<compile_context>
chip_gen: v5e
topology: v5e:2x2
jax: 0.10.0
libtpu: 0.0.40
codegen_flags: <defaults>
</compile_context>

<pallas_src>
import functools

import jax
import jax.numpy as jnp
from jax.experimental import pallas as pl
from jax.experimental.pallas import tpu as pltpu


# ------------------------------ fused kernel --------------------------------

def _unet_up_kernel(x0_ref, skip_ref, wup_ref, bup_ref, w1_ref, b1_ref,
                    w2_ref, b2_ref, w3_ref, b3_ref, o_ref,
                    x0p_ref, bufa_ref, bufb_ref, *, H, W, C, Cs):
    H2, W2 = 2 * H, 2 * W
    Cin = C + Cs
    f32 = jnp.float32

    # ---- zero-fill padded VMEM scratch (1-pixel borders must stay zero) ----
    x0p_ref[...] = jnp.zeros_like(x0p_ref)
    bufa_ref[...] = jnp.zeros_like(bufa_ref)
    bufb_ref[...] = jnp.zeros_like(bufb_ref)

    x0p_ref[1:H + 1, 1:W + 1, :] = x0_ref[0]
    # skip connection goes straight into the concat buffer, channels [C:]
    bufa_ref[1:H2 + 1, 1:W2 + 1, C:] = skip_ref[0]

    def im2col(ref, rows, cols, ch):
        # 3x3-neighborhood im2col of a padded (rows+2, cols+2, ch) buffer.
        return jnp.concatenate(
            [ref[dy:dy + rows, dx:dx + cols, :].reshape(rows * cols, ch)
             for dy in range(3) for dx in range(3)], axis=1)

    # ---- stage 1: ConvTranspose2d(k=4, s=2, p=1) via phase decomposition ---
    cols0 = im2col(x0p_ref, H, W, C)                                 # (H*W, 9C)
    phases = jnp.dot(cols0, wup_ref[...],
                     preferred_element_type=f32) + bup_ref[...]      # (H*W, 4C)
    # phases[:, p*C:(p+1)*C] is output phase p = py*2 + px.
    for px in range(2):
        pe = phases[:, px * C:(px + 1) * C].reshape(H, 1, W, C)        # py = 0
        po = phases[:, (2 + px) * C:(3 + px) * C].reshape(H, 1, W, C)  # py = 1
        # row interleave = cheap major-dim concat + reshape
        rows = jnp.concatenate([pe, po], axis=1).reshape(H2, W, C)
        # column interleave: short unrolled store loop into the concat buffer
        for k in range(W):
            bufa_ref[1:H2 + 1, 1 + 2 * k + px, 0:C] = rows[:, k, :]

    # ---- stages 2..4: three (3x3 conv + ReLU), one im2col matmul each ------
    c1 = im2col(bufa_ref, H2, W2, Cin)                            # (H2*W2, 9Cin)
    y = jnp.maximum(jnp.dot(c1, w1_ref[...], preferred_element_type=f32)
                    + b1_ref[...], 0.0)
    bufb_ref[1:H2 + 1, 1:W2 + 1, :] = y.reshape(H2, W2, C)

    c2 = im2col(bufb_ref, H2, W2, C)                              # (H2*W2, 9C)
    y = jnp.maximum(jnp.dot(c2, w2_ref[...], preferred_element_type=f32)
                    + b2_ref[...], 0.0)
    bufb_ref[1:H2 + 1, 1:W2 + 1, :] = y.reshape(H2, W2, C)

    c3 = im2col(bufb_ref, H2, W2, C)                              # (H2*W2, 9C)
    y = jnp.maximum(jnp.dot(c3, w3_ref[...], preferred_element_type=f32)
                    + b3_ref[...], 0.0)                           # (H2*W2, C)
    # lane-dense NCHW output slab: (C, H2*W2), last dim 256 >= 128 lanes.
    o_ref[0] = y.T.astype(o_ref.dtype)


def unet_up_pallas(x0, skip, wup, bup, w1, b1, w2, b2, w3, b3):
    """x0: (N,H,W,C) NHWC low-res feature; skip: (N,2H,2W,Cs) NHWC skip."""
    N, H, W, C = x0.shape
    _, H2, W2, Cs = skip.shape
    Cin = C + Cs
    kernel = functools.partial(_unet_up_kernel, H=H, W=W, C=C, Cs=Cs)
    full2d = lambda n: (0, 0)
    return pl.pallas_call(
        kernel,
        out_shape=jax.ShapeDtypeStruct((N, C, H2 * W2), x0.dtype),
        grid=(N,),
        in_specs=[
            pl.BlockSpec((1, H, W, C), lambda n: (n, 0, 0, 0)),
            pl.BlockSpec((1, H2, W2, Cs), lambda n: (n, 0, 0, 0)),
            pl.BlockSpec((9 * C, 4 * C), full2d),
            pl.BlockSpec((1, 4 * C), full2d),
            pl.BlockSpec((9 * Cin, C), full2d),
            pl.BlockSpec((1, C), full2d),
            pl.BlockSpec((9 * C, C), full2d),
            pl.BlockSpec((1, C), full2d),
            pl.BlockSpec((9 * C, C), full2d),
            pl.BlockSpec((1, C), full2d),
        ],
        out_specs=pl.BlockSpec((1, C, H2 * W2), lambda n: (n, 0, 0)),
        scratch_shapes=[
            pltpu.VMEM((H + 2, W + 2, C), jnp.float32),        # padded deconv in
            pltpu.VMEM((H2 + 2, W2 + 2, Cin), jnp.float32),    # padded concat buf
            pltpu.VMEM((H2 + 2, W2 + 2, C), jnp.float32),      # padded conv buf
        ],
        compiler_params=pltpu.CompilerParams(
            dimension_semantics=("parallel",)),
    )(x0, skip, wup, bup, w1, b1, w2, b2, w3, b3)


# ------------------------------- glue (XLA) ----------------------------------

def _pack_deconv_phase_weight(w_t):
    """torch ConvTranspose2d weight (Cin, Cout, 4, 4) -> (9*Cin, 4*Cout).

    Row order matches the in-kernel 3x3-neighborhood im2col [(ry,rx), cin];
    column block p = py*2 + px holds the weights of output phase (py, px).
    out[2m+py, 2k+px] = sum_{ry,rx,cin} x[m+ry-1, k+rx-1, cin] *
                        W[cin, :, 3-2*ry+py, 3-2*rx+px]   (when tap index valid)
    """
    Cin, Cout = w_t.shape[0], w_t.shape[1]
    wp = jnp.zeros((3, 3, Cin, 2, 2, Cout), w_t.dtype)
    for py in range(2):
        for ry in range(3):
            ky = 3 - 2 * ry + py
            if not 0 <= ky <= 3:
                continue
            for px in range(2):
                for rx in range(3):
                    kx = 3 - 2 * rx + px
                    if not 0 <= kx <= 3:
                        continue
                    wp = wp.at[ry, rx, :, py, px, :].set(w_t[:, :, ky, kx])
    return wp.reshape(9 * Cin, 4 * Cout)


def unet_up_forward(params, inputs0_nchw, *skips_nchw):
    """unetUp.forward: deconv upsample, channel-concat skips, 3x(conv3x3+ReLU)."""
    x0 = jnp.transpose(inputs0_nchw, (0, 2, 3, 1))                # NCHW -> NHWC
    skip_nchw = (skips_nchw[0] if len(skips_nchw) == 1
                 else jnp.concatenate(skips_nchw, axis=1))        # torch.cat dim=1
    skip = jnp.transpose(skip_nchw, (0, 2, 3, 1))
    N, H, W, C = x0.shape
    Cin = C + skip.shape[-1]

    wup = _pack_deconv_phase_weight(params["up_w"])               # (9C, 4C)
    bup = jnp.tile(params["up_b"], 4).reshape(1, 4 * C)
    w1 = jnp.transpose(params["conv1_w"], (2, 3, 1, 0)).reshape(9 * Cin, C)
    w2 = jnp.transpose(params["conv2_w"], (2, 3, 1, 0)).reshape(9 * C, C)
    w3 = jnp.transpose(params["conv3_w"], (2, 3, 1, 0)).reshape(9 * C, C)
    b1 = params["conv1_b"].reshape(1, C)
    b2 = params["conv2_b"].reshape(1, C)
    b3 = params["conv3_b"].reshape(1, C)

    out = unet_up_pallas(x0, skip, wup, bup, w1, b1, w2, b2, w3, b3)
    return out.reshape(N, C, 2 * H, 2 * W)                        # NCHW (free)


# --------------------------- pure-JAX reference ------------------------------

def reference_forward(params, inputs0, *skips):
    dn = ("NCHW", "OIHW", "NCHW")
    # transposed conv as lhs-dilated conv with flipped kernel
    w_t = jnp.transpose(params["up_w"], (1, 0, 2, 3))[:, :, ::-1, ::-1]
    x = jax.lax.conv_general_dilated(
        inputs0, w_t, window_strides=(1, 1), padding=[(2, 2), (2, 2)],
        lhs_dilation=(2, 2), dimension_numbers=dn)
    x = x + params["up_b"][None, :, None, None]
    x = jnp.concatenate([x] + list(skips), axis=1)
    for i in range(1, 4):
        w = params[f"conv{i}_w"]
        b = params[f"conv{i}_b"]
        x = jax.lax.conv_general_dilated(
            x, w, window_strides=(1, 1), padding=[(1, 1), (1, 1)],
            dimension_numbers=dn)
        x = jnp.maximum(x + b[None, :, None, None], 0.0)
    return x


# ---------------------------------- main -------------------------------------

def make_params(key, in_size, out_size):
    ks = jax.random.split(key, 8)

    def u(k, shape, fan_in):
        bound = 1.0 / jnp.sqrt(fan_in)
        return jax.random.uniform(k, shape, jnp.float32, -bound, bound)

    return {
        # ConvTranspose2d(out_size, out_size, 4, 2, 1): weight (Cin, Cout, 4, 4)
        "up_w": u(ks[0], (out_size, out_size, 4, 4), out_size * 16),
        "up_b": u(ks[1], (out_size,), out_size * 16),
        # unetConv2(in_size, out_size, is_batchnorm=False), n=3, ks=3
        "conv1_w": u(ks[2], (out_size, in_size, 3, 3), in_size * 9),
        "conv1_b": u(ks[3], (out_size,), in_size * 9),
        "conv2_w": u(ks[4], (out_size, out_size, 3, 3), out_size * 9),
        "conv2_b": u(ks[5], (out_size,), out_size * 9),
        "conv3_w": u(ks[6], (out_size, out_size, 3, 3), out_size * 9),
        "conv3_b": u(ks[7], (out_size,), out_size * 9),
    }


if __name__ == "__main__":
    key = jax.random.PRNGKey(0)
    k_p, k_x, k_s = jax.random.split(key, 3)

    in_size, out_size = 16, 8         # n_concat=2 -> one skip connection
    N, H, W = 2, 8, 8                 # inputs0 is the low-res decoder feature

    params = make_params(k_p, in_size, out_size)
    inputs0 = jax.random.normal(k_x, (N, out_size, H, W), jnp.float32)     # NCHW
    skip = jax.random.normal(k_s, (N, in_size - out_size, 2 * H, 2 * W),
                             jnp.float32)                                  # NCHW

    fwd = jax.jit(unet_up_forward)
    out = jax.block_until_ready(fwd(params, inputs0, skip))
    ref = jax.block_until_ready(reference_forward(params, inputs0, skip))

    assert out.shape == (N, out_size, 2 * H, 2 * W), out.shape
    assert jnp.allclose(out, ref, atol=5e-3, rtol=5e-3), (
        float(jnp.max(jnp.abs(out - ref))))
    print("KERNEL_OK")
</pallas_src>

<mosaic_0001>
module attributes {stable_mosaic.version = 11 : i64} {
  func.func @_unet_up_kernel(%arg0: i32, %arg1: memref<1x8x8x8xf32, #tpu.memory_space<vmem>>, %arg2: memref<1x16x16x8xf32, #tpu.memory_space<vmem>>, %arg3: memref<72x32xf32, #tpu.memory_space<vmem>>, %arg4: memref<1x32xf32, #tpu.memory_space<vmem>>, %arg5: memref<144x8xf32, #tpu.memory_space<vmem>>, %arg6: memref<1x8xf32, #tpu.memory_space<vmem>>, %arg7: memref<72x8xf32, #tpu.memory_space<vmem>>, %arg8: memref<1x8xf32, #tpu.memory_space<vmem>>, %arg9: memref<72x8xf32, #tpu.memory_space<vmem>>, %arg10: memref<1x8xf32, #tpu.memory_space<vmem>>, %arg11: memref<1x8x256xf32, #tpu.memory_space<vmem>>, %arg12: memref<10x10x8xf32, #tpu.memory_space<vmem>>, %arg13: memref<18x18x16xf32, #tpu.memory_space<vmem>>, %arg14: memref<18x18x8xf32, #tpu.memory_space<vmem>>) attributes {dimension_semantics = [#tpu.dimension_semantics<parallel>], iteration_bounds = array<i64: 2>, scalar_prefetch = 0 : i64, scratch_operands = 3 : i64, tpu.core_type = #tpu.core_type<tc>, window_params = [{transform_indices = @transform_0, window_bounds = array<i64: 1, 8, 8, 8>}, {transform_indices = @transform_1, window_bounds = array<i64: 1, 16, 16, 8>}, {pipeline_mode = #tpu.pipeline_mode<synchronous>, transform_indices = @transform_2, window_bounds = array<i64: 72, 32>}, {pipeline_mode = #tpu.pipeline_mode<synchronous>, transform_indices = @transform_3, window_bounds = array<i64: 1, 32>}, {pipeline_mode = #tpu.pipeline_mode<synchronous>, transform_indices = @transform_4, window_bounds = array<i64: 144, 8>}, {pipeline_mode = #tpu.pipeline_mode<synchronous>, transform_indices = @transform_5, window_bounds = array<i64: 1, 8>}, {pipeline_mode = #tpu.pipeline_mode<synchronous>, transform_indices = @transform_6, window_bounds = array<i64: 72, 8>}, {pipeline_mode = #tpu.pipeline_mode<synchronous>, transform_indices = @transform_7, window_bounds = array<i64: 1, 8>}, {pipeline_mode = #tpu.pipeline_mode<synchronous>, transform_indices = @transform_8, window_bounds = array<i64: 72, 8>}, {pipeline_mode = #tpu.pipeline_mode<synchronous>, transform_indices = @transform_9, window_bounds = array<i64: 1, 8>}, {transform_indices = @transform_10, window_bounds = array<i64: 1, 8, 256>}]} {
    %cst = arith.constant 0.000000e+00 : f32
    %0 = vector.broadcast %cst : f32 to vector<10x10x8xf32>
    %c0 = arith.constant 0 : index
    %c0_0 = arith.constant 0 : index
    %c0_1 = arith.constant 0 : index
    %1 = vector.load %arg12[%c0, %c0_0, %c0_1] : memref<10x10x8xf32, #tpu.memory_space<vmem>>, vector<10x10x8xf32>
    tpu.vector_store %arg12[%c0, %c0_0, %c0_1], %0 {strides = array<i32>} : memref<10x10x8xf32, #tpu.memory_space<vmem>>, vector<10x10x8xf32>,
    %cst_2 = arith.constant 0.000000e+00 : f32
    %2 = vector.broadcast %cst_2 : f32 to vector<18x18x16xf32>
    %c0_3 = arith.constant 0 : index
    %c0_4 = arith.constant 0 : index
    %c0_5 = arith.constant 0 : index
    %3 = vector.load %arg13[%c0_3, %c0_4, %c0_5] : memref<18x18x16xf32, #tpu.memory_space<vmem>>, vector<18x18x16xf32>
    tpu.vector_store %arg13[%c0_3, %c0_4, %c0_5], %2 {strides = array<i32>} : memref<18x18x16xf32, #tpu.memory_space<vmem>>, vector<18x18x16xf32>,
    %cst_6 = arith.constant 0.000000e+00 : f32
    %4 = vector.broadcast %cst_6 : f32 to vector<18x18x8xf32>
    %c0_7 = arith.constant 0 : index
    %c0_8 = arith.constant 0 : index
    %c0_9 = arith.constant 0 : index
    %5 = vector.load %arg14[%c0_7, %c0_8, %c0_9] : memref<18x18x8xf32, #tpu.memory_space<vmem>>, vector<18x18x8xf32>
    tpu.vector_store %arg14[%c0_7, %c0_8, %c0_9], %4 {strides = array<i32>} : memref<18x18x8xf32, #tpu.memory_space<vmem>>, vector<18x18x8xf32>,
    %c0_10 = arith.constant 0 : index
    %c0_11 = arith.constant 0 : index
    %c0_12 = arith.constant 0 : index
    %c0_13 = arith.constant 0 : index
    %6 = vector.load %arg1[%c0_10, %c0_11, %c0_12, %c0_13] : memref<1x8x8x8xf32, #tpu.memory_space<vmem>>, vector<1x8x8x8xf32>
    %7 = vector.shape_cast %6 : vector<1x8x8x8xf32> to vector<8x8x8xf32>
    %c1 = arith.constant 1 : index
    %c1_14 = arith.constant 1 : index
    %c0_15 = arith.constant 0 : index
    %8 = vector.load %arg12[%c1, %c1_14, %c0_15] : memref<10x10x8xf32, #tpu.memory_space<vmem>>, vector<8x8x8xf32>
    tpu.vector_store %arg12[%c1, %c1_14, %c0_15], %7 {strides = array<i32>} : memref<10x10x8xf32, #tpu.memory_space<vmem>>, vector<8x8x8xf32>,
    %c0_16 = arith.constant 0 : index
    %c0_17 = arith.constant 0 : index
    %c0_18 = arith.constant 0 : index
    %c0_19 = arith.constant 0 : index
    %9 = vector.load %arg2[%c0_16, %c0_17, %c0_18, %c0_19] : memref<1x16x16x8xf32, #tpu.memory_space<vmem>>, vector<1x16x16x8xf32>
    %10 = vector.shape_cast %9 : vector<1x16x16x8xf32> to vector<16x16x8xf32>
    %c1_20 = arith.constant 1 : index
    %c1_21 = arith.constant 1 : index
    %c8 = arith.constant 8 : index
    %11 = vector.load %arg13[%c1_20, %c1_21, %c8] : memref<18x18x16xf32, #tpu.memory_space<vmem>>, vector<16x16x8xf32>
    tpu.vector_store %arg13[%c1_20, %c1_21, %c8], %10 {strides = array<i32>} : memref<18x18x16xf32, #tpu.memory_space<vmem>>, vector<16x16x8xf32>,
    %c0_22 = arith.constant 0 : index
    %c0_23 = arith.constant 0 : index
    %c0_24 = arith.constant 0 : index
    %12 = vector.load %arg12[%c0_22, %c0_23, %c0_24] : memref<10x10x8xf32, #tpu.memory_space<vmem>>, vector<8x8x8xf32>
    %13 = vector.shape_cast %12 : vector<8x8x8xf32> to vector<64x8xf32>
    %c0_25 = arith.constant 0 : index
    %c1_26 = arith.constant 1 : index
    %c0_27 = arith.constant 0 : index
    %14 = vector.load %arg12[%c0_25, %c1_26, %c0_27] : memref<10x10x8xf32, #tpu.memory_space<vmem>>, vector<8x8x8xf32>
    %15 = vector.shape_cast %14 : vector<8x8x8xf32> to vector<64x8xf32>
    %c0_28 = arith.constant 0 : index
    %c2 = arith.constant 2 : index
    %c0_29 = arith.constant 0 : index
    %16 = vector.load %arg12[%c0_28, %c2, %c0_29] : memref<10x10x8xf32, #tpu.memory_space<vmem>>, vector<8x8x8xf32>
    %17 = vector.shape_cast %16 : vector<8x8x8xf32> to vector<64x8xf32>
    %c1_30 = arith.constant 1 : index
    %c0_31 = arith.constant 0 : index
    %c0_32 = arith.constant 0 : index
    %18 = vector.load %arg12[%c1_30, %c0_31, %c0_32] : memref<10x10x8xf32, #tpu.memory_space<vmem>>, vector<8x8x8xf32>
    %19 = vector.shape_cast %18 : vector<8x8x8xf32> to vector<64x8xf32>
    %c1_33 = arith.constant 1 : index
    %c1_34 = arith.constant 1 : index
    %c0_35 = arith.constant 0 : index
    %20 = vector.load %arg12[%c1_33, %c1_34, %c0_35] : memref<10x10x8xf32, #tpu.memory_space<vmem>>, vector<8x8x8xf32>
    %21 = vector.shape_cast %20 : vector<8x8x8xf32> to vector<64x8xf32>
    %c1_36 = arith.constant 1 : index
    %c2_37 = arith.constant 2 : index
    %c0_38 = arith.constant 0 : index
    %22 = vector.load %arg12[%c1_36, %c2_37, %c0_38] : memref<10x10x8xf32, #tpu.memory_space<vmem>>, vector<8x8x8xf32>
    %23 = vector.shape_cast %22 : vector<8x8x8xf32> to vector<64x8xf32>
    %c2_39 = arith.constant 2 : index
    %c0_40 = arith.constant 0 : index
    %c0_41 = arith.constant 0 : index
    %24 = vector.load %arg12[%c2_39, %c0_40, %c0_41] : memref<10x10x8xf32, #tpu.memory_space<vmem>>, vector<8x8x8xf32>
    %25 = vector.shape_cast %24 : vector<8x8x8xf32> to vector<64x8xf32>
    %c2_42 = arith.constant 2 : index
    %c1_43 = arith.constant 1 : index
    %c0_44 = arith.constant 0 : index
    %26 = vector.load %arg12[%c2_42, %c1_43, %c0_44] : memref<10x10x8xf32, #tpu.memory_space<vmem>>, vector<8x8x8xf32>
    %27 = vector.shape_cast %26 : vector<8x8x8xf32> to vector<64x8xf32>
    %c2_45 = arith.constant 2 : index
    %c2_46 = arith.constant 2 : index
    %c0_47 = arith.constant 0 : index
    %28 = vector.load %arg12[%c2_45, %c2_46, %c0_47] : memref<10x10x8xf32, #tpu.memory_space<vmem>>, vector<8x8x8xf32>
    %29 = vector.shape_cast %28 : vector<8x8x8xf32> to vector<64x8xf32>
    %30 = tpu.concatenate %13, %15, %17, %19, %21, %23, %25, %27, %29 in 1 : vector<64x8xf32>, vector<64x8xf32>, vector<64x8xf32>, vector<64x8xf32>, vector<64x8xf32>, vector<64x8xf32>, vector<64x8xf32>, vector<64x8xf32>, vector<64x8xf32> -> vector<64x72xf32>
    %c0_48 = arith.constant 0 : index
    %c0_49 = arith.constant 0 : index
    %31 = vector.load %arg3[%c0_48, %c0_49] : memref<72x32xf32, #tpu.memory_space<vmem>>, vector<72x32xf32>
    %cst_50 = arith.constant dense<0.000000e+00> : vector<64x32xf32>
    %32 = tpu.matmul %30, %31, %cst_50 {dimension_numbers = #tpu.dot_dimension_numbers<[1], [0], [0], [1], [0, 0, 1, 1], [], []>} : vector<64x72xf32>, vector<72x32xf32>, vector<64x32xf32> -> vector<64x32xf32>
    %c0_51 = arith.constant 0 : index
    %c0_52 = arith.constant 0 : index
    %33 = vector.load %arg4[%c0_51, %c0_52] : memref<1x32xf32, #tpu.memory_space<vmem>>, vector<1x32xf32>
    %34 = vector.broadcast %33 : vector<1x32xf32> to vector<64x32xf32>
    %35 = arith.addf %32, %34 : vector<64x32xf32>
    %36 = vector.extract_strided_slice %35 {offsets = [0, 0], sizes = [64, 8], strides = [1, 1]} : vector<64x32xf32> to vector<64x8xf32>
    %37 = vector.shape_cast %36 : vector<64x8xf32> to vector<8x1x8x8xf32>
    %38 = vector.extract_strided_slice %35 {offsets = [0, 16], sizes = [64, 8], strides = [1, 1]} : vector<64x32xf32> to vector<64x8xf32>
    %39 = vector.shape_cast %38 : vector<64x8xf32> to vector<8x1x8x8xf32>
    %40 = tpu.concatenate %37, %39 in 1 : vector<8x1x8x8xf32>, vector<8x1x8x8xf32> -> vector<8x2x8x8xf32>
    %41 = vector.shape_cast %40 : vector<8x2x8x8xf32> to vector<16x8x8xf32>
    %42 = vector.extract_strided_slice %41 {offsets = [0, 0, 0], sizes = [16, 1, 8], strides = [1, 1, 1]} : vector<16x8x8xf32> to vector<16x1x8xf32>
    %43 = vector.shape_cast %42 : vector<16x1x8xf32> to vector<16x8xf32>
    %c1_53 = arith.constant 1 : index
    %c1_54 = arith.constant 1 : index
    %c0_55 = arith.constant 0 : index
    %44 = vector.load %arg13[%c1_53, %c1_54, %c0_55] : memref<18x18x16xf32, #tpu.memory_space<vmem>>, vector<16x1x8xf32>
    %45 = vector.shape_cast %44 : vector<16x1x8xf32> to vector<16x8xf32>
    %46 = vector.shape_cast %43 : vector<16x8xf32> to vector<16x1x8xf32>
    tpu.vector_store %arg13[%c1_53, %c1_54, %c0_55], %46 {strides = array<i32>} : memref<18x18x16xf32, #tpu.memory_space<vmem>>, vector<16x1x8xf32>,
    %47 = vector.extract_strided_slice %41 {offsets = [0, 1, 0], sizes = [16, 1, 8], strides = [1, 1, 1]} : vector<16x8x8xf32> to vector<16x1x8xf32>
    %48 = vector.shape_cast %47 : vector<16x1x8xf32> to vector<16x8xf32>
    %c1_56 = arith.constant 1 : index
    %c3 = arith.constant 3 : index
    %c0_57 = arith.constant 0 : index
    %49 = vector.load %arg13[%c1_56, %c3, %c0_57] : memref<18x18x16xf32, #tpu.memory_space<vmem>>, vector<16x1x8xf32>
    %50 = vector.shape_cast %49 : vector<16x1x8xf32> to vector<16x8xf32>
    %51 = vector.shape_cast %48 : vector<16x8xf32> to vector<16x1x8xf32>
    tpu.vector_store %arg13[%c1_56, %c3, %c0_57], %51 {strides = array<i32>} : memref<18x18x16xf32, #tpu.memory_space<vmem>>, vector<16x1x8xf32>,
    %52 = vector.extract_strided_slice %41 {offsets = [0, 2, 0], sizes = [16, 1, 8], strides = [1, 1, 1]} : vector<16x8x8xf32> to vector<16x1x8xf32>
    %53 = vector.shape_cast %52 : vector<16x1x8xf32> to vector<16x8xf32>
    %c1_58 = arith.constant 1 : index
    %c5 = arith.constant 5 : index
    %c0_59 = arith.constant 0 : index
    %54 = vector.load %arg13[%c1_58, %c5, %c0_59] : memref<18x18x16xf32, #tpu.memory_space<vmem>>, vector<16x1x8xf32>
    %55 = vector.shape_cast %54 : vector<16x1x8xf32> to vector<16x8xf32>
    %56 = vector.shape_cast %53 : vector<16x8xf32> to vector<16x1x8xf32>
    tpu.vector_store %arg13[%c1_58, %c5, %c0_59], %56 {strides = array<i32>} : memref<18x18x16xf32, #tpu.memory_space<vmem>>, vector<16x1x8xf32>,
    %57 = vector.extract_strided_slice %41 {offsets = [0, 3, 0], sizes = [16, 1, 8], strides = [1, 1, 1]} : vector<16x8x8xf32> to vector<16x1x8xf32>
    %58 = vector.shape_cast %57 : vector<16x1x8xf32> to vector<16x8xf32>
    %c1_60 = arith.constant 1 : index
    %c7 = arith.constant 7 : index
    %c0_61 = arith.constant 0 : index
    %59 = vector.load %arg13[%c1_60, %c7, %c0_61] : memref<18x18x16xf32, #tpu.memory_space<vmem>>, vector<16x1x8xf32>
    %60 = vector.shape_cast %59 : vector<16x1x8xf32> to vector<16x8xf32>
    %61 = vector.shape_cast %58 : vector<16x8xf32> to vector<16x1x8xf32>
    tpu.vector_store %arg13[%c1_60, %c7, %c0_61], %61 {strides = array<i32>} : memref<18x18x16xf32, #tpu.memory_space<vmem>>, vector<16x1x8xf32>,
    %62 = vector.extract_strided_slice %41 {offsets = [0, 4, 0], sizes = [16, 1, 8], strides = [1, 1, 1]} : vector<16x8x8xf32> to vector<16x1x8xf32>
    %63 = vector.shape_cast %62 : vector<16x1x8xf32> to vector<16x8xf32>
    %c1_62 = arith.constant 1 : index
    %c9 = arith.constant 9 : index
    %c0_63 = arith.constant 0 : index
    %64 = vector.load %arg13[%c1_62, %c9, %c0_63] : memref<18x18x16xf32, #tpu.memory_space<vmem>>, vector<16x1x8xf32>
    %65 = vector.shape_cast %64 : vector<16x1x8xf32> to vector<16x8xf32>
    %66 = vector.shape_cast %63 : vector<16x8xf32> to vector<16x1x8xf32>
    tpu.vector_store %arg13[%c1_62, %c9, %c0_63], %66 {strides = array<i32>} : memref<18x18x16xf32, #tpu.memory_space<vmem>>, vector<16x1x8xf32>,
    %67 = vector.extract_strided_slice %41 {offsets = [0, 5, 0], sizes = [16, 1, 8], strides = [1, 1, 1]} : vector<16x8x8xf32> to vector<16x1x8xf32>
    %68 = vector.shape_cast %67 : vector<16x1x8xf32> to vector<16x8xf32>
    %c1_64 = arith.constant 1 : index
    %c11 = arith.constant 11 : index
    %c0_65 = arith.constant 0 : index
    %69 = vector.load %arg13[%c1_64, %c11, %c0_65] : memref<18x18x16xf32, #tpu.memory_space<vmem>>, vector<16x1x8xf32>
    %70 = vector.shape_cast %69 : vector<16x1x8xf32> to vector<16x8xf32>
    %71 = vector.shape_cast %68 : vector<16x8xf32> to vector<16x1x8xf32>
    tpu.vector_store %arg13[%c1_64, %c11, %c0_65], %71 {strides = array<i32>} : memref<18x18x16xf32, #tpu.memory_space<vmem>>, vector<16x1x8xf32>,
    %72 = vector.extract_strided_slice %41 {offsets = [0, 6, 0], sizes = [16, 1, 8], strides = [1, 1, 1]} : vector<16x8x8xf32> to vector<16x1x8xf32>
    %73 = vector.shape_cast %72 : vector<16x1x8xf32> to vector<16x8xf32>
    %c1_66 = arith.constant 1 : index
    %c13 = arith.constant 13 : index
    %c0_67 = arith.constant 0 : index
    %74 = vector.load %arg13[%c1_66, %c13, %c0_67] : memref<18x18x16xf32, #tpu.memory_space<vmem>>, vector<16x1x8xf32>
    %75 = vector.shape_cast %74 : vector<16x1x8xf32> to vector<16x8xf32>
    %76 = vector.shape_cast %73 : vector<16x8xf32> to vector<16x1x8xf32>
    tpu.vector_store %arg13[%c1_66, %c13, %c0_67], %76 {strides = array<i32>} : memref<18x18x16xf32, #tpu.memory_space<vmem>>, vector<16x1x8xf32>,
    %77 = vector.extract_strided_slice %41 {offsets = [0, 7, 0], sizes = [16, 1, 8], strides = [1, 1, 1]} : vector<16x8x8xf32> to vector<16x1x8xf32>
    %78 = vector.shape_cast %77 : vector<16x1x8xf32> to vector<16x8xf32>
    %c1_68 = arith.constant 1 : index
    %c15 = arith.constant 15 : index
    %c0_69 = arith.constant 0 : index
    %79 = vector.load %arg13[%c1_68, %c15, %c0_69] : memref<18x18x16xf32, #tpu.memory_space<vmem>>, vector<16x1x8xf32>
    %80 = vector.shape_cast %79 : vector<16x1x8xf32> to vector<16x8xf32>
    %81 = vector.shape_cast %78 : vector<16x8xf32> to vector<16x1x8xf32>
    tpu.vector_store %arg13[%c1_68, %c15, %c0_69], %81 {strides = array<i32>} : memref<18x18x16xf32, #tpu.memory_space<vmem>>, vector<16x1x8xf32>,
    %82 = vector.extract_strided_slice %35 {offsets = [0, 8], sizes = [64, 8], strides = [1, 1]} : vector<64x32xf32> to vector<64x8xf32>
    %83 = vector.shape_cast %82 : vector<64x8xf32> to vector<8x1x8x8xf32>
    %84 = vector.extract_strided_slice %35 {offsets = [0, 24], sizes = [64, 8], strides = [1, 1]} : vector<64x32xf32> to vector<64x8xf32>
    %85 = vector.shape_cast %84 : vector<64x8xf32> to vector<8x1x8x8xf32>
    %86 = tpu.concatenate %83, %85 in 1 : vector<8x1x8x8xf32>, vector<8x1x8x8xf32> -> vector<8x2x8x8xf32>
    %87 = vector.shape_cast %86 : vector<8x2x8x8xf32> to vector<16x8x8xf32>
    %88 = vector.extract_strided_slice %87 {offsets = [0, 0, 0], sizes = [16, 1, 8], strides = [1, 1, 1]} : vector<16x8x8xf32> to vector<16x1x8xf32>
    %89 = vector.shape_cast %88 : vector<16x1x8xf32> to vector<16x8xf32>
    %c1_70 = arith.constant 1 : index
    %c2_71 = arith.constant 2 : index
    %c0_72 = arith.constant 0 : index
    %90 = vector.load %arg13[%c1_70, %c2_71, %c0_72] : memref<18x18x16xf32, #tpu.memory_space<vmem>>, vector<16x1x8xf32>
    %91 = vector.shape_cast %90 : vector<16x1x8xf32> to vector<16x8xf32>
    %92 = vector.shape_cast %89 : vector<16x8xf32> to vector<16x1x8xf32>
    tpu.vector_store %arg13[%c1_70, %c2_71, %c0_72], %92 {strides = array<i32>} : memref<18x18x16xf32, #tpu.memory_space<vmem>>, vector<16x1x8xf32>,
    %93 = vector.extract_strided_slice %87 {offsets = [0, 1, 0], sizes = [16, 1, 8], strides = [1, 1, 1]} : vector<16x8x8xf32> to vector<16x1x8xf32>
    %94 = vector.shape_cast %93 : vector<16x1x8xf32> to vector<16x8xf32>
    %c1_73 = arith.constant 1 : index
    %c4 = arith.constant 4 : index
    %c0_74 = arith.constant 0 : index
    %95 = vector.load %arg13[%c1_73, %c4, %c0_74] : memref<18x18x16xf32, #tpu.memory_space<vmem>>, vector<16x1x8xf32>
    %96 = vector.shape_cast %95 : vector<16x1x8xf32> to vector<16x8xf32>
    %97 = vector.shape_cast %94 : vector<16x8xf32> to vector<16x1x8xf32>
    tpu.vector_store %arg13[%c1_73, %c4, %c0_74], %97 {strides = array<i32>} : memref<18x18x16xf32, #tpu.memory_space<vmem>>, vector<16x1x8xf32>,
    %98 = vector.extract_strided_slice %87 {offsets = [0, 2, 0], sizes = [16, 1, 8], strides = [1, 1, 1]} : vector<16x8x8xf32> to vector<16x1x8xf32>
    %99 = vector.shape_cast %98 : vector<16x1x8xf32> to vector<16x8xf32>
    %c1_75 = arith.constant 1 : index
    %c6 = arith.constant 6 : index
    %c0_76 = arith.constant 0 : index
    %100 = vector.load %arg13[%c1_75, %c6, %c0_76] : memref<18x18x16xf32, #tpu.memory_space<vmem>>, vector<16x1x8xf32>
    %101 = vector.shape_cast %100 : vector<16x1x8xf32> to vector<16x8xf32>
    %102 = vector.shape_cast %99 : vector<16x8xf32> to vector<16x1x8xf32>
    tpu.vector_store %arg13[%c1_75, %c6, %c0_76], %102 {strides = array<i32>} : memref<18x18x16xf32, #tpu.memory_space<vmem>>, vector<16x1x8xf32>,
    %103 = vector.extract_strided_slice %87 {offsets = [0, 3, 0], sizes = [16, 1, 8], strides = [1, 1, 1]} : vector<16x8x8xf32> to vector<16x1x8xf32>
    %104 = vector.shape_cast %103 : vector<16x1x8xf32> to vector<16x8xf32>
    %c1_77 = arith.constant 1 : index
    %c8_78 = arith.constant 8 : index
    %c0_79 = arith.constant 0 : index
    %105 = vector.load %arg13[%c1_77, %c8_78, %c0_79] : memref<18x18x16xf32, #tpu.memory_space<vmem>>, vector<16x1x8xf32>
    %106 = vector.shape_cast %105 : vector<16x1x8xf32> to vector<16x8xf32>
    %107 = vector.shape_cast %104 : vector<16x8xf32> to vector<16x1x8xf32>
    tpu.vector_store %arg13[%c1_77, %c8_78, %c0_79], %107 {strides = array<i32>} : memref<18x18x16xf32, #tpu.memory_space<vmem>>, vector<16x1x8xf32>,
    %108 = vector.extract_strided_slice %87 {offsets = [0, 4, 0], sizes = [16, 1, 8], strides = [1, 1, 1]} : vector<16x8x8xf32> to vector<16x1x8xf32>
    %109 = vector.shape_cast %108 : vector<16x1x8xf32> to vector<16x8xf32>
    %c1_80 = arith.constant 1 : index
    %c10 = arith.constant 10 : index
    %c0_81 = arith.constant 0 : index
    %110 = vector.load %arg13[%c1_80, %c10, %c0_81] : memref<18x18x16xf32, #tpu.memory_space<vmem>>, vector<16x1x8xf32>
    %111 = vector.shape_cast %110 : vector<16x1x8xf32> to vector<16x8xf32>
    %112 = vector.shape_cast %109 : vector<16x8xf32> to vector<16x1x8xf32>
    tpu.vector_store %arg13[%c1_80, %c10, %c0_81], %112 {strides = array<i32>} : memref<18x18x16xf32, #tpu.memory_space<vmem>>, vector<16x1x8xf32>,
    %113 = vector.extract_strided_slice %87 {offsets = [0, 5, 0], sizes = [16, 1, 8], strides = [1, 1, 1]} : vector<16x8x8xf32> to vector<16x1x8xf32>
    %114 = vector.shape_cast %113 : vector<16x1x8xf32> to vector<16x8xf32>
    %c1_82 = arith.constant 1 : index
    %c12 = arith.constant 12 : index
    %c0_83 = arith.constant 0 : index
    %115 = vector.load %arg13[%c1_82, %c12, %c0_83] : memref<18x18x16xf32, #tpu.memory_space<vmem>>, vector<16x1x8xf32>
    %116 = vector.shape_cast %115 : vector<16x1x8xf32> to vector<16x8xf32>
    %117 = vector.shape_cast %114 : vector<16x8xf32> to vector<16x1x8xf32>
    tpu.vector_store %arg13[%c1_82, %c12, %c0_83], %117 {strides = array<i32>} : memref<18x18x16xf32, #tpu.memory_space<vmem>>, vector<16x1x8xf32>,
    %118 = vector.extract_strided_slice %87 {offsets = [0, 6, 0], sizes = [16, 1, 8], strides = [1, 1, 1]} : vector<16x8x8xf32> to vector<16x1x8xf32>
    %119 = vector.shape_cast %118 : vector<16x1x8xf32> to vector<16x8xf32>
    %c1_84 = arith.constant 1 : index
    %c14 = arith.constant 14 : index
    %c0_85 = arith.constant 0 : index
    %120 = vector.load %arg13[%c1_84, %c14, %c0_85] : memref<18x18x16xf32, #tpu.memory_space<vmem>>, vector<16x1x8xf32>
    %121 = vector.shape_cast %120 : vector<16x1x8xf32> to vector<16x8xf32>
    %122 = vector.shape_cast %119 : vector<16x8xf32> to vector<16x1x8xf32>
    tpu.vector_store %arg13[%c1_84, %c14, %c0_85], %122 {strides = array<i32>} : memref<18x18x16xf32, #tpu.memory_space<vmem>>, vector<16x1x8xf32>,
    %123 = vector.extract_strided_slice %87 {offsets = [0, 7, 0], sizes = [16, 1, 8], strides = [1, 1, 1]} : vector<16x8x8xf32> to vector<16x1x8xf32>
    %124 = vector.shape_cast %123 : vector<16x1x8xf32> to vector<16x8xf32>
    %c1_86 = arith.constant 1 : index
    %c16 = arith.constant 16 : index
    %c0_87 = arith.constant 0 : index
    %125 = vector.load %arg13[%c1_86, %c16, %c0_87] : memref<18x18x16xf32, #tpu.memory_space<vmem>>, vector<16x1x8xf32>
    %126 = vector.shape_cast %125 : vector<16x1x8xf32> to vector<16x8xf32>
    %127 = vector.shape_cast %124 : vector<16x8xf32> to vector<16x1x8xf32>
    tpu.vector_store %arg13[%c1_86, %c16, %c0_87], %127 {strides = array<i32>} : memref<18x18x16xf32, #tpu.memory_space<vmem>>, vector<16x1x8xf32>,
    %c0_88 = arith.constant 0 : index
    %c0_89 = arith.constant 0 : index
    %c0_90 = arith.constant 0 : index
    %128 = vector.load %arg13[%c0_88, %c0_89, %c0_90] : memref<18x18x16xf32, #tpu.memory_space<vmem>>, vector<16x16x16xf32>
    %129 = vector.shape_cast %128 : vector<16x16x16xf32> to vector<256x16xf32>
    %c0_91 = arith.constant 0 : index
    %c1_92 = arith.constant 1 : index
    %c0_93 = arith.constant 0 : index
    %130 = vector.load %arg13[%c0_91, %c1_92, %c0_93] : memref<18x18x16xf32, #tpu.memory_space<vmem>>, vector<16x16x16xf32>
    %131 = vector.shape_cast %130 : vector<16x16x16xf32> to vector<256x16xf32>
    %c0_94 = arith.constant 0 : index
    %c2_95 = arith.constant 2 : index
    %c0_96 = arith.constant 0 : index
    %132 = vector.load %arg13[%c0_94, %c2_95, %c0_96] : memref<18x18x16xf32, #tpu.memory_space<vmem>>, vector<16x16x16xf32>
    %133 = vector.shape_cast %132 : vector<16x16x16xf32> to vector<256x16xf32>
    %c1_97 = arith.constant 1 : index
    %c0_98 = arith.constant 0 : index
    %c0_99 = arith.constant 0 : index
    %134 = vector.load %arg13[%c1_97, %c0_98, %c0_99] : memref<18x18x16xf32, #tpu.memory_space<vmem>>, vector<16x16x16xf32>
    %135 = vector.shape_cast %134 : vector<16x16x16xf32> to vector<256x16xf32>
    %c1_100 = arith.constant 1 : index
    %c1_101 = arith.constant 1 : index
    %c0_102 = arith.constant 0 : index
    %136 = vector.load %arg13[%c1_100, %c1_101, %c0_102] : memref<18x18x16xf32, #tpu.memory_space<vmem>>, vector<16x16x16xf32>
    %137 = vector.shape_cast %136 : vector<16x16x16xf32> to vector<256x16xf32>
    %c1_103 = arith.constant 1 : index
    %c2_104 = arith.constant 2 : index
    %c0_105 = arith.constant 0 : index
    %138 = vector.load %arg13[%c1_103, %c2_104, %c0_105] : memref<18x18x16xf32, #tpu.memory_space<vmem>>, vector<16x16x16xf32>
    %139 = vector.shape_cast %138 : vector<16x16x16xf32> to vector<256x16xf32>
    %c2_106 = arith.constant 2 : index
    %c0_107 = arith.constant 0 : index
    %c0_108 = arith.constant 0 : index
    %140 = vector.load %arg13[%c2_106, %c0_107, %c0_108] : memref<18x18x16xf32, #tpu.memory_space<vmem>>, vector<16x16x16xf32>
    %141 = vector.shape_cast %140 : vector<16x16x16xf32> to vector<256x16xf32>
    %c2_109 = arith.constant 2 : index
    %c1_110 = arith.constant 1 : index
    %c0_111 = arith.constant 0 : index
    %142 = vector.load %arg13[%c2_109, %c1_110, %c0_111] : memref<18x18x16xf32, #tpu.memory_space<vmem>>, vector<16x16x16xf32>
    %143 = vector.shape_cast %142 : vector<16x16x16xf32> to vector<256x16xf32>
    %c2_112 = arith.constant 2 : index
    %c2_113 = arith.constant 2 : index
    %c0_114 = arith.constant 0 : index
    %144 = vector.load %arg13[%c2_112, %c2_113, %c0_114] : memref<18x18x16xf32, #tpu.memory_space<vmem>>, vector<16x16x16xf32>
    %145 = vector.shape_cast %144 : vector<16x16x16xf32> to vector<256x16xf32>
    %146 = tpu.concatenate %129, %131, %133, %135, %137, %139, %141, %143, %145 in 1 : vector<256x16xf32>, vector<256x16xf32>, vector<256x16xf32>, vector<256x16xf32>, vector<256x16xf32>, vector<256x16xf32>, vector<256x16xf32>, vector<256x16xf32>, vector<256x16xf32> -> vector<256x144xf32>
    %c0_115 = arith.constant 0 : index
    %c0_116 = arith.constant 0 : index
    %147 = vector.load %arg5[%c0_115, %c0_116] : memref<144x8xf32, #tpu.memory_space<vmem>>, vector<144x8xf32>
    %cst_117 = arith.constant dense<0.000000e+00> : vector<256x8xf32>
    %148 = tpu.matmul %146, %147, %cst_117 {dimension_numbers = #tpu.dot_dimension_numbers<[1], [0], [0], [1], [0, 0, 1, 1], [], []>} : vector<256x144xf32>, vector<144x8xf32>, vector<256x8xf32> -> vector<256x8xf32>
    %c0_118 = arith.constant 0 : index
    %c0_119 = arith.constant 0 : index
    %149 = vector.load %arg6[%c0_118, %c0_119] : memref<1x8xf32, #tpu.memory_space<vmem>>, vector<1x8xf32>
    %150 = vector.broadcast %149 : vector<1x8xf32> to vector<256x8xf32>
    %151 = arith.addf %148, %150 : vector<256x8xf32>
    %cst_120 = arith.constant 0.000000e+00 : f32
    %152 = vector.broadcast %cst_120 : f32 to vector<256x8xf32>
    %153 = arith.maximumf %151, %152 : vector<256x8xf32>
    %154 = vector.shape_cast %153 : vector<256x8xf32> to vector<16x16x8xf32>
    %c1_121 = arith.constant 1 : index
    %c1_122 = arith.constant 1 : index
    %c0_123 = arith.constant 0 : index
    %155 = vector.load %arg14[%c1_121, %c1_122, %c0_123] : memref<18x18x8xf32, #tpu.memory_space<vmem>>, vector<16x16x8xf32>
    tpu.vector_store %arg14[%c1_121, %c1_122, %c0_123], %154 {strides = array<i32>} : memref<18x18x8xf32, #tpu.memory_space<vmem>>, vector<16x16x8xf32>,
    %c0_124 = arith.constant 0 : index
    %c0_125 = arith.constant 0 : index
    %c0_126 = arith.constant 0 : index
    %156 = vector.load %arg14[%c0_124, %c0_125, %c0_126] : memref<18x18x8xf32, #tpu.memory_space<vmem>>, vector<16x16x8xf32>
    %157 = vector.shape_cast %156 : vector<16x16x8xf32> to vector<256x8xf32>
    %c0_127 = arith.constant 0 : index
    %c1_128 = arith.constant 1 : index
    %c0_129 = arith.constant 0 : index
    %158 = vector.load %arg14[%c0_127, %c1_128, %c0_129] : memref<18x18x8xf32, #tpu.memory_space<vmem>>, vector<16x16x8xf32>
    %159 = vector.shape_cast %158 : vector<16x16x8xf32> to vector<256x8xf32>
    %c0_130 = arith.constant 0 : index
    %c2_131 = arith.constant 2 : index
    %c0_132 = arith.constant 0 : index
    %160 = vector.load %arg14[%c0_130, %c2_131, %c0_132] : memref<18x18x8xf32, #tpu.memory_space<vmem>>, vector<16x16x8xf32>
    %161 = vector.shape_cast %160 : vector<16x16x8xf32> to vector<256x8xf32>
    %c1_133 = arith.constant 1 : index
    %c0_134 = arith.constant 0 : index
    %c0_135 = arith.constant 0 : index
    %162 = vector.load %arg14[%c1_133, %c0_134, %c0_135] : memref<18x18x8xf32, #tpu.memory_space<vmem>>, vector<16x16x8xf32>
    %163 = vector.shape_cast %162 : vector<16x16x8xf32> to vector<256x8xf32>
    %c1_136 = arith.constant 1 : index
    %c1_137 = arith.constant 1 : index
    %c0_138 = arith.constant 0 : index
    %164 = vector.load %arg14[%c1_136, %c1_137, %c0_138] : memref<18x18x8xf32, #tpu.memory_space<vmem>>, vector<16x16x8xf32>
    %165 = vector.shape_cast %164 : vector<16x16x8xf32> to vector<256x8xf32>
    %c1_139 = arith.constant 1 : index
    %c2_140 = arith.constant 2 : index
    %c0_141 = arith.constant 0 : index
    %166 = vector.load %arg14[%c1_139, %c2_140, %c0_141] : memref<18x18x8xf32, #tpu.memory_space<vmem>>, vector<16x16x8xf32>
    %167 = vector.shape_cast %166 : vector<16x16x8xf32> to vector<256x8xf32>
    %c2_142 = arith.constant 2 : index
    %c0_143 = arith.constant 0 : index
    %c0_144 = arith.constant 0 : index
    %168 = vector.load %arg14[%c2_142, %c0_143, %c0_144] : memref<18x18x8xf32, #tpu.memory_space<vmem>>, vector<16x16x8xf32>
    %169 = vector.shape_cast %168 : vector<16x16x8xf32> to vector<256x8xf32>
    %c2_145 = arith.constant 2 : index
    %c1_146 = arith.constant 1 : index
    %c0_147 = arith.constant 0 : index
    %170 = vector.load %arg14[%c2_145, %c1_146, %c0_147] : memref<18x18x8xf32, #tpu.memory_space<vmem>>, vector<16x16x8xf32>
    %171 = vector.shape_cast %170 : vector<16x16x8xf32> to vector<256x8xf32>
    %c2_148 = arith.constant 2 : index
    %c2_149 = arith.constant 2 : index
    %c0_150 = arith.constant 0 : index
    %172 = vector.load %arg14[%c2_148, %c2_149, %c0_150] : memref<18x18x8xf32, #tpu.memory_space<vmem>>, vector<16x16x8xf32>
    %173 = vector.shape_cast %172 : vector<16x16x8xf32> to vector<256x8xf32>
    %174 = tpu.concatenate %157, %159, %161, %163, %165, %167, %169, %171, %173 in 1 : vector<256x8xf32>, vector<256x8xf32>, vector<256x8xf32>, vector<256x8xf32>, vector<256x8xf32>, vector<256x8xf32>, vector<256x8xf32>, vector<256x8xf32>, vector<256x8xf32> -> vector<256x72xf32>
    %c0_151 = arith.constant 0 : index
    %c0_152 = arith.constant 0 : index
    %175 = vector.load %arg7[%c0_151, %c0_152] : memref<72x8xf32, #tpu.memory_space<vmem>>, vector<72x8xf32>
    %cst_153 = arith.constant dense<0.000000e+00> : vector<256x8xf32>
    %176 = tpu.matmul %174, %175, %cst_153 {dimension_numbers = #tpu.dot_dimension_numbers<[1], [0], [0], [1], [0, 0, 1, 1], [], []>} : vector<256x72xf32>, vector<72x8xf32>, vector<256x8xf32> -> vector<256x8xf32>
    %c0_154 = arith.constant 0 : index
    %c0_155 = arith.constant 0 : index
    %177 = vector.load %arg8[%c0_154, %c0_155] : memref<1x8xf32, #tpu.memory_space<vmem>>, vector<1x8xf32>
    %178 = vector.broadcast %177 : vector<1x8xf32> to vector<256x8xf32>
    %179 = arith.addf %176, %178 : vector<256x8xf32>
    %cst_156 = arith.constant 0.000000e+00 : f32
    %180 = vector.broadcast %cst_156 : f32 to vector<256x8xf32>
    %181 = arith.maximumf %179, %180 : vector<256x8xf32>
    %182 = vector.shape_cast %181 : vector<256x8xf32> to vector<16x16x8xf32>
    %c1_157 = arith.constant 1 : index
    %c1_158 = arith.constant 1 : index
    %c0_159 = arith.constant 0 : index
    %183 = vector.load %arg14[%c1_157, %c1_158, %c0_159] : memref<18x18x8xf32, #tpu.memory_space<vmem>>, vector<16x16x8xf32>
    tpu.vector_store %arg14[%c1_157, %c1_158, %c0_159], %182 {strides = array<i32>} : memref<18x18x8xf32, #tpu.memory_space<vmem>>, vector<16x16x8xf32>,
    %c0_160 = arith.constant 0 : index
    %c0_161 = arith.constant 0 : index
    %c0_162 = arith.constant 0 : index
    %184 = vector.load %arg14[%c0_160, %c0_161, %c0_162] : memref<18x18x8xf32, #tpu.memory_space<vmem>>, vector<16x16x8xf32>
    %185 = vector.shape_cast %184 : vector<16x16x8xf32> to vector<256x8xf32>
    %c0_163 = arith.constant 0 : index
    %c1_164 = arith.constant 1 : index
    %c0_165 = arith.constant 0 : index
    %186 = vector.load %arg14[%c0_163, %c1_164, %c0_165] : memref<18x18x8xf32, #tpu.memory_space<vmem>>, vector<16x16x8xf32>
    %187 = vector.shape_cast %186 : vector<16x16x8xf32> to vector<256x8xf32>
    %c0_166 = arith.constant 0 : index
    %c2_167 = arith.constant 2 : index
    %c0_168 = arith.constant 0 : index
    %188 = vector.load %arg14[%c0_166, %c2_167, %c0_168] : memref<18x18x8xf32, #tpu.memory_space<vmem>>, vector<16x16x8xf32>
    %189 = vector.shape_cast %188 : vector<16x16x8xf32> to vector<256x8xf32>
    %c1_169 = arith.constant 1 : index
    %c0_170 = arith.constant 0 : index
    %c0_171 = arith.constant 0 : index
    %190 = vector.load %arg14[%c1_169, %c0_170, %c0_171] : memref<18x18x8xf32, #tpu.memory_space<vmem>>, vector<16x16x8xf32>
    %191 = vector.shape_cast %190 : vector<16x16x8xf32> to vector<256x8xf32>
    %c1_172 = arith.constant 1 : index
    %c1_173 = arith.constant 1 : index
    %c0_174 = arith.constant 0 : index
    %192 = vector.load %arg14[%c1_172, %c1_173, %c0_174] : memref<18x18x8xf32, #tpu.memory_space<vmem>>, vector<16x16x8xf32>
    %193 = vector.shape_cast %192 : vector<16x16x8xf32> to vector<256x8xf32>
    %c1_175 = arith.constant 1 : index
    %c2_176 = arith.constant 2 : index
    %c0_177 = arith.constant 0 : index
    %194 = vector.load %arg14[%c1_175, %c2_176, %c0_177] : memref<18x18x8xf32, #tpu.memory_space<vmem>>, vector<16x16x8xf32>
    %195 = vector.shape_cast %194 : vector<16x16x8xf32> to vector<256x8xf32>
    %c2_178 = arith.constant 2 : index
    %c0_179 = arith.constant 0 : index
    %c0_180 = arith.constant 0 : index
    %196 = vector.load %arg14[%c2_178, %c0_179, %c0_180] : memref<18x18x8xf32, #tpu.memory_space<vmem>>, vector<16x16x8xf32>
    %197 = vector.shape_cast %196 : vector<16x16x8xf32> to vector<256x8xf32>
    %c2_181 = arith.constant 2 : index
    %c1_182 = arith.constant 1 : index
    %c0_183 = arith.constant 0 : index
    %198 = vector.load %arg14[%c2_181, %c1_182, %c0_183] : memref<18x18x8xf32, #tpu.memory_space<vmem>>, vector<16x16x8xf32>
    %199 = vector.shape_cast %198 : vector<16x16x8xf32> to vector<256x8xf32>
    %c2_184 = arith.constant 2 : index
    %c2_185 = arith.constant 2 : index
    %c0_186 = arith.constant 0 : index
    %200 = vector.load %arg14[%c2_184, %c2_185, %c0_186] : memref<18x18x8xf32, #tpu.memory_space<vmem>>, vector<16x16x8xf32>
    %201 = vector.shape_cast %200 : vector<16x16x8xf32> to vector<256x8xf32>
    %202 = tpu.concatenate %185, %187, %189, %191, %193, %195, %197, %199, %201 in 1 : vector<256x8xf32>, vector<256x8xf32>, vector<256x8xf32>, vector<256x8xf32>, vector<256x8xf32>, vector<256x8xf32>, vector<256x8xf32>, vector<256x8xf32>, vector<256x8xf32> -> vector<256x72xf32>
    %c0_187 = arith.constant 0 : index
    %c0_188 = arith.constant 0 : index
    %203 = vector.load %arg9[%c0_187, %c0_188] : memref<72x8xf32, #tpu.memory_space<vmem>>, vector<72x8xf32>
    %cst_189 = arith.constant dense<0.000000e+00> : vector<256x8xf32>
    %204 = tpu.matmul %202, %203, %cst_189 {dimension_numbers = #tpu.dot_dimension_numbers<[1], [0], [0], [1], [0, 0, 1, 1], [], []>} : vector<256x72xf32>, vector<72x8xf32>, vector<256x8xf32> -> vector<256x8xf32>
    %c0_190 = arith.constant 0 : index
    %c0_191 = arith.constant 0 : index
    %205 = vector.load %arg10[%c0_190, %c0_191] : memref<1x8xf32, #tpu.memory_space<vmem>>, vector<1x8xf32>
    %206 = vector.broadcast %205 : vector<1x8xf32> to vector<256x8xf32>
    %207 = arith.addf %204, %206 : vector<256x8xf32>
    %cst_192 = arith.constant 0.000000e+00 : f32
    %208 = vector.broadcast %cst_192 : f32 to vector<256x8xf32>
    %209 = arith.maximumf %207, %208 : vector<256x8xf32>
    %210 = tpu.transpose %209, [1, 0] : vector<256x8xf32> -> vector<8x256xf32>
    %c0_193 = arith.constant 0 : index
    %c0_194 = arith.constant 0 : index
    %c0_195 = arith.constant 0 : index
    %211 = vector.load %arg11[%c0_193, %c0_194, %c0_195] : memref<1x8x256xf32, #tpu.memory_space<vmem>>, vector<1x8x256xf32>
    %212 = vector.shape_cast %211 : vector<1x8x256xf32> to vector<8x256xf32>
    %213 = vector.shape_cast %210 : vector<8x256xf32> to vector<1x8x256xf32>
    tpu.vector_store %arg11[%c0_193, %c0_194, %c0_195], %213 {strides = array<i32>} : memref<1x8x256xf32, #tpu.memory_space<vmem>>, vector<1x8x256xf32>,
    return
  }
  func.func @transform_0(%arg0: i32) -> (i32, i32, i32, i32) {
    %c0_i32 = arith.constant 0 : i32
    %c0_i32_0 = arith.constant 0 : i32
    %c0_i32_1 = arith.constant 0 : i32
    %c0_i32_2 = arith.constant 0 : i32
    return %arg0, %c0_i32, %c0_i32_0, %c0_i32_1 : i32, i32, i32, i32
  }
  func.func @transform_1(%arg0: i32) -> (i32, i32, i32, i32) {
    %c0_i32 = arith.constant 0 : i32
    %c0_i32_0 = arith.constant 0 : i32
    %c0_i32_1 = arith.constant 0 : i32
    %c0_i32_2 = arith.constant 0 : i32
    return %arg0, %c0_i32, %c0_i32_0, %c0_i32_1 : i32, i32, i32, i32
  }
  func.func @transform_2(%arg0: i32) -> (i32, i32) {
    %c0_i32 = arith.constant 0 : i32
    %c0_i32_0 = arith.constant 0 : i32
    %c0_i32_1 = arith.constant 0 : i32
    return %c0_i32, %c0_i32_0 : i32, i32
  }
  func.func @transform_3(%arg0: i32) -> (i32, i32) {
    %c0_i32 = arith.constant 0 : i32
    %c0_i32_0 = arith.constant 0 : i32
    %c0_i32_1 = arith.constant 0 : i32
    return %c0_i32, %c0_i32_0 : i32, i32
  }
  func.func @transform_4(%arg0: i32) -> (i32, i32) {
    %c0_i32 = arith.constant 0 : i32
    %c0_i32_0 = arith.constant 0 : i32
    %c0_i32_1 = arith.constant 0 : i32
    return %c0_i32, %c0_i32_0 : i32, i32
  }
  func.func @transform_5(%arg0: i32) -> (i32, i32) {
    %c0_i32 = arith.constant 0 : i32
    %c0_i32_0 = arith.constant 0 : i32
    %c0_i32_1 = arith.constant 0 : i32
    return %c0_i32, %c0_i32_0 : i32, i32
  }
  func.func @transform_6(%arg0: i32) -> (i32, i32) {
    %c0_i32 = arith.constant 0 : i32
    %c0_i32_0 = arith.constant 0 : i32
    %c0_i32_1 = arith.constant 0 : i32
    return %c0_i32, %c0_i32_0 : i32, i32
  }
  func.func @transform_7(%arg0: i32) -> (i32, i32) {
    %c0_i32 = arith.constant 0 : i32
    %c0_i32_0 = arith.constant 0 : i32
    %c0_i32_1 = arith.constant 0 : i32
    return %c0_i32, %c0_i32_0 : i32, i32
  }
  func.func @transform_8(%arg0: i32) -> (i32, i32) {
    %c0_i32 = arith.constant 0 : i32
    %c0_i32_0 = arith.constant 0 : i32
    %c0_i32_1 = arith.constant 0 : i32
    return %c0_i32, %c0_i32_0 : i32, i32
  }
  func.func @transform_9(%arg0: i32) -> (i32, i32) {
    %c0_i32 = arith.constant 0 : i32
    %c0_i32_0 = arith.constant 0 : i32
    %c0_i32_1 = arith.constant 0 : i32
    return %c0_i32, %c0_i32_0 : i32, i32
  }
  func.func @transform_10(%arg0: i32) -> (i32, i32, i32) {
    %c0_i32 = arith.constant 0 : i32
    %c0_i32_0 = arith.constant 0 : i32
    %c0_i32_1 = arith.constant 0 : i32
    return %arg0, %c0_i32, %c0_i32_0 : i32, i32, i32
  }
}

</mosaic_0001>

<bundles_post_ra>
// kernel: tile.8
= control target key start
LH: loop header
LB: loop body
LE: loop exit
PB: predicated region body
PF: predicated region fallthrough
CT: control target
= control target key end

     0   :  { %s22_s0 = inlined_call_operand.vmem [shape: f32[8], index: 0, kind: input, shape index: {}]   ;;  %s23_s1 = inlined_call_operand.vmem [shape: f32[4,8], index: 1, kind: output, shape index: {}]  }
   0x1   :  { %v4_v0 = vld [vmem:[%s22_s0] ss:$0 sm:$0xff] }
   0x2   :  { %5 = vst [vmem:[%s23_s1] sm:$0xf] %v4_v0 }

// kernel: tile.9
= control target key start
LH: loop header
LB: loop body
LE: loop exit
PB: predicated region body
PF: predicated region fallthrough
CT: control target
= control target key end

     0   :  { %s37_s8 = smov 8   ;;  %s38_s9 = smov 16   ;;  %vm7_vm0 = vcmask 64512   ;;  %vm13_vm1 = vcmask 261312   ;;  %vm19_vm2 = vcmask 195712   ;;  %vm25_vm3 = vcmask 130112   ;;  %s55_s0 = inlined_call_operand.vmem [shape: f32[4,8], index: 0, kind: input, shape index: {}]   ;;  %s56_s1 = inlined_call_operand.vmem [shape: f32[1,32], index: 1, kind: output, shape index: {}]  }
   0x1   :  { %v4_v0 = vld [vmem:[%s55_s0] sm:$0xf]  ;;  %s36_s0 = smov 24  }
   0x2   :  { %5 = vst [vmem:[#allocation1] sm:$0xf] %v4_v0 }
   0x9   :  { %v10_v1 = vld [vmem:[#allocation1 + $0x3] sm:$0x1]   ;;  %v22_v2 = vld [vmem:[#allocation1 + $0x1] sm:$0x1]   ;;  %v16_v3 = vld [vmem:[#allocation1 + $0x2] sm:$0x1]  }
   0xa   :  { %11 = vrot.lane.b32.xlu0 %v10_v1, %s36_s0  ;;  %23 = vrot.lane.b32.xlu1 %v22_v2, %s37_s8  ;;  %v6_v4 = vld [vmem:[#allocation1] sm:$0x1]  }
   0xb   :  { %8 = vst.msk [vmem:[#allocation0] sm:$0x1] %vm7_vm0, %v6_v4  }
  0x12   :  { %17 = vrot.lane.b32.xlu0 %v16_v3, %s38_s9 }
  0x7c   :  { %v12_v5 = vpop.permute.xlu0 %11   ;;  %v24_v6 = vpop.permute.xlu1 %23  }
  0x7d   :  { %14 = vst.msk [vmem:[#allocation0] sm:$0x1] %vm13_vm1, %v12_v5  }
  0x84   :  { %v18_v7 = vpop.permute.xlu0 %17  }
  0x85   :  { %20 = vst.msk [vmem:[#allocation0] sm:$0x1] %vm19_vm2, %v18_v7  }
  0x86   :  { %26 = vst.msk [vmem:[#allocation0] sm:$0x1] %vm25_vm3, %v24_v6  }
  0x8d   :  { %v29_v8 = vld [vmem:[#allocation0] sm:$0x1] }
  0x8e   :  { %32 = vst [vmem:[%s56_s1] sm:$0x1] %v29_v8 }

// kernel: unet_up_forward.1
= control target key start
LH: loop header
LB: loop body
LE: loop exit
PB: predicated region body
PF: predicated region fallthrough
CT: control target
= control target key end

     0   :  { %s8035_s13 = smov 0   ;;  %s13240_s0 = inlined_call_operand.vmem [shape: f32[2,8,8,8], index: 0, kind: input, shape index: {}]   ;;  %s13241_s1 = inlined_call_operand.vmem [shape: f32[2,16,16,8], index: 1, kind: input, shape index: {}]   ;;  %s13242_s2 = inlined_call_operand.vmem [shape: f32[72,32], index: 2, kind: input, shape index: {}]   ;;  %s13243_s3 = inlined_call_operand.vmem [shape: f32[1,32], index: 3, kind: input, shape index: {}]   ;;  %s13244_s4 = inlined_call_operand.vmem [shape: f32[144,8], index: 4, kind: input, shape index: {}]   ;;  %s13245_s5 = inlined_call_operand.vmem [shape: f32[1,8], index: 5, kind: input, shape index: {}]   ;;  %s13246_s6 = inlined_call_operand.vmem [shape: f32[72,8], index: 6, kind: input, shape index: {}]   ;;  %s13247_s7 = inlined_call_operand.vmem [shape: f32[1,8], index: 7, kind: input, shape index: {}]   ;;  %s13248_s8 = inlined_call_operand.vmem [shape: f32[72,8], index: 8, kind: input, shape index: {}]   ;;  %s13249_s9 = inlined_call_operand.vmem [shape: f32[1,8], index: 9, kind: input, shape index: {}]   ;;  %s13250_s10 = inlined_call_operand.vmem [shape: f32[2,8,256], index: 10, kind: output, shape index: {}]  }
   0x1 LB: > { %s7176_s14 = sadd.s32 4294967295, %s7965_s13   ;;  %p7180_p0 = scmp.ge.s32.totalorder %s7965_s13, 1  ;;  %s7965_s13 = sphi %s8035_s13, %s20_s13  }
   0x2   : > { %p322_p1 = scmp.lt.s32.totalorder %s7965_s13, 3 }
   0x4   : > { %p323_p2 = pnand %p7180_p0, %p322_p1 }
   0x6   : > { %326 = sbr.rel (%p323_p2) target bundleno = 3182 (0xc6e), region = 60 }
   0xb   : > { %p365_p3 = scmp.lt.s32.totalorder %s7176_s14, 1  ;;  %s7967_s19 = smov 8   ;;  %vm380_vm0 = vcmask 64512   ;;  %vm382_vm1 = vcmask 58368   ;;  %v7968_v21 = vmov 0.0   ;;  %vm402_vm2 = vcmask 130048  }
   0xc   : > { %386 = vst.msk [vmem:[#allocation2 + $0x20] sm:$0xff] %vm380_vm0, %v7968_v21  ;;  %vm690_vm3 = vcmask 130112   ;;  %s7969_s24 = smov 16   ;;  %vm405_vm4 = vcmask 123904   ;;  %s7970_s25 = smov 24   ;;  %vm1068_vm5 = vcmask 195584  }
   0xd   : > { %s14041_s14 = smov (!%p365_p3, %s7176_s14), 1  ;;  %387 = vst.msk [vmem:[#allocation2 + $0x28] sm:$0x3] %vm382_vm1, %v7968_v21  ;;  %s7971_s26 = smov 32   ;;  %vm1077_vm6 = vcmask 261120   ;;  %vm1086_vm7 = vcmask 326656  }
   0xe   : > { %s7294_s15 = sshll.u32 %s14041_s14, 8  ;;  %s7293_s20 = sshll.u32 %s14041_s14, 6  ;;  %381 = vst.msk [vmem:[#allocation2] sm:$0xff] %vm380_vm0, %v7968_v21  ;;  %vm1095_vm8 = vcmask 392192   ;;  %vm1104_vm9 = vcmask 457728   ;;  %vm13251_vm10 = vcmask 588800  }
   0xf   : > { %s8049_s18 = scalar_lea.vmem %s13241_s1, %s7294_s15  ;;  %s8091_s23 = scalar_lea.vmem %s13240_s0, %s7293_s20  ;;  %383 = vst.msk [vmem:[#allocation2 + $0x8] sm:$0x3] %vm382_vm1, %v7968_v21  ;;  %vm1113_vm11 = vcmask 523264   ;;  %vm1233_vm12 = vcmask 57344   ;;  %vm1250_vm13 = vcmask 58369   ;;  %vm1267_vm14 = vcmask 59394  }
  0x10   : > { %v531_v0 = vld [vmem:[%s8049_s18 + $0x10] sm:$0xff]  ;;  %v529_v1 = vld [vmem:[%s8049_s18] sm:$0xff]  ;;  %v532_v3 = vld [vmem:[%s8049_s18 + $0x18] sm:$0xff]  ;;  %384 = vst.msk [vmem:[#allocation2 + $0x10] sm:$0xff] %vm380_vm0, %v7968_v21  ;;  %s7972_s27 = smov 40   ;;  %s7973_s28 = smov 48  }
  0x11   : > { %597 = vrot.lane.b32.xlu1 %v531_v0, %s7967_s19  ;;  %593 = vrot.lane.b32.xlu0 %v529_v1, %s7967_s19  ;;  %v533_v2 = vld [vmem:[%s8049_s18 + $0x20] sm:$0xff]  ;;  %v530_v4 = vld [vmem:[%s8049_s18 + $0x8] sm:$0xff]  ;;  %385 = vst.msk [vmem:[#allocation2 + $0x18] sm:$0x3] %vm382_vm1, %v7968_v21  ;;  %s7974_s29 = smov 56   ;;  %s7975_s30 = smov 64  }
  0x12   : > { %601 = vrot.lane.b32.xlu2 %v533_v2, %s7967_s19  ;;  %v534_v5 = vld [vmem:[%s8049_s18 + $0x28] sm:$0xff]  ;;  %v536_v6 = vld [vmem:[%s8049_s18 + $0x38] sm:$0xff]  ;;  %v535_v7 = vld [vmem:[%s8049_s18 + $0x30] sm:$0xff]  ;;  %388 = vst.msk [vmem:[#allocation2 + $0x30] sm:$0xff] %vm380_vm0, %v7968_v21  ;;  %s7976_s11 = smov 120   ;;  %s7977_s12 = smov 112  }
  0x13   : > { %v537_v8 = vld [vmem:[%s8049_s18 + $0x40] sm:$0xff]  ;;  %v539_v9 = vld [vmem:[%s8049_s18 + $0x50] sm:$0xff]  ;;  %v538_v10 = vld [vmem:[%s8049_s18 + $0x48] sm:$0xff]  ;;  %389 = vst.msk [vmem:[#allocation2 + $0x38] sm:$0x3] %vm382_vm1, %v7968_v21  ;;  %vm1284_vm15 = vcmask 60419  }
  0x14   : > { %v540_v11 = vld [vmem:[%s8049_s18 + $0x58] sm:$0xff]  ;;  %v542_v12 = vld [vmem:[%s8049_s18 + $0x68] sm:$0xff]  ;;  %v541_v13 = vld [vmem:[%s8049_s18 + $0x60] sm:$0xff]  ;;  %390 = vst.msk [vmem:[#allocation2 + $0x40] sm:$0xff] %vm380_vm0, %v7968_v21  ;;  %s7978_s15 = smov 80   ;;  %s7979_s16 = smov 96  }
  0x15   : > { %v543_v14 = vld [vmem:[%s8049_s18 + $0x70] sm:$0xff]  ;;  %v545_v15 = vld [vmem:[%s8049_s18 + $0x80] sm:$0xff]  ;;  %v544_v16 = vld [vmem:[%s8049_s18 + $0x78] sm:$0xff]  ;;  %391 = vst.msk [vmem:[#allocation2 + $0x48] sm:$0x3] %vm382_vm1, %v7968_v21 }
  0x16   : > { %v546_v17 = vld [vmem:[%s8049_s18 + $0x88] sm:$0xff]  ;;  %v548_v18 = vld [vmem:[%s8049_s18 + $0x98] sm:$0xff]  ;;  %v547_v19 = vld [vmem:[%s8049_s18 + $0x90] sm:$0xff]  ;;  %392 = vst.msk [vmem:[#allocation2 + $0x50] sm:$0xff] %vm380_vm0, %v7968_v21 }
  0x17   : > { %v549_v20 = vld [vmem:[%s8049_s18 + $0xa0] sm:$0xff]  ;;  %v513_v22 = vld [vmem:[%s8091_s23 + $0x8] sm:$0xff]  ;;  %v551_v23 = vld [vmem:[%s8049_s18 + $0xb0] sm:$0xff]  ;;  %393 = vst.msk [vmem:[#allocation2 + $0x58] sm:$0x3] %vm382_vm1, %v7968_v21 }
  0x18   : > { %522 = vst.msk [vmem:[#allocation2 + $0x21] sm:$0xff] %vm380_vm0, %v513_v22  ;;  %v550_v24 = vld [vmem:[%s8049_s18 + $0xa8] sm:$0xff]  ;;  %v552_v25 = vld [vmem:[%s8049_s18 + $0xb8] sm:$0xff]  ;;  %v553_v27 = vld [vmem:[%s8049_s18 + $0xc0] sm:$0xff] }
  0x19   : > { %599 = vrot.lane.b32.xlu1 %v532_v3, %s7967_s19  ;;  %595 = vrot.lane.b32.xlu0 %v530_v4, %s7967_s19  ;;  %394 = vst.msk [vmem:[#allocation2 + $0x60] sm:$0xff] %vm380_vm0, %v7968_v21  ;;  %v554_v26 = vld [vmem:[%s8049_s18 + $0xc8] sm:$0xff]  ;;  %v555_v28 = vld [vmem:[%s8049_s18 + $0xd0] sm:$0xff] }
  0x1a   : > { %603 = vrot.lane.b32.xlu2 %v534_v5, %s7967_s19  ;;  %395 = vst.msk [vmem:[#allocation2 + $0x68] sm:$0x3] %vm382_vm1, %v7968_v21  ;;  %v557_v29 = vld [vmem:[%s8049_s18 + $0xe0] sm:$0xff]  ;;  %v556_v30 = vld [vmem:[%s8049_s18 + $0xd8] sm:$0xff]  ;;  %v558_v31 = vld [vmem:[%s8049_s18 + $0xe8] sm:$0xff] }
  0x1b   : > { %396 = vst.msk [vmem:[#allocation2 + $0x70] sm:$0xff] %vm380_vm0, %v7968_v21  ;;  %v560_v32 = vld [vmem:[%s8049_s18 + $0xf8] sm:$0xff]  ;;  %v559_v33 = vld [vmem:[%s8049_s18 + $0xf0] sm:$0xff]  ;;  %v731_v35 = vld [vmem:[#allocation2 + $0x1] sm:$0xff] }
  0x1c   : > { %397 = vst.msk [vmem:[#allocation2 + $0x78] sm:$0x3] %vm382_vm1, %v7968_v21  ;;  %v512_v36 = vld [vmem:[%s8091_s23] sm:$0xff]  ;;  %v515_v38 = vld [vmem:[%s8091_s23 + $0x18] sm:$0xff]  ;;  %v514_v39 = vld [vmem:[%s8091_s23 + $0x10] sm:$0xff] }
  0x1d   : > { %398 = vst.msk [vmem:[#allocation2 + $0x80] sm:$0xff] %vm380_vm0, %v7968_v21  ;;  %v516_v37 = vld [vmem:[%s8091_s23 + $0x20] sm:$0xff]  ;;  %v518_v53 = vld [vmem:[%s8091_s23 + $0x30] sm:$0xff]  ;;  %v517_v55 = vld [vmem:[%s8091_s23 + $0x28] sm:$0xff] }
  0x1e   : > { %399 = vst.msk [vmem:[#allocation2 + $0x88] sm:$0x3] %vm382_vm1, %v7968_v21  ;;  %v739_v45 = vld [vmem:[#allocation2 + $0x2] sm:$0xff] }
  0x1f   : > { %400 = vst.msk [vmem:[#allocation2 + $0x90] sm:$0xff] %vm380_vm0, %v7968_v21  ;;  %v8197_v34 = vld [vmem:[#allocation2 + $0x21] sm:$0xff] }
  0x20   : > { %401 = vst.msk [vmem:[#allocation2 + $0x98] sm:$0x3] %vm382_vm1, %v7968_v21  ;;  %v8423_v0 = vld [vmem:[#allocation2 + $0x22] sm:$0xff] }
  0x21   : > { %607 = vrot.lane.b32.xlu1 %v536_v6, %s7967_s19  ;;  %605 = vrot.lane.b32.xlu0 %v535_v7, %s7967_s19  ;;  %458 = vst.msk [vmem:[#allocation4] sm:$0xff] %vm380_vm0, %v7968_v21  ;;  %v8429_v3 = vld [vmem:[#allocation2 + $0x20] sm:$0xff] }
  0x22   : > { %609 = vrot.lane.b32.xlu2 %v537_v8, %s7967_s19  ;;  %459 = vst.msk [vmem:[#allocation4 + $0x8] sm:$0xff] %vm380_vm0, %v7968_v21 }
  0x23   : > { %460 = vst.msk [vmem:[#allocation4 + $0x10] sm:$0x3] %vm382_vm1, %v7968_v21 }
  0x24   : > { %461 = vst.msk [vmem:[#allocation4 + $0x18] sm:$0xff] %vm380_vm0, %v7968_v21 }
  0x25   : > { %462 = vst.msk [vmem:[#allocation4 + $0x20] sm:$0xff] %vm380_vm0, %v7968_v21 }
  0x26   : > { %463 = vst.msk [vmem:[#allocation4 + $0x28] sm:$0x3] %vm382_vm1, %v7968_v21 }
  0x27   : > { %464 = vst.msk [vmem:[#allocation4 + $0x30] sm:$0xff] %vm380_vm0, %v7968_v21 }
  0x28   : > { %465 = vst.msk [vmem:[#allocation4 + $0x38] sm:$0xff] %vm380_vm0, %v7968_v21 }
  0x29   : > { %613 = vrot.lane.b32.xlu1 %v539_v9, %s7967_s19  ;;  %611 = vrot.lane.b32.xlu0 %v538_v10, %s7967_s19  ;;  %466 = vst.msk [vmem:[#allocation4 + $0x40] sm:$0x3] %vm382_vm1, %v7968_v21 }
  0x2a   : > { %615 = vrot.lane.b32.xlu2 %v540_v11, %s7967_s19  ;;  %467 = vst.msk [vmem:[#allocation4 + $0x48] sm:$0xff] %vm380_vm0, %v7968_v21 }
  0x2b   : > { %468 = vst.msk [vmem:[#allocation4 + $0x50] sm:$0xff] %vm380_vm0, %v7968_v21 }
  0x2c   : > { %469 = vst.msk [vmem:[#allocation4 + $0x58] sm:$0x3] %vm382_vm1, %v7968_v21 }
  0x2d   : > { %470 = vst.msk [vmem:[#allocation4 + $0x60] sm:$0xff] %vm380_vm0, %v7968_v21 }
  0x2e   : > { %471 = vst.msk [vmem:[#allocation4 + $0x68] sm:$0xff] %vm380_vm0, %v7968_v21 }
  0x2f   : > { %472 = vst.msk [vmem:[#allocation4 + $0x70] sm:$0x3] %vm382_vm1, %v7968_v21 }
  0x30   : > { %473 = vst.msk [vmem:[#allocation4 + $0x78] sm:$0xff] %vm380_vm0, %v7968_v21 }
  0x31   : > { %619 = vrot.lane.b32.xlu1 %v542_v12, %s7967_s19  ;;  %617 = vrot.lane.b32.xlu0 %v541_v13, %s7967_s19  ;;  %474 = vst.msk [vmem:[#allocation4 + $0x80] sm:$0xff] %vm380_vm0, %v7968_v21 }
  0x32   : > { %621 = vrot.lane.b32.xlu2 %v543_v14, %s7967_s19  ;;  %475 = vst.msk [vmem:[#allocation4 + $0x88] sm:$0x3] %vm382_vm1, %v7968_v21 }
  0x33   : > { %476 = vst.msk [vmem:[#allocation4 + $0x90] sm:$0xff] %vm380_vm0, %v7968_v21 }
  0x34   : > { %477 = vst.msk [vmem:[#allocation4 + $0x98] sm:$0xff] %vm380_vm0, %v7968_v21 }
  0x35   : > { %478 = vst.msk [vmem:[#allocation4 + $0xa0] sm:$0x3] %vm382_vm1, %v7968_v21 }
  0x36   : > { %479 = vst.msk [vmem:[#allocation4 + $0xa8] sm:$0xff] %vm380_vm0, %v7968_v21 }
  0x37   : > { %480 = vst.msk [vmem:[#allocation4 + $0xb0] sm:$0xff] %vm380_vm0, %v7968_v21 }
  0x38   : > { %481 = vst.msk [vmem:[#allocation4 + $0xb8] sm:$0x3] %vm382_vm1, %v7968_v21 }
  0x39   : > { %625 = vrot.lane.b32.xlu1 %v545_v15, %s7967_s19  ;;  %623 = vrot.lane.b32.xlu0 %v544_v16, %s7967_s19  ;;  %482 = vst.msk [vmem:[#allocation4 + $0xc0] sm:$0xff] %vm380_vm0, %v7968_v21  ;;  %v519_v15 = vld [vmem:[%s8091_s23 + $0x38] sm:$0xff] }
  0x3a   : > { %627 = vrot.lane.b32.xlu2 %v546_v17, %s7967_s19  ;;  %483 = vst.msk [vmem:[#allocation4 + $0xc8] sm:$0xff] %vm380_vm0, %v7968_v21 }
  0x3b   : > { %484 = vst.msk [vmem:[#allocation4 + $0xd0] sm:$0x3] %vm382_vm1, %v7968_v21 }
  0x3c   : > { %485 = vst.msk [vmem:[#allocation4 + $0xd8] sm:$0xff] %vm380_vm0, %v7968_v21 }
  0x3d   : > { %486 = vst.msk [vmem:[#allocation4 + $0xe0] sm:$0xff] %vm380_vm0, %v7968_v21 }
  0x3e   : > { %487 = vst.msk [vmem:[#allocation4 + $0xe8] sm:$0x3] %vm382_vm1, %v7968_v21 }
  0x3f   : > { %488 = vst.msk [vmem:[#allocation4 + $0xf0] sm:$0xff] %vm380_vm0, %v7968_v21 }
  0x40   : > { %489 = vst.msk [vmem:[#allocation4 + $0xf8] sm:$0xff] %vm380_vm0, %v7968_v21 }
  0x41   : > { %631 = vrot.lane.b32.xlu1 %v548_v18, %s7967_s19  ;;  %629 = vrot.lane.b32.xlu0 %v547_v19, %s7967_s19  ;;  %490 = vst.msk [vmem:[#allocation4 + $0x100] sm:$0x3] %vm382_vm1, %v7968_v21 }
  0x42   : > { %633 = vrot.lane.b32.xlu2 %v549_v20, %s7967_s19  ;;  %491 = vst.msk [vmem:[#allocation4 + $0x108] sm:$0xff] %vm380_vm0, %v7968_v21 }
  0x43   : > { %492 = vst.msk [vmem:[#allocation4 + $0x110] sm:$0xff] %vm380_vm0, %v7968_v21 }
  0x44   : > { %493 = vst.msk [vmem:[#allocation4 + $0x118] sm:$0x3] %vm382_vm1, %v7968_v21 }
  0x45   : > { %494 = vst.msk [vmem:[#allocation4 + $0x120] sm:$0xff] %vm380_vm0, %v7968_v21 }
  0x46   : > { %495 = vst.msk [vmem:[#allocation4 + $0x128] sm:$0xff] %vm380_vm0, %v7968_v21 }
  0x47   : > { %496 = vst.msk [vmem:[#allocation4 + $0x130] sm:$0x3] %vm382_vm1, %v7968_v21 }
  0x48   : > { %497 = vst.msk [vmem:[#allocation4 + $0x138] sm:$0xff] %vm380_vm0, %v7968_v21 }
  0x49   : > { %637 = vrot.lane.b32.xlu1 %v551_v23, %s7967_s19  ;;  %635 = vrot.lane.b32.xlu0 %v550_v24, %s7967_s19  ;;  %498 = vst.msk [vmem:[#allocation4 + $0x140] sm:$0xff] %vm380_vm0, %v7968_v21 }
  0x4a   : > { %639 = vrot.lane.b32.xlu2 %v552_v25, %s7967_s19  ;;  %499 = vst.msk [vmem:[#allocation4 + $0x148] sm:$0x3] %vm382_vm1, %v7968_v21 }
  0x4b   : > { %500 = vst.msk [vmem:[#allocation4 + $0x150] sm:$0xff] %vm380_vm0, %v7968_v21 }
  0x4c   : > { %501 = vst.msk [vmem:[#allocation4 + $0x158] sm:$0xff] %vm380_vm0, %v7968_v21 }
  0x4d   : > { %502 = vst.msk [vmem:[#allocation4 + $0x160] sm:$0x3] %vm382_vm1, %v7968_v21 }
  0x4e   : > { %503 = vst.msk [vmem:[#allocation4 + $0x168] sm:$0xff] %vm380_vm0, %v7968_v21 }
  0x4f   : > { %504 = vst.msk [vmem:[#allocation4 + $0x170] sm:$0xff] %vm380_vm0, %v7968_v21 }
  0x50   : > { %505 = vst.msk [vmem:[#allocation4 + $0x178] sm:$0x3] %vm382_vm1, %v7968_v21 }
  0x51   : > { %643 = vrot.lane.b32.xlu1 %v554_v26, %s7967_s19  ;;  %641 = vrot.lane.b32.xlu0 %v553_v27, %s7967_s19  ;;  %506 = vst.msk [vmem:[#allocation4 + $0x180] sm:$0xff] %vm380_vm0, %v7968_v21 }
  0x52   : > { %645 = vrot.lane.b32.xlu2 %v555_v28, %s7967_s19  ;;  %507 = vst.msk [vmem:[#allocation4 + $0x188] sm:$0xff] %vm380_vm0, %v7968_v21 }
  0x53   : > { %508 = vst.msk [vmem:[#allocation4 + $0x190] sm:$0x3] %vm382_vm1, %v7968_v21 }
  0x54   : > { %509 = vst.msk [vmem:[#allocation4 + $0x198] sm:$0xff] %vm380_vm0, %v7968_v21 }
  0x55   : > { %510 = vst.msk [vmem:[#allocation4 + $0x1a0] sm:$0xff] %vm380_vm0, %v7968_v21 }
  0x56   : > { %511 = vst.msk [vmem:[#allocation4 + $0x1a8] sm:$0x3] %vm382_vm1, %v7968_v21  ;;  %vm1301_vm1 = vcmask 61444  }
  0x57   : > { %521 = vst.msk [vmem:[#allocation2 + $0x11] sm:$0xff] %vm380_vm0, %v512_v36 }
  0x58   : > { %525 = vst.msk [vmem:[#allocation2 + $0x51] sm:$0xff] %vm380_vm0, %v516_v37 }
  0x59   : > { %649 = vrot.lane.b32.xlu1 %v557_v29, %s7967_s19  ;;  %647 = vrot.lane.b32.xlu0 %v556_v30, %s7967_s19  ;;  %524 = vst.msk [vmem:[#allocation2 + $0x41] sm:$0xff] %vm380_vm0, %v515_v38 }
  0x5a   : > { %651 = vrot.lane.b32.xlu2 %v558_v31, %s7967_s19  ;;  %523 = vst.msk [vmem:[#allocation2 + $0x31] sm:$0xff] %vm380_vm0, %v514_v39 }
  0x5b   : > { %413 = vst.msk [vmem:[#allocation3 + $0x48] sm:$0xff] %vm402_vm2, %v7968_v21 }
  0x5c   : > { %414 = vst.msk [vmem:[#allocation3 + $0x50] sm:$0xff] %vm402_vm2, %v7968_v21 }
  0x5d   : > { %403 = vst.msk [vmem:[#allocation3] sm:$0xff] %vm402_vm2, %v7968_v21 }
  0x5e   : > { %v8289_v41 = vld [vmem:[#allocation2 + $0x11] sm:$0xff]  ;;  %404 = vst.msk [vmem:[#allocation3 + $0x8] sm:$0xff] %vm402_vm2, %v7968_v21 }
  0x5f   : > { %v8295_v42 = vld [vmem:[#allocation2 + $0x51] sm:$0xff]  ;;  %407 = vst.msk [vmem:[#allocation3 + $0x18] sm:$0xff] %vm402_vm2, %v7968_v21 }
  0x60   : > { %408 = vst.msk [vmem:[#allocation3 + $0x20] sm:$0xff] %vm402_vm2, %v7968_v21  ;;  %v8313_v44 = vld [vmem:[#allocation2 + $0x41] sm:$0xff]  ;;  %v8427_v2 = vld [vmem:[#allocation2 + $0x12] sm:$0xff] }
  0x61   : > { %655 = vrot.lane.b32.xlu1 %v560_v32, %s7967_s19  ;;  %653 = vrot.lane.b32.xlu0 %v559_v33, %s7967_s19  ;;  %v8303_v43 = vld [vmem:[#allocation2 + $0x31] sm:$0xff]  ;;  %410 = vst.msk [vmem:[#allocation3 + $0x30] sm:$0xff] %vm402_vm2, %v7968_v21  ;;  %v8455_v8 = vld [vmem:[#allocation2 + $0x42] sm:$0xff] }
  0x62   : > { %804 = vrot.lane.b32.xlu2 %v731_v35, %s7967_s19  ;;  %411 = vst.msk [vmem:[#allocation3 + $0x38] sm:$0xff] %vm402_vm2, %v7968_v21  ;;  %v8342_v47 = vld [vmem:[#allocation2 + $0x32] sm:$0xff]  ;;  %v8489_v18 = vld [vmem:[#allocation2 + $0x40] sm:$0xff] }
  0x63   : > { %416 = vst.msk [vmem:[#allocation3 + $0x60] sm:$0xff] %vm402_vm2, %v7968_v21  ;;  %v8451_v6 = vld [vmem:[#allocation2 + $0x52] sm:$0xff] }
  0x64   : > { %417 = vst.msk [vmem:[#allocation3 + $0x68] sm:$0xff] %vm402_vm2, %v7968_v21  ;;  %v8457_v9 = vld [vmem:[#allocation2 + $0x50] sm:$0xff] }
  0x65   : > { %419 = vst.msk [vmem:[#allocation3 + $0x78] sm:$0xff] %vm402_vm2, %v7968_v21  ;;  %v8472_v12 = vld [vmem:[#allocation2 + $0x10] sm:$0xff] }
  0x66   : > { %420 = vst.msk [vmem:[#allocation3 + $0x80] sm:$0xff] %vm402_vm2, %v7968_v21  ;;  %v8492_v20 = vld [vmem:[#allocation2 + $0x30] sm:$0xff] }
  0x67   : > { %422 = vst.msk [vmem:[#allocation3 + $0x90] sm:$0xff] %vm402_vm2, %v7968_v21 }
  0x68   : > { %423 = vst.msk [vmem:[#allocation3 + $0x98] sm:$0xff] %vm402_vm2, %v7968_v21 }
  0x69   : > { %808 = vrot.lane.b32.xlu1 %v8197_v34, %s7967_s19  ;;  %806 = vrot.lane.b32.xlu0 %v8289_v41, %s7967_s19  ;;  %425 = vst.msk [vmem:[#allocation3 + $0xa8] sm:$0xff] %vm402_vm2, %v7968_v21 }
  0x6a   : > { %810 = vrot.lane.b32.xlu2 %v8303_v43, %s7967_s19  ;;  %426 = vst.msk [vmem:[#allocation3 + $0xb0] sm:$0xff] %vm402_vm2, %v7968_v21 }
  0x6b   : > { %428 = vst.msk [vmem:[#allocation3 + $0xc0] sm:$0xff] %vm402_vm2, %v7968_v21 }
  0x6c   : > { %v602_v40 = vpop.permute.xlu2 %601  ;;  %429 = vst.msk [vmem:[#allocation3 + $0xc8] sm:$0xff] %vm402_vm2, %v7968_v21 }
  0x6d   : > { %695 = vst.msk [vmem:[#allocation3 + $0x49] sm:$0xff] %vm690_vm3, %v602_v40 }
  0x6e   : > { %431 = vst.msk [vmem:[#allocation3 + $0xd8] sm:$0xff] %vm402_vm2, %v7968_v21 }
  0x6f   : > { %432 = vst.msk [vmem:[#allocation3 + $0xe0] sm:$0xff] %vm402_vm2, %v7968_v21 }
  0x70   : > { %434 = vst.msk [vmem:[#allocation3 + $0xf0] sm:$0xff] %vm402_vm2, %v7968_v21 }
  0x71   : > { %814 = vrot.lane.b32.xlu1 %v8295_v42, %s7967_s19  ;;  %812 = vrot.lane.b32.xlu0 %v8313_v44, %s7967_s19  ;;  %435 = vst.msk [vmem:[#allocation3 + $0xf8] sm:$0xff] %vm402_vm2, %v7968_v21 }
  0x72   : > { %437 = vst.msk [vmem:[#allocation3 + $0x108] sm:$0xff] %vm402_vm2, %v7968_v21 }
  0x73   : > { %438 = vst.msk [vmem:[#allocation3 + $0x110] sm:$0xff] %vm402_vm2, %v7968_v21 }
  0x74   : > { %v604_v46 = vpop.permute.xlu2 %603  ;;  %440 = vst.msk [vmem:[#allocation3 + $0x120] sm:$0xff] %vm402_vm2, %v7968_v21 }
  0x75   : > { %441 = vst.msk [vmem:[#allocation3 + $0x128] sm:$0xff] %vm402_vm2, %v7968_v21 }
  0x76   : > { %443 = vst.msk [vmem:[#allocation3 + $0x138] sm:$0xff] %vm402_vm2, %v7968_v21 }
  0x77   : > { %444 = vst.msk [vmem:[#allocation3 + $0x140] sm:$0xff] %vm402_vm2, %v7968_v21 }
  0x78   : > { %446 = vst.msk [vmem:[#allocation3 + $0x150] sm:$0xff] %vm402_vm2, %v7968_v21 }
  0x79   : > { %836 = vrot.lane.b32.xlu1 %v739_v45, %s7969_s24  ;;  %447 = vst.msk [vmem:[#allocation3 + $0x158] sm:$0xff] %vm402_vm2, %v7968_v21  ;;  %v779_v45 = vld [vmem:[#allocation2 + $0x90] sm:$0xff] }
  0x7a   : > { %449 = vst.msk [vmem:[#allocation3 + $0x168] sm:$0xff] %vm402_vm2, %v7968_v21 }
  0x7b   : > { %450 = vst.msk [vmem:[#allocation3 + $0x170] sm:$0xff] %vm402_vm2, %v7968_v21 }
  0x7c   : > { %v8362_v50 = vpop.permute.xlu2 %609  ;;  %452 = vst.msk [vmem:[#allocation3 + $0x180] sm:$0xff] %vm402_vm2, %v7968_v21 }
  0x7d   : > { %453 = vst.msk [vmem:[#allocation3 + $0x188] sm:$0xff] %vm402_vm2, %v7968_v21 }
  0x7e   : > { %455 = vst.msk [vmem:[#allocation3 + $0x198] sm:$0xff] %vm402_vm2, %v7968_v21 }
  0x7f   : > { %456 = vst.msk [vmem:[#allocation3 + $0x1a0] sm:$0xff] %vm402_vm2, %v7968_v21 }
  0x80   : > { %527 = vst.msk [vmem:[#allocation2 + $0x71] sm:$0xff] %vm380_vm0, %v518_v53 }
  0x81   : > { %842 = vrot.lane.b32.xlu1 %v8342_v47, %s7969_s24  ;;  %526 = vst.msk [vmem:[#allocation2 + $0x61] sm:$0xff] %vm380_vm0, %v517_v55 }
  0x82   : > { %415 = vst.msk [vmem:[#allocation3 + $0x58] sm:$0x3] %vm405_vm4, %v7968_v21 }
  0x83   : > { %v8352_v48 = vpop.permute.xlu1 %597  ;;  %v8358_v49 = vpop.permute.xlu0 %593  ;;  %696 = vst.msk [vmem:[#allocation3 + $0x51] sm:$0xff] %vm690_vm3, %v604_v46 }
  0x84   : > { %v616_v54 = vpop.permute.xlu2 %615  ;;  %406 = vst.msk [vmem:[#allocation3 + $0x10] sm:$0x3] %vm405_vm4, %v7968_v21 }
  0x85   : > { %409 = vst.msk [vmem:[#allocation3 + $0x28] sm:$0x3] %vm405_vm4, %v7968_v21 }
  0x86   : > { %412 = vst.msk [vmem:[#allocation3 + $0x40] sm:$0x3] %vm405_vm4, %v7968_v21 }
  0x87   : > { %v8397_v59 = vld [vmem:[#allocation2 + $0x71] sm:$0xff]  ;;  %418 = vst.msk [vmem:[#allocation3 + $0x70] sm:$0x3] %vm405_vm4, %v7968_v21 }
  0x88   : > { %818 = vrot.lane.b32.xlu0 %v8397_v59, %s7967_s19  ;;  %v8403_v60 = vld [vmem:[#allocation2 + $0x61] sm:$0xff]  ;;  %421 = vst.msk [vmem:[#allocation3 + $0x88] sm:$0x3] %vm405_vm4, %v7968_v21  ;;  %v8475_v14 = vld [vmem:[#allocation2 + $0x72] sm:$0xff] }
  0x89   : > { %v8407_v61 = vld [vmem:[#allocation2 + $0x62] sm:$0xff]  ;;  %816 = vrot.lane.b32.xlu2 %v8403_v60, %s7967_s19  ;;  %424 = vst.msk [vmem:[#allocation3 + $0xa0] sm:$0x3] %vm405_vm4, %v7968_v21  ;;  %v8508_v24 = vld [vmem:[#allocation2 + $0x70] sm:$0xff] }
  0x8a   : > { %848 = vrot.lane.b32.xlu1 %v8407_v61, %s7969_s24  ;;  %427 = vst.msk [vmem:[#allocation3 + $0xb8] sm:$0x3] %vm405_vm4, %v7968_v21  ;;  %v8511_v26 = vld [vmem:[#allocation2 + $0x60] sm:$0xff] }
  0x8b   : > { %v600_v51 = vpop.permute.xlu1 %599  ;;  %v596_v52 = vpop.permute.xlu0 %595  ;;  %430 = vst.msk [vmem:[#allocation3 + $0xd0] sm:$0x3] %vm405_vm4, %v7968_v21 }
  0x8c   : > { %v622_v58 = vpop.permute.xlu2 %621  ;;  %433 = vst.msk [vmem:[#allocation3 + $0xe8] sm:$0x3] %vm405_vm4, %v7968_v21 }
  0x8d   : > { %436 = vst.msk [vmem:[#allocation3 + $0x100] sm:$0x3] %vm405_vm4, %v7968_v21 }
  0x8e   : > { %439 = vst.msk [vmem:[#allocation3 + $0x118] sm:$0x3] %vm405_vm4, %v7968_v21 }
  0x8f   : > { %442 = vst.msk [vmem:[#allocation3 + $0x130] sm:$0x3] %vm405_vm4, %v7968_v21 }
  0x90   : > { %445 = vst.msk [vmem:[#allocation3 + $0x148] sm:$0x3] %vm405_vm4, %v7968_v21  ;;  %840 = vrot.lane.b32.xlu0 %v8423_v0, %s7969_s24 }
  0x91   : > { %448 = vst.msk [vmem:[#allocation3 + $0x160] sm:$0x3] %vm405_vm4, %v7968_v21  ;;  %838 = vrot.lane.b32.xlu2 %v8427_v2, %s7969_s24 }
  0x92   : > { %870 = vrot.lane.b32.xlu1 %v8429_v3, %s7970_s25  ;;  %451 = vst.msk [vmem:[#allocation3 + $0x178] sm:$0x3] %vm405_vm4, %v7968_v21 }
  0x93   : > { %v608_v56 = vpop.permute.xlu1 %607  ;;  %v606_v57 = vpop.permute.xlu0 %605  ;;  %454 = vst.msk [vmem:[#allocation3 + $0x190] sm:$0x3] %vm405_vm4, %v7968_v21 }
  0x94   : > { %v628_v1 = vpop.permute.xlu2 %627  ;;  %457 = vst.msk [vmem:[#allocation3 + $0x1a8] sm:$0x3] %vm405_vm4, %v7968_v21  ;;  %vm1335_vm4 = vcmask 63494  }
  0x95   : > { %693 = vst.msk [vmem:[#allocation3 + $0x31] sm:$0xff] %vm690_vm3, %v8352_v48 }
  0x96   : > { %691 = vst.msk [vmem:[#allocation3 + $0x19] sm:$0xff] %vm690_vm3, %v8358_v49 }
  0x97   : > { %699 = vst.msk [vmem:[#allocation3 + $0x79] sm:$0xff] %vm690_vm3, %v8362_v50 }
  0x98   : > { %846 = vrot.lane.b32.xlu0 %v8451_v6, %s7969_s24  ;;  %694 = vst.msk [vmem:[#allocation3 + $0x39] sm:$0xff] %vm690_vm3, %v600_v51 }
  0x99   : > { %844 = vrot.lane.b32.xlu2 %v8455_v8, %s7969_s24  ;;  %692 = vst.msk [vmem:[#allocation3 + $0x21] sm:$0xff] %vm690_vm3, %v596_v52 }
  0x9a   : > { %876 = vrot.lane.b32.xlu1 %v8457_v9, %s7970_s25  ;;  %702 = vst.msk [vmem:[#allocation3 + $0x99] sm:$0xff] %vm690_vm3, %v616_v54 }
  0x9b   : > { %v614_v62 = vpop.permute.xlu1 %613  ;;  %v612_v63 = vpop.permute.xlu0 %611  ;;  %698 = vst.msk [vmem:[#allocation3 + $0x69] sm:$0xff] %vm690_vm3, %v608_v56 }
  0x9c   : > { %v634_v7 = vpop.permute.xlu2 %633  ;;  %697 = vst.msk [vmem:[#allocation3 + $0x61] sm:$0xff] %vm690_vm3, %v606_v57 }
  0x9d   : > { %705 = vst.msk [vmem:[#allocation3 + $0xc1] sm:$0xff] %vm690_vm3, %v622_v58 }
  0x9e   : > { %701 = vst.msk [vmem:[#allocation3 + $0x91] sm:$0xff] %vm690_vm3, %v614_v62 }
  0x9f   : > { %700 = vst.msk [vmem:[#allocation3 + $0x81] sm:$0xff] %vm690_vm3, %v612_v63 }
  0xa0   : > { %868 = vrot.lane.b32.xlu0 %v8472_v12, %s7970_s25  ;;  %708 = vst.msk [vmem:[#allocation3 + $0xe1] sm:$0xff] %vm690_vm3, %v628_v1 }
  0xa1   : > { %850 = vrot.lane.b32.xlu2 %v8475_v14, %s7969_s24  ;;  %528 = vst.msk [vmem:[#allocation2 + $0x81] sm:$0xff] %vm380_vm0, %v519_v15 }
  0xa2   : > { %711 = vst.msk [vmem:[#allocation3 + $0x109] sm:$0xff] %vm690_vm3, %v634_v7 }
  0xa3   : > { %v620_v4 = vpop.permute.xlu1 %619  ;;  %v618_v5 = vpop.permute.xlu0 %617 }
  0xa4   : > { %v640_v13 = vpop.permute.xlu2 %639  ;;  %704 = vst.msk [vmem:[#allocation3 + $0xb1] sm:$0xff] %vm690_vm3, %v620_v4 }
  0xa5   : > { %703 = vst.msk [vmem:[#allocation3 + $0xa9] sm:$0xff] %vm690_vm3, %v618_v5 }
  0xa6   : > { %714 = vst.msk [vmem:[#allocation3 + $0x129] sm:$0xff] %vm690_vm3, %v640_v13 }
  0xa8   : > { %874 = vrot.lane.b32.xlu0 %v8489_v18, %s7970_s25  ;;  %v8498_v21 = vld [vmem:[#allocation2 + $0x80] sm:$0xff] }
  0xa9   : > { %872 = vrot.lane.b32.xlu2 %v8492_v20, %s7970_s25  ;;  %882 = vrot.lane.b32.xlu1 %v8498_v21, %s7970_s25  ;;  %v762_v33 = vld [vmem:[#allocation2 + $0x81] sm:$0xff] }
  0xaa   : > { %v770_v38 = vld [vmem:[#allocation2 + $0x82] sm:$0xff] }
  0xab   : > { %v626_v10 = vpop.permute.xlu1 %625  ;;  %v624_v11 = vpop.permute.xlu0 %623 }
  0xac   : > { %707 = vst.msk [vmem:[#allocation3 + $0xd9] sm:$0xff] %vm690_vm3, %v626_v10  ;;  %v646_v19 = vpop.permute.xlu2 %645 }
  0xad   : > { %706 = vst.msk [vmem:[#allocation3 + $0xc9] sm:$0xff] %vm690_vm3, %v624_v11 }
  0xae   : > { %717 = vst.msk [vmem:[#allocation3 + $0x151] sm:$0xff] %vm690_vm3, %v646_v19 }
  0xb0   : > { %880 = vrot.lane.b32.xlu0 %v8508_v24, %s7970_s25 }
  0xb1   : > { %878 = vrot.lane.b32.xlu2 %v8511_v26, %s7970_s25  ;;  %904 = vrot.lane.b32.xlu1 %v8303_v43, %s7971_s26 }
  0xb3   : > { %v632_v16 = vpop.permute.xlu1 %631  ;;  %v630_v17 = vpop.permute.xlu0 %629 }
  0xb4   : > { %710 = vst.msk [vmem:[#allocation3 + $0xf9] sm:$0xff] %vm690_vm3, %v632_v16  ;;  %v652_v25 = vpop.permute.xlu2 %651 }
  0xb5   : > { %709 = vst.msk [vmem:[#allocation3 + $0xf1] sm:$0xff] %vm690_vm3, %v630_v17 }
  0xb6   : > { %720 = vst.msk [vmem:[#allocation3 + $0x171] sm:$0xff] %vm690_vm3, %v652_v25  ;;  %v1127_v25 = vld [vmem:[%s13242_s2 + $0x28] sm:$0xff] }
  0xb8   : > { %902 = vrot.lane.b32.xlu0 %v8197_v34, %s7971_s26 }
  0xb9   : > { %900 = vrot.lane.b32.xlu2 %v8289_v41, %s7971_s26  ;;  %910 = vrot.lane.b32.xlu1 %v8403_v60, %s7971_s26 }
  0xbb   : > { %v638_v22 = vpop.permute.xlu1 %637  ;;  %v636_v23 = vpop.permute.xlu0 %635 }
  0xbc   : > { %713 = vst.msk [vmem:[#allocation3 + $0x121] sm:$0xff] %vm690_vm3, %v638_v22  ;;  %v8543_v35 = vpop.permute.xlu2 %804  ;;  %v1129_v22 = vld [vmem:[%s13242_s2 + $0x38] sm:$0xff] }
  0xbd   : > { %712 = vst.msk [vmem:[#allocation3 + $0x111] sm:$0xff] %vm690_vm3, %v636_v23  ;;  %v1128_v23 = vld [vmem:[%s13242_s2 + $0x30] sm:$0xff] }
  0xc0   : > { %908 = vrot.lane.b32.xlu0 %v8295_v42, %s7971_s26 }
  0xc1   : > { %906 = vrot.lane.b32.xlu2 %v8313_v44, %s7971_s26  ;;  %932 = vrot.lane.b32.xlu1 %v8427_v2, %s7972_s27 }
  0xc3   : > { %v644_v27 = vpop.permute.xlu1 %643  ;;  %v642_v28 = vpop.permute.xlu0 %641 }
  0xc4   : > { %716 = vst.msk [vmem:[#allocation3 + $0x141] sm:$0xff] %vm690_vm3, %v644_v27  ;;  %v8557_v37 = vpop.permute.xlu2 %810 }
  0xc5   : > { %715 = vst.msk [vmem:[#allocation3 + $0x139] sm:$0xff] %vm690_vm3, %v642_v28 }
  0xc8   : > { %914 = vrot.lane.b32.xlu0 %v762_v33, %s7971_s26 }
  0xc9   : > { %912 = vrot.lane.b32.xlu2 %v8397_v59, %s7971_s26  ;;  %938 = vrot.lane.b32.xlu1 %v8455_v8, %s7972_s27 }
  0xcb   : > { %v650_v29 = vpop.permute.xlu1 %649  ;;  %v648_v30 = vpop.permute.xlu0 %647 }
  0xcc   : > { %719 = vst.msk [vmem:[#allocation3 + $0x169] sm:$0xff] %vm690_vm3, %v650_v29 }
  0xcd   : > { %718 = vst.msk [vmem:[#allocation3 + $0x159] sm:$0xff] %vm690_vm3, %v648_v30  ;;  %v1126_v30 = vld [vmem:[%s13242_s2 + $0x20] sm:$0xff] }
  0xd0   : > { %936 = vrot.lane.b32.xlu0 %v8342_v47, %s7972_s27 }
  0xd1   : > { %934 = vrot.lane.b32.xlu2 %v8423_v0, %s7972_s27  ;;  %944 = vrot.lane.b32.xlu1 %v8475_v14, %s7972_s27 }
  0xd3   : > { %v656_v31 = vpop.permute.xlu1 %655  ;;  %v654_v32 = vpop.permute.xlu0 %653 }
  0xd4   : > { %722 = vst.msk [vmem:[#allocation3 + $0x189] sm:$0xff] %vm690_vm3, %v656_v31  ;;  %v1125_v31 = vld [vmem:[%s13242_s2 + $0x18] sm:$0xff] }
  0xd5   : > { %721 = vst.msk [vmem:[#allocation3 + $0x181] sm:$0xff] %vm690_vm3, %v654_v32  ;;  %v1124_v32 = vld [vmem:[%s13242_s2 + $0x10] sm:$0xff]  ;;  %vm1318_vm3 = vcmask 62469  }
  0xd8   : > { %942 = vrot.lane.b32.xlu0 %v8407_v61, %s7972_s27 }
  0xd9   : > { %940 = vrot.lane.b32.xlu2 %v8451_v6, %s7972_s27  ;;  %966 = vrot.lane.b32.xlu1 %v8492_v20, %s7973_s28 }
  0xdb   : > { %v8551_v36 = vpop.permute.xlu1 %808  ;;  %v8570_v41 = vpop.permute.xlu0 %806 }
  0xe0   : > { %964 = vrot.lane.b32.xlu0 %v8429_v3, %s7973_s28 }
  0xe1   : > { %946 = vrot.lane.b32.xlu2 %v770_v38, %s7972_s27  ;;  %972 = vrot.lane.b32.xlu1 %v8511_v26, %s7973_s28 }
  0xe3   : > { %v8561_v39 = vpop.permute.xlu1 %814  ;;  %v8568_v40 = vpop.permute.xlu2 %816 }
  0xe4   : > { %v8583_v49 = vpop.permute.xlu0 %812 }
  0xe8   : > { %970 = vrot.lane.b32.xlu0 %v8457_v9, %s7973_s28 }
  0xe9   : > { %968 = vrot.lane.b32.xlu2 %v8489_v18, %s7973_s28  ;;  %978 = vrot.lane.b32.xlu1 %v779_v45, %s7973_s28 }
  0xeb   : > { %v8577_v46 = vpop.permute.xlu1 %836  ;;  %v8579_v48 = vpop.permute.xlu2 %838 }
  0xf0   : > { %976 = vrot.lane.b32.xlu0 %v8498_v21, %s7973_s28  ;;  %v1130_v21 = vld [vmem:[%s13242_s2 + $0x40] sm:$0xff] }
  0xf1   : > { %974 = vrot.lane.b32.xlu2 %v8508_v24, %s7973_s28  ;;  %1000 = vrot.lane.b32.xlu1 %v8313_v44, %s7974_s29  ;;  %v787_v44 = vld [vmem:[#allocation2 + $0x91] sm:$0xff] }
  0xf2   : > { %1167 = vmatpush.msra.mxu0 %v1130_v21 }
  0xf3   : > { %v8589_v50 = vpop.permute.xlu2 %844  ;;  %v8591_v51 = vpop.permute.xlu1 %842 }
  0xf4   : > { %1168 = vmatpush.msra.mxu0 %v1129_v22 }
  0xf6   : > { %1169 = vmatpush.msra.mxu0 %v1128_v23 }
  0xf8   : > { %998 = vrot.lane.b32.xlu0 %v8303_v43, %s7974_s29  ;;  %1170 = vmatpush.msra.mxu0 %v1127_v25  ;;  %v723_v25 = vld [vmem:[#allocation2] sm:$0xff] }
  0xf9   : > { %996 = vrot.lane.b32.xlu2 %v8197_v34, %s7974_s29  ;;  %1006 = vrot.lane.b32.xlu1 %v8397_v59, %s7974_s29 }
  0xfa   : > { %v8599_v52 = vpop.permute.xlu0 %818  ;;  %1171 = vmatpush.msra.mxu0 %v1126_v30  ;;  %v1052_v30 = vsel %vm380_vm0, %v723_v25, %v8543_v35 }
  0xfb   : > { %v8601_v53 = vpop.permute.xlu2 %850 }
  0xfc   : > { %v8603_v54 = vpop.permute.xlu1 %848  ;;  %1172 = vmatpush.msra.mxu0 %v1125_v31  ;;  %v1060_v31 = vsel %vm402_vm2, %v1052_v30, %v8577_v46 }
  0xfe   : > { %1173 = vmatpush.msra.mxu0 %v1124_v32 }
 0x100   : > { %1004 = vrot.lane.b32.xlu0 %v8403_v60, %s7974_s29 }
 0x101   : > { %1002 = vrot.lane.b32.xlu2 %v8295_v42, %s7974_s29  ;;  %1028 = vrot.lane.b32.xlu1 %v8423_v0, %s7975_s30  ;;  %v795_v0 = vld [vmem:[#allocation2 + $0x92] sm:$0xff] }
 0x102   : > { %v8611_v34 = vpop.permute.xlu0 %840 }
 0x103   : > { %v8613_v43 = vpop.permute.xlu2 %872 }
 0x104   : > { %v8615_v55 = vpop.permute.xlu1 %870 }
 0x108   : > { %1010 = vrot.lane.b32.xlu0 %v787_v44, %s7974_s29 }
 0x109   : > { %1008 = vrot.lane.b32.xlu2 %v762_v33, %s7974_s29  ;;  %1034 = vrot.lane.b32.xlu1 %v8451_v6, %s7975_s30  ;;  %v1123_v33 = vld [vmem:[%s13242_s2 + $0x8] sm:$0xff] }
 0x10a   : > { %v8621_v56 = vpop.permute.xlu0 %846  ;;  %1174 = vmatpush.msra.mxu0 %v1123_v33 }
 0x10b   : > { %v8623_v42 = vpop.permute.xlu2 %878 }
 0x10c   : > { %v8630_v57 = vpop.permute.xlu1 %876 }
 0x110   : > { %1032 = vrot.lane.b32.xlu0 %v8455_v8, %s7975_s30 }
 0x111   : > { %1030 = vrot.lane.b32.xlu2 %v8342_v47, %s7975_s30  ;;  %1040 = vrot.lane.b32.xlu1 %v770_v38, %s7975_s30 }
 0x112   : > { %v869_v58 = vpop.permute.xlu0 %868 }
 0x113   : > { %v901_v59 = vpop.permute.xlu2 %900  ;;  %v1069_v33 = vsel %vm1068_vm5, %v1060_v31, %v869_v58 }
 0x118   : > { %1038 = vrot.lane.b32.xlu0 %v8475_v14, %s7975_s30 }
 0x119   : > { %1036 = vrot.lane.b32.xlu2 %v8407_v61, %s7975_s30 }
 0x11a   : > { %v8636_v60 = vpop.permute.xlu0 %874 }
 0x11b   : > { %v8638_v62 = vpop.permute.xlu2 %906  ;;  %v8640_v63 = vpop.permute.xlu1 %882 }
 0x121   : > { %1042 = vrot.lane.b32.xlu2 %v795_v0, %s7975_s30  ;;  %v1122_v0 = vld [vmem:[%s13242_s2] sm:$0xff] }
 0x122   : > { %v8643_v47 = vpop.permute.xlu0 %880  ;;  %1175 = vmatpush.msra.mxu0 %v1122_v0  ;;  %v1078_v0 = vsel %vm1077_vm6, %v1069_v33, %v901_v59 }
 0x123   : > { %v8645_v1 = vpop.permute.xlu2 %912  ;;  %v8647_v2 = vpop.permute.xlu1 %904 }
 0x12a   : > { %v8649_v4 = vpop.permute.xlu0 %902 }
 0x12b   : > { %v8651_v5 = vpop.permute.xlu2 %934  ;;  %v8653_v61 = vpop.permute.xlu1 %910 }
 0x132   : > { %v8655_v6 = vpop.permute.xlu0 %908 }
 0x133   : > { %v8657_v7 = vpop.permute.xlu2 %940  ;;  %v933_v8 = vpop.permute.xlu1 %932 }
 0x13a   : > { %v8659_v10 = vpop.permute.xlu0 %914 }
 0x13b   : > { %13325 = vst [vmem:[#allocation5_spill] sm:$0xff] %v8659_v10  ;;  %v8661_v11 = vpop.permute.xlu1 %938  ;;  %v8663_v13 = vpop.permute.xlu2 %946  ;;  %v1087_v10 = vsel %vm1086_vm7, %v1078_v0, %v933_v8 }
 0x13c   : > { %13326 = vst [vmem:[#allocation6_spill] sm:$0xff] %v8663_v13  ;;  %v1053_v13 = vsel %vm380_vm0, %v8472_v12, %v8570_v41 }
 0x13d   : > { %v1061_v58 = vsel %vm402_vm2, %v1053_v13, %v8579_v48 }
 0x13e   : > { %v1070_v59 = vsel %vm1068_vm5, %v1061_v58, %v8615_v55  ;;  %v1054_v55 = vsel %vm380_vm0, %v8429_v3, %v8551_v36  ;;  %v1055_v36 = vsel %vm380_vm0, %v8492_v20, %v8557_v37  ;;  %v1056_v20 = vsel %vm380_vm0, %v8489_v18, %v8583_v49  ;;  %v1577_v18 = vld [vmem:[#allocation3 + $0x1] sm:$0xff]  ;;  %v1578_v49 = vld [vmem:[#allocation3 + $0x9] sm:$0xff] }
 0x13f   : > { %v1079_v12 = vsel %vm1077_vm6, %v1070_v59, %v8649_v4 }
 0x140   : > { %v1088_v8 = vsel %vm1086_vm7, %v1079_v12, %v8651_v5 }
 0x142   : > { %v8665_v14 = vpop.permute.xlu0 %936 }
 0x143   : > { %v8667_v15 = vpop.permute.xlu1 %944  ;;  %v8669_v16 = vpop.permute.xlu2 %968 }
 0x14a   : > { %v8671_v17 = vpop.permute.xlu0 %942 }
 0x14b   : > { %v967_v19 = vpop.permute.xlu1 %966  ;;  %v8685_v27 = vpop.permute.xlu2 %974 }
 0x14c   : > { %v1097_v48 = vsel %vm1095_vm8, %v1088_v8, %v967_v19 }
 0x152   : > { %v965_v28 = vpop.permute.xlu0 %964 }
 0x153   : > { %v8687_v29 = vpop.permute.xlu1 %972  ;;  %v997_v45 = vpop.permute.xlu2 %996  ;;  %v1096_v46 = vsel %vm1095_vm8, %v1087_v10, %v965_v28  ;;  %v1062_v28 = vsel %vm402_vm2, %v1054_v55, %v8611_v34  ;;  %v1063_v34 = vsel %vm402_vm2, %v1055_v36, %v8591_v51 }
 0x154   : > { %v1105_v30 = vsel %vm1104_vm9, %v1096_v46, %v997_v45  ;;  %v1071_v33 = vsel %vm1068_vm5, %v1062_v28, %v8613_v43  ;;  %v1072_v43 = vsel %vm1068_vm5, %v1063_v34, %v8636_v60  ;;  %v1064_v60 = vsel %vm402_vm2, %v1056_v20, %v8589_v50  ;;  %v8840_v28 = vld [vmem:[%s13243_s3] ss:$0 sm:$0xff] }
 0x155   : > { %v1080_v5 = vsel %vm1077_vm6, %v1071_v33, %v8647_v2 }
 0x156   : > { %v1089_v3 = vsel %vm1086_vm7, %v1080_v5, %v8665_v14  ;;  %v1081_v14 = vsel %vm1077_vm6, %v1072_v43, %v8638_v62 }
 0x157   : > { %v1098_v19 = vsel %vm1095_vm8, %v1089_v3, %v8669_v16  ;;  %v1090_v37 = vsel %vm1086_vm7, %v1081_v14, %v8661_v11  ;;  %v7328_v11 = vpack.i.bf16 %v1578_v49, %v1577_v18 }
 0x159   : > { %7329 = vrot.lane.b32.xlu0 %v7328_v11, %s7969_s24 }
 0x15a   : > { %v971_v38 = vpop.permute.xlu0 %970 }
 0x15b   : > { %v8701_v44 = vpop.permute.xlu1 %978  ;;  %v1003_v23 = vpop.permute.xlu2 %1002  ;;  %v1099_v51 = vsel %vm1095_vm8, %v1090_v37, %v971_v38 }
 0x15c   : > { %13327 = vst [vmem:[#allocation7_spill] sm:$0xff] %v8701_v44  ;;  %v1108_v46 = vsel %vm1104_vm9, %v1099_v51, %v1003_v23 }
 0x162   : > { %v8706_v21 = vpop.permute.xlu0 %976 }
 0x163   : > { %v1001_v22 = vpop.permute.xlu1 %1000  ;;  %v8720_v35 = vpop.permute.xlu2 %1008 }
 0x164   : > { %v1107_v0 = vsel %vm1104_vm9, %v1098_v19, %v1001_v22  ;;  %v1073_v22 = vsel %vm1068_vm5, %v1064_v60, %v8630_v57  ;;  %v1057_v57 = vsel %vm380_vm0, %v8457_v9, %v8561_v39  ;;  %v1058_v9 = vsel %vm380_vm0, %v8511_v26, %v8568_v40 }
 0x165   : > { %v1082_v62 = vsel %vm1077_vm6, %v1073_v22, %v8655_v6  ;;  %v1065_v59 = vsel %vm402_vm2, %v1057_v57, %v8621_v56  ;;  %v1066_v56 = vsel %vm402_vm2, %v1058_v9, %v8603_v54  ;;  %v1059_v40 = vsel %vm380_vm0, %v8508_v24, %v8599_v52  ;;  %v13329_v52 = vld [vmem:[#allocation6_spill] sm:$0xff] }
 0x166   : > { %v1091_v38 = vsel %vm1086_vm7, %v1082_v62, %v8657_v7  ;;  %v1074_v7 = vsel %vm1068_vm5, %v1065_v59, %v8623_v42  ;;  %v1075_v42 = vsel %vm1068_vm5, %v1066_v56, %v8643_v47 }
 0x167   : > { %v1100_v50 = vsel %vm1095_vm8, %v1091_v38, %v8687_v29  ;;  %v1083_v29 = vsel %vm1077_vm6, %v1074_v7, %v8653_v61  ;;  %v1084_v26 = vsel %vm1077_vm6, %v1075_v42, %v8645_v1 }
 0x168   : > { %v1093_v54 = vsel %vm1086_vm7, %v1084_v26, %v8667_v15 }
 0x169   : > { %v1102_v47 = vsel %vm1095_vm8, %v1093_v54, %v8706_v21  ;;  %v13330_v21 = vld [vmem:[#allocation7_spill] sm:$0xff] }
 0x16a   : > { %v999_v32 = vpop.permute.xlu0 %998  ;;  %v1111_v1 = vsel %vm1104_vm9, %v1102_v47, %v8720_v35  ;;  %v1609_v35 = vld [vmem:[#allocation3 + $0x2] sm:$0xff] }
 0x16b   : > { %v8713_v44 = vpop.permute.xlu1 %1006  ;;  %v1106_v10 = vsel %vm1104_vm9, %v1097_v48, %v999_v32  ;;  %v1031_v13 = vpop.permute.xlu2 %1030 }
 0x16c   : > { %v1115_v45 = vsel %vm1113_vm11, %v1106_v10, %v1031_v13  ;;  %v1610_v10 = vld [vmem:[#allocation3 + $0xa] sm:$0xff] }
 0x16d   : > { %v7333_v13 = vpack.i.bf16 %v1610_v10, %v1609_v35 }
 0x16f   : > { %7334 = vrot.lane.b32.xlu1 %v7333_v13, %s7971_s26 }
 0x172   : > { %v1005_v25 = vpop.permute.xlu0 %1004 }
 0x173   : > { %v1029_v31 = vpop.permute.xlu1 %1028  ;;  %v1109_v6 = vsel %vm1104_vm9, %v1100_v50, %v1005_v25  ;;  %v1037_v23 = vpop.permute.xlu2 %1036 }
 0x174   : > { %v1114_v41 = vsel %vm1113_vm11, %v1105_v30, %v1029_v31  ;;  %v1118_v30 = vsel %vm1113_vm11, %v1109_v6, %v1037_v23  ;;  %v1092_v31 = vsel %vm1086_vm7, %v1083_v29, %v8671_v17 }
 0x175   : > { %7187 = vmatmul.msk.f32.vlgmr.msra.gmra.mxu0 %vm13251_vm10, %v1114_v41  ;;  %v1101_v25 = vsel %vm1095_vm8, %v1092_v31, %v8685_v27  ;;  %v1067_v27 = vsel %vm402_vm2, %v1059_v40, %v8601_v53  ;;  %v13328_v41 = vld [vmem:[#allocation5_spill] sm:$0xff] }
 0x176   : > { %v1110_v61 = vsel %vm1104_vm9, %v1101_v25, %v8713_v44  ;;  %v1076_v44 = vsel %vm1068_vm5, %v1067_v27, %v8640_v63 }
 0x177   : > { %v1085_v8 = vsel %vm1077_vm6, %v1076_v44, %v13328_v41 }
 0x178   : > { %v1094_v15 = vsel %vm1086_vm7, %v1085_v8, %v13329_v52 }
 0x179   : > { %v1103_v48 = vsel %vm1095_vm8, %v1094_v15, %v13330_v21 }
 0x17a   : > { %v1011_v4 = vpop.permute.xlu0 %1010 }
 0x17b   : > { %v1035_v16 = vpop.permute.xlu1 %1034  ;;  %v1112_v53 = vsel %vm1104_vm9, %v1103_v48, %v1011_v4  ;;  %v1043_v55 = vpop.permute.xlu2 %1042 }
 0x17c   : > { %v1117_v58 = vsel %vm1113_vm11, %v1108_v46, %v1035_v16  ;;  %v1121_v63 = vsel %vm1113_vm11, %v1112_v53, %v1043_v55 }
 0x17d   : > { %7188 = vmatmul.msk.f32.gmra.mxu0 %vm13251_vm10, %v1115_v45 }
 0x182   : > { %v1033_v32 = vpop.permute.xlu0 %1032 }
 0x183   : > { %v1116_v2 = vsel %vm1113_vm11, %v1107_v0, %v1033_v32  ;;  %v1041_v17 = vpop.permute.xlu1 %1040 }
 0x184   : > { %v1120_v24 = vsel %vm1113_vm11, %v1111_v1, %v1041_v17 }
 0x185   : > { %7189 = vmatmul.msk.f32.gmra.mxu0 %vm13251_vm10, %v1116_v2 }
 0x18a   : > { %v1039_v39 = vpop.permute.xlu0 %1038 }
 0x18b   : > { %v1119_v12 = vsel %vm1113_vm11, %v1110_v61, %v1039_v39 }
 0x18d   : > { %7190 = vmatmul.msk.f32.gmra.mxu0 %vm13251_vm10, %v1117_v58 }
 0x195   : > { %7191 = vmatmul.msk.f32.gmra.mxu0 %vm13251_vm10, %v1118_v30 }
 0x19d   : > { %7192 = vmatmul.msk.f32.gmra.mxu0 %vm13251_vm10, %v1119_v12 }
 0x1a5   : > { %7193 = vmatmul.msk.f32.gmra.mxu0 %vm13251_vm10, %v1120_v24 }
 0x1ad   : > { %7194 = vmatmul.msk.f32.gmra.mxu0 %vm13251_vm10, %v1121_v63  ;;  %vm1352_vm10 = vcmask 64519  }
 0x1cb   : > { %v8938_v22 = vpop.permute.xlu0 %7329 }
 0x1e1   : > { %v8947_v11 = vpop.permute.xlu1 %7334 }
 0x1f2   : > { %v1177_v45 = vpop.f32.mrf.mxu0 }
 0x1f3   : > { %v1178_v33 = vadd.f32 %v8840_v28, %v1177_v45 }
 0x1f5   : > { %1369 = vrot.lane.b32.xlu2 %v1178_v33, %s7976_s11  ;;  %1209 = vrot.lane.b32.xlu0 %v1178_v33, %s7977_s12  ;;  %1234 = vst.msk [vmem:[#allocation3 + $0x19] sm:$0x1] %vm1233_vm12, %v1178_v33 }
 0x1f6   : > { %1251 = vst.msk [vmem:[#allocation3 + $0x1a] sm:$0x2] %vm1250_vm13, %v1178_v33 }
 0x1f7   : > { %1268 = vst.msk [vmem:[#allocation3 + $0x1b] sm:$0x4] %vm1267_vm14, %v1178_v33 }
 0x1f8   : > { %1285 = vst.msk [vmem:[#allocation3 + $0x1c] sm:$0x8] %vm1284_vm15, %v1178_v33 }
 0x1f9   : > { %1302 = vst.msk [vmem:[#allocation3 + $0x1d] sm:$0x10] %vm1301_vm1, %v1178_v33 }
 0x1fa   : > { %v1180_v4 = vpop.f32.mrf.mxu0  ;;  %1319 = vst.msk [vmem:[#allocation3 + $0x1e] sm:$0x20] %vm1318_vm3, %v1178_v33 }
 0x1fb   : > { %v1181_v5 = vadd.f32 %v8840_v28, %v1180_v4  ;;  %1336 = vst.msk [vmem:[#allocation3 + $0x1f] sm:$0x40] %vm1335_vm4, %v1178_v33 }
 0x1fc   : > { %1353 = vst.msk [vmem:[#allocation3 + $0x20] sm:$0x80] %vm1352_vm10, %v1178_v33 }
 0x1fd   : > { %1211 = vrot.lane.b32.xlu1 %v1181_v5, %s7977_s12  ;;  %1236 = vst.msk [vmem:[#allocation3 + $0x49] sm:$0x1] %vm1233_vm12, %v1181_v5 }
 0x1fe   : > { %1253 = vst.msk [vmem:[#allocation3 + $0x4a] sm:$0x2] %vm1250_vm13, %v1181_v5 }
 0x1ff   : > { %1270 = vst.msk [vmem:[#allocation3 + $0x4b] sm:$0x4] %vm1267_vm14, %v1181_v5 }
 0x200   : > { %1287 = vst.msk [vmem:[#allocation3 + $0x4c] sm:$0x8] %vm1284_vm15, %v1181_v5 }
 0x201   : > { %1304 = vst.msk [vmem:[#allocation3 + $0x4d] sm:$0x10] %vm1301_vm1, %v1181_v5 }
 0x202   : > { %v1183_v3 = vpop.f32.mrf.mxu0  ;;  %1321 = vst.msk [vmem:[#allocation3 + $0x4e] sm:$0x20] %vm1318_vm3, %v1181_v5 }
 0x203   : > { %v1184_v36 = vadd.f32 %v8840_v28, %v1183_v3  ;;  %1338 = vst.msk [vmem:[#allocation3 + $0x4f] sm:$0x40] %vm1335_vm4, %v1181_v5 }
 0x204   : > { %1355 = vst.msk [vmem:[#allocation3 + $0x50] sm:$0x80] %vm1352_vm10, %v1181_v5 }
 0x205   : > { %1377 = vrot.lane.b32.xlu0 %v1184_v36, %s7976_s11  ;;  %1213 = vrot.lane.b32.xlu2 %v1184_v36, %s7977_s12  ;;  %1238 = vst.msk [vmem:[#allocation3 + $0x79] sm:$0x1] %vm1233_vm12, %v1184_v36 }
 0x206   : > { %1373 = vrot.lane.b32.xlu1 %v1181_v5, %s7976_s11  ;;  %1255 = vst.msk [vmem:[#allocation3 + $0x7a] sm:$0x2] %vm1250_vm13, %v1184_v36 }
 0x207   : > { %1272 = vst.msk [vmem:[#allocation3 + $0x7b] sm:$0x4] %vm1267_vm14, %v1184_v36 }
 0x208   : > { %1289 = vst.msk [vmem:[#allocation3 + $0x7c] sm:$0x8] %vm1284_vm15, %v1184_v36 }
 0x209   : > { %1306 = vst.msk [vmem:[#allocation3 + $0x7d] sm:$0x10] %vm1301_vm1, %v1184_v36 }
 0x20a   : > { %v1186_v34 = vpop.f32.mrf.mxu0  ;;  %1323 = vst.msk [vmem:[#allocation3 + $0x7e] sm:$0x20] %vm1318_vm3, %v1184_v36 }
 0x20b   : > { %v1187_v19 = vadd.f32 %v8840_v28, %v1186_v34  ;;  %1340 = vst.msk [vmem:[#allocation3 + $0x7f] sm:$0x40] %vm1335_vm4, %v1184_v36 }
 0x20c   : > { %1357 = vst.msk [vmem:[#allocation3 + $0x80] sm:$0x80] %vm1352_vm10, %v1184_v36 }
 0x20d   : > { %1215 = vrot.lane.b32.xlu0 %v1187_v19, %s7977_s12  ;;  %1381 = vrot.lane.b32.xlu2 %v1187_v19, %s7976_s11  ;;  %1240 = vst.msk [vmem:[#allocation3 + $0xa9] sm:$0x1] %vm1233_vm12, %v1187_v19 }
 0x20e   : > { %1257 = vst.msk [vmem:[#allocation3 + $0xaa] sm:$0x2] %vm1250_vm13, %v1187_v19 }
 0x20f   : > { %1274 = vst.msk [vmem:[#allocation3 + $0xab] sm:$0x4] %vm1267_vm14, %v1187_v19 }
 0x210   : > { %1291 = vst.msk [vmem:[#allocation3 + $0xac] sm:$0x8] %vm1284_vm15, %v1187_v19 }
 0x211   : > { %1308 = vst.msk [vmem:[#allocation3 + $0xad] sm:$0x10] %vm1301_vm1, %v1187_v19 }
 0x212   : > { %v1189_v32 = vpop.f32.mrf.mxu0  ;;  %1325 = vst.msk [vmem:[#allocation3 + $0xae] sm:$0x20] %vm1318_vm3, %v1187_v19 }
 0x213   : > { %v1190_v43 = vadd.f32 %v8840_v28, %v1189_v32  ;;  %1342 = vst.msk [vmem:[#allocation3 + $0xaf] sm:$0x40] %vm1335_vm4, %v1187_v19 }
 0x214   : > { %1359 = vst.msk [vmem:[#allocation3 + $0xb0] sm:$0x80] %vm1352_vm10, %v1187_v19 }
 0x215   : > { %1217 = vrot.lane.b32.xlu1 %v1190_v43, %s7977_s12  ;;  %1242 = vst.msk [vmem:[#allocation3 + $0xd9] sm:$0x1] %vm1233_vm12, %v1190_v43 }
 0x216   : > { %1259 = vst.msk [vmem:[#allocation3 + $0xda] sm:$0x2] %vm1250_vm13, %v1190_v43 }
 0x217   : > { %1276 = vst.msk [vmem:[#allocation3 + $0xdb] sm:$0x4] %vm1267_vm14, %v1190_v43 }
 0x218   : > { %1293 = vst.msk [vmem:[#allocation3 + $0xdc] sm:$0x8] %vm1284_vm15, %v1190_v43 }
 0x219   : > { %1310 = vst.msk [vmem:[#allocation3 + $0xdd] sm:$0x10] %vm1301_vm1, %v1190_v43 }
 0x21a   : > { %v1192_v0 = vpop.f32.mrf.mxu0  ;;  %1327 = vst.msk [vmem:[#allocation3 + $0xde] sm:$0x20] %vm1318_vm3, %v1190_v43 }
 0x21b   : > { %v1193_v2 = vadd.f32 %v8840_v28, %v1192_v0  ;;  %1344 = vst.msk [vmem:[#allocation3 + $0xdf] sm:$0x40] %vm1335_vm4, %v1190_v43 }
 0x21c   : > { %1361 = vst.msk [vmem:[#allocation3 + $0xe0] sm:$0x80] %vm1352_vm10, %v1190_v43 }
 0x21d   : > { %1389 = vrot.lane.b32.xlu0 %v1193_v2, %s7976_s11  ;;  %1219 = vrot.lane.b32.xlu2 %v1193_v2, %s7977_s12  ;;  %1244 = vst.msk [vmem:[#allocation3 + $0x109] sm:$0x1] %vm1233_vm12, %v1193_v2 }
 0x21e   : > { %1385 = vrot.lane.b32.xlu1 %v1190_v43, %s7976_s11  ;;  %1261 = vst.msk [vmem:[#allocation3 + $0x10a] sm:$0x2] %vm1250_vm13, %v1193_v2 }
 0x21f   : > { %1278 = vst.msk [vmem:[#allocation3 + $0x10b] sm:$0x4] %vm1267_vm14, %v1193_v2 }
 0x220   : > { %1295 = vst.msk [vmem:[#allocation3 + $0x10c] sm:$0x8] %vm1284_vm15, %v1193_v2 }
 0x221   : > { %1312 = vst.msk [vmem:[#allocation3 + $0x10d] sm:$0x10] %vm1301_vm1, %v1193_v2 }
 0x222   : > { %v1195_v14 = vpop.f32.mrf.mxu0  ;;  %1329 = vst.msk [vmem:[#allocation3 + $0x10e] sm:$0x20] %vm1318_vm3, %v1193_v2 }
 0x223   : > { %v1196_v20 = vadd.f32 %v8840_v28, %v1195_v14  ;;  %1346 = vst.msk [vmem:[#allocation3 + $0x10f] sm:$0x40] %vm1335_vm4, %v1193_v2 }
 0x224   : > { %1363 = vst.msk [vmem:[#allocation3 + $0x110] sm:$0x80] %vm1352_vm10, %v1193_v2 }
 0x225   : > { %1221 = vrot.lane.b32.xlu0 %v1196_v20, %s7977_s12  ;;  %1393 = vrot.lane.b32.xlu2 %v1196_v20, %s7976_s11  ;;  %1246 = vst.msk [vmem:[#allocation3 + $0x139] sm:$0x1] %vm1233_vm12, %v1196_v20 }
 0x226   : > { %1263 = vst.msk [vmem:[#allocation3 + $0x13a] sm:$0x2] %vm1250_vm13, %v1196_v20 }
 0x227   : > { %1280 = vst.msk [vmem:[#allocation3 + $0x13b] sm:$0x4] %vm1267_vm14, %v1196_v20 }
 0x228   : > { %1297 = vst.msk [vmem:[#allocation3 + $0x13c] sm:$0x8] %vm1284_vm15, %v1196_v20 }
 0x229   : > { %1314 = vst.msk [vmem:[#allocation3 + $0x13d] sm:$0x10] %vm1301_vm1, %v1196_v20 }
 0x22a   : > { %v1198_v37 = vpop.f32.mrf.mxu0  ;;  %1331 = vst.msk [vmem:[#allocation3 + $0x13e] sm:$0x20] %vm1318_vm3, %v1196_v20 }
 0x22b   : > { %v1199_v51 = vadd.f32 %v8840_v28, %v1198_v37  ;;  %1348 = vst.msk [vmem:[#allocation3 + $0x13f] sm:$0x40] %vm1335_vm4, %v1196_v20  ;;  %v2974_v37 = vld [vmem:[%s13244_s4 + $0x88] sm:$0xff] }
 0x22c   : > { %1365 = vst.msk [vmem:[#allocation3 + $0x140] sm:$0x80] %vm1352_vm10, %v1196_v20  ;;  %3202 = vmatpush.msra.mxu2 %v2974_v37  ;;  %7296 = vmatpush.msra.mxu3 %v2974_v37 }
 0x22d   : > { %1223 = vrot.lane.b32.xlu1 %v1199_v51, %s7977_s12  ;;  %1248 = vst.msk [vmem:[#allocation3 + $0x169] sm:$0x1] %vm1233_vm12, %v1199_v51 }
 0x22e   : > { %1265 = vst.msk [vmem:[#allocation3 + $0x16a] sm:$0x2] %vm1250_vm13, %v1199_v51 }
 0x22f   : > { %1282 = vst.msk [vmem:[#allocation3 + $0x16b] sm:$0x4] %vm1267_vm14, %v1199_v51 }
 0x230   : > { %1299 = vst.msk [vmem:[#allocation3 + $0x16c] sm:$0x8] %vm1284_vm15, %v1199_v51 }
 0x231   : > { %1316 = vst.msk [vmem:[#allocation3 + $0x16d] sm:$0x10] %vm1301_vm1, %v1199_v51 }
 0x232   : > { %1333 = vst.msk [vmem:[#allocation3 + $0x16e] sm:$0x20] %vm1318_vm3, %v1199_v51 }
 0x233   : > { %1350 = vst.msk [vmem:[#allocation3 + $0x16f] sm:$0x40] %vm1335_vm4, %v1199_v51 }
 0x234   : > { %1367 = vst.msk [vmem:[#allocation3 + $0x170] sm:$0x80] %vm1352_vm10, %v1199_v51 }
 0x235   : > { %1397 = vrot.lane.b32.xlu1 %v1199_v51, %s7976_s11  ;;  %v2973_v51 = vld [vmem:[%s13244_s4 + $0x80] sm:$0xff] }
 0x236   : > { %3203 = vmatpush.msra.mxu2 %v2973_v51  ;;  %7297 = vmatpush.msra.mxu3 %v2973_v51 }
 0x24f   : > { %v1370_v16 = vpop.permute.xlu2 %1369 }
 0x250   : > { %1417 = vst.msk [vmem:[#allocation3 + $0x1a] sm:$0x1] %vm1233_vm12, %v1370_v16 }
 0x251   : > { %1433 = vst.msk [vmem:[#allocation3 + $0x1b] sm:$0x2] %vm1250_vm13, %v1370_v16 }
 0x252   : > { %1449 = vst.msk [vmem:[#allocation3 + $0x1c] sm:$0x4] %vm1267_vm14, %v1370_v16 }
 0x253   : > { %1465 = vst.msk [vmem:[#allocation3 + $0x1d] sm:$0x8] %vm1284_vm15, %v1370_v16 }
 0x254   : > { %1481 = vst.msk [vmem:[#allocation3 + $0x1e] sm:$0x10] %vm1301_vm1, %v1370_v16 }
 0x255   : > { %1497 = vst.msk [vmem:[#allocation3 + $0x1f] sm:$0x20] %vm1318_vm3, %v1370_v16 }
 0x256   : > { %1513 = vst.msk [vmem:[#allocation3 + $0x20] sm:$0x40] %vm1335_vm4, %v1370_v16 }
 0x257   : > { %1529 = vst.msk [vmem:[#allocation3 + $0x21] sm:$0x80] %vm1352_vm10, %v1370_v16 }
 0x259   : > { %v1641_v23 = vld [vmem:[#allocation3 + $0x18] sm:$0xff] }
 0x25a   : > { %v1579_v60 = vld [vmem:[#allocation3 + $0x19] sm:$0xff] }
 0x25b   : > { %v1705_v18 = vld [vmem:[#allocation3 + $0x1a] sm:$0xff] }
 0x25d   : > { %v1642_v59 = vld [vmem:[#allocation3 + $0x20] sm:$0xff] }
 0x25e   : > { %v1580_v46 = vld [vmem:[#allocation3 + $0x21] sm:$0xff]  ;;  %v7348_v7 = vpack.i.bf16 %v1642_v59, %v1641_v23 }
 0x25f   : > { %v7338_v62 = vpack.i.bf16 %v1580_v46, %v1579_v60  ;;  %v1214_v58 = vpop.permute.xlu2 %1213  ;;  %v1706_v49 = vld [vmem:[#allocation3 + $0x22] sm:$0xff] }
 0x260   : > { %1239 = vst.msk [vmem:[#allocation3 + $0x91] sm:$0x1] %vm1233_vm12, %v1214_v58  ;;  %v7358_v38 = vpack.i.bf16 %v1706_v49, %v1705_v18 }
 0x261   : > { %7339 = vrot.lane.b32.xlu1 %v7338_v62, %s7969_s24  ;;  %1256 = vst.msk [vmem:[#allocation3 + $0x92] sm:$0x2] %vm1250_vm13, %v1214_v58 }
 0x262   : > { %1273 = vst.msk [vmem:[#allocation3 + $0x93] sm:$0x4] %vm1267_vm14, %v1214_v58 }
 0x263   : > { %1290 = vst.msk [vmem:[#allocation3 + $0x94] sm:$0x8] %vm1284_vm15, %v1214_v58 }
 0x264   : > { %1307 = vst.msk [vmem:[#allocation3 + $0x95] sm:$0x10] %vm1301_vm1, %v1214_v58 }
 0x265   : > { %1324 = vst.msk [vmem:[#allocation3 + $0x96] sm:$0x20] %vm1318_vm3, %v1214_v58 }
 0x266   : > { %1341 = vst.msk [vmem:[#allocation3 + $0x97] sm:$0x40] %vm1335_vm4, %v1214_v58 }
 0x267   : > { %1358 = vst.msk [vmem:[#allocation3 + $0x98] sm:$0x80] %vm1352_vm10, %v1214_v58  ;;  %v1210_v50 = vpop.permute.xlu0 %1209  ;;  %v1382_v57 = vpop.permute.xlu2 %1381 }
 0x268   : > { %1235 = vst.msk [vmem:[#allocation3 + $0x31] sm:$0x1] %vm1233_vm12, %v1210_v50  ;;  %1371 = vrot.lane.b32.xlu0 %v1210_v50, %s7976_s11 }
 0x269   : > { %7359 = vrot.lane.b32.xlu1 %v7358_v38, %s7978_s15  ;;  %1252 = vst.msk [vmem:[#allocation3 + $0x32] sm:$0x2] %vm1250_vm13, %v1210_v50 }
 0x26a   : > { %1269 = vst.msk [vmem:[#allocation3 + $0x33] sm:$0x4] %vm1267_vm14, %v1210_v50 }
 0x26b   : > { %1286 = vst.msk [vmem:[#allocation3 + $0x34] sm:$0x8] %vm1284_vm15, %v1210_v50 }
 0x26c   : > { %1303 = vst.msk [vmem:[#allocation3 + $0x35] sm:$0x10] %vm1301_vm1, %v1210_v50 }
 0x26d   : > { %1320 = vst.msk [vmem:[#allocation3 + $0x36] sm:$0x20] %vm1318_vm3, %v1210_v50 }
 0x26e   : > { %1337 = vst.msk [vmem:[#allocation3 + $0x37] sm:$0x40] %vm1335_vm4, %v1210_v50 }
 0x26f   : > { %1354 = vst.msk [vmem:[#allocation3 + $0x38] sm:$0x80] %vm1352_vm10, %v1210_v50  ;;  %v1212_v6 = vpop.permute.xlu1 %1211 }
 0x270   : > { %1423 = vst.msk [vmem:[#allocation3 + $0xaa] sm:$0x1] %vm1233_vm12, %v1382_v57  ;;  %7354 = vrot.lane.b32.xlu0 %v7338_v62, %s7975_s30  ;;  %1375 = vrot.lane.b32.xlu2 %v1212_v6, %s7976_s11 }
 0x271   : > { %1439 = vst.msk [vmem:[#allocation3 + $0xab] sm:$0x2] %vm1250_vm13, %v1382_v57  ;;  %1379 = vrot.lane.b32.xlu1 %v1214_v58, %s7976_s11 }
 0x272   : > { %1455 = vst.msk [vmem:[#allocation3 + $0xac] sm:$0x4] %vm1267_vm14, %v1382_v57 }
 0x273   : > { %1471 = vst.msk [vmem:[#allocation3 + $0xad] sm:$0x8] %vm1284_vm15, %v1382_v57 }
 0x274   : > { %1487 = vst.msk [vmem:[#allocation3 + $0xae] sm:$0x10] %vm1301_vm1, %v1382_v57 }
 0x275   : > { %1503 = vst.msk [vmem:[#allocation3 + $0xaf] sm:$0x20] %vm1318_vm3, %v1382_v57 }
 0x276   : > { %1519 = vst.msk [vmem:[#allocation3 + $0xb0] sm:$0x40] %vm1335_vm4, %v1382_v57 }
 0x277   : > { %1535 = vst.msk [vmem:[#allocation3 + $0xb1] sm:$0x80] %vm1352_vm10, %v1382_v57  ;;  %v1378_v30 = vpop.permute.xlu0 %1377  ;;  %v8988_v29 = vpop.permute.xlu2 %1219 }
 0x278   : > { %1237 = vst.msk [vmem:[#allocation3 + $0x61] sm:$0x1] %vm1233_vm12, %v1212_v6  ;;  %7344 = vrot.lane.b32.xlu2 %v7358_v38, %s7971_s26  ;;  %v1374_v31 = vpop.permute.xlu1 %1373 }
 0x279   : > { %1254 = vst.msk [vmem:[#allocation3 + $0x62] sm:$0x2] %vm1250_vm13, %v1212_v6  ;;  %v1748_v4 = vld [vmem:[#allocation3 + $0xa8] sm:$0xff] }
 0x27a   : > { %1271 = vst.msk [vmem:[#allocation3 + $0x63] sm:$0x4] %vm1267_vm14, %v1212_v6  ;;  %v1591_v15 = vld [vmem:[#allocation3 + $0xa9] sm:$0xff] }
 0x27b   : > { %1288 = vst.msk [vmem:[#allocation3 + $0x64] sm:$0x8] %vm1284_vm15, %v1212_v6  ;;  %v9088_v10 = vld [vmem:[#allocation3 + $0xaa] sm:$0xff] }
 0x27c   : > { %1305 = vst.msk [vmem:[#allocation3 + $0x65] sm:$0x10] %vm1301_vm1, %v1212_v6 }
 0x27d   : > { %1322 = vst.msk [vmem:[#allocation3 + $0x66] sm:$0x20] %vm1318_vm3, %v1212_v6  ;;  %v1749_v5 = vld [vmem:[#allocation3 + $0xb0] sm:$0xff] }
 0x27e   : > { %1339 = vst.msk [vmem:[#allocation3 + $0x67] sm:$0x40] %vm1335_vm4, %v1212_v6  ;;  %v1592_v21 = vld [vmem:[#allocation3 + $0xb1] sm:$0xff]  ;;  %v7448_v3 = vpack.i.bf16 %v1749_v5, %v1748_v4 }
 0x27f   : > { %1356 = vst.msk [vmem:[#allocation3 + $0x68] sm:$0x80] %vm1352_vm10, %v1212_v6  ;;  %v9014_v9 = vpop.permute.xlu0 %1215  ;;  %v1394_v25 = vpop.permute.xlu2 %1393  ;;  %v7423_v63 = vpack.i.bf16 %v1592_v21, %v1591_v15  ;;  %v9090_v13 = vld [vmem:[#allocation3 + $0xb2] sm:$0xff] }
 0x280   : > { %1421 = vst.msk [vmem:[#allocation3 + $0x7a] sm:$0x1] %vm1233_vm12, %v1378_v30  ;;  %7349 = vrot.lane.b32.xlu2 %v7348_v7, %s7973_s28  ;;  %v7443_v45 = vpack.i.bf16 %v9090_v13, %v9088_v10 }
 0x281   : > { %1437 = vst.msk [vmem:[#allocation3 + $0x7b] sm:$0x2] %vm1250_vm13, %v1378_v30 }
 0x282   : > { %1453 = vst.msk [vmem:[#allocation3 + $0x7c] sm:$0x4] %vm1267_vm14, %v1378_v30 }
 0x283   : > { %1469 = vst.msk [vmem:[#allocation3 + $0x7d] sm:$0x8] %vm1284_vm15, %v1378_v30 }
 0x284   : > { %1485 = vst.msk [vmem:[#allocation3 + $0x7e] sm:$0x10] %vm1301_vm1, %v1378_v30 }
 0x285   : > { %1501 = vst.msk [vmem:[#allocation3 + $0x7f] sm:$0x20] %vm1318_vm3, %v1378_v30 }
 0x286   : > { %1517 = vst.msk [vmem:[#allocation3 + $0x80] sm:$0x40] %vm1335_vm4, %v1378_v30 }
 0x287   : > { %1533 = vst.msk [vmem:[#allocation3 + $0x81] sm:$0x80] %vm1352_vm10, %v1378_v30  ;;  %v1218_v47 = vpop.permute.xlu1 %1217 }
 0x288   : > { %1245 = vst.msk [vmem:[#allocation3 + $0x121] sm:$0x1] %vm1233_vm12, %v8988_v29 }
 0x289   : > { %1262 = vst.msk [vmem:[#allocation3 + $0x122] sm:$0x2] %vm1250_vm13, %v8988_v29  ;;  %v1744_v53 = vld [vmem:[#allocation3 + $0x78] sm:$0xff] }
 0x28a   : > { %1279 = vst.msk [vmem:[#allocation3 + $0x123] sm:$0x4] %vm1267_vm14, %v8988_v29  ;;  %v1587_v17 = vld [vmem:[#allocation3 + $0x79] sm:$0xff] }
 0x28b   : > { %1296 = vst.msk [vmem:[#allocation3 + $0x124] sm:$0x8] %vm1284_vm15, %v8988_v29  ;;  %v9060_v8 = vld [vmem:[#allocation3 + $0x7a] sm:$0xff] }
 0x28c   : > { %1313 = vst.msk [vmem:[#allocation3 + $0x125] sm:$0x10] %vm1301_vm1, %v8988_v29 }
 0x28d   : > { %1330 = vst.msk [vmem:[#allocation3 + $0x126] sm:$0x20] %vm1318_vm3, %v8988_v29  ;;  %v1745_v55 = vld [vmem:[#allocation3 + $0x80] sm:$0xff] }
 0x28e   : > { %1347 = vst.msk [vmem:[#allocation3 + $0x127] sm:$0x40] %vm1335_vm4, %v8988_v29  ;;  %v1588_v27 = vld [vmem:[#allocation3 + $0x81] sm:$0xff]  ;;  %v7418_v35 = vpack.i.bf16 %v1745_v55, %v1744_v53 }
 0x28f   : > { %1364 = vst.msk [vmem:[#allocation3 + $0x128] sm:$0x80] %vm1352_vm10, %v8988_v29  ;;  %v7393_v1 = vpack.i.bf16 %v1588_v27, %v1587_v17  ;;  %v1390_v41 = vpop.permute.xlu0 %1389  ;;  %v9062_v24 = vld [vmem:[#allocation3 + $0x82] sm:$0xff] }
 0x290   : > { %1419 = vst.msk [vmem:[#allocation3 + $0x4a] sm:$0x1] %vm1233_vm12, %v1374_v31  ;;  %v7413_v52 = vpack.i.bf16 %v9062_v24, %v9060_v8  ;;  %v1386_v48 = vpop.permute.xlu1 %1385 }
 0x291   : > { %1435 = vst.msk [vmem:[#allocation3 + $0x4b] sm:$0x2] %vm1250_vm13, %v1374_v31 }
 0x292   : > { %1451 = vst.msk [vmem:[#allocation3 + $0x4c] sm:$0x4] %vm1267_vm14, %v1374_v31 }
 0x293   : > { %1467 = vst.msk [vmem:[#allocation3 + $0x4d] sm:$0x8] %vm1284_vm15, %v1374_v31 }
 0x294   : > { %1483 = vst.msk [vmem:[#allocation3 + $0x4e] sm:$0x10] %vm1301_vm1, %v1374_v31 }
 0x295   : > { %1499 = vst.msk [vmem:[#allocation3 + $0x4f] sm:$0x20] %vm1318_vm3, %v1374_v31 }
 0x296   : > { %1515 = vst.msk [vmem:[#allocation3 + $0x50] sm:$0x40] %vm1335_vm4, %v1374_v31 }
 0x297   : > { %1531 = vst.msk [vmem:[#allocation3 + $0x51] sm:$0x80] %vm1352_vm10, %v1374_v31  ;;  %v9093_v28 = vpop.permute.xlu0 %1221 }
 0x298   : > { %1241 = vst.msk [vmem:[#allocation3 + $0xc1] sm:$0x1] %vm1233_vm12, %v9014_v9 }
 0x299   : > { %1258 = vst.msk [vmem:[#allocation3 + $0xc2] sm:$0x2] %vm1250_vm13, %v9014_v9  ;;  %v1645_v40 = vld [vmem:[#allocation3 + $0x48] sm:$0xff] }
 0x29a   : > { %1275 = vst.msk [vmem:[#allocation3 + $0xc3] sm:$0x4] %vm1267_vm14, %v9014_v9  ;;  %v9028_v39 = vld [vmem:[#allocation3 + $0x4a] sm:$0xff] }
 0x29b   : > { %1292 = vst.msk [vmem:[#allocation3 + $0xc4] sm:$0x8] %vm1284_vm15, %v9014_v9  ;;  %v1583_v56 = vld [vmem:[#allocation3 + $0x49] sm:$0xff] }
 0x29c   : > { %1309 = vst.msk [vmem:[#allocation3 + $0xc5] sm:$0x10] %vm1301_vm1, %v9014_v9 }
 0x29d   : > { %1326 = vst.msk [vmem:[#allocation3 + $0xc6] sm:$0x20] %vm1318_vm3, %v9014_v9  ;;  %v1646_v54 = vld [vmem:[#allocation3 + $0x50] sm:$0xff] }
 0x29e   : > { %1343 = vst.msk [vmem:[#allocation3 + $0xc7] sm:$0x40] %vm1335_vm4, %v9014_v9  ;;  %v9034_v42 = vld [vmem:[#allocation3 + $0x52] sm:$0xff]  ;;  %v7373_v44 = vpack.i.bf16 %v1646_v54, %v1645_v40 }
 0x29f   : > { %v1584_v61 = vld [vmem:[#allocation3 + $0x51] sm:$0xff]  ;;  %1360 = vst.msk [vmem:[#allocation3 + $0xc8] sm:$0x80] %vm1352_vm10, %v9014_v9  ;;  %v7368_v12 = vpack.i.bf16 %v9034_v42, %v9028_v39  ;;  %v9103_v33 = vpop.permute.xlu1 %1223 }
 0x2a0   : > { %v7363_v26 = vpack.i.bf16 %v1584_v61, %v1583_v56  ;;  %1429 = vst.msk [vmem:[#allocation3 + $0x13a] sm:$0x1] %vm1233_vm12, %v1394_v25 }
 0x2a1   : > { %1445 = vst.msk [vmem:[#allocation3 + $0x13b] sm:$0x2] %vm1250_vm13, %v1394_v25  ;;  %7369 = vrot.lane.b32.xlu1 %v7368_v12, %s7971_s26 }
 0x2a2   : > { %7364 = vrot.lane.b32.xlu0 %v7363_v26, %s7969_s24  ;;  %1461 = vst.msk [vmem:[#allocation3 + $0x13c] sm:$0x4] %vm1267_vm14, %v1394_v25  ;;  %7379 = vrot.lane.b32.xlu2 %v7363_v26, %s7975_s30 }
 0x2a3   : > { %1477 = vst.msk [vmem:[#allocation3 + $0x13d] sm:$0x8] %vm1284_vm15, %v1394_v25 }
 0x2a4   : > { %1493 = vst.msk [vmem:[#allocation3 + $0x13e] sm:$0x10] %vm1301_vm1, %v1394_v25 }
 0x2a5   : > { %1509 = vst.msk [vmem:[#allocation3 + $0x13f] sm:$0x20] %vm1318_vm3, %v1394_v25 }
 0x2a6   : > { %1525 = vst.msk [vmem:[#allocation3 + $0x140] sm:$0x40] %vm1335_vm4, %v1394_v25 }
 0x2a7   : > { %1541 = vst.msk [vmem:[#allocation3 + $0x141] sm:$0x80] %vm1352_vm10, %v1394_v25  ;;  %v1398_v36 = vpop.permute.xlu1 %1397 }
 0x2a8   : > { %1243 = vst.msk [vmem:[#allocation3 + $0xf1] sm:$0x1] %vm1233_vm12, %v1218_v47 }
 0x2a9   : > { %1260 = vst.msk [vmem:[#allocation3 + $0xf2] sm:$0x2] %vm1250_vm13, %v1218_v47  ;;  %7374 = vrot.lane.b32.xlu1 %v7373_v44, %s7973_s28  ;;  %v1665_v15 = vld [vmem:[#allocation3 + $0x138] sm:$0xff] }
 0x2aa   : > { %7384 = vrot.lane.b32.xlu0 %v7368_v12, %s7978_s15  ;;  %1277 = vst.msk [vmem:[#allocation3 + $0xf3] sm:$0x4] %vm1267_vm14, %v1218_v47  ;;  %7394 = vrot.lane.b32.xlu2 %v7393_v1, %s7969_s24  ;;  %v1603_v7 = vld [vmem:[#allocation3 + $0x139] sm:$0xff] }
 0x2ab   : > { %1294 = vst.msk [vmem:[#allocation3 + $0xf4] sm:$0x8] %vm1284_vm15, %v1218_v47  ;;  %v1729_v26 = vld [vmem:[#allocation3 + $0x13a] sm:$0xff] }
 0x2ac   : > { %1311 = vst.msk [vmem:[#allocation3 + $0xf5] sm:$0x10] %vm1301_vm1, %v1218_v47 }
 0x2ad   : > { %1328 = vst.msk [vmem:[#allocation3 + $0xf6] sm:$0x20] %vm1318_vm3, %v1218_v47 }
 0x2ae   : > { %1345 = vst.msk [vmem:[#allocation3 + $0xf7] sm:$0x40] %vm1335_vm4, %v1218_v47  ;;  %v1730_v40 = vld [vmem:[#allocation3 + $0x142] sm:$0xff] }
 0x2af   : > { %1362 = vst.msk [vmem:[#allocation3 + $0xf8] sm:$0x80] %vm1352_vm10, %v1218_v47  ;;  %v7533_v54 = vpack.i.bf16 %v1730_v40, %v1729_v26 }
 0x2b0   : > { %1427 = vst.msk [vmem:[#allocation3 + $0x10a] sm:$0x1] %vm1233_vm12, %v1390_v41 }
 0x2b1   : > { %1443 = vst.msk [vmem:[#allocation3 + $0x10b] sm:$0x2] %vm1250_vm13, %v1390_v41  ;;  %7409 = vrot.lane.b32.xlu1 %v7393_v1, %s7975_s30 }
 0x2b2   : > { %7389 = vrot.lane.b32.xlu0 %v7373_v44, %s7979_s16  ;;  %1459 = vst.msk [vmem:[#allocation3 + $0x10c] sm:$0x4] %vm1267_vm14, %v1390_v41  ;;  %7414 = vrot.lane.b32.xlu2 %v7413_v52, %s7978_s15 }
 0x2b3   : > { %1475 = vst.msk [vmem:[#allocation3 + $0x10d] sm:$0x8] %vm1284_vm15, %v1390_v41 }
 0x2b4   : > { %1491 = vst.msk [vmem:[#allocation3 + $0x10e] sm:$0x10] %vm1301_vm1, %v1390_v41 }
 0x2b5   : > { %1507 = vst.msk [vmem:[#allocation3 + $0x10f] sm:$0x20] %vm1318_vm3, %v1390_v41 }
 0x2b6   : > { %1523 = vst.msk [vmem:[#allocation3 + $0x110] sm:$0x40] %vm1335_vm4, %v1390_v41 }
 0x2b7   : > { %1539 = vst.msk [vmem:[#allocation3 + $0x111] sm:$0x80] %vm1352_vm10, %v1390_v41 }
 0x2b8   : > { %1425 = vst.msk [vmem:[#allocation3 + $0xda] sm:$0x1] %vm1233_vm12, %v1386_v48 }
 0x2b9   : > { %1441 = vst.msk [vmem:[#allocation3 + $0xdb] sm:$0x2] %vm1250_vm13, %v1386_v48  ;;  %7424 = vrot.lane.b32.xlu1 %v7423_v63, %s7969_s24  ;;  %v1756_v31 = vld [vmem:[#allocation3 + $0x108] sm:$0xff] }
 0x2ba   : > { %1383 = vrot.lane.b32.xlu0 %v9014_v9, %s7976_s11  ;;  %1457 = vst.msk [vmem:[#allocation3 + $0xdc] sm:$0x4] %vm1267_vm14, %v1386_v48  ;;  %7419 = vrot.lane.b32.xlu2 %v7418_v35, %s7979_s16  ;;  %v1599_v62 = vld [vmem:[#allocation3 + $0x109] sm:$0xff] }
 0x2bb   : > { %1473 = vst.msk [vmem:[#allocation3 + $0xdd] sm:$0x8] %vm1284_vm15, %v1386_v48  ;;  %v1725_v50 = vld [vmem:[#allocation3 + $0x10a] sm:$0xff] }
 0x2bc   : > { %1489 = vst.msk [vmem:[#allocation3 + $0xde] sm:$0x10] %vm1301_vm1, %v1386_v48 }
 0x2bd   : > { %1505 = vst.msk [vmem:[#allocation3 + $0xdf] sm:$0x20] %vm1318_vm3, %v1386_v48  ;;  %v1757_v9 = vld [vmem:[#allocation3 + $0x110] sm:$0xff] }
 0x2be   : > { %1521 = vst.msk [vmem:[#allocation3 + $0xe0] sm:$0x40] %vm1335_vm4, %v1386_v48  ;;  %v1600_v58 = vld [vmem:[#allocation3 + $0x111] sm:$0xff]  ;;  %v7508_v25 = vpack.i.bf16 %v1757_v9, %v1756_v31 }
 0x2bf   : > { %1537 = vst.msk [vmem:[#allocation3 + $0xe1] sm:$0x80] %vm1352_vm10, %v1386_v48  ;;  %v7483_v38 = vpack.i.bf16 %v1600_v58, %v1599_v62  ;;  %v1726_v57 = vld [vmem:[#allocation3 + $0x112] sm:$0xff] }
 0x2c0   : > { %1247 = vst.msk [vmem:[#allocation3 + $0x151] sm:$0x1] %vm1233_vm12, %v9093_v28  ;;  %v7503_v23 = vpack.i.bf16 %v1726_v57, %v1725_v50 }
 0x2c1   : > { %1264 = vst.msk [vmem:[#allocation3 + $0x152] sm:$0x2] %vm1250_vm13, %v9093_v28  ;;  %7444 = vrot.lane.b32.xlu1 %v7443_v45, %s7978_s15  ;;  %v1657_v60 = vld [vmem:[#allocation3 + $0xd8] sm:$0xff] }
 0x2c2   : > { %7399 = vrot.lane.b32.xlu0 %v7413_v52, %s7971_s26  ;;  %1281 = vst.msk [vmem:[#allocation3 + $0x153] sm:$0x4] %vm1267_vm14, %v9093_v28  ;;  %1387 = vrot.lane.b32.xlu2 %v1218_v47, %s7976_s11  ;;  %v9147_v34 = vld [vmem:[#allocation3 + $0xda] sm:$0xff] }
 0x2c3   : > { %1298 = vst.msk [vmem:[#allocation3 + $0x154] sm:$0x8] %vm1284_vm15, %v9093_v28  ;;  %v1595_v43 = vld [vmem:[#allocation3 + $0xd9] sm:$0xff] }
 0x2c4   : > { %1315 = vst.msk [vmem:[#allocation3 + $0x155] sm:$0x10] %vm1301_vm1, %v9093_v28 }
 0x2c5   : > { %1332 = vst.msk [vmem:[#allocation3 + $0x156] sm:$0x20] %vm1318_vm3, %v9093_v28  ;;  %v1658_v46 = vld [vmem:[#allocation3 + $0xe0] sm:$0xff] }
 0x2c6   : > { %1349 = vst.msk [vmem:[#allocation3 + $0x157] sm:$0x40] %vm1335_vm4, %v9093_v28  ;;  %v1628_v32 = vld [vmem:[#allocation3 + $0xe2] sm:$0xff]  ;;  %v7463_v49 = vpack.i.bf16 %v1658_v46, %v1657_v60 }
 0x2c7   : > { %1366 = vst.msk [vmem:[#allocation3 + $0x158] sm:$0x80] %vm1352_vm10, %v9093_v28  ;;  %v1596_v0 = vld [vmem:[#allocation3 + $0xe1] sm:$0xff]  ;;  %v7458_v14 = vpack.i.bf16 %v1628_v32, %v9147_v34 }
 0x2c8   : > { %1249 = vst.msk [vmem:[#allocation3 + $0x181] sm:$0x1] %vm1233_vm12, %v9103_v33  ;;  %v7453_v20 = vpack.i.bf16 %v1596_v0, %v1595_v43 }
 0x2c9   : > { %1266 = vst.msk [vmem:[#allocation3 + $0x182] sm:$0x2] %vm1250_vm13, %v9103_v33  ;;  %7449 = vrot.lane.b32.xlu1 %v7448_v3, %s7979_s16 }
 0x2ca   : > { %7404 = vrot.lane.b32.xlu0 %v7418_v35, %s7973_s28  ;;  %1283 = vst.msk [vmem:[#allocation3 + $0x183] sm:$0x4] %vm1267_vm14, %v9103_v33  ;;  %7429 = vrot.lane.b32.xlu2 %v7443_v45, %s7971_s26  ;;  %v1376_v2 = vpop.permute.xlu2 %1375 }
 0x2cb   : > { %1300 = vst.msk [vmem:[#allocation3 + $0x184] sm:$0x8] %vm1284_vm15, %v9103_v33 }
 0x2cc   : > { %1317 = vst.msk [vmem:[#allocation3 + $0x185] sm:$0x10] %vm1301_vm1, %v9103_v33 }
 0x2cd   : > { %1334 = vst.msk [vmem:[#allocation3 + $0x186] sm:$0x20] %vm1318_vm3, %v9103_v33 }
 0x2ce   : > { %1351 = vst.msk [vmem:[#allocation3 + $0x187] sm:$0x40] %vm1335_vm4, %v9103_v33 }
 0x2cf   : > { %1368 = vst.msk [vmem:[#allocation3 + $0x188] sm:$0x80] %vm1352_vm10, %v9103_v33 }
 0x2d0   : > { %1431 = vst.msk [vmem:[#allocation3 + $0x16a] sm:$0x1] %vm1233_vm12, %v1398_v36 }
 0x2d1   : > { %1447 = vst.msk [vmem:[#allocation3 + $0x16b] sm:$0x2] %vm1250_vm13, %v1398_v36  ;;  %1391 = vrot.lane.b32.xlu1 %v8988_v29, %s7976_s11  ;;  %v1604_v29 = vld [vmem:[#allocation3 + $0x141] sm:$0xff] }
 0x2d2   : > { %7439 = vrot.lane.b32.xlu0 %v7423_v63, %s7975_s30  ;;  %1463 = vst.msk [vmem:[#allocation3 + $0x16c] sm:$0x4] %vm1267_vm14, %v1398_v36  ;;  %7434 = vrot.lane.b32.xlu2 %v7448_v3, %s7973_s28  ;;  %v9186_v59 = vpop.permute.xlu2 %7344  ;;  %v7513_v56 = vpack.i.bf16 %v1604_v29, %v1603_v7 }
 0x2d3   : > { %1479 = vst.msk [vmem:[#allocation3 + $0x16d] sm:$0x8] %vm1284_vm15, %v1398_v36  ;;  %v9149_v19 = vpop.permute.xlu1 %7339 }
 0x2d4   : > { %1495 = vst.msk [vmem:[#allocation3 + $0x16e] sm:$0x10] %vm1301_vm1, %v1398_v36 }
 0x2d5   : > { %1511 = vst.msk [vmem:[#allocation3 + $0x16f] sm:$0x20] %vm1318_vm3, %v1398_v36 }
 0x2d6   : > { %1527 = vst.msk [vmem:[#allocation3 + $0x170] sm:$0x40] %vm1335_vm4, %v1398_v36 }
 0x2d7   : > { %1543 = vst.msk [vmem:[#allocation3 + $0x171] sm:$0x80] %vm1352_vm10, %v1398_v36 }
 0x2d8   : > { %1420 = vst.msk [vmem:[#allocation3 + $0x62] sm:$0x1] %vm1233_vm12, %v1376_v2 }
 0x2d9   : > { %7459 = vrot.lane.b32.xlu1 %v7458_v14, %s7971_s26  ;;  %1436 = vst.msk [vmem:[#allocation3 + $0x63] sm:$0x2] %vm1250_vm13, %v1376_v2  ;;  %v1669_v41 = vld [vmem:[#allocation3 + $0x168] sm:$0xff] }
 0x2da   : > { %7454 = vrot.lane.b32.xlu0 %v7453_v20, %s7969_s24  ;;  %7469 = vrot.lane.b32.xlu2 %v7453_v20, %s7975_s30  ;;  %1452 = vst.msk [vmem:[#allocation3 + $0x64] sm:$0x4] %vm1267_vm14, %v1376_v2  ;;  %v1372_v18 = vpop.permute.xlu0 %1371  ;;  %v9207_v61 = vpop.permute.xlu2 %7349  ;;  %v1639_v17 = vld [vmem:[#allocation3 + $0x16a] sm:$0xff] }
 0x2db   : > { %1468 = vst.msk [vmem:[#allocation3 + $0x65] sm:$0x8] %vm1284_vm15, %v1376_v2  ;;  %v9169_v16 = vpop.permute.xlu1 %7359  ;;  %v1607_v55 = vld [vmem:[#allocation3 + $0x169] sm:$0xff] }
 0x2dc   : > { %1484 = vst.msk [vmem:[#allocation3 + $0x66] sm:$0x10] %vm1301_vm1, %v1376_v2 }
 0x2dd   : > { %1500 = vst.msk [vmem:[#allocation3 + $0x67] sm:$0x20] %vm1318_vm3, %v1376_v2  ;;  %v1670_v52 = vld [vmem:[#allocation3 + $0x170] sm:$0xff] }
 0x2de   : > { %1516 = vst.msk [vmem:[#allocation3 + $0x68] sm:$0x40] %vm1335_vm4, %v1376_v2  ;;  %v1640_v27 = vld [vmem:[#allocation3 + $0x172] sm:$0xff]  ;;  %v9225_v21 = vpack.i.bf16 %v1670_v52, %v1669_v41 }
 0x2df   : > { %1532 = vst.msk [vmem:[#allocation3 + $0x69] sm:$0x80] %vm1352_vm10, %v1376_v2  ;;  %v7543_v44 = vpack.i.bf16 %v1640_v27, %v1639_v17  ;;  %v1608_v45 = vld [vmem:[#allocation3 + $0x171] sm:$0xff] }
 0x2e0   : > { %1418 = vst.msk [vmem:[#allocation3 + $0x32] sm:$0x1] %vm1233_vm12, %v1372_v18  ;;  %v7538_v4 = vpack.i.bf16 %v1608_v45, %v1607_v55 }
 0x2e1   : > { %7464 = vrot.lane.b32.xlu1 %v7463_v49, %s7973_s28  ;;  %1434 = vst.msk [vmem:[#allocation3 + $0x33] sm:$0x2] %vm1250_vm13, %v1372_v18  ;;  %v9280_v62 = vld [vmem:[#allocation3 + $0x60] sm:$0xff] }
 0x2e2   : > { %7474 = vrot.lane.b32.xlu0 %v7458_v14, %s7978_s15  ;;  %7484 = vrot.lane.b32.xlu2 %v7483_v38, %s7969_s24  ;;  %1450 = vst.msk [vmem:[#allocation3 + $0x34] sm:$0x4] %vm1267_vm14, %v1372_v18  ;;  %v1711_v53 = vld [vmem:[#allocation3 + $0x62] sm:$0xff] }
 0x2e3   : > { %1466 = vst.msk [vmem:[#allocation3 + $0x35] sm:$0x8] %vm1284_vm15, %v1372_v18  ;;  %v1380_v6 = vpop.permute.xlu1 %1379  ;;  %v1585_v43 = vld [vmem:[#allocation3 + $0x61] sm:$0xff] }
 0x2e4   : > { %1482 = vst.msk [vmem:[#allocation3 + $0x36] sm:$0x10] %vm1301_vm1, %v1372_v18 }
 0x2e5   : > { %1498 = vst.msk [vmem:[#allocation3 + $0x37] sm:$0x20] %vm1318_vm3, %v1372_v18 }
 0x2e6   : > { %1514 = vst.msk [vmem:[#allocation3 + $0x38] sm:$0x40] %vm1335_vm4, %v1372_v18  ;;  %v1712_v5 = vld [vmem:[#allocation3 + $0x6a] sm:$0xff] }
 0x2e7   : > { %1530 = vst.msk [vmem:[#allocation3 + $0x39] sm:$0x80] %vm1352_vm10, %v1372_v18  ;;  %v1586_v0 = vld [vmem:[#allocation3 + $0x69] sm:$0xff]  ;;  %v7613_v51 = vpack.i.bf16 %v1712_v5, %v1711_v53 }
 0x2e8   : > { %1422 = vst.msk [vmem:[#allocation3 + $0x92] sm:$0x1] %vm1233_vm12, %v1380_v6  ;;  %v9252_v2 = vpack.i.bf16 %v1586_v0, %v1585_v43  ;;  %v9287_v18 = vld [vmem:[#allocation3 + $0x68] sm:$0xff] }
 0x2e9   : > { %7499 = vrot.lane.b32.xlu1 %v7483_v38, %s7975_s30  ;;  %1438 = vst.msk [vmem:[#allocation3 + $0x93] sm:$0x2] %vm1250_vm13, %v1380_v6  ;;  %v7618_v50 = vpack.i.bf16 %v9287_v18, %v9280_v62 }
 0x2ea   : > { %7479 = vrot.lane.b32.xlu0 %v7463_v49, %s7979_s16  ;;  %7504 = vrot.lane.b32.xlu2 %v7503_v23, %s7978_s15  ;;  %1454 = vst.msk [vmem:[#allocation3 + $0x94] sm:$0x4] %vm1267_vm14, %v1380_v6  ;;  %v9194_v30 = vld [vmem:[#allocation3 + $0x32] sm:$0xff] }
 0x2eb   : > { %1470 = vst.msk [vmem:[#allocation3 + $0x95] sm:$0x8] %vm1284_vm15, %v1380_v6  ;;  %7195 = vmatmul.msk.f32.vlgmr.msra.gmra.mxu2 %vm402_vm2, %v9194_v30  ;;  %v1675_v35 = vld [vmem:[#allocation3 + $0x31] sm:$0xff] }
 0x2ec   : > { %1486 = vst.msk [vmem:[#allocation3 + $0x96] sm:$0x10] %vm1301_vm1, %v1380_v6  ;;  %v9289_v49 = vld [vmem:[#allocation3 + $0x30] sm:$0xff] }
 0x2ed   : > { %1502 = vst.msk [vmem:[#allocation3 + $0x97] sm:$0x20] %vm1318_vm3, %v1380_v6  ;;  %v9291_v38 = vld [vmem:[#allocation3 + $0x38] sm:$0xff] }
 0x2ee   : > { %1518 = vst.msk [vmem:[#allocation3 + $0x98] sm:$0x40] %vm1335_vm4, %v1380_v6  ;;  %v1803_v12 = vld [vmem:[#allocation3 + $0x3a] sm:$0xff]  ;;  %v7573_v57 = vpack.i.bf16 %v9291_v38, %v9289_v49 }
 0x2ef   : > { %1534 = vst.msk [vmem:[#allocation3 + $0x99] sm:$0x80] %vm1352_vm10, %v1380_v6  ;;  %v7568_v60 = vpack.i.bf16 %v1803_v12, %v9194_v30 }
 0x2f1   : > { %7514 = vrot.lane.b32.xlu1 %v7513_v56, %s7969_s24 }
 0x2f2   : > { %1395 = vrot.lane.b32.xlu0 %v9093_v28, %s7976_s11  ;;  %7509 = vrot.lane.b32.xlu2 %v7508_v25, %s7979_s16  ;;  %v1676_v28 = vld [vmem:[#allocation3 + $0x39] sm:$0xff]  ;;  %v1589_v26 = vld [vmem:[#allocation3 + $0x91] sm:$0xff] }
 0x2f3   : > { %7196 = vmatmul.msk.f32.gmra.mxu2 %vm402_vm2, %v1803_v12 }
 0x2f5   : > { %v9326_v12 = vld [vmem:[#allocation3 + $0x98] sm:$0xff] }
 0x2f6   : > { %v1622_v7 = vld [vmem:[#allocation3 + $0x9a] sm:$0xff] }
 0x2f7   : > { %v1590_v40 = vld [vmem:[#allocation3 + $0x99] sm:$0xff] }
 0x2f8   : > { %v9330_v17 = vpack.i.bf16 %v1590_v40, %v1589_v26 }
 0x2f9   : > { %7534 = vrot.lane.b32.xlu1 %v7533_v54, %s7978_s15 }
 0x2fa   : > { %7489 = vrot.lane.b32.xlu0 %v7503_v23, %s7971_s26  ;;  %1399 = vrot.lane.b32.xlu2 %v9103_v33, %s7976_s11  ;;  %v9239_v33 = vpack.i.bf16 %v1676_v28, %v1675_v35 }
 0x2fb   : > { %7197 = vmatmul.msk.f32.gmra.mxu2 %vm402_vm2, %v9028_v39  ;;  %v1666_v39 = vld [vmem:[#allocation3 + $0x140] sm:$0xff] }
 0x2fc   : > { %v9216_v47 = vpop.permute.xlu2 %7379  ;;  %v9227_v48 = vpack.i.bf16 %v1666_v39, %v1665_v15 }
 0x301   : > { %7544 = vrot.lane.b32.xlu1 %v7543_v44, %s7971_s26 }
 0x302   : > { %7494 = vrot.lane.b32.xlu0 %v7508_v25, %s7973_s28  ;;  %7519 = vrot.lane.b32.xlu2 %v7533_v54, %s7971_s26 }
 0x303   : > { %7198 = vmatmul.msk.f32.gmra.mxu2 %vm402_vm2, %v9034_v42  ;;  %v9234_v42 = vpop.permute.xlu0 %7354 }
 0x304   : > { %v9223_v1 = vpop.permute.xlu2 %7394 }
 0x309   : > { %7549 = vrot.lane.b32.xlu1 %v9225_v21, %s7973_s28 }
 0x30a   : > { %7529 = vrot.lane.b32.xlu0 %v7513_v56, %s7975_s30  ;;  %7524 = vrot.lane.b32.xlu2 %v9227_v48, %s7973_s28  ;;  %v9321_v56 = vld [vmem:[#allocation3 + $0x90] sm:$0xff] }
 0x30b   : > { %7199 = vmatmul.msk.f32.gmra.mxu2 %vm402_vm2, %v1711_v53  ;;  %v7633_v54 = vpack.i.bf16 %v9326_v12, %v9321_v56 }
 0x30c   : > { %v9237_v63 = vpop.permute.xlu2 %7414 }
 0x311   : > { %7579 = vrot.lane.b32.xlu1 %v9239_v33, %s7975_s30 }
 0x312   : > { %7539 = vrot.lane.b32.xlu0 %v7538_v4, %s7969_s24  ;;  %7554 = vrot.lane.b32.xlu2 %v7538_v4, %s7975_s30 }
 0x313   : > { %v9245_v3 = vpop.permute.xlu1 %7369  ;;  %7200 = vmatmul.msk.f32.gmra.mxu2 %vm402_vm2, %v1712_v5 }
 0x314   : > { %v9247_v36 = vpop.permute.xlu0 %7364  ;;  %v9250_v32 = vpop.permute.xlu2 %7419 }
 0x319   : > { %7594 = vrot.lane.b32.xlu1 %v9252_v2, %s7969_s24 }
 0x31a   : > { %7559 = vrot.lane.b32.xlu0 %v7543_v44, %s7978_s15  ;;  %7564 = vrot.lane.b32.xlu2 %v9239_v33, %s7969_s24 }
 0x31b   : > { %v9259_v14 = vpop.permute.xlu1 %7374  ;;  %7201 = vmatmul.msk.f32.gmra.mxu2 %vm402_vm2, %v9060_v8 }
 0x31c   : > { %v9261_v20 = vpop.permute.xlu0 %7384  ;;  %v1388_v37 = vpop.permute.xlu2 %1387 }
 0x31d   : > { %1426 = vst.msk [vmem:[#allocation3 + $0xf2] sm:$0x1] %vm1233_vm12, %v1388_v37 }
 0x31e   : > { %1442 = vst.msk [vmem:[#allocation3 + $0xf3] sm:$0x2] %vm1250_vm13, %v1388_v37 }
 0x31f   : > { %1458 = vst.msk [vmem:[#allocation3 + $0xf4] sm:$0x4] %vm1267_vm14, %v1388_v37 }
 0x320   : > { %1474 = vst.msk [vmem:[#allocation3 + $0xf5] sm:$0x8] %vm1284_vm15, %v1388_v37 }
 0x321   : > { %1490 = vst.msk [vmem:[#allocation3 + $0xf6] sm:$0x10] %vm1301_vm1, %v1388_v37  ;;  %7614 = vrot.lane.b32.xlu1 %v7613_v51, %s7978_s15 }
 0x322   : > { %7569 = vrot.lane.b32.xlu0 %v7568_v60, %s7971_s26  ;;  %1506 = vst.msk [vmem:[#allocation3 + $0xf7] sm:$0x20] %vm1318_vm3, %v1388_v37  ;;  %7584 = vrot.lane.b32.xlu2 %v7568_v60, %s7978_s15 }
 0x323   : > { %1522 = vst.msk [vmem:[#allocation3 + $0xf8] sm:$0x40] %vm1335_vm4, %v1388_v37  ;;  %v9276_v8 = vpop.permute.xlu1 %7409  ;;  %7202 = vmatmul.msk.f32.gmra.mxu2 %vm402_vm2, %v9062_v24  ;;  %v1621_v24 = vld [vmem:[#allocation3 + $0x92] sm:$0xff] }
 0x324   : > { %v9278_v46 = vpop.permute.xlu0 %7389  ;;  %1538 = vst.msk [vmem:[#allocation3 + $0xf9] sm:$0x80] %vm1352_vm10, %v1388_v37  ;;  %v9285_v58 = vpop.permute.xlu2 %7429  ;;  %v7628_v29 = vpack.i.bf16 %v1622_v7, %v1621_v24 }
 0x325   : > { %13331 = vst [vmem:[#allocation5_spill] sm:$0xff] %v9285_v58 }
 0x327   : > { %v1597_v35 = vld [vmem:[#allocation3 + $0xf1] sm:$0xff] }
 0x328   : > { %v1723_v0 = vld [vmem:[#allocation3 + $0xf2] sm:$0xff] }
 0x329   : > { %7619 = vrot.lane.b32.xlu1 %v7618_v50, %s7979_s16 }
 0x32a   : > { %7574 = vrot.lane.b32.xlu0 %v7573_v57, %s7973_s28  ;;  %7589 = vrot.lane.b32.xlu2 %v7573_v57, %s7979_s16 }
 0x32b   : > { %v9300_v6 = vpop.permute.xlu1 %7424  ;;  %7203 = vmatmul.msk.f32.gmra.mxu2 %vm402_vm2, %v1621_v24  ;;  %v1598_v28 = vld [vmem:[#allocation3 + $0xf9] sm:$0xff] }
 0x32c   : > { %v1384_v23 = vpop.permute.xlu0 %1383  ;;  %v9304_v30 = vpop.permute.xlu2 %7434  ;;  %v9361_v45 = vpack.i.bf16 %v1598_v28, %v1597_v35  ;;  %v9379_v37 = vld [vmem:[#allocation3 + $0xfa] sm:$0xff] }
 0x32d   : > { %1424 = vst.msk [vmem:[#allocation3 + $0xc2] sm:$0x1] %vm1233_vm12, %v1384_v23  ;;  %v7703_v60 = vpack.i.bf16 %v9379_v37, %v1723_v0 }
 0x32e   : > { %1440 = vst.msk [vmem:[#allocation3 + $0xc3] sm:$0x2] %vm1250_vm13, %v1384_v23 }
 0x32f   : > { %1456 = vst.msk [vmem:[#allocation3 + $0xc4] sm:$0x4] %vm1267_vm14, %v1384_v23 }
 0x330   : > { %1472 = vst.msk [vmem:[#allocation3 + $0xc5] sm:$0x8] %vm1284_vm15, %v1384_v23 }
 0x331   : > { %1488 = vst.msk [vmem:[#allocation3 + $0xc6] sm:$0x10] %vm1301_vm1, %v1384_v23  ;;  %7629 = vrot.lane.b32.xlu1 %v7628_v29, %s7971_s26 }
 0x332   : > { %1504 = vst.msk [vmem:[#allocation3 + $0xc7] sm:$0x20] %vm1318_vm3, %v1384_v23  ;;  %7609 = vrot.lane.b32.xlu0 %v9252_v2, %s7975_s30  ;;  %7599 = vrot.lane.b32.xlu2 %v7613_v51, %s7971_s26 }
 0x333   : > { %1520 = vst.msk [vmem:[#allocation3 + $0xc8] sm:$0x40] %vm1335_vm4, %v1384_v23  ;;  %v9317_v31 = vpop.permute.xlu1 %7444  ;;  %7204 = vmatmul.msk.f32.gmra.mxu2 %vm402_vm2, %v1622_v7 }
 0x334   : > { %1536 = vst.msk [vmem:[#allocation3 + $0xc9] sm:$0x80] %vm1352_vm10, %v1384_v23  ;;  %v9319_v9 = vpop.permute.xlu0 %7399  ;;  %v9324_v25 = vpop.permute.xlu2 %7469  ;;  %v1754_v23 = vld [vmem:[#allocation3 + $0xf0] sm:$0xff] }
 0x335   : > { %13332 = vst [vmem:[#allocation6_spill] sm:$0xff] %v9324_v25  ;;  %v1780_v25 = vld [vmem:[#allocation3 + $0xa9] sm:$0xff] }
 0x336   : > { %v9390_v26 = vld [vmem:[#allocation3 + $0xc0] sm:$0xff] }
 0x337   : > { %v1687_v52 = vld [vmem:[#allocation3 + $0xc1] sm:$0xff]  ;;  %13340 = vst [vmem:[#allocation14_spill] sm:$0xff] %v9390_v26 }
 0x339   : > { %7634 = vrot.lane.b32.xlu1 %v7633_v54, %s7973_s28 }
 0x33a   : > { %7624 = vrot.lane.b32.xlu0 %v9330_v17, %s7969_s24  ;;  %7604 = vrot.lane.b32.xlu2 %v7618_v50, %s7973_s28  ;;  %v1656_v40 = vld [vmem:[#allocation3 + $0xc8] sm:$0xff] }
 0x33b   : > { %v9336_v27 = vpop.permute.xlu1 %7449  ;;  %7205 = vmatmul.msk.f32.gmra.mxu2 %vm402_vm2, %v9088_v10  ;;  %v1688_v15 = vld [vmem:[#allocation3 + $0xc9] sm:$0xff] }
 0x33c   : > { %v9338_v44 = vpop.permute.xlu0 %7404  ;;  %v9342_v41 = vpop.permute.xlu2 %7484  ;;  %v9344_v39 = vpack.i.bf16 %v1688_v15, %v1687_v52  ;;  %v1626_v51 = vld [vmem:[#allocation3 + $0xca] sm:$0xff]  ;;  %v7663_v52 = vpack.i.bf16 %v1656_v40, %v9390_v26 }
 0x33d   : > { %13333 = vst [vmem:[#allocation7_spill] sm:$0xff] %v9342_v41 }
 0x341   : > { %7669 = vrot.lane.b32.xlu1 %v9344_v39, %s7975_s30 }
 0x342   : > { %7644 = vrot.lane.b32.xlu0 %v7628_v29, %s7978_s15  ;;  %7639 = vrot.lane.b32.xlu2 %v9330_v17, %s7975_s30  ;;  %v1755_v29 = vld [vmem:[#allocation3 + $0xf8] sm:$0xff] }
 0x343   : > { %v1392_v53 = vpop.permute.xlu1 %1391  ;;  %7206 = vmatmul.msk.f32.gmra.mxu2 %vm402_vm2, %v9090_v13  ;;  %v1625_v13 = vld [vmem:[#allocation3 + $0xc2] sm:$0xff] }
 0x344   : > { %v9351_v55 = vpop.permute.xlu0 %7439  ;;  %1428 = vst.msk [vmem:[#allocation3 + $0x122] sm:$0x1] %vm1233_vm12, %v1392_v53  ;;  %v9356_v10 = vpop.permute.xlu2 %7504  ;;  %v7658_v50 = vpack.i.bf16 %v1626_v51, %v1625_v13 }
 0x345   : > { %13334 = vst [vmem:[#allocation8_spill] sm:$0xff] %v9356_v10 }
 0x346   : > { %1444 = vst.msk [vmem:[#allocation3 + $0x123] sm:$0x2] %vm1250_vm13, %v1392_v53 }
 0x347   : > { %1460 = vst.msk [vmem:[#allocation3 + $0x124] sm:$0x4] %vm1267_vm14, %v1392_v53 }
 0x348   : > { %1476 = vst.msk [vmem:[#allocation3 + $0x125] sm:$0x8] %vm1284_vm15, %v1392_v53 }
 0x349   : > { %1492 = vst.msk [vmem:[#allocation3 + $0x126] sm:$0x10] %vm1301_vm1, %v1392_v53  ;;  %7684 = vrot.lane.b32.xlu1 %v9361_v45, %s7969_s24 }
 0x34a   : > { %1508 = vst.msk [vmem:[#allocation3 + $0x127] sm:$0x20] %vm1318_vm3, %v1392_v53  ;;  %7649 = vrot.lane.b32.xlu0 %v7633_v54, %s7979_s16  ;;  %7654 = vrot.lane.b32.xlu2 %v9344_v39, %s7969_s24  ;;  %v7708_v54 = vpack.i.bf16 %v1755_v29, %v1754_v23 }
 0x34b   : > { %1524 = vst.msk [vmem:[#allocation3 + $0x128] sm:$0x40] %vm1335_vm4, %v1392_v53  ;;  %v9372_v4 = vpop.permute.xlu1 %7459  ;;  %7207 = vmatmul.msk.f32.gmra.mxu2 %vm402_vm2, %v1625_v13 }
 0x34c   : > { %1540 = vst.msk [vmem:[#allocation3 + $0x129] sm:$0x80] %vm1352_vm10, %v1392_v53  ;;  %v9374_v5 = vpop.permute.xlu0 %7454  ;;  %v9377_v43 = vpop.permute.xlu2 %7509 }
 0x34d   : > { %13335 = vst [vmem:[#allocation9_spill] sm:$0xff] %v9372_v4 }
 0x34e   : > { %13336 = vst [vmem:[#allocation10_spill] sm:$0xff] %v9374_v5  ;;  %v1663_v23 = vld [vmem:[#allocation3 + $0x120] sm:$0xff] }
 0x34f   : > { %13337 = vst [vmem:[#allocation11_spill] sm:$0xff] %v9377_v43  ;;  %v9410_v35 = vld [vmem:[#allocation3 + $0x122] sm:$0xff] }
 0x350   : > { %v1601_v29 = vld [vmem:[#allocation3 + $0x121] sm:$0xff] }
 0x351   : > { %7704 = vrot.lane.b32.xlu1 %v7703_v60, %s7978_s15 }
 0x352   : > { %7659 = vrot.lane.b32.xlu0 %v7658_v50, %s7971_s26  ;;  %7674 = vrot.lane.b32.xlu2 %v7658_v50, %s7978_s15 }
 0x353   : > { %v9385_v57 = vpop.permute.xlu1 %7464  ;;  %7208 = vmatmul.msk.f32.gmra.mxu2 %vm402_vm2, %v1626_v51  ;;  %v9412_v28 = vld [vmem:[#allocation3 + $0x12a] sm:$0xff]  ;;  %v1817_v51 = vld [vmem:[#allocation3 + $0xe2] sm:$0xff] }
 0x354   : > { %13338 = vst [vmem:[#allocation12_spill] sm:$0xff] %v9385_v57  ;;  %v9387_v24 = vpop.permute.xlu0 %7474  ;;  %v1400_v7 = vpop.permute.xlu2 %1399  ;;  %v7718_v13 = vpack.i.bf16 %v9412_v28, %v9410_v35  ;;  %v1602_v40 = vld [vmem:[#allocation3 + $0x129] sm:$0xff] }
 0x355   : > { %13339 = vst [vmem:[#allocation13_spill] sm:$0xff] %v9387_v24  ;;  %v9429_v41 = vpack.i.bf16 %v1602_v40, %v1601_v29  ;;  %v1768_v24 = vld [vmem:[#allocation3 + $0x198] sm:$0xff] }
 0x356   : > { %1432 = vst.msk [vmem:[#allocation3 + $0x182] sm:$0x1] %vm1233_vm12, %v1400_v7 }
 0x357   : > { %1448 = vst.msk [vmem:[#allocation3 + $0x183] sm:$0x2] %vm1250_vm13, %v1400_v7 }
 0x358   : > { %1464 = vst.msk [vmem:[#allocation3 + $0x184] sm:$0x4] %vm1267_vm14, %v1400_v7 }
 0x359   : > { %1480 = vst.msk [vmem:[#allocation3 + $0x185] sm:$0x8] %vm1284_vm15, %v1400_v7  ;;  %7709 = vrot.lane.b32.xlu1 %v7708_v54, %s7979_s16 }
 0x35a   : > { %1496 = vst.msk [vmem:[#allocation3 + $0x186] sm:$0x10] %vm1301_vm1, %v1400_v7  ;;  %7664 = vrot.lane.b32.xlu0 %v7663_v52, %s7973_s28  ;;  %7679 = vrot.lane.b32.xlu2 %v7663_v52, %s7979_s16 }
 0x35b   : > { %1512 = vst.msk [vmem:[#allocation3 + $0x187] sm:$0x20] %vm1318_vm3, %v1400_v7  ;;  %v9403_v15 = vpop.permute.xlu1 %7499  ;;  %7209 = vmatmul.msk.f32.gmra.mxu2 %vm402_vm2, %v9147_v34 }
 0x35c   : > { %1528 = vst.msk [vmem:[#allocation3 + $0x188] sm:$0x40] %vm1335_vm4, %v1400_v7  ;;  %v9405_v53 = vpop.permute.xlu0 %7479  ;;  %v9425_v52 = vpop.permute.xlu2 %7519 }
 0x35d   : > { %13341 = vst [vmem:[#allocation15_spill] sm:$0xff] %v9403_v15 }
 0x35e   : > { %13342 = vst [vmem:[#allocation16_spill] sm:$0xff] %v9405_v53 }
 0x35f   : > { %1544 = vst.msk [vmem:[#allocation3 + $0x189] sm:$0x80] %vm1352_vm10, %v1400_v7  ;;  %v1664_v7 = vld [vmem:[#allocation3 + $0x128] sm:$0xff] }
 0x360   : > { %13344 = vst [vmem:[#allocation18_spill] sm:$0xff] %v9425_v52 }
 0x361   : > { %7719 = vrot.lane.b32.xlu1 %v7718_v13, %s7971_s26 }
 0x362   : > { %7699 = vrot.lane.b32.xlu0 %v9361_v45, %s7975_s30  ;;  %7689 = vrot.lane.b32.xlu2 %v7703_v60, %s7971_s26  ;;  %v7723_v60 = vpack.i.bf16 %v1664_v7, %v1663_v23 }
 0x363   : > { %v9420_v50 = vpop.permute.xlu1 %7514  ;;  %7210 = vmatmul.msk.f32.gmra.mxu2 %vm402_vm2, %v1817_v51 }
 0x364   : > { %13343 = vst [vmem:[#allocation17_spill] sm:$0xff] %v9420_v50  ;;  %v1396_v34 = vpop.permute.xlu0 %1395  ;;  %v9444_v7 = vpop.permute.xlu2 %7524 }
 0x365   : > { %1430 = vst.msk [vmem:[#allocation3 + $0x152] sm:$0x1] %vm1233_vm12, %v1396_v34  ;;  %vm2891_vm12 = vcmask 785408  }
 0x366   : > { %1446 = vst.msk [vmem:[#allocation3 + $0x153] sm:$0x2] %vm1250_vm13, %v1396_v34  ;;  %vm2924_vm13 = vcmask 916480  }
 0x367   : > { %1462 = vst.msk [vmem:[#allocation3 + $0x154] sm:$0x4] %vm1267_vm14, %v1396_v34  ;;  %vm13613_vm14 = vcmask 588800  }
 0x368   : > { %1478 = vst.msk [vmem:[#allocation3 + $0x155] sm:$0x8] %vm1284_vm15, %v1396_v34  ;;  %vm13616_vm15 = vmmov %vm13613_vm14 }
 0x369   : > { %1494 = vst.msk [vmem:[#allocation3 + $0x156] sm:$0x10] %vm1301_vm1, %v1396_v34  ;;  %7724 = vrot.lane.b32.xlu1 %v7723_v60, %s7973_s28  ;;  %vm13620_vm1 = vmmov %vm13613_vm14 }
 0x36a   : > { %1510 = vst.msk [vmem:[#allocation3 + $0x157] sm:$0x20] %vm1318_vm3, %v1396_v34  ;;  %7714 = vrot.lane.b32.xlu0 %v9429_v41, %s7969_s24  ;;  %7694 = vrot.lane.b32.xlu2 %v7708_v54, %s7973_s28  ;;  %vm13628_vm3 = vmmov %vm13620_vm1 }
 0x36b   : > { %1526 = vst.msk [vmem:[#allocation3 + $0x158] sm:$0x40] %vm1335_vm4, %v1396_v34  ;;  %v9439_v51 = vpop.permute.xlu1 %7534  ;;  %7211 = vmatmul.msk.f32.gmra.mxu2 %vm402_vm2, %v1723_v0  ;;  %vm13634_vm4 = vmmov %vm13620_vm1 }
 0x36c   : > { %1542 = vst.msk [vmem:[#allocation3 + $0x159] sm:$0x80] %vm1352_vm10, %v1396_v34  ;;  %v9441_v23 = vpop.permute.xlu0 %7489  ;;  %vm2858_vm10 = vcmask 654336  }
 0x36d   : > { %13345 = vst [vmem:[#allocation19_spill] sm:$0xff] %v9439_v51  ;;  %v9465_v51 = vld [vmem:[#allocation3 + $0x182] sm:$0xff] }
 0x36e   : > { %13346 = vst [vmem:[#allocation20_spill] sm:$0xff] %v9441_v23  ;;  %v1667_v10 = vld [vmem:[#allocation3 + $0x150] sm:$0xff] }
 0x36f   : > { %13347 = vst [vmem:[#allocation21_spill] sm:$0xff] %v9444_v7  ;;  %v1699_v29 = vld [vmem:[#allocation3 + $0x151] sm:$0xff] }
 0x370   : > { %v9457_v50 = vld [vmem:[#allocation3 + $0x152] sm:$0xff] }
 0x372   : > { %7734 = vrot.lane.b32.xlu0 %v7718_v13, %s7978_s15  ;;  %7729 = vrot.lane.b32.xlu2 %v9429_v41, %s7975_s30  ;;  %v1668_v15 = vld [vmem:[#allocation3 + $0x158] sm:$0xff] }
 0x373   : > { %v1700_v40 = vld [vmem:[#allocation3 + $0x159] sm:$0xff]  ;;  %v9451_v54 = vpop.permute.xlu1 %7544  ;;  %7212 = vmatmul.msk.f32.gmra.mxu2 %vm402_vm2, %v9379_v37  ;;  %v1820_v37 = vld [vmem:[#allocation3 + $0x10a] sm:$0xff] }
 0x374   : > { %v9449_v52 = vpack.i.bf16 %v1700_v40, %v1699_v29  ;;  %13348 = vst [vmem:[#allocation22_spill] sm:$0xff] %v9451_v54  ;;  %v9453_v34 = vpop.permute.xlu0 %7494  ;;  %v9459_v0 = vld [vmem:[#allocation3 + $0x15a] sm:$0xff]  ;;  %v9467_v29 = vld [vmem:[#allocation3 + $0x18a] sm:$0xff]  ;;  %v9470_v40 = vpop.permute.xlu2 %7554 }
 0x375   : > { %13349 = vst [vmem:[#allocation23_spill] sm:$0xff] %v9453_v34  ;;  %v7743_v13 = vpack.i.bf16 %v9459_v0, %v9457_v50  ;;  %v7778_v54 = vpack.i.bf16 %v9467_v29, %v9465_v51  ;;  %v7748_v34 = vpack.i.bf16 %v1668_v15, %v1667_v10  ;;  %v1767_v10 = vld [vmem:[#allocation3 + $0x188] sm:$0xff] }
 0x376   : > { %7754 = vrot.lane.b32.xlu1 %v9449_v52, %s7975_s30  ;;  %13350 = vst [vmem:[#allocation24_spill] sm:$0xff] %v9470_v40  ;;  %v1821_v40 = vld [vmem:[#allocation3 + $0x112] sm:$0xff] }
 0x37a   : > { %7744 = vrot.lane.b32.xlu0 %v7743_v13, %s7971_s26  ;;  %7739 = vrot.lane.b32.xlu2 %v9449_v52, %s7969_s24 }
 0x37b   : > { %v9476_v7 = vpop.permute.xlu1 %7549  ;;  %7213 = vmatmul.msk.f32.gmra.mxu2 %vm402_vm2, %v1820_v37 }
 0x37c   : > { %13351 = vst [vmem:[#allocation25_spill] sm:$0xff] %v9476_v7  ;;  %v9478_v23 = vpop.permute.xlu0 %7529  ;;  %v1703_v7 = vld [vmem:[#allocation3 + $0x181] sm:$0xff]  ;;  %v9489_v5 = vpop.permute.xlu2 %7564 }
 0x37d   : > { %13352 = vst [vmem:[#allocation26_spill] sm:$0xff] %v9478_v23  ;;  %v1704_v23 = vld [vmem:[#allocation3 + $0x189] sm:$0xff] }
 0x37e   : > { %7779 = vrot.lane.b32.xlu1 %v7778_v54, %s7978_s15  ;;  %v1766_v54 = vld [vmem:[#allocation3 + $0x180] sm:$0xff]  ;;  %v9493_v15 = vpack.i.bf16 %v1704_v23, %v1703_v7  ;;  %v1773_v23 = vld [vmem:[#allocation3 + $0x51] sm:$0xff] }
 0x37f   : > { %v7798_v37 = vpack.i.bf16 %v1767_v10, %v1766_v54 }
 0x382   : > { %7749 = vrot.lane.b32.xlu0 %v7748_v34, %s7973_s28  ;;  %7759 = vrot.lane.b32.xlu2 %v7743_v13, %s7978_s15 }
 0x383   : > { %v9484_v43 = vpop.permute.xlu1 %7579  ;;  %7214 = vmatmul.msk.f32.gmra.mxu2 %vm402_vm2, %v1821_v40 }
 0x384   : > { %v9486_v4 = vpop.permute.xlu0 %7539 }
 0x385   : > { %13353 = vst [vmem:[#allocation27_spill] sm:$0xff] %v9486_v4  ;;  %v1772_v4 = vld [vmem:[#allocation3 + $0x49] sm:$0xff] }
 0x386   : > { %7784 = vrot.lane.b32.xlu1 %v9227_v48, %s7979_s16  ;;  %v9505_v48 = vpop.permute.xlu2 %7584  ;;  %v7813_v7 = vpack.i.bf16 %v1773_v23, %v1772_v4  ;;  %v1824_v4 = vld [vmem:[#allocation3 + $0x13a] sm:$0xff] }
 0x387   : > { %v1785_v23 = vld [vmem:[#allocation3 + $0xe1] sm:$0xff] }
 0x38a   : > { %7769 = vrot.lane.b32.xlu0 %v9493_v15, %s7975_s30  ;;  %7764 = vrot.lane.b32.xlu2 %v7798_v37, %s7973_s28 }
 0x38b   : > { %v9498_v13 = vpop.permute.xlu1 %7594  ;;  %7215 = vmatmul.msk.f32.gmra.mxu2 %vm402_vm2, %v9410_v35 }
 0x38c   : > { %v9500_v40 = vpop.permute.xlu0 %7559 }
 0x38d   : > { %13354 = vst [vmem:[#allocation28_spill] sm:$0xff] %v9500_v40  ;;  %v1769_v40 = vld [vmem:[#allocation3 + $0x1a0] sm:$0xff] }
 0x38e   : > { %7799 = vrot.lane.b32.xlu1 %v7798_v37, %s7979_s16  ;;  %v7803_v35 = vpack.i.bf16 %v1769_v40, %v1768_v24  ;;  %v9516_v37 = vpop.permute.xlu2 %7589  ;;  %v9528_v24 = vpop.f32.mrf.mxu2 }
 0x38f   : > { %13355 = vst [vmem:[#allocation29_spill] sm:$0xff] %v9528_v24  ;;  %v1781_v24 = vld [vmem:[#allocation3 + $0xb1] sm:$0xff] }
 0x390   : > { %v7833_v26 = vpack.i.bf16 %v1781_v24, %v1780_v25  ;;  %v1789_v24 = vld [vmem:[#allocation3 + $0x111] sm:$0xff] }
 0x392   : > { %7774 = vrot.lane.b32.xlu0 %v7723_v60, %s7979_s16  ;;  %7789 = vrot.lane.b32.xlu2 %v7748_v34, %s7979_s16 }
 0x393   : > { %v9509_v54 = vpop.permute.xlu1 %7614  ;;  %7216 = vmatmul.msk.f32.gmra.mxu2 %vm402_vm2, %v9412_v28  ;;  %v1784_v28 = vld [vmem:[#allocation3 + $0xd9] sm:$0xff] }
 0x394   : > { %v9511_v10 = vpop.permute.xlu0 %7569 }
 0x396   : > { %7814 = vrot.lane.b32.xlu1 %v7813_v7, %s7977_s12  ;;  %v9534_v40 = vpop.permute.xlu2 %7599  ;;  %v7843_v7 = vpack.i.bf16 %v1785_v23, %v1784_v28 }
 0x39a   : > { %7794 = vrot.lane.b32.xlu0 %v9225_v21, %s7979_s16  ;;  %7804 = vrot.lane.b32.xlu2 %v7803_v35, %s7979_s16  ;;  %v1825_v21 = vld [vmem:[#allocation3 + $0x142] sm:$0xff] }
 0x39b   : > { %7217 = vmatmul.msk.f32.gmra.mxu2 %vm402_vm2, %v1824_v4  ;;  %v9526_v34 = vpop.permute.xlu1 %7619  ;;  %v1777_v4 = vld [vmem:[#allocation3 + $0x81] sm:$0xff] }
 0x39c   : > { %v9521_v60 = vpop.permute.xlu0 %7574 }
 0x39e   : > { %7829 = vrot.lane.b32.xlu1 %v9330_v17, %s7977_s12  ;;  %v1776_v17 = vld [vmem:[#allocation3 + $0x79] sm:$0xff]  ;;  %v9550_v23 = vpop.permute.xlu2 %7604 }
 0x3a2   : > { %7809 = vrot.lane.b32.xlu0 %v9239_v33, %s7977_s12  ;;  %7819 = vrot.lane.b32.xlu2 %v9252_v2, %s7977_s12  ;;  %v7823_v33 = vpack.i.bf16 %v1777_v4, %v1776_v17  ;;  %v9544_v2 = vpop.f32.mrf.mxu2 }
 0x3a3   : > { %7218 = vmatmul.msk.f32.gmra.mxu2 %vm402_vm2, %v1825_v21  ;;  %v9540_v57 = vpop.permute.xlu1 %7629  ;;  %13356 = vst [vmem:[#allocation30_spill] sm:$0xff] %v9544_v2  ;;  %v1796_v21 = vld [vmem:[#allocation3 + $0x169] sm:$0xff] }
 0x3a4   : > { %v9536_v35 = vpop.permute.xlu0 %7609 }
 0x3a6   : > { %7844 = vrot.lane.b32.xlu1 %v7843_v7, %s7977_s12  ;;  %v1797_v7 = vld [vmem:[#allocation3 + $0x171] sm:$0xff]  ;;  %v9567_v2 = vpop.permute.xlu2 %7639 }
 0x3a7   : > { %v7873_v25 = vpack.i.bf16 %v1797_v7, %v1796_v21 }
 0x3aa   : > { %7824 = vrot.lane.b32.xlu0 %v7823_v33, %s7977_s12  ;;  %7834 = vrot.lane.b32.xlu2 %v7833_v26, %s7977_s12  ;;  %v9564_v4 = vpop.f32.mrf.mxu2  ;;  %v1793_v33 = vld [vmem:[#allocation3 + $0x141] sm:$0xff] }
 0x3ab   : > { %7219 = vmatmul.msk.f32.gmra.mxu2 %vm402_vm2, %v9457_v50  ;;  %v9554_v17 = vpop.permute.xlu1 %7634  ;;  %v1788_v50 = vld [vmem:[#allocation3 + $0x109] sm:$0xff]  ;;  %13357 = vst [vmem:[#allocation31_spill] sm:$0xff] %v9564_v4 }
 0x3ac   : > { %v9546_v28 = vpop.permute.xlu0 %7624 }
 0x3ae   : > { %7859 = vrot.lane.b32.xlu1 %v9429_v41, %s7977_s12  ;;  %v1792_v41 = vld [vmem:[#allocation3 + $0x139] sm:$0xff] }
 0x3af   : > { %v7863_v53 = vpack.i.bf16 %v1793_v33, %v1792_v41 }
 0x3b2   : > { %7839 = vrot.lane.b32.xlu0 %v9344_v39, %s7977_s12  ;;  %7849 = vrot.lane.b32.xlu2 %v9361_v45, %s7977_s12  ;;  %v7853_v39 = vpack.i.bf16 %v1789_v24, %v1788_v50  ;;  %v1828_v45 = vld [vmem:[#allocation3 + $0x16a] sm:$0xff]  ;;  %v9576_v7 = vpop.f32.mrf.mxu2  ;;  %v1800_v50 = vld [vmem:[#allocation3 + $0x199] sm:$0xff]  ;;  %v1801_v24 = vld [vmem:[#allocation3 + $0x1a1] sm:$0xff] }
 0x3b3   : > { %7220 = vmatmul.msk.f32.gmra.mxu2 %vm402_vm2, %v9459_v0  ;;  %v9571_v21 = vpop.permute.xlu1 %7669  ;;  %13359 = vst [vmem:[#allocation33_spill] sm:$0xff] %v9576_v7 }
 0x3b4   : > { %v9560_v26 = vpop.permute.xlu0 %7644  ;;  %13358 = vst [vmem:[#allocation32_spill] sm:$0xff] %v9571_v21  ;;  %v7591_v21 = vunpack.i.l.bf16 %v9516_v37 }
 0x3b6   : > { %7874 = vrot.lane.b32.xlu1 %v7873_v25, %s7977_s12  ;;  %v9578_v25 = vpop.permute.xlu2 %7654 }
 0x3b7   : > { %13360 = vst [vmem:[#allocation34_spill] sm:$0xff] %v9578_v25 }
 0x3ba   : > { %7854 = vrot.lane.b32.xlu0 %v7853_v39, %s7977_s12  ;;  %7864 = vrot.lane.b32.xlu2 %v7863_v53, %s7977_s12  ;;  %v1829_v53 = vld [vmem:[#allocation3 + $0x172] sm:$0xff]  ;;  %v7883_v39 = vpack.i.bf16 %v1801_v24, %v1800_v50 }
 0x3bb   : > { %7221 = vmatmul.msk.f32.gmra.mxu2 %vm402_vm2, %v1828_v45  ;;  %v9587_v33 = vpop.permute.xlu1 %7684  ;;  %v9589_v45 = vpop.f32.mrf.mxu2  ;;  %v2972_v24 = vld [vmem:[%s13244_s4 + $0x78] sm:$0xff] }
 0x3bc   : > { %v9573_v0 = vpop.permute.xlu0 %7649  ;;  %13362 = vst [vmem:[#allocation36_spill] sm:$0xff] %v9587_v33  ;;  %3075 = vmatpush.msra.mxu1 %v2972_v24  ;;  %v2968_v33 = vld [vmem:[%s13244_s4 + $0x58] sm:$0xff] }
 0x3bd   : > { %13363 = vst [vmem:[#allocation37_spill] sm:$0xff] %v9589_v45  ;;  %v2969_v45 = vld [vmem:[%s13244_s4 + $0x60] sm:$0xff] }
 0x3be   : > { %v9592_v7 = vpop.permute.xlu2 %7674 }
 0x3bf   : > { %13364 = vst [vmem:[#allocation38_spill] sm:$0xff] %v9592_v7 }
 0x3c2   : > { %7869 = vrot.lane.b32.xlu0 %v9449_v52, %s7977_s12  ;;  %7879 = vrot.lane.b32.xlu2 %v9493_v15, %s7977_s12 }
 0x3c3   : > { %7222 = vmatmul.msk.f32.gmra.mxu2 %vm402_vm2, %v1829_v53  ;;  %v9598_v15 = vpop.permute.xlu1 %7704  ;;  %v9600_v4 = vpop.f32.mrf.mxu2  ;;  %v2971_v53 = vld [vmem:[%s13244_s4 + $0x70] sm:$0xff] }
 0x3c4   : > { %v9584_v41 = vpop.permute.xlu0 %7659  ;;  %13366 = vst [vmem:[#allocation40_spill] sm:$0xff] %v9598_v15  ;;  %3076 = vmatpush.msra.mxu1 %v2971_v53  ;;  %v2967_v53 = vld [vmem:[%s13244_s4 + $0x50] sm:$0xff] }
 0x3c5   : > { %13361 = vst [vmem:[#allocation35_spill] sm:$0xff] %v9584_v41 }
 0x3c6   : > { %13367 = vst [vmem:[#allocation41_spill] sm:$0xff] %v9600_v4  ;;  %v9606_v50 = vpop.permute.xlu2 %7679 }
 0x3ca   : > { %7884 = vrot.lane.b32.xlu0 %v7883_v39, %s7977_s12 }
 0x3cb   : > { %7223 = vmatmul.msk.f32.gmra.mxu2 %vm402_vm2, %v9465_v51  ;;  %v9614_v51 = vpop.permute.xlu1 %7709 }
 0x3cc   : > { %v9594_v52 = vpop.permute.xlu0 %7664  ;;  %13369 = vst [vmem:[#allocation43_spill] sm:$0xff] %v9614_v51  ;;  %v7336_v51 = vunpack.i.l.bf16 %v8947_v11 }
 0x3cd   : > { %13365 = vst [vmem:[#allocation39_spill] sm:$0xff] %v9594_v52 }
 0x3ce   : > { %v9618_v4 = vpop.permute.xlu2 %7689 }
 0x3cf   : > { %13371 = vst [vmem:[#allocation45_spill] sm:$0xff] %v9618_v4 }
 0x3d3   : > { %7224 = vmatmul.msk.f32.gmra.mxu2 %vm402_vm2, %v9467_v29  ;;  %v2970_v29 = vld [vmem:[%s13244_s4 + $0x68] sm:$0xff]  ;;  %v9629_v15 = vpop.permute.xlu1 %7719 }
 0x3d4   : > { %v9602_v41 = vpop.permute.xlu0 %7699  ;;  %3077 = vmatpush.msra.mxu1 %v2970_v29  ;;  %13372 = vst [vmem:[#allocation46_spill] sm:$0xff] %v9629_v15  ;;  %v2965_v29 = vld [vmem:[%s13244_s4 + $0x40] sm:$0xff] }
 0x3d5   : > { %13368 = vst [vmem:[#allocation42_spill] sm:$0xff] %v9602_v41 }
 0x3d6   : > { %3078 = vmatpush.msra.mxu1 %v2969_v45  ;;  %v9642_v4 = vpop.permute.xlu2 %7694  ;;  %v2964_v45 = vld [vmem:[%s13244_s4 + $0x38] sm:$0xff] }
 0x3d7   : > { %13374 = vst [vmem:[#allocation48_spill] sm:$0xff] %v9642_v4  ;;  %v1545_v4 = vld [vmem:[#allocation3] sm:$0xff] }
 0x3d8   : > { %3079 = vmatpush.msra.mxu1 %v2968_v33  ;;  %v2963_v33 = vld [vmem:[%s13244_s4 + $0x30] sm:$0xff] }
 0x3da   : > { %3080 = vmatpush.msra.mxu1 %v2967_v53 }
 0x3db   : > { %v9652_v53 = vpop.permute.xlu1 %7724 }
 0x3dc   : > { %v9616_v39 = vpop.permute.xlu0 %7714  ;;  %13376 = vst [vmem:[#allocation50_spill] sm:$0xff] %v9652_v53  ;;  %v2957_v53 = vld [vmem:[%s13244_s4] sm:$0xff] }
 0x3dd   : > { %13370 = vst [vmem:[#allocation44_spill] sm:$0xff] %v9616_v39  ;;  %v2966_v39 = vld [vmem:[%s13244_s4 + $0x48] sm:$0xff] }
 0x3de   : > { %3081 = vmatpush.msra.mxu1 %v2966_v39  ;;  %v2961_v39 = vld [vmem:[%s13244_s4 + $0x20] sm:$0xff] }
 0x3e0   : > { %3082 = vmatpush.msra.mxu1 %v2965_v29  ;;  %v2960_v29 = vld [vmem:[%s13244_s4 + $0x18] sm:$0xff] }
 0x3e2   : > { %3083 = vmatpush.msra.mxu1 %v2964_v45  ;;  %v2959_v45 = vld [vmem:[%s13244_s4 + $0x10] sm:$0xff] }
 0x3e4   : > { %v9631_v24 = vpop.permute.xlu0 %7734  ;;  %3084 = vmatpush.msra.mxu1 %v2963_v33 }
 0x3e5   : > { %13373 = vst [vmem:[#allocation47_spill] sm:$0xff] %v9631_v24  ;;  %v2962_v24 = vld [vmem:[%s13244_s4 + $0x28] sm:$0xff] }
 0x3e6   : > { %3085 = vmatpush.msra.mxu1 %v2962_v24  ;;  %v2958_v24 = vld [vmem:[%s13244_s4 + $0x8] sm:$0xff] }
 0x3e8   : > { %3086 = vmatpush.msra.mxu1 %v2961_v39  ;;  %v9670_v33 = vpop.permute.xlu1 %7754 }
 0x3e9   : > { %13379 = vst [vmem:[#allocation53_spill] sm:$0xff] %v9670_v33 }
 0x3ea   : > { %3087 = vmatpush.msra.mxu1 %v2960_v29 }
 0x3ec   : > { %v9647_v15 = vpop.permute.xlu0 %7744  ;;  %3088 = vmatpush.msra.mxu1 %v2959_v45  ;;  %v7331_v45 = vunpack.i.l.bf16 %v8938_v22 }
 0x3ed   : > { %13375 = vst [vmem:[#allocation49_spill] sm:$0xff] %v9647_v15  ;;  %v9663_v15 = vpop.permute.xlu2 %7729 }
 0x3ee   : > { %13377 = vst [vmem:[#allocation51_spill] sm:$0xff] %v9663_v15  ;;  %3089 = vmatpush.msra.mxu1 %v2958_v24  ;;  %v2730_v24 = vsel %vm402_vm2, %v1545_v4, %v7331_v45  ;;  %v7361_v4 = vunpack.i.l.bf16 %v9169_v16  ;;  %v7337_v45 = vunpack.i.h.bf16 %v8947_v11 }
 0x3f0   : > { %3090 = vmatpush.msra.mxu1 %v2957_v53  ;;  %v7351_v53 = vunpack.i.l.bf16 %v9207_v61 }
 0x3f4   : > { %v9665_v41 = vpop.permute.xlu0 %7749 }
 0x3f5   : > { %13378 = vst [vmem:[#allocation52_spill] sm:$0xff] %v9665_v41  ;;  %v9680_v39 = vpop.permute.xlu2 %7739  ;;  %v9682_v41 = vpop.permute.xlu1 %7779 }
 0x3f6   : > { %13381 = vst [vmem:[#allocation55_spill] sm:$0xff] %v9680_v39  ;;  %v7332_v39 = vunpack.i.h.bf16 %v8938_v22  ;;  %v7352_v22 = vunpack.i.h.bf16 %v9207_v61 }
 0x3f7   : > { %13382 = vst [vmem:[#allocation56_spill] sm:$0xff] %v9682_v41  ;;  %v2762_v41 = vsel %vm1077_vm6, %v2730_v24, %v7336_v51 }
 0x3fc   : > { %v9678_v15 = vpop.permute.xlu0 %7769 }
 0x3fd   : > { %13380 = vst [vmem:[#allocation54_spill] sm:$0xff] %v9678_v15  ;;  %v9686_v33 = vpop.permute.xlu2 %7759  ;;  %v9690_v25 = vpop.permute.xlu1 %7784  ;;  %v7356_v15 = vunpack.i.l.bf16 %v9234_v42 }
 0x3fe   : > { %13384 = vst [vmem:[#allocation58_spill] sm:$0xff] %v9686_v33  ;;  %v2794_v33 = vsel %vm1095_vm8, %v2762_v41, %v7351_v53  ;;  %v7357_v53 = vunpack.i.h.bf16 %v9234_v42  ;;  %v7592_v42 = vunpack.i.h.bf16 %v9516_v37 }
 0x3ff   : > { %13385 = vst [vmem:[#allocation59_spill] sm:$0xff] %v9690_v25  ;;  %v2826_v25 = vsel %vm1113_vm11, %v2794_v33, %v7356_v15  ;;  %v7341_v33 = vunpack.i.l.bf16 %v9149_v19 }
 0x400   : > { %v2859_v41 = vsel %vm2858_vm10, %v2826_v25, %v7361_v4  ;;  %v7576_v25 = vunpack.i.l.bf16 %v9521_v60  ;;  %v7892_v4 = vld [vmem:[#allocation3 + $0x18] sm:$0xff] }
 0x401   : > { %v2892_v15 = vsel %vm2891_vm12, %v2859_v41, %v7591_v21  ;;  %v2732_v21 = vsel %vm402_vm2, %v7892_v4, %v7341_v33  ;;  %v7362_v41 = vunpack.i.h.bf16 %v9169_v16  ;;  %v7347_v33 = vunpack.i.h.bf16 %v9186_v59 }
 0x402   : > { %v7582_v4 = vunpack.i.h.bf16 %v9484_v43 }
 0x404   : > { %v9684_v29 = vpop.permute.xlu0 %7774 }
 0x405   : > { %13383 = vst [vmem:[#allocation57_spill] sm:$0xff] %v9684_v29  ;;  %v1546_v29 = vld [vmem:[#allocation3 + $0x8] sm:$0xff]  ;;  %v9701_v58 = vpop.permute.xlu2 %7764  ;;  %v9710_v52 = vpop.permute.xlu1 %7799 }
 0x406   : > { %13387 = vst [vmem:[#allocation61_spill] sm:$0xff] %v9701_v58  ;;  %v2731_v51 = vsel %vm402_vm2, %v1546_v29, %v7332_v39  ;;  %v7346_v39 = vunpack.i.l.bf16 %v9186_v59 }
 0x407   : > { %13388 = vst [vmem:[#allocation62_spill] sm:$0xff] %v9710_v52  ;;  %v2763_v11 = vsel %vm1077_vm6, %v2731_v51, %v7337_v45 }
 0x408   : > { %v2795_v61 = vsel %vm1095_vm8, %v2763_v11, %v7352_v22  ;;  %v7581_v22 = vunpack.i.l.bf16 %v9484_v43  ;;  %v7586_v11 = vunpack.i.l.bf16 %v9505_v48 }
 0x409   : > { %v2827_v29 = vsel %vm1113_vm11, %v2795_v61, %v7357_v53  ;;  %v7342_v53 = vunpack.i.h.bf16 %v9149_v19  ;;  %v7893_v61 = vld [vmem:[#allocation3 + $0x20] sm:$0xff] }
 0x40a   : > { %v2860_v51 = vsel %vm2858_vm10, %v2827_v29, %v7362_v41 }
 0x40b   : > { %v2893_v37 = vsel %vm2891_vm12, %v2860_v51, %v7592_v42 }
 0x40c   : > { %v9692_v7 = vpop.permute.xlu0 %7794 }
 0x40d   : > { %13386 = vst [vmem:[#allocation60_spill] sm:$0xff] %v9692_v7  ;;  %v9724_v45 = vpop.permute.xlu2 %7789  ;;  %v7815_v16 = vpop.permute.xlu1 %7814 }
 0x40e   : > { %v7816_v29 = vunpack.i.l.bf16 %v7815_v16 }
 0x414   : > { %v7810_v7 = vpop.permute.xlu0 %7809 }
 0x415   : > { %v7811_v24 = vunpack.i.l.bf16 %v7810_v7  ;;  %v7812_v52 = vunpack.i.h.bf16 %v7810_v7 }
 0x417   : > { %v2925_v58 = vsel %vm2924_vm13, %v2892_v15, %v7811_v24  ;;  %v2764_v24 = vsel %vm1077_vm6, %v2732_v21, %v7346_v39  ;;  %v2926_v15 = vsel %vm2924_vm13, %v2893_v37, %v7812_v52  ;;  %v7577_v39 = vunpack.i.h.bf16 %v9521_v60  ;;  %v9742_v21 = vpop.permute.xlu2 %7804 }
 0x418   : > { %3091 = vmatmul.f32.vlgmr.msra.gmra.mxu1 %v2925_v58  ;;  %v2796_v58 = vsel %vm1095_vm8, %v2764_v24, %v7576_v25  ;;  %v2733_v25 = vsel %vm402_vm2, %v7893_v61, %v7342_v53  ;;  %v7391_v52 = vunpack.i.l.bf16 %v9278_v46  ;;  %v7566_v60 = vunpack.i.l.bf16 %v9489_v5 }
 0x419   : > { %v2828_v7 = vsel %vm1113_vm11, %v2796_v58, %v7581_v22  ;;  %v2765_v19 = vsel %vm1077_vm6, %v2733_v25, %v7347_v33  ;;  %v7571_v58 = vunpack.i.l.bf16 %v9511_v10  ;;  %v7587_v22 = vunpack.i.h.bf16 %v9505_v48 }
 0x41a   : > { %v2861_v42 = vsel %vm2858_vm10, %v2828_v7, %v7586_v11  ;;  %v2797_v59 = vsel %vm1095_vm8, %v2765_v19, %v7577_v39  ;;  %v2734_v37 = vsel %vm402_vm2, %v9289_v49, %v7566_v60  ;;  %v7817_v53 = vunpack.i.h.bf16 %v7815_v16 }
 0x41b   : > { %v2894_v41 = vsel %vm2891_vm12, %v2861_v42, %v7391_v52  ;;  %v2829_v51 = vsel %vm1113_vm11, %v2797_v59, %v7582_v4  ;;  %v2766_v33 = vsel %vm1077_vm6, %v2734_v37, %v7571_v58  ;;  %v7376_v7 = vunpack.i.l.bf16 %v9259_v14 }
 0x41c   : > { %v2927_v24 = vsel %vm2924_vm13, %v2894_v41, %v7816_v29  ;;  %v2862_v43 = vsel %vm2858_vm10, %v2829_v51, %v7587_v22  ;;  %v7567_v39 = vunpack.i.h.bf16 %v9489_v5  ;;  %v7381_v25 = vunpack.i.l.bf16 %v9216_v47 }
 0x41d   : > { %v2798_v48 = vsel %vm1095_vm8, %v2766_v33, %v7376_v7  ;;  %v7572_v49 = vunpack.i.h.bf16 %v9511_v10  ;;  %v7386_v42 = vunpack.i.l.bf16 %v9261_v20  ;;  %v7377_v59 = vunpack.i.h.bf16 %v9259_v14  ;;  %v7894_v14 = vld [vmem:[#allocation3 + $0x48] sm:$0xff] }
 0x41e   : > { %v2830_v29 = vsel %vm1113_vm11, %v2798_v48, %v7381_v25  ;;  %v2735_v19 = vsel %vm402_vm2, %v9291_v38, %v7567_v39  ;;  %v7366_v41 = vunpack.i.l.bf16 %v9247_v36  ;;  %v7382_v58 = vunpack.i.h.bf16 %v9216_v47  ;;  %v7825_v48 = vpop.permute.xlu0 %7824 }
 0x41f   : > { %v7820_v16 = vpop.permute.xlu2 %7819  ;;  %v2767_v52 = vsel %vm1077_vm6, %v2735_v19, %v7572_v49  ;;  %v2863_v4 = vsel %vm2858_vm10, %v2830_v29, %v7386_v42  ;;  %v7371_v38 = vunpack.i.l.bf16 %v9245_v3  ;;  %v7622_v51 = vunpack.i.h.bf16 %v9526_v34 }
 0x420   : > { %3094 = vmatmul.f32.gmra.mxu1 %v2926_v15  ;;  %v7392_v15 = vunpack.i.h.bf16 %v9278_v46  ;;  %v7621_v46 = vunpack.i.l.bf16 %v9526_v34  ;;  %v7821_v5 = vunpack.i.l.bf16 %v7820_v16  ;;  %v2736_v37 = vsel %vm402_vm2, %v7894_v14, %v7366_v41 }
 0x421   : > { %v7611_v33 = vunpack.i.l.bf16 %v9536_v35  ;;  %v2768_v47 = vsel %vm1077_vm6, %v2736_v37, %v7371_v38  ;;  %v7367_v34 = vunpack.i.h.bf16 %v9247_v36  ;;  %v7616_v25 = vunpack.i.l.bf16 %v9509_v54 }
 0x422   : > { %v2895_v11 = vsel %vm2891_vm12, %v2862_v43, %v7392_v15  ;;  %v2896_v10 = vsel %vm2891_vm12, %v2863_v4, %v7621_v46  ;;  %v7606_v43 = vunpack.i.l.bf16 %v9550_v23  ;;  %v7822_v15 = vunpack.i.h.bf16 %v7820_v16  ;;  %v7895_v16 = vld [vmem:[#allocation3 + $0x50] sm:$0xff] }
 0x423   : > { %v2928_v61 = vsel %vm2924_vm13, %v2895_v11, %v7817_v53  ;;  %v2929_v60 = vsel %vm2924_vm13, %v2896_v10, %v7821_v5  ;;  %v7387_v53 = vunpack.i.h.bf16 %v9261_v20  ;;  %v7372_v49 = vunpack.i.h.bf16 %v9245_v3 }
 0x424   : > { %v2800_v39 = vsel %vm1095_vm8, %v2768_v47, %v7606_v43  ;;  %v2737_v46 = vsel %vm402_vm2, %v7895_v16, %v7367_v34  ;;  %v7607_v29 = vunpack.i.h.bf16 %v9550_v23  ;;  %v7826_v42 = vunpack.i.l.bf16 %v7825_v48 }
 0x425   : > { %v2832_v20 = vsel %vm1113_vm11, %v2800_v39, %v7611_v33  ;;  %v7421_v19 = vunpack.i.l.bf16 %v9250_v32  ;;  %v7612_v5 = vunpack.i.h.bf16 %v9536_v35  ;;  %v7596_v4 = vunpack.i.l.bf16 %v9498_v13 }
 0x426   : > { %v2865_v36 = vsel %vm2858_vm10, %v2832_v20, %v7616_v25  ;;  %v7601_v41 = vunpack.i.l.bf16 %v9534_v40  ;;  %v7422_v38 = vunpack.i.h.bf16 %v9250_v32  ;;  %v7597_v37 = vunpack.i.h.bf16 %v9498_v13 }
 0x427   : > { %v2738_v35 = vsel %vm402_vm2, %v9280_v62, %v7596_v4  ;;  %v7411_v43 = vunpack.i.l.bf16 %v9276_v8  ;;  %v7602_v62 = vunpack.i.h.bf16 %v9534_v40  ;;  %v7651_v32 = vunpack.i.l.bf16 %v9573_v0  ;;  %v7835_v4 = vpop.permute.xlu2 %7834 }
 0x428   : > { %3097 = vmatmul.f32.gmra.mxu1 %v2927_v24  ;;  %v2799_v24 = vsel %vm1095_vm8, %v2767_v52, %v7377_v59  ;;  %v2769_v52 = vsel %vm1077_vm6, %v2737_v46, %v7372_v49  ;;  %v2898_v59 = vsel %vm2891_vm12, %v2865_v36, %v7421_v19  ;;  %v2739_v47 = vsel %vm402_vm2, %v9287_v18, %v7597_v37 }
 0x429   : > { %v2831_v22 = vsel %vm1113_vm11, %v2799_v24, %v7382_v58  ;;  %v2801_v3 = vsel %vm1095_vm8, %v2769_v52, %v7607_v29  ;;  %v2931_v10 = vsel %vm2924_vm13, %v2898_v59, %v7826_v42  ;;  %v7827_v24 = vunpack.i.h.bf16 %v7825_v48  ;;  %v7896_v42 = vld [vmem:[#allocation3 + $0x78] sm:$0xff] }
 0x42a   : > { %v2864_v7 = vsel %vm2858_vm10, %v2831_v22, %v7387_v53  ;;  %v2833_v23 = vsel %vm1113_vm11, %v2801_v3, %v7612_v5  ;;  %v7406_v22 = vunpack.i.l.bf16 %v9338_v44  ;;  %v7407_v34 = vunpack.i.h.bf16 %v9338_v44 }
 0x42b   : > { %v2897_v11 = vsel %vm2891_vm12, %v2864_v7, %v7622_v51  ;;  %v2770_v51 = vsel %vm1077_vm6, %v2738_v35, %v7601_v41  ;;  %v7416_v7 = vunpack.i.l.bf16 %v9237_v63  ;;  %v7412_v20 = vunpack.i.h.bf16 %v9276_v8 }
 0x42c   : > { %v7396_v25 = vunpack.i.l.bf16 %v9223_v1  ;;  %v7401_v18 = vunpack.i.l.bf16 %v9319_v9  ;;  %v7652_v49 = vunpack.i.h.bf16 %v9573_v0  ;;  %v7417_v44 = vunpack.i.h.bf16 %v9237_v63 }
 0x42d   : > { %v7636_v46 = vunpack.i.l.bf16 %v9554_v17  ;;  %v7646_v0 = vunpack.i.l.bf16 %v9560_v26  ;;  %v7641_v63 = vunpack.i.l.bf16 %v9567_v2  ;;  %v7397_v3 = vunpack.i.h.bf16 %v9223_v1 }
 0x42e   : > { %v2740_v36 = vsel %vm402_vm2, %v7896_v42, %v7396_v25  ;;  %v7642_v37 = vunpack.i.h.bf16 %v9567_v2 }
 0x42f   : > { %v2772_v8 = vsel %vm1077_vm6, %v2740_v36, %v7401_v18  ;;  %v7426_v18 = vunpack.i.l.bf16 %v9300_v6  ;;  %v13389_v36 = vld [vmem:[#allocation39_spill] sm:$0xff] }
 0x430   : > { %3100 = vmatmul.f32.gmra.mxu1 %v2928_v61  ;;  %v2930_v61 = vsel %vm2924_vm13, %v2897_v11, %v7822_v15  ;;  %v7830_v15 = vpop.permute.xlu1 %7829  ;;  %v2771_v11 = vsel %vm1077_vm6, %v2739_v47, %v7602_v62  ;;  %v2804_v52 = vsel %vm1095_vm8, %v2772_v8, %v7636_v46  ;;  %v7631_v62 = vunpack.i.l.bf16 %v9540_v57  ;;  %v13390_v8 = vld [vmem:[#allocation5_spill] sm:$0xff] }
 0x431   : > { %v7831_v13 = vunpack.i.l.bf16 %v7830_v15  ;;  %v2803_v48 = vsel %vm1095_vm8, %v2771_v11, %v7407_v34  ;;  %v7832_v29 = vunpack.i.h.bf16 %v7830_v15  ;;  %v2836_v41 = vsel %vm1113_vm11, %v2804_v52, %v7641_v63 }
 0x432   : > { %v2835_v16 = vsel %vm1113_vm11, %v2803_v48, %v7412_v20  ;;  %v2869_v35 = vsel %vm2858_vm10, %v2836_v41, %v7646_v0  ;;  %v7627_v47 = vunpack.i.h.bf16 %v9546_v28  ;;  %v7441_v34 = vunpack.i.l.bf16 %v9351_v55 }
 0x433   : > { %v2868_v19 = vsel %vm2858_vm10, %v2835_v16, %v7417_v44  ;;  %v7442_v46 = vunpack.i.h.bf16 %v9351_v55  ;;  %v7447_v0 = vunpack.i.h.bf16 %v9317_v31  ;;  %v7427_v55 = vunpack.i.h.bf16 %v9300_v6 }
 0x434   : > { %v2901_v5 = vsel %vm2891_vm12, %v2868_v19, %v7652_v49  ;;  %v7437_v49 = vunpack.i.h.bf16 %v9304_v30  ;;  %v7666_v19 = vunpack.i.l.bf16 %v13389_v36 }
 0x435   : > { %v2934_v59 = vsel %vm2924_vm13, %v2901_v5, %v7832_v29  ;;  %v7898_v29 = vld [vmem:[#allocation3 + $0xa8] sm:$0xff]  ;;  %v7431_v5 = vunpack.i.l.bf16 %v13390_v8 }
 0x436   : > { %v2744_v42 = vsel %vm402_vm2, %v7898_v29, %v7426_v18  ;;  %v13398_v18 = vld [vmem:[#allocation6_spill] sm:$0xff] }
 0x437   : > { %v2776_v63 = vsel %vm1077_vm6, %v2744_v42, %v7431_v5  ;;  %v13400_v42 = vld [vmem:[#allocation13_spill] sm:$0xff] }
 0x438   : > { %3103 = vmatmul.f32.gmra.mxu1 %v2929_v60  ;;  %v7617_v60 = vunpack.i.h.bf16 %v9509_v54  ;;  %v2802_v54 = vsel %vm1095_vm8, %v2770_v51, %v7406_v22  ;;  %v7626_v51 = vunpack.i.l.bf16 %v9546_v28  ;;  %v7446_v28 = vunpack.i.l.bf16 %v9317_v31 }
 0x439   : > { %v2834_v33 = vsel %vm1113_vm11, %v2802_v54, %v7411_v43  ;;  %v3430_v54 = vld [vmem:[#allocation4 + $0x2] sm:$0xff] }
 0x43a   : > { %v2866_v58 = vsel %vm2858_vm10, %v2833_v23, %v7617_v60  ;;  %v2867_v39 = vsel %vm2858_vm10, %v2834_v33, %v7416_v7  ;;  %v7637_v23 = vunpack.i.h.bf16 %v9554_v17  ;;  %v7836_v60 = vunpack.i.l.bf16 %v7835_v4  ;;  %3815 = vrot.lane.b32.xlu0 %v3430_v54, %s7969_s24 }
 0x43b   : > { %v2899_v14 = vsel %vm2891_vm12, %v2866_v58, %v7422_v38  ;;  %v2900_v40 = vsel %vm2891_vm12, %v2867_v39, %v7651_v32  ;;  %v7897_v58 = vld [vmem:[#allocation3 + $0x80] sm:$0xff]  ;;  %v2742_v43 = vsel %vm402_vm2, %v9321_v56, %v7626_v51  ;;  %v7837_v32 = vunpack.i.h.bf16 %v7835_v4  ;;  %v7840_v39 = vpop.permute.xlu0 %7839 }
 0x43c   : > { %v2932_v53 = vsel %vm2924_vm13, %v2899_v14, %v7827_v24  ;;  %v7451_v24 = vunpack.i.l.bf16 %v9336_v27  ;;  %v2741_v38 = vsel %vm402_vm2, %v7897_v58, %v7397_v3  ;;  %v7647_v14 = vunpack.i.h.bf16 %v9560_v26  ;;  %v3431_v4 = vld [vmem:[#allocation4 + $0xa] sm:$0xff]  ;;  %v7899_v58 = vld [vmem:[#allocation3 + $0xb0] sm:$0xff] }
 0x43d   : > { %v7452_v33 = vunpack.i.h.bf16 %v9336_v27  ;;  %v2774_v2 = vsel %vm1077_vm6, %v2742_v43, %v7631_v62  ;;  %v7436_v7 = vunpack.i.l.bf16 %v9304_v30  ;;  %v7632_v27 = vunpack.i.h.bf16 %v9540_v57  ;;  %v3399_v3 = vld [vmem:[#allocation4 + $0x9] sm:$0xff] }
 0x43e   : > { %v2902_v1 = vsel %vm2891_vm12, %v2869_v35, %v7451_v24  ;;  %v7841_v20 = vunpack.i.l.bf16 %v7840_v39  ;;  %v7682_v30 = vunpack.i.h.bf16 %v9606_v50  ;;  %3689 = vrot.lane.b32.xlu2 %v3399_v3, %s7967_s19  ;;  %v7845_v35 = vpop.permute.xlu1 %7844  ;;  %v2745_v6 = vsel %vm402_vm2, %v7899_v58, %v7427_v55  ;;  %v13401_v3 = vld [vmem:[#allocation10_spill] sm:$0xff] }
 0x43f   : > { %v2935_v17 = vsel %vm2924_vm13, %v2902_v1, %v7836_v60  ;;  %v2806_v11 = vsel %vm1095_vm8, %v2774_v2, %v7436_v7  ;;  %v7432_v1 = vunpack.i.h.bf16 %v13390_v8  ;;  %v7456_v55 = vunpack.i.l.bf16 %v13401_v3 }
 0x440   : > { %3106 = vmatmul.f32.gmra.mxu1 %v2930_v61  ;;  %v2933_v61 = vsel %vm2924_vm13, %v2900_v40, %v7831_v13  ;;  %v2743_v40 = vsel %vm402_vm2, %v9326_v12, %v7627_v47  ;;  %v2838_v48 = vsel %vm1113_vm11, %v2806_v11, %v7441_v34  ;;  %v7847_v11 = vunpack.i.h.bf16 %v7845_v35 }
 0x441   : > { %v2775_v25 = vsel %vm1077_vm6, %v2743_v40, %v7632_v27  ;;  %v2871_v16 = vsel %vm2858_vm10, %v2838_v48, %v7446_v28  ;;  %v13397_v27 = vld [vmem:[#allocation12_spill] sm:$0xff] }
 0x442   : > { %v2807_v57 = vsel %vm1095_vm8, %v2775_v25, %v7437_v49  ;;  %v7471_v49 = vunpack.i.l.bf16 %v13398_v18 }
 0x443   : > { %v2839_v52 = vsel %vm1113_vm11, %v2807_v57, %v7442_v46  ;;  %v9932_v46 = vld [vmem:[%s13245_s5] ss:$0 sm:$0xff] }
 0x444   : > { %v2872_v41 = vsel %vm2858_vm10, %v2839_v52, %v7447_v0  ;;  %v7467_v52 = vunpack.i.h.bf16 %v13397_v27 }
 0x445   : > { %v2905_v60 = vsel %vm2891_vm12, %v2872_v41, %v7682_v30 }
 0x448   : > { %3109 = vmatmul.f32.gmra.mxu1 %v2931_v10  ;;  %v7402_v10 = vunpack.i.h.bf16 %v9319_v9 }
 0x44a   : > { %v2773_v22 = vsel %vm1077_vm6, %v2741_v38, %v7402_v10  ;;  %v2808_v10 = vsel %vm1095_vm8, %v2776_v63, %v7666_v19  ;;  %v13392_v38 = vld [vmem:[#allocation38_spill] sm:$0xff] }
 0x44b   : > { %v2805_v9 = vsel %vm1095_vm8, %v2773_v22, %v7637_v23  ;;  %v7676_v51 = vunpack.i.l.bf16 %v13392_v38  ;;  %v7667_v22 = vunpack.i.h.bf16 %v13389_v36  ;;  %v7677_v47 = vunpack.i.h.bf16 %v13392_v38  ;;  %v7900_v19 = vld [vmem:[#allocation3 + $0xc8] sm:$0xff] }
 0x44c   : > { %v2837_v15 = vsel %vm1113_vm11, %v2805_v9, %v7642_v37  ;;  %v7846_v9 = vunpack.i.l.bf16 %v7845_v35  ;;  %v7476_v36 = vunpack.i.l.bf16 %v13400_v42  ;;  %v13403_v35 = vld [vmem:[#allocation9_spill] sm:$0xff] }
 0x44d   : > { %v2870_v26 = vsel %vm2858_vm10, %v2837_v15, %v7647_v14  ;;  %v13394_v15 = vld [vmem:[#allocation34_spill] sm:$0xff] }
 0x44e   : > { %v2903_v56 = vsel %vm2891_vm12, %v2870_v26, %v7452_v33  ;;  %v13395_v33 = vld [vmem:[#allocation35_spill] sm:$0xff]  ;;  %v7657_v28 = vunpack.i.h.bf16 %v13394_v15 }
 0x44f   : > { %v2936_v13 = vsel %vm2924_vm13, %v2903_v56, %v7837_v32  ;;  %v7656_v32 = vunpack.i.l.bf16 %v13394_v15  ;;  %v7661_v2 = vunpack.i.l.bf16 %v13395_v33  ;;  %v13396_v56 = vld [vmem:[#allocation14_spill] sm:$0xff] }
 0x450   : > { %3112 = vmatmul.f32.gmra.mxu1 %v2932_v53  ;;  %v3398_v53 = vld [vmem:[#allocation4 + $0x1] sm:$0xff]  ;;  %v2747_v8 = vsel %vm402_vm2, %v7900_v19, %v7657_v28 }
 0x451   : > { %3687 = vrot.lane.b32.xlu1 %v3398_v53, %s7967_s19  ;;  %v2777_v53 = vsel %vm1077_vm6, %v2745_v6, %v7432_v1  ;;  %v7477_v1 = vunpack.i.h.bf16 %v13400_v42  ;;  %v13409_v19 = vld [vmem:[#allocation36_spill] sm:$0xff] }
 0x452   : > { %v2809_v54 = vsel %vm1095_vm8, %v2777_v53, %v7667_v22 }
 0x458   : > { %3115 = vmatmul.f32.gmra.mxu1 %v2933_v61  ;;  %v7681_v61 = vunpack.i.l.bf16 %v9606_v50  ;;  %v13391_v50 = vld [vmem:[#allocation32_spill] sm:$0xff] }
 0x459   : > { %3817 = vrot.lane.b32.xlu1 %v3431_v4, %s7969_s24  ;;  %v7671_v23 = vunpack.i.l.bf16 %v13391_v50  ;;  %v7672_v43 = vunpack.i.h.bf16 %v13391_v50  ;;  %v7472_v50 = vunpack.i.h.bf16 %v13398_v18 }
 0x45a   : > { %v2904_v44 = vsel %vm2891_vm12, %v2871_v16, %v7681_v61  ;;  %v7466_v61 = vunpack.i.l.bf16 %v13397_v27  ;;  %v7662_v16 = vunpack.i.h.bf16 %v13395_v33  ;;  %v7902_v27 = vld [vmem:[#allocation3 + $0xe0] sm:$0xff] }
 0x45b   : > { %v2937_v12 = vsel %vm2924_vm13, %v2904_v44, %v7841_v20  ;;  %v2840_v24 = vsel %vm1113_vm11, %v2808_v10, %v7671_v23  ;;  %v2841_v7 = vsel %vm1113_vm11, %v2809_v54, %v7672_v43  ;;  %v7850_v44 = vpop.permute.xlu2 %7849  ;;  %v13402_v23 = vld [vmem:[#allocation29_spill] sm:$0xff] }
 0x45c   : > { %v2873_v14 = vsel %vm2858_vm10, %v2840_v24, %v7676_v51  ;;  %v2874_v34 = vsel %vm2858_vm10, %v2841_v7, %v7677_v47  ;;  %v7851_v5 = vunpack.i.l.bf16 %v7850_v44  ;;  %v2779_v30 = vsel %vm1077_vm6, %v2747_v8, %v7662_v16  ;;  %v7901_v51 = vld [vmem:[#allocation3 + $0xd8] sm:$0xff]  ;;  %v7855_v7 = vpop.permute.xlu0 %7854  ;;  %v13406_v47 = vld [vmem:[#allocation30_spill] sm:$0xff]  ;;  %v13408_v16 = vld [vmem:[#allocation11_spill] sm:$0xff] }
 0x45d   : > { %v2811_v41 = vsel %vm1095_vm8, %v2779_v30, %v7467_v52  ;;  %v7461_v24 = vunpack.i.l.bf16 %v13403_v35  ;;  %v2748_v22 = vsel %vm402_vm2, %v7901_v51, %v7456_v55  ;;  %v7686_v8 = vunpack.i.l.bf16 %v13409_v19  ;;  %v13410_v52 = vld [vmem:[#allocation45_spill] sm:$0xff] }
 0x45e   : > { %v2843_v38 = vsel %vm1113_vm11, %v2811_v41, %v7472_v50  ;;  %v7857_v50 = vunpack.i.h.bf16 %v7855_v7 }
 0x45f   : > { %v2876_v43 = vsel %vm2858_vm10, %v2843_v38, %v7477_v1  ;;  %v13412_v38 = vld [vmem:[#allocation23_spill] sm:$0xff] }
 0x460   : > { %3118 = vmatmul.f32.gmra.mxu1 %v2934_v59  ;;  %v7842_v59 = vunpack.i.h.bf16 %v7840_v39  ;;  %v7496_v51 = vunpack.i.l.bf16 %v13412_v38 }
 0x462   : > { %v2938_v31 = vsel %vm2924_vm13, %v2905_v60, %v7842_v59 }
 0x468   : > { %3121 = vmatmul.f32.gmra.mxu1 %v2935_v17  ;;  %v13393_v17 = vld [vmem:[#allocation16_spill] sm:$0xff] }
 0x469   : > { %v7481_v37 = vunpack.i.l.bf16 %v13393_v17  ;;  %v7482_v39 = vunpack.i.h.bf16 %v13393_v17  ;;  %v7852_v17 = vunpack.i.h.bf16 %v7850_v44  ;;  %v7511_v44 = vunpack.i.l.bf16 %v13408_v16 }
 0x46b   : > { %v2906_v62 = vsel %vm2891_vm12, %v2873_v14, %v7481_v37  ;;  %v2907_v48 = vsel %vm2891_vm12, %v2874_v34, %v7482_v39  ;;  %v13405_v37 = vld [vmem:[#allocation42_spill] sm:$0xff]  ;;  %v7462_v39 = vunpack.i.h.bf16 %v13403_v35 }
 0x46c   : > { %v2939_v26 = vsel %vm2924_vm13, %v2906_v62, %v7846_v9  ;;  %v2940_v20 = vsel %vm2924_vm13, %v2907_v48, %v7847_v11  ;;  %v13404_v9 = vld [vmem:[#allocation48_spill] sm:$0xff]  ;;  %v7701_v53 = vunpack.i.l.bf16 %v13405_v37  ;;  %v2780_v62 = vsel %vm1077_vm6, %v2748_v22, %v7461_v24 }
 0x46d   : > { %v7696_v14 = vunpack.i.l.bf16 %v13404_v9  ;;  %v13407_v11 = vld [vmem:[#allocation40_spill] sm:$0xff]  ;;  %v7697_v28 = vunpack.i.h.bf16 %v13404_v9 }
 0x46e   : > { %v7706_v34 = vunpack.i.l.bf16 %v13407_v11 }
 0x46f   : > { %v2812_v33 = vsel %vm1095_vm8, %v2780_v62, %v7696_v14  ;;  %v7692_v62 = vunpack.i.h.bf16 %v13410_v52 }
 0x470   : > { %3124 = vmatmul.f32.gmra.mxu1 %v2936_v13  ;;  %v2746_v13 = vsel %vm402_vm2, %v13396_v56, %v7656_v32 }
 0x471   : > { %v2778_v40 = vsel %vm1077_vm6, %v2746_v13, %v7661_v2  ;;  %v2844_v13 = vsel %vm1113_vm11, %v2812_v33, %v7701_v53  ;;  %v13415_v33 = vld [vmem:[#allocation57_spill] sm:$0xff] }
 0x472   : > { %v2810_v25 = vsel %vm1095_vm8, %v2778_v40, %v7466_v61 }
 0x473   : > { %v2842_v29 = vsel %vm1113_vm11, %v2810_v25, %v7471_v49  ;;  %v2877_v49 = vsel %vm2858_vm10, %v2844_v13, %v7706_v34 }
 0x474   : > { %v2875_v59 = vsel %vm2858_vm10, %v2842_v29, %v7476_v36  ;;  %v2910_v36 = vsel %vm2891_vm12, %v2877_v49, %v7511_v44 }
 0x478   : > { %3127 = vmatmul.f32.gmra.mxu1 %v2937_v12  ;;  %v13399_v12 = vld [vmem:[#allocation43_spill] sm:$0xff] }
 0x479   : > { %v7711_v57 = vunpack.i.l.bf16 %v13399_v12  ;;  %v7712_v58 = vunpack.i.h.bf16 %v13399_v12  ;;  %v7702_v12 = vunpack.i.h.bf16 %v13405_v37 }
 0x47b   : > { %v2908_v4 = vsel %vm2891_vm12, %v2875_v59, %v7711_v57  ;;  %v2909_v32 = vsel %vm2891_vm12, %v2876_v43, %v7712_v58  ;;  %v13411_v59 = vld [vmem:[#allocation31_spill] sm:$0xff]  ;;  %v7512_v58 = vunpack.i.h.bf16 %v13408_v16 }
 0x47c   : > { %v2941_v10 = vsel %vm2924_vm13, %v2908_v4, %v7851_v5  ;;  %v2942_v2 = vsel %vm2924_vm13, %v2909_v32, %v7852_v17  ;;  %v7687_v17 = vunpack.i.h.bf16 %v13409_v19  ;;  %v13414_v32 = vld [vmem:[#allocation33_spill] sm:$0xff] }
 0x480   : > { %3130 = vmatmul.f32.gmra.mxu1 %v2938_v31  ;;  %v9947_v31 = vpop.f32.mrf.mxu2 }
 0x488   : > { %3133 = vmatmul.f32.gmra.mxu1 %v2939_v26  ;;  %v7457_v26 = vunpack.i.h.bf16 %v13401_v3  ;;  %v9969_v48 = vpop.f32.mrf.mxu2  ;;  %v7707_v3 = vunpack.i.h.bf16 %v13407_v11  ;;  %v7904_v11 = vld [vmem:[#allocation3 + $0xf8] sm:$0xff] }
 0x489   : > { %v2751_v34 = vsel %vm402_vm2, %v7904_v11, %v7687_v17 }
 0x48a   : > { %v2749_v61 = vsel %vm402_vm2, %v7902_v27, %v7457_v26 }
 0x48b   : > { %v2781_v29 = vsel %vm1077_vm6, %v2749_v61, %v7462_v39  ;;  %v7497_v61 = vunpack.i.h.bf16 %v13412_v38  ;;  %v7865_v38 = vpop.permute.xlu2 %7864 }
 0x48c   : > { %v2813_v5 = vsel %vm1095_vm8, %v2781_v29, %v7697_v28 }
 0x48d   : > { %v2845_v4 = vsel %vm1113_vm11, %v2813_v5, %v7702_v12 }
 0x48e   : > { %v2878_v24 = vsel %vm2858_vm10, %v2845_v4, %v7707_v3  ;;  %v13420_v3 = vld [vmem:[#allocation50_spill] sm:$0xff] }
 0x48f   : > { %v2911_v14 = vsel %vm2891_vm12, %v2878_v24, %v7512_v58 }
 0x490   : > { %3136 = vmatmul.f32.gmra.mxu1 %v2940_v20  ;;  %v7856_v20 = vunpack.i.l.bf16 %v7855_v7  ;;  %v9997_v22 = vpop.f32.mrf.mxu2  ;;  %v2944_v37 = vsel %vm2924_vm13, %v2911_v14, %v7857_v50  ;;  %v13422_v14 = vld [vmem:[#allocation47_spill] sm:$0xff] }
 0x491   : > { %v7736_v17 = vunpack.i.l.bf16 %v13422_v14 }
 0x492   : > { %v2943_v30 = vsel %vm2924_vm13, %v2910_v36, %v7856_v20 }
 0x495   : > { %v3092_v0 = vpop.f32.mrf.mxu1 }
 0x496   : > { %v3093_v63 = vadd.f32 %v9932_v46, %v3092_v0  ;;  %v7691_v0 = vunpack.i.l.bf16 %v13410_v52 }
 0x498   : > { %v3206_v60 = vadd.f32 %v13402_v23, %v3093_v63  ;;  %3139 = vmatmul.f32.gmra.mxu1 %v2941_v10  ;;  %v7903_v10 = vld [vmem:[#allocation3 + $0xf0] sm:$0xff]  ;;  %v10021_v49 = vpop.f32.mrf.mxu2 }
 0x499   : > { %v2750_v41 = vsel %vm402_vm2, %v7903_v10, %v7686_v8  ;;  %v13418_v8 = vld [vmem:[#allocation7_spill] sm:$0xff] }
 0x49a   : > { %v3301_v6 = vmax.f32 %v3206_v60, 0.0  ;;  %v7486_v5 = vunpack.i.l.bf16 %v13418_v8 }
 0x49c   : > { %3334 = vst.msk [vmem:[#allocation4 + $0x19] sm:$0xff] %vm380_vm0, %v3301_v6  ;;  %v2782_v6 = vsel %vm1077_vm6, %v2750_v41, %v7691_v0 }
 0x49d   : > { %v3095_v54 = vpop.f32.mrf.mxu1  ;;  %v2814_v53 = vsel %vm1095_vm8, %v2782_v6, %v7496_v51  ;;  %v13421_v51 = vld [vmem:[#allocation41_spill] sm:$0xff] }
 0x49e   : > { %v3096_v15 = vadd.f32 %v9932_v46, %v3095_v54  ;;  %v13413_v54 = vld [vmem:[#allocation15_spill] sm:$0xff] }
 0x49f   : > { %v7501_v43 = vunpack.i.l.bf16 %v13413_v54  ;;  %v7502_v12 = vunpack.i.h.bf16 %v13413_v54  ;;  %v13424_v54 = vld [vmem:[#allocation59_spill] sm:$0xff] }
 0x4a0   : > { %v3209_v56 = vadd.f32 %v13406_v47, %v3096_v15  ;;  %3142 = vmatmul.f32.gmra.mxu1 %v2942_v2  ;;  %v7860_v15 = vpop.permute.xlu1 %7859  ;;  %v7776_v2 = vunpack.i.l.bf16 %v13415_v33 }
 0x4a1   : > { %v2846_v47 = vsel %vm1113_vm11, %v2814_v53, %v7501_v43  ;;  %v7861_v39 = vunpack.i.l.bf16 %v7860_v15  ;;  %v7862_v52 = vunpack.i.h.bf16 %v7860_v15  ;;  %v7786_v43 = vunpack.i.l.bf16 %v13424_v54 }
 0x4a2   : > { %v3302_v40 = vmax.f32 %v3209_v56, 0.0  ;;  %v13416_v56 = vld [vmem:[#allocation8_spill] sm:$0xff]  ;;  %v7487_v15 = vunpack.i.h.bf16 %v13418_v8 }
 0x4a3   : > { %v3494_v25 = vld [vmem:[#allocation4 + $0x19] sm:$0xff]  ;;  %v7506_v13 = vunpack.i.l.bf16 %v13416_v56 }
 0x4a4   : > { %v3462_v18 = vld [vmem:[#allocation4 + $0x18] sm:$0xff]  ;;  %3335 = vst.msk [vmem:[#allocation4 + $0x21] sm:$0xff] %vm380_vm0, %v3302_v40  ;;  %4071 = vrot.lane.b32.xlu1 %v3494_v25, %s7971_s26  ;;  %3691 = vrot.lane.b32.xlu0 %v3494_v25, %s7967_s19  ;;  %v2783_v40 = vsel %vm1077_vm6, %v2751_v34, %v7692_v62 }
 0x4a5   : > { %3943 = vrot.lane.b32.xlu2 %v3462_v18, %s7970_s25  ;;  %v3098_v57 = vpop.f32.mrf.mxu1  ;;  %v2879_v20 = vsel %vm2858_vm10, %v2846_v47, %v7506_v13  ;;  %v2815_v44 = vsel %vm1095_vm8, %v2783_v40, %v7497_v61  ;;  %v7727_v47 = vunpack.i.h.bf16 %v13420_v3 }
 0x4a6   : > { %v3099_v42 = vadd.f32 %v9932_v46, %v3098_v57  ;;  %v2912_v18 = vsel %vm2891_vm12, %v2879_v20, %v7776_v2  ;;  %v13417_v57 = vld [vmem:[#allocation37_spill] sm:$0xff]  ;;  %v2847_v19 = vsel %vm1113_vm11, %v2815_v44, %v7502_v12  ;;  %v7737_v12 = vunpack.i.h.bf16 %v13422_v14 }
 0x4a7   : > { %v2945_v16 = vsel %vm2924_vm13, %v2912_v18, %v7861_v39 }
 0x4a8   : > { %v3212_v63 = vadd.f32 %v13411_v59, %v3099_v42  ;;  %3145 = vmatmul.f32.gmra.mxu1 %v2943_v30  ;;  %v7777_v42 = vunpack.i.h.bf16 %v13415_v33  ;;  %v7507_v30 = vunpack.i.h.bf16 %v13416_v56  ;;  %v13425_v56 = vld [vmem:[#allocation44_spill] sm:$0xff] }
 0x4a9   : > { %v7716_v13 = vunpack.i.l.bf16 %v13425_v56 }
 0x4aa   : > { %v3303_v55 = vmax.f32 %v3212_v63, 0.0  ;;  %v13419_v63 = vld [vmem:[#allocation20_spill] sm:$0xff]  ;;  %v2880_v41 = vsel %vm2858_vm10, %v2847_v19, %v7507_v30 }
 0x4ab   : > { %v3401_v23 = vld [vmem:[#allocation4 + $0x21] sm:$0xff]  ;;  %v7491_v4 = vunpack.i.l.bf16 %v13419_v63  ;;  %v7492_v2 = vunpack.i.h.bf16 %v13419_v63 }
 0x4ac   : > { %v3432_v60 = vld [vmem:[#allocation4 + $0x1a] sm:$0xff]  ;;  %v3433_v35 = vld [vmem:[#allocation4 + $0x22] sm:$0xff]  ;;  %3336 = vst.msk [vmem:[#allocation4 + $0x31] sm:$0xff] %vm380_vm0, %v3303_v55  ;;  %3693 = vrot.lane.b32.xlu1 %v3401_v23, %s7967_s19  ;;  %v7726_v55 = vunpack.i.l.bf16 %v13420_v3 }
 0x4ad   : > { %3819 = vrot.lane.b32.xlu2 %v3432_v60, %s7969_s24  ;;  %3821 = vrot.lane.b32.xlu0 %v3433_v35, %s7969_s24  ;;  %v3101_v1 = vpop.f32.mrf.mxu1  ;;  %v3463_v27 = vld [vmem:[#allocation4 + $0x20] sm:$0xff] }
 0x4ae   : > { %v3102_v9 = vadd.f32 %v9932_v46, %v3101_v1 }
 0x4b0   : > { %v3215_v26 = vadd.f32 %v13414_v32, %v3102_v9  ;;  %3148 = vmatmul.f32.gmra.mxu1 %v2944_v37  ;;  %v10044_v9 = vpop.f32.mrf.mxu2  ;;  %v13423_v37 = vld [vmem:[#allocation51_spill] sm:$0xff]  ;;  %v7866_v32 = vunpack.i.l.bf16 %v7865_v38 }
 0x4b1   : > { %v7731_v53 = vunpack.i.l.bf16 %v13423_v37 }
 0x4b2   : > { %v3304_v7 = vmax.f32 %v3215_v26, 0.0 }
 0x4b3   : > { %v3464_v0 = vld [vmem:[#allocation4 + $0x30] sm:$0xff] }
 0x4b4   : > { %3337 = vst.msk [vmem:[#allocation4 + $0x39] sm:$0xff] %vm380_vm0, %v3304_v7  ;;  %4201 = vrot.lane.b32.xlu1 %v3433_v35, %s7972_s27  ;;  %v3402_v59 = vld [vmem:[#allocation4 + $0x31] sm:$0xff] }
 0x4b5   : > { %4073 = vrot.lane.b32.xlu2 %v3401_v23, %s7971_s26  ;;  %3945 = vrot.lane.b32.xlu0 %v3463_v27, %s7970_s25  ;;  %v3104_v28 = vpop.f32.mrf.mxu1  ;;  %v2913_v23 = vsel %vm2891_vm12, %v2880_v41, %v7777_v42  ;;  %v7905_v35 = vld [vmem:[#allocation3 + $0x108] sm:$0xff]  ;;  %v7906_v27 = vld [vmem:[#allocation3 + $0x110] sm:$0xff] }
 0x4b6   : > { %v3105_v25 = vadd.f32 %v9932_v46, %v3104_v28  ;;  %v2752_v24 = vsel %vm402_vm2, %v7905_v35, %v7486_v5  ;;  %v2946_v58 = vsel %vm2924_vm13, %v2913_v23, %v7862_v52  ;;  %v2753_v61 = vsel %vm402_vm2, %v7906_v27, %v7487_v15  ;;  %v13428_v35 = vld [vmem:[#allocation26_spill] sm:$0xff] }
 0x4b7   : > { %v2784_v6 = vsel %vm1077_vm6, %v2752_v24, %v7491_v4  ;;  %v2785_v20 = vsel %vm1077_vm6, %v2753_v61, %v7492_v2  ;;  %v7867_v5 = vunpack.i.h.bf16 %v7865_v38  ;;  %v7717_v4 = vunpack.i.h.bf16 %v13425_v56  ;;  %v7908_v38 = vld [vmem:[#allocation3 + $0x128] sm:$0xff]  ;;  %v13430_v56 = vld [vmem:[#allocation17_spill] sm:$0xff]  ;;  %v7909_v61 = vld [vmem:[#allocation3 + $0x138] sm:$0xff] }
 0x4b8   : > { %v3218_v29 = vadd.f32 %v13417_v57, %v3105_v25  ;;  %3151 = vmatmul.f32.gmra.mxu1 %v2945_v16  ;;  %v2817_v18 = vsel %vm1095_vm8, %v2785_v20, %v7727_v47  ;;  %v7907_v16 = vld [vmem:[#allocation3 + $0x120] sm:$0xff]  ;;  %v7732_v57 = vunpack.i.h.bf16 %v13423_v37  ;;  %v10075_v8 = vpop.f32.mrf.mxu2  ;;  %v7531_v24 = vunpack.i.l.bf16 %v13428_v35  ;;  %v13429_v37 = vld [vmem:[#allocation19_spill] sm:$0xff] }
 0x4b9   : > { %v2754_v44 = vsel %vm402_vm2, %v7907_v16, %v7716_v13  ;;  %v7516_v13 = vunpack.i.l.bf16 %v13430_v56  ;;  %v7537_v20 = vunpack.i.h.bf16 %v13429_v37 }
 0x4ba   : > { %v3305_v36 = vmax.f32 %v3218_v29, 0.0  ;;  %v13426_v29 = vld [vmem:[#allocation46_spill] sm:$0xff] }
 0x4bb   : > { %v3434_v26 = vld [vmem:[#allocation4 + $0x32] sm:$0xff]  ;;  %v10051_v33 = vld [vmem:[#allocation4 + $0x3a] sm:$0xff]  ;;  %v7721_v42 = vunpack.i.l.bf16 %v13426_v29 }
 0x4bc   : > { %3338 = vst.msk [vmem:[#allocation4 + $0x49] sm:$0xff] %vm380_vm0, %v3305_v36  ;;  %3947 = vrot.lane.b32.xlu1 %v3464_v0, %s7970_s25  ;;  %v7787_v36 = vunpack.i.h.bf16 %v13424_v54  ;;  %v3403_v30 = vld [vmem:[#allocation4 + $0x39] sm:$0xff]  ;;  %v2849_v0 = vsel %vm1113_vm11, %v2817_v18, %v7732_v57 }
 0x4bd   : > { %3695 = vrot.lane.b32.xlu2 %v3402_v59, %s7967_s19  ;;  %4199 = vrot.lane.b32.xlu0 %v3432_v60, %s7972_s27  ;;  %v3107_v10 = vpop.f32.mrf.mxu1  ;;  %v2816_v60 = vsel %vm1095_vm8, %v2784_v6, %v7726_v55  ;;  %v2786_v52 = vsel %vm1077_vm6, %v2754_v44, %v7721_v42  ;;  %v2882_v55 = vsel %vm2858_vm10, %v2849_v0, %v7737_v12  ;;  %v13432_v12 = vld [vmem:[#allocation18_spill] sm:$0xff]  ;;  %v13433_v0 = vld [vmem:[#allocation53_spill] sm:$0xff] }
 0x4be   : > { %v3108_v50 = vadd.f32 %v9932_v46, %v3107_v10  ;;  %v2848_v7 = vsel %vm1113_vm11, %v2816_v60, %v7731_v53  ;;  %v2915_v41 = vsel %vm2891_vm12, %v2882_v55, %v7787_v36  ;;  %v7791_v60 = vunpack.i.l.bf16 %v9724_v45 }
 0x4bf   : > { %v2881_v34 = vsel %vm2858_vm10, %v2848_v7, %v7736_v17  ;;  %v7536_v53 = vunpack.i.l.bf16 %v13429_v37  ;;  %v7521_v57 = vunpack.i.l.bf16 %v13432_v12 }
 0x4c0   : > { %v3221_v1 = vadd.f32 %v13421_v51, %v3108_v50  ;;  %3154 = vmatmul.f32.gmra.mxu1 %v2946_v58  ;;  %v2914_v40 = vsel %vm2891_vm12, %v2881_v34, %v7786_v43  ;;  %v2948_v50 = vsel %vm2924_vm13, %v2915_v41, %v7867_v5  ;;  %v7870_v58 = vpop.permute.xlu0 %7869  ;;  %v2755_v51 = vsel %vm402_vm2, %v7908_v38, %v7717_v4  ;;  %v10102_v15 = vpop.f32.mrf.mxu2 }
 0x4c1   : > { %v2947_v28 = vsel %vm2924_vm13, %v2914_v40, %v7866_v32  ;;  %v7871_v54 = vunpack.i.l.bf16 %v7870_v58  ;;  %v7532_v34 = vunpack.i.h.bf16 %v13428_v35  ;;  %v7872_v16 = vunpack.i.h.bf16 %v7870_v58  ;;  %v13435_v35 = vld [vmem:[#allocation58_spill] sm:$0xff] }
 0x4c2   : > { %v3306_v62 = vmax.f32 %v3221_v1, 0.0  ;;  %v7722_v1 = vunpack.i.h.bf16 %v13426_v29  ;;  %v7517_v5 = vunpack.i.h.bf16 %v13430_v56 }
 0x4c3   : > { %v3404_v43 = vld [vmem:[#allocation4 + $0x49] sm:$0xff] }
 0x4c4   : > { %3339 = vst.msk [vmem:[#allocation4 + $0x51] sm:$0xff] %vm380_vm0, %v3306_v62  ;;  %3823 = vrot.lane.b32.xlu1 %v3434_v26, %s7969_s24  ;;  %v2787_v62 = vsel %vm1077_vm6, %v2755_v51, %v7722_v1  ;;  %v7522_v1 = vunpack.i.h.bf16 %v13432_v12 }
 0x4c5   : > { %3825 = vrot.lane.b32.xlu2 %v10051_v33, %s7969_s24  ;;  %4075 = vrot.lane.b32.xlu0 %v3402_v59, %s7971_s26  ;;  %v3110_v11 = vpop.f32.mrf.mxu1  ;;  %v13427_v59 = vld [vmem:[#allocation21_spill] sm:$0xff] }
 0x4c6   : > { %v3111_v39 = vadd.f32 %v9932_v46, %v3110_v11  ;;  %v7526_v63 = vunpack.i.l.bf16 %v13427_v59 }
 0x4c8   : > { %v3224_v25 = vadd.f32 %v9947_v31, %v3111_v39  ;;  %3157 = vmatmul.f32.gmra.mxu1 %v2947_v28  ;;  %v3465_v31 = vld [vmem:[#allocation4 + $0x38] sm:$0xff]  ;;  %v2818_v23 = vsel %vm1095_vm8, %v2786_v52, %v7526_v63  ;;  %v2756_v28 = vsel %vm402_vm2, %v7909_v61, %v7516_v13  ;;  %v7875_v63 = vpop.permute.xlu1 %7874 }
 0x4c9   : > { %v2850_v17 = vsel %vm1113_vm11, %v2818_v23, %v7531_v24  ;;  %v2788_v42 = vsel %vm1077_vm6, %v2756_v28, %v7521_v57  ;;  %v7761_v24 = vunpack.i.l.bf16 %v13435_v35  ;;  %v10163_v28 = vpop.permute.xlu2 %7879 }
 0x4ca   : > { %v3307_v19 = vmax.f32 %v3224_v25, 0.0  ;;  %v2883_v2 = vsel %vm2858_vm10, %v2850_v17, %v7536_v53  ;;  %v13431_v25 = vld [vmem:[#allocation52_spill] sm:$0xff] }
 0x4cb   : > { %v2916_v47 = vsel %vm2891_vm12, %v2883_v2, %v7791_v60  ;;  %v7751_v18 = vunpack.i.l.bf16 %v13431_v25  ;;  %v3437_v44 = vld [vmem:[#allocation4 + $0x52] sm:$0xff]  ;;  %v7752_v58 = vunpack.i.h.bf16 %v13431_v25  ;;  %v1832_v60 = vld [vmem:[#allocation3 + $0x19a] sm:$0xff]  ;;  %v7757_v2 = vunpack.i.h.bf16 %v13433_v0 }
 0x4cc   : > { %3340 = vst.msk [vmem:[#allocation4 + $0x61] sm:$0xff] %vm380_vm0, %v3307_v19  ;;  %4077 = vrot.lane.b32.xlu1 %v3403_v30, %s7971_s26  ;;  %v3405_v38 = vld [vmem:[#allocation4 + $0x51] sm:$0xff]  ;;  %7225 = vmatmul.msk.f32.vlgmr.msra.gmra.mxu3 %vm402_vm2, %v1832_v60 }
 0x4cd   : > { %3949 = vrot.lane.b32.xlu2 %v3465_v31, %s7970_s25  ;;  %3697 = vrot.lane.b32.xlu0 %v3403_v30, %s7967_s19  ;;  %v3113_v3 = vpop.f32.mrf.mxu1  ;;  %v10129_v30 = vpop.f32.mrf.mxu2  ;;  %v2820_v31 = vsel %vm1095_vm8, %v2788_v42, %v7751_v18  ;;  %v3467_v51 = vld [vmem:[#allocation4 + $0x50] sm:$0xff] }
 0x4ce   : > { %v3114_v10 = vadd.f32 %v9932_v46, %v3113_v3  ;;  %v13434_v3 = vld [vmem:[#allocation60_spill] sm:$0xff] }
 0x4cf   : > { %v7796_v55 = vunpack.i.l.bf16 %v13434_v3 }
 0x4d0   : > { %v3227_v6 = vadd.f32 %v9969_v48, %v3114_v10  ;;  %3160 = vmatmul.f32.gmra.mxu1 %v2948_v50  ;;  %v7527_v48 = vunpack.i.h.bf16 %v13427_v59  ;;  %v7756_v59 = vunpack.i.l.bf16 %v13433_v0  ;;  %v7910_v50 = vld [vmem:[#allocation3 + $0x140] sm:$0xff] }
 0x4d1   : > { %v2757_v23 = vsel %vm402_vm2, %v7910_v50, %v7517_v5  ;;  %v13440_v5 = vld [vmem:[#allocation62_spill] sm:$0xff] }
 0x4d2   : > { %v3308_v14 = vmax.f32 %v3227_v6, 0.0  ;;  %v2819_v11 = vsel %vm1095_vm8, %v2787_v62, %v7527_v48  ;;  %v2852_v41 = vsel %vm1113_vm11, %v2820_v31, %v7756_v59  ;;  %v7876_v6 = vunpack.i.l.bf16 %v7875_v63  ;;  %v13441_v59 = vld [vmem:[#allocation28_spill] sm:$0xff] }
 0x4d3   : > { %v2851_v27 = vsel %vm1113_vm11, %v2819_v11, %v7532_v34  ;;  %v2885_v17 = vsel %vm2858_vm10, %v2852_v41, %v7761_v24  ;;  %v2789_v37 = vsel %vm1077_vm6, %v2757_v23, %v7522_v1  ;;  %v7801_v31 = vunpack.i.l.bf16 %v13440_v5  ;;  %v3500_v41 = vld [vmem:[#allocation4 + $0x61] sm:$0xff] }
 0x4d4   : > { %3341 = vst.msk [vmem:[#allocation4 + $0x69] sm:$0xff] %vm380_vm0, %v3308_v14  ;;  %3699 = vrot.lane.b32.xlu1 %v3404_v43, %s7967_s19  ;;  %v2884_v29 = vsel %vm2858_vm10, %v2851_v27, %v7537_v20  ;;  %v2821_v48 = vsel %vm1095_vm8, %v2789_v37, %v7752_v58  ;;  %v7877_v27 = vunpack.i.h.bf16 %v7875_v63  ;;  %v13438_v20 = vld [vmem:[#allocation25_spill] sm:$0xff]  ;;  %v7561_v63 = vunpack.i.l.bf16 %v13441_v59  ;;  %v3468_v50 = vld [vmem:[#allocation4 + $0x60] sm:$0xff] }
 0x4d5   : > { %4203 = vrot.lane.b32.xlu2 %v3434_v26, %s7972_s27  ;;  %4205 = vrot.lane.b32.xlu0 %v10051_v33, %s7972_s27  ;;  %v3116_v32 = vpop.f32.mrf.mxu1  ;;  %v2949_v26 = vsel %vm2924_vm13, %v2916_v47, %v7871_v54  ;;  %v7792_v33 = vunpack.i.h.bf16 %v9724_v45  ;;  %v2918_v54 = vsel %vm2891_vm12, %v2885_v17, %v7796_v55  ;;  %v10156_v13 = vpop.f32.mrf.mxu2  ;;  %v2853_v34 = vsel %vm1113_vm11, %v2821_v48, %v7757_v2 }
 0x4d6   : > { %v3117_v7 = vadd.f32 %v9932_v46, %v3116_v32  ;;  %v2951_v32 = vsel %vm2924_vm13, %v2918_v54, %v7876_v6  ;;  %v7551_v25 = vunpack.i.l.bf16 %v13438_v20  ;;  %v7802_v37 = vunpack.i.h.bf16 %v13440_v5 }
 0x4d7   : > { %v2917_v19 = vsel %vm2891_vm12, %v2884_v29, %v7792_v33  ;;  %v13439_v29 = vld [vmem:[#allocation24_spill] sm:$0xff]  ;;  %v7562_v48 = vunpack.i.h.bf16 %v13441_v59 }
 0x4d8   : > { %v3230_v39 = vadd.f32 %v9997_v22, %v3117_v7  ;;  %3163 = vmatmul.f32.gmra.mxu1 %v2949_v26  ;;  %v3466_v22 = vld [vmem:[#allocation4 + $0x48] sm:$0xff]  ;;  %v2950_v52 = vsel %vm2924_vm13, %v2917_v19, %v7872_v16  ;;  %v13437_v7 = vld [vmem:[#allocation49_spill] sm:$0xff]  ;;  %v7797_v26 = vunpack.i.h.bf16 %v13434_v3  ;;  %v7556_v42 = vunpack.i.l.bf16 %v13439_v29 }
 0x4d9   : > { %v7746_v47 = vunpack.i.l.bf16 %v13437_v7 }
 0x4da   : > { %v3309_v40 = vmax.f32 %v3230_v39, 0.0  ;;  %v7911_v39 = vld [vmem:[#allocation3 + $0x150] sm:$0xff] }
 0x4dc   : > { %3342 = vst.msk [vmem:[#allocation4 + $0x79] sm:$0xff] %vm380_vm0, %v3309_v40  ;;  %3829 = vrot.lane.b32.xlu1 %v3437_v44, %s7969_s24  ;;  %v7762_v40 = vunpack.i.h.bf16 %v13435_v35  ;;  %v7552_v35 = vunpack.i.h.bf16 %v13438_v20 }
 0x4dd   : > { %4079 = vrot.lane.b32.xlu2 %v3404_v43, %s7971_s26  ;;  %3951 = vrot.lane.b32.xlu0 %v3466_v22, %s7970_s25  ;;  %v3119_v45 = vpop.f32.mrf.mxu1  ;;  %v13436_v43 = vld [vmem:[#allocation55_spill] sm:$0xff]  ;;  %v10184_v55 = vpop.f32.mrf.mxu2 }
 0x4de   : > { %v3120_v36 = vadd.f32 %v9932_v46, %v3119_v45  ;;  %v7741_v62 = vunpack.i.l.bf16 %v13436_v43  ;;  %v2886_v16 = vsel %vm2858_vm10, %v2853_v34, %v7762_v40  ;;  %v7742_v22 = vunpack.i.h.bf16 %v13436_v43  ;;  %v7913_v43 = vld [vmem:[#allocation3 + $0x168] sm:$0xff] }
 0x4df   : > { %v2919_v57 = vsel %vm2891_vm12, %v2886_v16, %v7797_v26  ;;  %v13444_v26 = vld [vmem:[#allocation22_spill] sm:$0xff] }
 0x4e0   : > { %v3233_v4 = vadd.f32 %v10021_v49, %v3120_v36  ;;  %3166 = vmatmul.f32.gmra.mxu1 %v2950_v52  ;;  %v3436_v49 = vld [vmem:[#allocation4 + $0x4a] sm:$0xff]  ;;  %v2758_v33 = vsel %vm402_vm2, %v7911_v39, %v7741_v62  ;;  %v2952_v45 = vsel %vm2924_vm13, %v2919_v57, %v7877_v27  ;;  %v7747_v36 = vunpack.i.h.bf16 %v13437_v7  ;;  %v7885_v57 = vpop.permute.xlu0 %7884 }
 0x4e1   : > { %v2790_v61 = vsel %vm1077_vm6, %v2758_v33, %v7746_v47  ;;  %v7882_v7 = vunpack.i.h.bf16 %v10163_v28  ;;  %v3407_v47 = vld [vmem:[#allocation4 + $0x69] sm:$0xff] }
 0x4e2   : > { %v3310_v10 = vmax.f32 %v3233_v4, 0.0  ;;  %v7912_v4 = vld [vmem:[#allocation3 + $0x158] sm:$0xff] }
 0x4e3   : > { %v2759_v3 = vsel %vm402_vm2, %v7912_v4, %v7742_v22  ;;  %v3439_v39 = vld [vmem:[#allocation4 + $0x6a] sm:$0xff] }
 0x4e4   : > { %3343 = vst.msk [vmem:[#allocation4 + $0x81] sm:$0xff] %vm380_vm0, %v3310_v10  ;;  %3953 = vrot.lane.b32.xlu1 %v3467_v51, %s7970_s25  ;;  %v7881_v10 = vunpack.i.l.bf16 %v10163_v28  ;;  %v2791_v23 = vsel %vm1077_vm6, %v2759_v3, %v7747_v36  ;;  %v13442_v51 = vld [vmem:[#allocation27_spill] sm:$0xff] }
 0x4e5   : > { %3701 = vrot.lane.b32.xlu2 %v3405_v38, %s7967_s19  ;;  %3827 = vrot.lane.b32.xlu0 %v3436_v49, %s7969_s24  ;;  %v3122_v14 = vpop.f32.mrf.mxu1  ;;  %v7541_v1 = vunpack.i.l.bf16 %v13442_v51  ;;  %v10214_v33 = vpop.f32.mrf.mxu2  ;;  %v7914_v36 = vld [vmem:[#allocation3 + $0x170] sm:$0xff] }
 0x4e6   : > { %v3123_v53 = vadd.f32 %v9932_v46, %v3122_v14  ;;  %v7557_v14 = vunpack.i.h.bf16 %v13439_v29  ;;  %v7806_v29 = vunpack.i.l.bf16 %v9742_v21 }
 0x4e7   : > { %v2760_v62 = vsel %vm402_vm2, %v7913_v43, %v7541_v1 }
 0x4e8   : > { %v3236_v56 = vadd.f32 %v10044_v9, %v3123_v53  ;;  %3169 = vmatmul.f32.gmra.mxu1 %v2951_v32  ;;  %v1833_v9 = vld [vmem:[#allocation3 + $0x1a2] sm:$0xff]  ;;  %v10263_v43 = vpop.permute.xlu0 %3815 }
 0x4e9   : > { %7226 = vmatmul.msk.f32.gmra.mxu3 %vm402_vm2, %v1833_v9  ;;  %v13443_v32 = vld [vmem:[#allocation61_spill] sm:$0xff] }
 0x4ea   : > { %v3311_v11 = vmax.f32 %v3236_v56, 0.0  ;;  %v7766_v2 = vunpack.i.l.bf16 %v13443_v32  ;;  %v3438_v56 = vld [vmem:[#allocation4 + $0x62] sm:$0xff]  ;;  %v7767_v5 = vunpack.i.h.bf16 %v13443_v32 }
 0x4ec   : > { %3344 = vst.msk [vmem:[#allocation4 + $0x91] sm:$0xff] %vm380_vm0, %v3311_v11  ;;  %4207 = vrot.lane.b32.xlu1 %v3436_v49, %s7972_s27  ;;  %v2823_v49 = vsel %vm1095_vm8, %v2791_v23, %v7552_v35  ;;  %v7546_v11 = vunpack.i.l.bf16 %v13444_v26 }
 0x4ed   : > { %4209 = vrot.lane.b32.xlu2 %v3437_v44, %s7972_s27  ;;  %4081 = vrot.lane.b32.xlu0 %v3405_v38, %s7971_s26  ;;  %v3125_v18 = vpop.f32.mrf.mxu1  ;;  %v2822_v44 = vsel %vm1095_vm8, %v2790_v61, %v7551_v25  ;;  %v2855_v54 = vsel %vm1113_vm11, %v2823_v49, %v7557_v14  ;;  %v7542_v25 = vunpack.i.h.bf16 %v13442_v51  ;;  %v3256_v35 = vpop.f32.mrf.mxu2  ;;  %v7807_v51 = vunpack.i.h.bf16 %v9742_v21  ;;  %v3408_v14 = vld [vmem:[#allocation4 + $0x79] sm:$0xff] }
 0x4ee   : > { %v3126_v12 = vadd.f32 %v9932_v46, %v3125_v18  ;;  %v2854_v0 = vsel %vm1113_vm11, %v2822_v44, %v7556_v42  ;;  %v2888_v27 = vsel %vm2858_vm10, %v2855_v54, %v7562_v48  ;;  %v2792_v61 = vsel %vm1077_vm6, %v2760_v62, %v7546_v11  ;;  %v13446_v44 = vld [vmem:[#allocation56_spill] sm:$0xff] }
 0x4ef   : > { %v2887_v58 = vsel %vm2858_vm10, %v2854_v0, %v7561_v63  ;;  %v2921_v20 = vsel %vm2891_vm12, %v2888_v27, %v7802_v37  ;;  %v2824_v18 = vsel %vm1095_vm8, %v2792_v61, %v7766_v2  ;;  %v7547_v0 = vunpack.i.h.bf16 %v13444_v26  ;;  %v10235_v63 = vpop.permute.xlu1 %3687  ;;  %v3503_v27 = vld [vmem:[#allocation4 + $0x81] sm:$0xff] }
 0x4f0   : > { %v3239_v19 = vadd.f32 %v10075_v8, %v3126_v12  ;;  %3172 = vmatmul.f32.gmra.mxu1 %v2952_v45  ;;  %v10191_v8 = vpop.permute.xlu2 %3689  ;;  %v2920_v38 = vsel %vm2891_vm12, %v2887_v58, %v7801_v31  ;;  %v2954_v16 = vsel %vm2924_vm13, %v2921_v20, %v7882_v7  ;;  %v7781_v45 = vunpack.i.l.bf16 %v13446_v44  ;;  %v3440_v7 = vld [vmem:[#allocation4 + $0x7a] sm:$0xff] }
 0x4f1   : > { %v2953_v60 = vsel %vm2924_vm13, %v2920_v38, %v7881_v10  ;;  %v7886_v31 = vunpack.i.l.bf16 %v7885_v57  ;;  %v7782_v38 = vunpack.i.h.bf16 %v13446_v44  ;;  %v7887_v49 = vunpack.i.h.bf16 %v7885_v57  ;;  %v3471_v61 = vld [vmem:[#allocation4 + $0x80] sm:$0xff] }
 0x4f2   : > { %v3312_v52 = vmax.f32 %v3239_v19, 0.0  ;;  %v2761_v19 = vsel %vm402_vm2, %v7914_v36, %v7542_v25 }
 0x4f3   : > { %v2793_v3 = vsel %vm1077_vm6, %v2761_v19, %v7547_v0  ;;  %v3410_v57 = vld [vmem:[#allocation4 + $0x91] sm:$0xff] }
 0x4f4   : > { %3345 = vst.msk [vmem:[#allocation4 + $0x99] sm:$0xff] %vm380_vm0, %v3312_v52  ;;  %4083 = vrot.lane.b32.xlu1 %v3500_v41, %s7971_s26  ;;  %v2825_v23 = vsel %vm1095_vm8, %v2793_v3, %v7767_v5 }
 0x4f5   : > { %3955 = vrot.lane.b32.xlu2 %v3468_v50, %s7970_s25  ;;  %3703 = vrot.lane.b32.xlu0 %v3500_v41, %s7967_s19  ;;  %v3128_v24 = vpop.f32.mrf.mxu1  ;;  %v3259_v32 = vpop.f32.mrf.mxu2 }
 0x4f6   : > { %v3129_v6 = vadd.f32 %v9932_v46, %v3128_v24 }
 0x4f7   : > { %v10256_v37 = vpop.permute.xlu1 %3817 }
 0x4f8   : > { %v3242_v17 = vadd.f32 %v10102_v15, %v3129_v6  ;;  %3175 = vmatmul.f32.gmra.mxu1 %v2953_v60  ;;  %v13445_v15 = vld [vmem:[#allocation54_spill] sm:$0xff] }
 0x4f9   : > { %v7771_v34 = vunpack.i.l.bf16 %v13445_v15  ;;  %v7772_v59 = vunpack.i.h.bf16 %v13445_v15  ;;  %v3470_v60 = vld [vmem:[#allocation4 + $0x78] sm:$0xff] }
 0x4fa   : > { %v3313_v53 = vmax.f32 %v3242_v17, 0.0 }
 0x4fb   : > { %v2856_v12 = vsel %vm1113_vm11, %v2824_v18, %v7771_v34  ;;  %v2857_v58 = vsel %vm1113_vm11, %v2825_v23, %v7772_v59 }
 0x4fc   : > { %3346 = vst.msk [vmem:[#allocation4 + $0xa9] sm:$0xff] %vm380_vm0, %v3313_v53  ;;  %3705 = vrot.lane.b32.xlu1 %v3407_v47, %s7967_s19  ;;  %v2889_v52 = vsel %vm2858_vm10, %v2856_v12, %v7781_v45  ;;  %v2890_v17 = vsel %vm2858_vm10, %v2857_v58, %v7782_v38  ;;  %v3442_v58 = vld [vmem:[#allocation4 + $0x92] sm:$0xff]  ;;  %vm13639_vm10 = vmmov %vm13620_vm1 }
 0x4fd   : > { %3831 = vrot.lane.b32.xlu2 %v3438_v56, %s7969_s24  ;;  %3833 = vrot.lane.b32.xlu0 %v3439_v39, %s7969_s24  ;;  %v3131_v40 = vpop.f32.mrf.mxu1  ;;  %v2922_v50 = vsel %vm2891_vm12, %v2889_v52, %v7806_v29  ;;  %v2923_v54 = vsel %vm2891_vm12, %v2890_v17, %v7807_v51  ;;  %v3472_v52 = vld [vmem:[#allocation4 + $0x90] sm:$0xff]  ;;  %vm13646_vm12 = vmmov %vm13620_vm1 }
 0x4fe   : > { %v3132_v28 = vadd.f32 %v9932_v46, %v3131_v40  ;;  %v2955_v24 = vsel %vm2924_vm13, %v2922_v50, %v7886_v31  ;;  %v2956_v62 = vsel %vm2924_vm13, %v2923_v54, %v7887_v49  ;;  %v3262_v40 = vpop.f32.mrf.mxu2  ;;  %v3443_v31 = vld [vmem:[#allocation4 + $0x9a] sm:$0xff]  ;;  %vm13652_vm13 = vmmov %vm13620_vm1 }
 0x4ff   : > { %v10220_v9 = vpop.permute.xlu2 %3943 }
 0x500   : > { %v3245_v22 = vadd.f32 %v10129_v30, %v3132_v28  ;;  %3178 = vmatmul.f32.gmra.mxu1 %v2954_v16  ;;  %v3469_v30 = vld [vmem:[#allocation4 + $0x68] sm:$0xff] }
 0x502   : > { %v3314_v42 = vmax.f32 %v3245_v22, 0.0 }
 0x504   : > { %3347 = vst.msk [vmem:[#allocation4 + $0xb1] sm:$0xff] %vm380_vm0, %v3314_v42  ;;  %4213 = vrot.lane.b32.xlu1 %v3439_v39, %s7972_s27 }
 0x505   : > { %4085 = vrot.lane.b32.xlu2 %v3407_v47, %s7971_s26  ;;  %3957 = vrot.lane.b32.xlu0 %v3469_v30, %s7970_s25  ;;  %v3134_v4 = vpop.f32.mrf.mxu1  ;;  %v3441_v47 = vld [vmem:[#allocation4 + $0x82] sm:$0xff] }
 0x506   : > { %v3135_v10 = vadd.f32 %v9932_v46, %v3134_v4  ;;  %v3265_v22 = vpop.f32.mrf.mxu2 }
 0x507   : > { %v10243_v41 = vpop.permute.xlu2 %3819 }
 0x508   : > { %13447 = vst [vmem:[#allocation39_spill] sm:$0xff] %v10243_v41  ;;  %v3248_v6 = vadd.f32 %v10156_v13, %v3135_v10  ;;  %3181 = vmatmul.f32.gmra.mxu1 %v2955_v24  ;;  %v3411_v24 = vld [vmem:[#allocation4 + $0x99] sm:$0xff] }
 0x50a   : > { %v3315_v1 = vmax.f32 %v3248_v6, 0.0 }
 0x50c   : > { %3348 = vst.msk [vmem:[#allocation4 + $0xc1] sm:$0xff] %vm380_vm0, %v3315_v1  ;;  %3959 = vrot.lane.b32.xlu1 %v3470_v60, %s7970_s25 }
 0x50d   : > { %3707 = vrot.lane.b32.xlu2 %v3408_v14, %s7967_s19  ;;  %4211 = vrot.lane.b32.xlu0 %v3438_v56, %s7972_s27  ;;  %v3137_v13 = vpop.f32.mrf.mxu1 }
 0x50e   : > { %v3138_v53 = vadd.f32 %v9932_v46, %v3137_v13  ;;  %v3268_v3 = vpop.f32.mrf.mxu2 }
 0x50f   : > { %v10260_v21 = vpop.permute.xlu2 %4073 }
 0x510   : > { %v3251_v48 = vadd.f32 %v10184_v55, %v3138_v53  ;;  %3184 = vmatmul.f32.gmra.mxu1 %v2956_v62 }
 0x512   : > { %v3316_v2 = vmax.f32 %v3251_v48, 0.0 }
 0x514   : > { %3349 = vst.msk [vmem:[#allocation4 + $0xc9] sm:$0xff] %vm380_vm0, %v3316_v2  ;;  %3835 = vrot.lane.b32.xlu1 %v3440_v7, %s7969_s24 }
 0x515   : > { %3837 = vrot.lane.b32.xlu2 %v3441_v47, %s7969_s24  ;;  %4087 = vrot.lane.b32.xlu0 %v3408_v14, %s7971_s26  ;;  %v3140_v56 = vpop.f32.mrf.mxu1 }
 0x516   : > { %v3141_v26 = vadd.f32 %v9932_v46, %v3140_v56  ;;  %v10272_v11 = vpop.permute.xlu1 %4071  ;;  %v10276_v55 = vpop.permute.xlu0 %3691  ;;  %v10334_v56 = vld [vmem:[#allocation4 + $0xa8] sm:$0xff] }
 0x517   : > { %v10274_v15 = vpop.permute.xlu2 %3695  ;;  %v3271_v14 = vpop.f32.mrf.mxu2 }
 0x518   : > { %13448 = vst [vmem:[#allocation5_spill] sm:$0xff] %v10274_v15  ;;  %v3254_v34 = vadd.f32 %v10214_v33, %v3141_v26 }
 0x51a   : > { %v3317_v39 = vmax.f32 %v3254_v34, 0.0 }
 0x51c   : > { %3350 = vst.msk [vmem:[#allocation4 + $0xd9] sm:$0xff] %vm380_vm0, %v3317_v39  ;;  %4089 = vrot.lane.b32.xlu1 %v3503_v27, %s7971_s26 }
 0x51d   : > { %3961 = vrot.lane.b32.xlu2 %v3471_v61, %s7970_s25  ;;  %3709 = vrot.lane.b32.xlu0 %v3503_v27, %s7967_s19  ;;  %v3143_v28 = vpop.f32.mrf.mxu1 }
 0x51e   : > { %v3144_v20 = vadd.f32 %v9932_v46, %v3143_v28  ;;  %v10284_v25 = vpop.permute.xlu1 %3693 }
 0x51f   : > { %13449 = vst [vmem:[#allocation32_spill] sm:$0xff] %v10284_v25  ;;  %v10286_v18 = vpop.permute.xlu2 %3825  ;;  %v10288_v33 = vpop.permute.xlu0 %3821 }
 0x520   : > { %13450 = vst [vmem:[#allocation38_spill] sm:$0xff] %v10286_v18  ;;  %v3257_v16 = vadd.f32 %v3256_v35, %v3144_v20  ;;  %v3473_v35 = vld [vmem:[#allocation4 + $0x98] sm:$0xff] }
 0x521   : > { %13451 = vst [vmem:[#allocation16_spill] sm:$0xff] %v10288_v33  ;;  %v3413_v20 = vld [vmem:[#allocation4 + $0xb1] sm:$0xff] }
 0x522   : > { %v3318_v12 = vmax.f32 %v3257_v16, 0.0  ;;  %v3444_v16 = vld [vmem:[#allocation4 + $0xaa] sm:$0xff] }
 0x524   : > { %3351 = vst.msk [vmem:[#allocation4 + $0xe1] sm:$0xff] %vm380_vm0, %v3318_v12  ;;  %3711 = vrot.lane.b32.xlu1 %v3410_v57, %s7967_s19  ;;  %v3445_v12 = vld [vmem:[#allocation4 + $0xb2] sm:$0xff] }
 0x525   : > { %4215 = vrot.lane.b32.xlu2 %v3440_v7, %s7972_s27  ;;  %4217 = vrot.lane.b32.xlu0 %v3441_v47, %s7972_s27  ;;  %v3146_v44 = vpop.f32.mrf.mxu1  ;;  %v3274_v7 = vpop.f32.mrf.mxu2  ;;  %v3506_v47 = vld [vmem:[#allocation4 + $0xa9] sm:$0xff] }
 0x526   : > { %v3147_v45 = vadd.f32 %v9932_v46, %v3146_v44  ;;  %v10295_v29 = vpop.permute.xlu1 %4201 }
 0x527   : > { %v10297_v42 = vpop.permute.xlu2 %3949  ;;  %v10299_v36 = vpop.permute.xlu0 %3945 }
 0x528   : > { %13452 = vst [vmem:[#allocation34_spill] sm:$0xff] %v10297_v42  ;;  %v3260_v19 = vadd.f32 %v3259_v32, %v3147_v45 }
 0x52a   : > { %v3319_v5 = vmax.f32 %v3260_v19, 0.0 }
 0x52c   : > { %3352 = vst.msk [vmem:[#allocation4 + $0xf1] sm:$0xff] %vm380_vm0, %v3319_v5  ;;  %3841 = vrot.lane.b32.xlu1 %v3443_v31, %s7969_s24 }
 0x52d   : > { %4091 = vrot.lane.b32.xlu2 %v3410_v57, %s7971_s26  ;;  %3963 = vrot.lane.b32.xlu0 %v3472_v52, %s7970_s25  ;;  %v3149_v0 = vpop.f32.mrf.mxu1  ;;  %v3277_v57 = vpop.f32.mrf.mxu2 }
 0x52e   : > { %v3150_v59 = vadd.f32 %v9932_v46, %v3149_v0  ;;  %v10306_v30 = vpop.permute.xlu1 %3947  ;;  %v10367_v0 = vld [vmem:[#allocation4 + $0xb0] sm:$0xff] }
 0x52f   : > { %13453 = vst [vmem:[#allocation35_spill] sm:$0xff] %v10306_v30  ;;  %v10308_v4 = vpop.permute.xlu2 %4203  ;;  %v10310_v10 = vpop.permute.xlu0 %4199 }
 0x530   : > { %13454 = vst [vmem:[#allocation14_spill] sm:$0xff] %v10308_v4  ;;  %v3263_v50 = vadd.f32 %v3262_v40, %v3150_v59 }
 0x532   : > { %v3320_v23 = vmax.f32 %v3263_v50, 0.0 }
 0x534   : > { %3353 = vst.msk [vmem:[#allocation4 + $0xf9] sm:$0xff] %vm380_vm0, %v3320_v23  ;;  %3965 = vrot.lane.b32.xlu1 %v3473_v35, %s7970_s25 }
 0x535   : > { %3713 = vrot.lane.b32.xlu2 %v3411_v24, %s7967_s19  ;;  %3839 = vrot.lane.b32.xlu0 %v3442_v58, %s7969_s24  ;;  %v3152_v6 = vpop.f32.mrf.mxu1  ;;  %v3280_v35 = vpop.f32.mrf.mxu2 }
 0x536   : > { %v3153_v38 = vadd.f32 %v9932_v46, %v3152_v6  ;;  %v10317_v51 = vpop.permute.xlu1 %3823 }
 0x537   : > { %13455 = vst [vmem:[#allocation12_spill] sm:$0xff] %v10317_v51  ;;  %v10319_v1 = vpop.permute.xlu2 %4079  ;;  %v10321_v49 = vpop.permute.xlu0 %4075 }
 0x538   : > { %13456 = vst [vmem:[#allocation6_spill] sm:$0xff] %v10319_v1  ;;  %v3266_v60 = vadd.f32 %v3265_v22, %v3153_v38  ;;  %v10355_v22 = vld [vmem:[%s13245_s5] ss:$0 sm:$0xff]  ;;  %v10378_v38 = vld [vmem:[#allocation4 + $0xc0] sm:$0xff] }
 0x539   : > { %13457 = vst [vmem:[#allocation43_spill] sm:$0xff] %v10321_v49 }
 0x53a   : > { %v3321_v17 = vmax.f32 %v3266_v60, 0.0  ;;  %v3414_v60 = vld [vmem:[#allocation4 + $0xc1] sm:$0xff] }
 0x53c   : > { %3354 = vst.msk [vmem:[#allocation4 + $0x109] sm:$0xff] %vm380_vm0, %v3321_v17  ;;  %4219 = vrot.lane.b32.xlu1 %v3442_v58, %s7972_s27 }
 0x53d   : > { %4221 = vrot.lane.b32.xlu2 %v3443_v31, %s7972_s27  ;;  %4093 = vrot.lane.b32.xlu0 %v3411_v24, %s7971_s26  ;;  %v3155_v13 = vpop.f32.mrf.mxu1 }
 0x53e   : > { %v3156_v53 = vadd.f32 %v9932_v46, %v3155_v13  ;;  %v10328_v54 = vpop.permute.xlu1 %4077 }
 0x53f   : > { %13458 = vst [vmem:[#allocation13_spill] sm:$0xff] %v10328_v54  ;;  %v10330_v62 = vpop.permute.xlu2 %3701  ;;  %v10332_v48 = vpop.permute.xlu0 %3697 }
 0x540   : > { %13459 = vst [vmem:[#allocation10_spill] sm:$0xff] %v10330_v62  ;;  %v3269_v32 = vadd.f32 %v3268_v3, %v3156_v53 }
 0x541   : > { %13460 = vst [vmem:[#allocation29_spill] sm:$0xff] %v10332_v48 }
 0x542   : > { %v3322_v2 = vmax.f32 %v3269_v32, 0.0 }
 0x544   : > { %3355 = vst.msk [vmem:[#allocation4 + $0x111] sm:$0xff] %vm380_vm0, %v3322_v2  ;;  %4095 = vrot.lane.b32.xlu1 %v3506_v47, %s7971_s26 }
 0x545   : > { %3967 = vrot.lane.b32.xlu2 %v10334_v56, %s7970_s25  ;;  %3715 = vrot.lane.b32.xlu0 %v3506_v47, %s7967_s19  ;;  %v3158_v26 = vpop.f32.mrf.mxu1 }
 0x546   : > { %v3159_v34 = vadd.f32 %v9932_v46, %v3158_v26  ;;  %v10344_v40 = vpop.permute.xlu1 %3699  ;;  %v3446_v26 = vld [vmem:[#allocation4 + $0xc2] sm:$0xff] }
 0x547   : > { %v10342_v39 = vpop.permute.xlu2 %4209  ;;  %13462 = vst [vmem:[#allocation48_spill] sm:$0xff] %v10344_v40  ;;  %v10346_v27 = vpop.permute.xlu0 %4205 }
 0x548   : > { %13461 = vst [vmem:[#allocation9_spill] sm:$0xff] %v10342_v39  ;;  %v3272_v61 = vadd.f32 %v3271_v14, %v3159_v34  ;;  %v10392_v34 = vld [vmem:[#allocation4 + $0xca] sm:$0xff] }
 0x549   : > { %13463 = vst [vmem:[#allocation42_spill] sm:$0xff] %v10346_v27 }
 0x54a   : > { %v3323_v28 = vmax.f32 %v3272_v61, 0.0 }
 0x54c   : > { %3356 = vst.msk [vmem:[#allocation4 + $0x121] sm:$0xff] %vm380_vm0, %v3323_v28  ;;  %3717 = vrot.lane.b32.xlu1 %v3413_v20, %s7967_s19 }
 0x54d   : > { %3843 = vrot.lane.b32.xlu2 %v3444_v16, %s7969_s24  ;;  %3845 = vrot.lane.b32.xlu0 %v3445_v12, %s7969_s24  ;;  %v3161_v46 = vpop.f32.mrf.mxu1 }
 0x54e   : > { %v3162_v44 = vadd.f32 %v10355_v22, %v3161_v46  ;;  %v10358_v45 = vpop.permute.xlu1 %3829 }
 0x54f   : > { %13464 = vst [vmem:[#allocation30_spill] sm:$0xff] %v10358_v45  ;;  %v10360_v19 = vpop.permute.xlu2 %3955  ;;  %v10362_v5 = vpop.permute.xlu0 %3951 }
 0x550   : > { %13465 = vst [vmem:[#allocation40_spill] sm:$0xff] %v10360_v19  ;;  %v3275_v31 = vadd.f32 %v3274_v7, %v3162_v44  ;;  %v3283_v7 = vpop.f32.mrf.mxu2 }
 0x551   : > { %13466 = vst [vmem:[#allocation11_spill] sm:$0xff] %v10362_v5 }
 0x552   : > { %v3324_v52 = vmax.f32 %v3275_v31, 0.0  ;;  %v3509_v31 = vld [vmem:[#allocation4 + $0xc9] sm:$0xff] }
 0x554   : > { %3357 = vst.msk [vmem:[#allocation4 + $0x129] sm:$0xff] %vm380_vm0, %v3324_v52  ;;  %4225 = vrot.lane.b32.xlu1 %v3445_v12, %s7972_s27  ;;  %v10406_v52 = vld [vmem:[#allocation4 + $0xc8] sm:$0xff] }
 0x555   : > { %4097 = vrot.lane.b32.xlu2 %v3413_v20, %s7971_s26  ;;  %3969 = vrot.lane.b32.xlu0 %v10367_v0, %s7970_s25  ;;  %v3164_v59 = vpop.f32.mrf.mxu1 }
 0x556   : > { %v3165_v3 = vadd.f32 %v10355_v22, %v3164_v59  ;;  %v10372_v50 = vpop.permute.xlu1 %3953 }
 0x557   : > { %13467 = vst [vmem:[#allocation36_spill] sm:$0xff] %v10372_v50  ;;  %v10374_v23 = vpop.permute.xlu2 %3831  ;;  %v10376_v24 = vpop.permute.xlu0 %3827 }
 0x558   : > { %13468 = vst [vmem:[#allocation45_spill] sm:$0xff] %v10374_v23  ;;  %v3278_v58 = vadd.f32 %v3277_v57, %v3165_v3  ;;  %v3286_v44 = vpop.f32.mrf.mxu2  ;;  %v10489_v23 = vld [vmem:[#allocation4 + $0xf2] sm:$0xff] }
 0x559   : > { %13469 = vst [vmem:[#allocation31_spill] sm:$0xff] %v10376_v24 }
 0x55a   : > { %v3325_v6 = vmax.f32 %v3278_v58, 0.0 }
 0x55b   : > { %v10572_v45 = vld [vmem:[#allocation4 + $0x12a] sm:$0xff] }
 0x55c   : > { %3358 = vst.msk [vmem:[#allocation4 + $0x139] sm:$0xff] %vm380_vm0, %v3325_v6  ;;  %3971 = vrot.lane.b32.xlu1 %v10378_v38, %s7970_s25 }
 0x55d   : > { %3719 = vrot.lane.b32.xlu2 %v3414_v60, %s7967_s19  ;;  %4223 = vrot.lane.b32.xlu0 %v3444_v16, %s7972_s27  ;;  %v3167_v14 = vpop.f32.mrf.mxu1 }
 0x55e   : > { %v3168_v17 = vadd.f32 %v10355_v22, %v3167_v14  ;;  %v10386_v13 = vpop.permute.xlu1 %4207 }
 0x55f   : > { %13470 = vst [vmem:[#allocation23_spill] sm:$0xff] %v10386_v13  ;;  %v10388_v53 = vpop.permute.xlu2 %4085  ;;  %v10390_v32 = vpop.permute.xlu0 %4081 }
 0x560   : > { %13471 = vst [vmem:[#allocation15_spill] sm:$0xff] %v10388_v53  ;;  %v3281_v2 = vadd.f32 %v3280_v35, %v3168_v17  ;;  %v3416_v17 = vld [vmem:[#allocation4 + $0xd9] sm:$0xff]  ;;  %v10556_v53 = vld [vmem:[#allocation4 + $0x110] sm:$0xff] }
 0x561   : > { %13472 = vst [vmem:[#allocation33_spill] sm:$0xff] %v10390_v32 }
 0x562   : > { %v3326_v47 = vmax.f32 %v3281_v2, 0.0  ;;  %v10423_v2 = vld [vmem:[#allocation4 + $0xd8] sm:$0xff] }
 0x563   : > { %v10606_v24 = vld [vmem:[#allocation4 + $0x138] sm:$0xff] }
 0x564   : > { %3359 = vst.msk [vmem:[#allocation4 + $0x141] sm:$0xff] %vm380_vm0, %v3326_v47  ;;  %3847 = vrot.lane.b32.xlu1 %v3446_v26, %s7969_s24 }
 0x565   : > { %3849 = vrot.lane.b32.xlu2 %v10392_v34, %s7969_s24  ;;  %4099 = vrot.lane.b32.xlu0 %v3414_v60, %s7971_s26  ;;  %v3170_v61 = vpop.f32.mrf.mxu1 }
 0x566   : > { %v3171_v28 = vadd.f32 %v10355_v22, %v3170_v61  ;;  %v10400_v20 = vpop.permute.xlu1 %4083 }
 0x567   : > { %13473 = vst [vmem:[#allocation57_spill] sm:$0xff] %v10400_v20  ;;  %v10402_v16 = vpop.permute.xlu2 %3707  ;;  %v10404_v12 = vpop.permute.xlu0 %3703  ;;  %v10590_v20 = vld [vmem:[#allocation4 + $0x129] sm:$0xff] }
 0x568   : > { %13474 = vst [vmem:[#allocation8_spill] sm:$0xff] %v10402_v16  ;;  %v3284_v57 = vadd.f32 %v3283_v7, %v3171_v28  ;;  %v3289_v7 = vpop.f32.mrf.mxu2  ;;  %v3295_v16 = vpop.f32.mrf.mxu3 }
 0x569   : > { %13475 = vst [vmem:[#allocation37_spill] sm:$0xff] %v10404_v12 }
 0x56a   : > { %v3327_v46 = vmax.f32 %v3284_v57, 0.0 }
 0x56b   : > { %v10622_v39 = vld [vmem:[#allocation4 + $0x13a] sm:$0xff]  ;;  %v10628_v32 = vld [vmem:[#allocation4 + $0x142] sm:$0xff] }
 0x56c   : > { %3360 = vst.msk [vmem:[#allocation4 + $0x151] sm:$0xff] %vm380_vm0, %v3327_v46  ;;  %4101 = vrot.lane.b32.xlu1 %v3509_v31, %s7971_s26  ;;  %v10644_v18 = vld [vmem:[#allocation4 + $0x140] sm:$0xff] }
 0x56d   : > { %3973 = vrot.lane.b32.xlu2 %v10406_v52, %s7970_s25  ;;  %3721 = vrot.lane.b32.xlu0 %v3509_v31, %s7967_s19  ;;  %v3173_v59 = vpop.f32.mrf.mxu1 }
 0x56e   : > { %v3174_v3 = vadd.f32 %v10355_v22, %v3173_v59  ;;  %v10414_v35 = vpop.permute.xlu1 %3705  ;;  %v10434_v59 = vld [vmem:[#allocation4 + $0xe2] sm:$0xff] }
 0x56f   : > { %13476 = vst [vmem:[#allocation7_spill] sm:$0xff] %v10414_v35  ;;  %v10416_v58 = vpop.permute.xlu2 %3837  ;;  %v10418_v6 = vpop.permute.xlu0 %3833  ;;  %v10469_v35 = vld [vmem:[#allocation4 + $0xf1] sm:$0xff] }
 0x570   : > { %13477 = vst [vmem:[#allocation20_spill] sm:$0xff] %v10416_v58  ;;  %v3287_v60 = vadd.f32 %v3286_v44, %v3174_v3  ;;  %v10451_v58 = vld [vmem:[#allocation4 + $0xe0] sm:$0xff] }
 0x571   : > { %13478 = vst [vmem:[#allocation50_spill] sm:$0xff] %v10418_v6 }
 0x572   : > { %v3328_v14 = vmax.f32 %v3287_v60, 0.0 }
 0x573   : > { %v10638_v50 = vld [vmem:[#allocation4 + $0x150] sm:$0xff] }
 0x574   : > { %3361 = vst.msk [vmem:[#allocation4 + $0x159] sm:$0xff] %vm380_vm0, %v3328_v14  ;;  %3723 = vrot.lane.b32.xlu1 %v3416_v17, %s7967_s19  ;;  %v10656_v48 = vld [vmem:[#allocation4 + $0x151] sm:$0xff] }
 0x575   : > { %4227 = vrot.lane.b32.xlu2 %v3446_v26, %s7972_s27  ;;  %3975 = vrot.lane.b32.xlu0 %v10423_v2, %s7970_s25  ;;  %v3176_v47 = vpop.f32.mrf.mxu1  ;;  %v10440_v26 = vld [vmem:[#allocation4 + $0xda] sm:$0xff] }
 0x576   : > { %v3177_v61 = vadd.f32 %v10355_v22, %v3176_v47  ;;  %v10428_v28 = vpop.permute.xlu1 %4213  ;;  %v3292_v47 = vpop.f32.mrf.mxu2 }
 0x577   : > { %13479 = vst [vmem:[#allocation41_spill] sm:$0xff] %v10428_v28  ;;  %v10430_v57 = vpop.permute.xlu2 %3961  ;;  %v10432_v46 = vpop.permute.xlu0 %3957  ;;  %v10540_v28 = vld [vmem:[#allocation4 + $0x112] sm:$0xff] }
 0x578   : > { %13480 = vst [vmem:[#allocation47_spill] sm:$0xff] %v10430_v57  ;;  %v3290_v44 = vadd.f32 %v3289_v7, %v3177_v61 }
 0x579   : > { %13481 = vst [vmem:[#allocation51_spill] sm:$0xff] %v10432_v46  ;;  %v10562_v46 = vld [vmem:[#allocation4 + $0x120] sm:$0xff] }
 0x57a   : > { %v3329_v31 = vmax.f32 %v3290_v44, 0.0 }
 0x57b   : > { %v10672_v5 = vld [vmem:[#allocation4 + $0x15a] sm:$0xff] }
 0x57c   : > { %3362 = vst.msk [vmem:[#allocation4 + $0x169] sm:$0xff] %vm380_vm0, %v3329_v31  ;;  %3853 = vrot.lane.b32.xlu1 %v10434_v59, %s7969_s24  ;;  %v10688_v15 = vld [vmem:[#allocation4 + $0x158] sm:$0xff] }
 0x57d   : > { %4103 = vrot.lane.b32.xlu2 %v3416_v17, %s7971_s26  ;;  %3851 = vrot.lane.b32.xlu0 %v10440_v26, %s7969_s24  ;;  %v3179_v3 = vpop.f32.mrf.mxu1  ;;  %v10453_v17 = vld [vmem:[#allocation4 + $0xe1] sm:$0xff] }
 0x57e   : > { %v3180_v60 = vadd.f32 %v10355_v22, %v3179_v3  ;;  %v10445_v14 = vpop.permute.xlu1 %3959 }
 0x57f   : > { %13482 = vst [vmem:[#allocation59_spill] sm:$0xff] %v10445_v14  ;;  %v10447_v7 = vpop.permute.xlu2 %4215  ;;  %v10449_v61 = vpop.permute.xlu0 %4211  ;;  %v10487_v14 = vld [vmem:[#allocation4 + $0xf9] sm:$0xff] }
 0x580   : > { %13483 = vst [vmem:[#allocation44_spill] sm:$0xff] %v10447_v7  ;;  %v3293_v44 = vadd.f32 %v3292_v47, %v3180_v60  ;;  %v10471_v7 = vld [vmem:[#allocation4 + $0xf0] sm:$0xff] }
 0x581   : > { %13484 = vst [vmem:[#allocation46_spill] sm:$0xff] %v10449_v61  ;;  %v10578_v61 = vld [vmem:[#allocation4 + $0x122] sm:$0xff] }
 0x582   : > { %v3330_v31 = vmax.f32 %v3293_v44, 0.0 }
 0x583   : > { %v10694_v27 = vld [vmem:[#allocation4 + $0x168] sm:$0xff] }
 0x584   : > { %3363 = vst.msk [vmem:[#allocation4 + $0x171] sm:$0xff] %vm380_vm0, %v3330_v31  ;;  %3977 = vrot.lane.b32.xlu1 %v10451_v58, %s7970_s25 }
 0x585   : > { %3725 = vrot.lane.b32.xlu2 %v10453_v17, %s7967_s19  ;;  %4105 = vrot.lane.b32.xlu0 %v10453_v17, %s7971_s26  ;;  %v3182_v3 = vpop.f32.mrf.mxu1 }
 0x586   : > { %v3183_v60 = vadd.f32 %v10355_v22, %v3182_v3  ;;  %v10463_v47 = vpop.permute.xlu1 %3835 }
 0x587   : > { %13485 = vst [vmem:[#allocation21_spill] sm:$0xff] %v10463_v47  ;;  %v10465_v44 = vpop.permute.xlu2 %4091  ;;  %v10467_v57 = vpop.permute.xlu0 %4087 }
 0x588   : > { %13486 = vst [vmem:[#allocation26_spill] sm:$0xff] %v10465_v44  ;;  %v3296_v6 = vadd.f32 %v3295_v16, %v3183_v60  ;;  %v3298_v44 = vpop.f32.mrf.mxu3 }
 0x589   : > { %13487 = vst [vmem:[#allocation19_spill] sm:$0xff] %v10467_v57 }
 0x58a   : > { %v3331_v31 = vmax.f32 %v3296_v6, 0.0 }
 0x58b   : > { %v10704_v54 = vld [vmem:[#allocation4 + $0x172] sm:$0xff]  ;;  %v10710_v42 = vld [vmem:[#allocation4 + $0x16a] sm:$0xff] }
 0x58c   : > { %3364 = vst.msk [vmem:[#allocation4 + $0x181] sm:$0xff] %vm380_vm0, %v3331_v31  ;;  %4107 = vrot.lane.b32.xlu1 %v10469_v35, %s7971_s26  ;;  %v10722_v25 = vld [vmem:[#allocation4 + $0x171] sm:$0xff] }
 0x58d   : > { %3979 = vrot.lane.b32.xlu2 %v10471_v7, %s7970_s25  ;;  %3727 = vrot.lane.b32.xlu0 %v10469_v35, %s7967_s19  ;;  %v3185_v3 = vpop.f32.mrf.mxu1 }
 0x58e   : > { %v3186_v16 = vadd.f32 %v10355_v22, %v3185_v3  ;;  %v10481_v6 = vpop.permute.xlu1 %4089  ;;  %v10496_v22 = vld [vmem:[#allocation4 + $0xfa] sm:$0xff] }
 0x58f   : > { %13488 = vst [vmem:[#allocation17_spill] sm:$0xff] %v10481_v6  ;;  %v10483_v60 = vpop.permute.xlu2 %3713  ;;  %v10485_v47 = vpop.permute.xlu0 %3709 }
 0x590   : > { %13489 = vst [vmem:[#allocation52_spill] sm:$0xff] %v10483_v60  ;;  %v3299_v31 = vadd.f32 %v3298_v44, %v3186_v16 }
 0x591   : > { %13490 = vst [vmem:[#allocation18_spill] sm:$0xff] %v10485_v47  ;;  %v10522_v47 = vld [vmem:[#allocation4 + $0x10a] sm:$0xff] }
 0x592   : > { %v3332_v57 = vmax.f32 %v3299_v31, 0.0  ;;  %v10506_v31 = vld [vmem:[#allocation4 + $0x108] sm:$0xff] }
 0x593   : > { %v10738_v49 = vld [vmem:[#allocation4 + $0x180] sm:$0xff] }
 0x594   : > { %3365 = vst.msk [vmem:[#allocation4 + $0x189] sm:$0xff] %vm380_vm0, %v3332_v57  ;;  %3729 = vrot.lane.b32.xlu1 %v10487_v14, %s7967_s19  ;;  %v10512_v57 = vld [vmem:[#allocation4 + $0xf8] sm:$0xff] }
 0x595   : > { %3855 = vrot.lane.b32.xlu2 %v10489_v23, %s7969_s24  ;;  %3857 = vrot.lane.b32.xlu0 %v10496_v22, %s7969_s24 }
 0x596   : > { %v10500_v3 = vpop.permute.xlu1 %3711 }
 0x597   : > { %13491 = vst [vmem:[#allocation53_spill] sm:$0xff] %v10500_v3  ;;  %v10502_v44 = vpop.permute.xlu2 %4221  ;;  %v10504_v16 = vpop.permute.xlu0 %4217 }
 0x598   : > { %13492 = vst [vmem:[#allocation60_spill] sm:$0xff] %v10502_v44 }
 0x599   : > { %13493 = vst [vmem:[#allocation58_spill] sm:$0xff] %v10504_v16  ;;  %v10524_v16 = vld [vmem:[#allocation4 + $0x109] sm:$0xff] }
 0x59c   : > { %3983 = vrot.lane.b32.xlu1 %v10506_v31, %s7970_s25 }
 0x59d   : > { %4109 = vrot.lane.b32.xlu2 %v10487_v14, %s7971_s26  ;;  %3981 = vrot.lane.b32.xlu0 %v10512_v57, %s7970_s25 }
 0x59e   : > { %v10516_v60 = vpop.permute.xlu1 %3841 }
 0x59f   : > { %13494 = vst [vmem:[#allocation55_spill] sm:$0xff] %v10516_v60  ;;  %v10518_v3 = vpop.permute.xlu2 %3967  ;;  %v10520_v44 = vpop.permute.xlu0 %3963 }
 0x5a0   : > { %13495 = vst [vmem:[#allocation49_spill] sm:$0xff] %v10518_v3 }
 0x5a1   : > { %13496 = vst [vmem:[#allocation25_spill] sm:$0xff] %v10520_v44  ;;  %v10538_v44 = vld [vmem:[#allocation4 + $0x111] sm:$0xff] }
 0x5a4   : > { %3859 = vrot.lane.b32.xlu1 %v10522_v47, %s7969_s24 }
 0x5a5   : > { %3731 = vrot.lane.b32.xlu2 %v10524_v16, %s7967_s19  ;;  %4111 = vrot.lane.b32.xlu0 %v10524_v16, %s7971_s26 }
 0x5a6   : > { %v10532_v6 = vpop.permute.xlu1 %3965 }
 0x5a7   : > { %13497 = vst [vmem:[#allocation24_spill] sm:$0xff] %v10532_v6  ;;  %v10534_v60 = vpop.permute.xlu2 %3843  ;;  %v10536_v3 = vpop.permute.xlu0 %3839 }
 0x5a8   : > { %13498 = vst [vmem:[#allocation62_spill] sm:$0xff] %v10534_v60 }
 0x5a9   : > { %13499 = vst [vmem:[#allocation28_spill] sm:$0xff] %v10536_v3  ;;  %v10554_v3 = vld [vmem:[#allocation4 + $0x121] sm:$0xff] }
 0x5ac   : > { %4113 = vrot.lane.b32.xlu1 %v10538_v44, %s7971_s26 }
 0x5ad   : > { %3861 = vrot.lane.b32.xlu2 %v10540_v28, %s7969_s24  ;;  %3733 = vrot.lane.b32.xlu0 %v10538_v44, %s7967_s19 }
 0x5ae   : > { %v10548_v12 = vpop.permute.xlu1 %4219 }
 0x5af   : > { %13500 = vst [vmem:[#allocation27_spill] sm:$0xff] %v10548_v12  ;;  %v10550_v6 = vpop.permute.xlu2 %4097  ;;  %v10552_v60 = vpop.permute.xlu0 %4093 }
 0x5b0   : > { %13501 = vst [vmem:[#allocation61_spill] sm:$0xff] %v10550_v6 }
 0x5b1   : > { %13502 = vst [vmem:[#allocation22_spill] sm:$0xff] %v10552_v60 }
 0x5b4   : > { %3735 = vrot.lane.b32.xlu1 %v10554_v3, %s7967_s19 }
 0x5b5   : > { %3985 = vrot.lane.b32.xlu2 %v10556_v53, %s7970_s25  ;;  %3987 = vrot.lane.b32.xlu0 %v10562_v46, %s7970_s25 }
 0x5b6   : > { %v10566_v12 = vpop.permute.xlu1 %4095 }
 0x5b7   : > { %13503 = vst [vmem:[#allocation54_spill] sm:$0xff] %v10566_v12  ;;  %v10568_v6 = vpop.permute.xlu2 %3719  ;;  %v10570_v60 = vpop.permute.xlu0 %3715 }
 0x5b8   : > { %13504 = vst [vmem:[#allocation56_spill] sm:$0xff] %v10568_v6 }
 0x5b9   : > { %13505 = vst [vmem:[#allocation63_spill] sm:$0xff] %v10570_v60  ;;  %v10588_v60 = vld [vmem:[#allocation4 + $0x128] sm:$0xff] }
 0x5bc   : > { %3865 = vrot.lane.b32.xlu1 %v10572_v45, %s7969_s24 }
 0x5bd   : > { %4115 = vrot.lane.b32.xlu2 %v10554_v3, %s7971_s26  ;;  %3863 = vrot.lane.b32.xlu0 %v10578_v61, %s7969_s24 }
 0x5be   : > { %v10582_v62 = vpop.permute.xlu1 %3717 }
 0x5bf   : > { %13506 = vst [vmem:[#allocation64_spill] sm:$0xff] %v10582_v62  ;;  %v10584_v12 = vpop.permute.xlu2 %3849  ;;  %v10586_v6 = vpop.permute.xlu0 %3845 }
 0x5c0   : > { %13507 = vst [vmem:[#allocation65_spill] sm:$0xff] %v10584_v12 }
 0x5c1   : > { %13508 = vst [vmem:[#allocation66_spill] sm:$0xff] %v10586_v6  ;;  %v10604_v6 = vld [vmem:[#allocation4 + $0x139] sm:$0xff] }
 0x5c4   : > { %3989 = vrot.lane.b32.xlu1 %v10588_v60, %s7970_s25 }
 0x5c5   : > { %3737 = vrot.lane.b32.xlu2 %v10590_v20, %s7967_s19  ;;  %4117 = vrot.lane.b32.xlu0 %v10590_v20, %s7971_s26 }
 0x5c6   : > { %v10598_v19 = vpop.permute.xlu1 %4225 }
 0x5c7   : > { %13509 = vst [vmem:[#allocation67_spill] sm:$0xff] %v10598_v19  ;;  %v10600_v62 = vpop.permute.xlu2 %3973  ;;  %v10602_v12 = vpop.permute.xlu0 %3969 }
 0x5c8   : > { %13510 = vst [vmem:[#allocation68_spill] sm:$0xff] %v10600_v62 }
 0x5c9   : > { %13511 = vst [vmem:[#allocation69_spill] sm:$0xff] %v10602_v12  ;;  %v10620_v12 = vld [vmem:[#allocation4 + $0x141] sm:$0xff] }
 0x5cc   : > { %4119 = vrot.lane.b32.xlu1 %v10604_v6, %s7971_s26 }
 0x5cd   : > { %3991 = vrot.lane.b32.xlu2 %v10606_v24, %s7970_s25  ;;  %3739 = vrot.lane.b32.xlu0 %v10604_v6, %s7967_s19 }
 0x5ce   : > { %v10614_v40 = vpop.permute.xlu1 %3971 }
 0x5cf   : > { %13512 = vst [vmem:[#allocation70_spill] sm:$0xff] %v10614_v40  ;;  %v10616_v19 = vpop.permute.xlu2 %4227  ;;  %v10618_v62 = vpop.permute.xlu0 %4223 }
 0x5d0   : > { %13513 = vst [vmem:[#allocation71_spill] sm:$0xff] %v10616_v19 }
 0x5d1   : > { %13514 = vst [vmem:[#allocation72_spill] sm:$0xff] %v10618_v62 }
 0x5d4   : > { %3741 = vrot.lane.b32.xlu1 %v10620_v12, %s7967_s19 }
 0x5d5   : > { %3867 = vrot.lane.b32.xlu2 %v10622_v39, %s7969_s24  ;;  %3869 = vrot.lane.b32.xlu0 %v10628_v32, %s7969_s24 }
 0x5d6   : > { %v10632_v40 = vpop.permute.xlu1 %3847 }
 0x5d7   : > { %13515 = vst [vmem:[#allocation73_spill] sm:$0xff] %v10632_v40  ;;  %v10634_v19 = vpop.permute.xlu2 %4103  ;;  %v10636_v62 = vpop.permute.xlu0 %4099 }
 0x5d8   : > { %13516 = vst [vmem:[#allocation74_spill] sm:$0xff] %v10634_v19 }
 0x5d9   : > { %13517 = vst [vmem:[#allocation75_spill] sm:$0xff] %v10636_v62  ;;  %v10654_v62 = vld [vmem:[#allocation4 + $0x152] sm:$0xff] }
 0x5dc   : > { %3995 = vrot.lane.b32.xlu1 %v10638_v50, %s7970_s25 }
 0x5dd   : > { %4121 = vrot.lane.b32.xlu2 %v10620_v12, %s7971_s26  ;;  %3993 = vrot.lane.b32.xlu0 %v10644_v18, %s7970_s25 }
 0x5de   : > { %v10648_v13 = vpop.permute.xlu1 %4101 }
 0x5df   : > { %13518 = vst [vmem:[#allocation76_spill] sm:$0xff] %v10648_v13  ;;  %v10650_v40 = vpop.permute.xlu2 %3725  ;;  %v10652_v19 = vpop.permute.xlu0 %3721 }
 0x5e0   : > { %13519 = vst [vmem:[#allocation77_spill] sm:$0xff] %v10650_v40 }
 0x5e1   : > { %13520 = vst [vmem:[#allocation78_spill] sm:$0xff] %v10652_v19  ;;  %v10670_v19 = vld [vmem:[#allocation4 + $0x159] sm:$0xff] }
 0x5e4   : > { %3871 = vrot.lane.b32.xlu1 %v10654_v62, %s7969_s24 }
 0x5e5   : > { %3743 = vrot.lane.b32.xlu2 %v10656_v48, %s7967_s19  ;;  %4123 = vrot.lane.b32.xlu0 %v10656_v48, %s7971_s26 }
 0x5e6   : > { %v10664_v1 = vpop.permute.xlu1 %3723 }
 0x5e7   : > { %13521 = vst [vmem:[#allocation79_spill] sm:$0xff] %v10664_v1  ;;  %v10666_v13 = vpop.permute.xlu2 %3979  ;;  %v10668_v40 = vpop.permute.xlu0 %3975 }
 0x5e8   : > { %13522 = vst [vmem:[#allocation80_spill] sm:$0xff] %v10666_v13 }
 0x5e9   : > { %13523 = vst [vmem:[#allocation81_spill] sm:$0xff] %v10668_v40  ;;  %v10686_v40 = vld [vmem:[#allocation4 + $0x169] sm:$0xff] }
 0x5ec   : > { %4125 = vrot.lane.b32.xlu1 %v10670_v19, %s7971_s26 }
 0x5ed   : > { %3873 = vrot.lane.b32.xlu2 %v10672_v5, %s7969_s24  ;;  %3745 = vrot.lane.b32.xlu0 %v10670_v19, %s7967_s19 }
 0x5ee   : > { %v10680_v51 = vpop.permute.xlu1 %3853 }
 0x5ef   : > { %13524 = vst [vmem:[#allocation82_spill] sm:$0xff] %v10680_v51  ;;  %v10682_v1 = vpop.permute.xlu2 %3855  ;;  %v10684_v13 = vpop.permute.xlu0 %3851 }
 0x5f0   : > { %13525 = vst [vmem:[#allocation83_spill] sm:$0xff] %v10682_v1 }
 0x5f1   : > { %13526 = vst [vmem:[#allocation84_spill] sm:$0xff] %v10684_v13 }
 0x5f4   : > { %3747 = vrot.lane.b32.xlu1 %v10686_v40, %s7967_s19 }
 0x5f5   : > { %3997 = vrot.lane.b32.xlu2 %v10688_v15, %s7970_s25  ;;  %3999 = vrot.lane.b32.xlu0 %v10694_v27, %s7970_s25 }
 0x5f6   : > { %v10698_v51 = vpop.permute.xlu1 %3977 }
 0x5f7   : > { %13527 = vst [vmem:[#allocation85_spill] sm:$0xff] %v10698_v51  ;;  %v10700_v1 = vpop.permute.xlu2 %4109  ;;  %v10702_v13 = vpop.permute.xlu0 %4105 }
 0x5f8   : > { %13528 = vst [vmem:[#allocation86_spill] sm:$0xff] %v10700_v1 }
 0x5f9   : > { %13529 = vst [vmem:[#allocation87_spill] sm:$0xff] %v10702_v13  ;;  %v10720_v13 = vld [vmem:[#allocation4 + $0x170] sm:$0xff] }
 0x5fc   : > { %3877 = vrot.lane.b32.xlu1 %v10704_v54, %s7969_s24 }
 0x5fd   : > { %4127 = vrot.lane.b32.xlu2 %v10686_v40, %s7971_s26  ;;  %3875 = vrot.lane.b32.xlu0 %v10710_v42, %s7969_s24 }
 0x5fe   : > { %v10714_v33 = vpop.permute.xlu1 %4107 }
 0x5ff   : > { %13530 = vst [vmem:[#allocation88_spill] sm:$0xff] %v10714_v33  ;;  %v10716_v51 = vpop.permute.xlu2 %3731  ;;  %v10718_v1 = vpop.permute.xlu0 %3727 }
 0x600   : > { %13531 = vst [vmem:[#allocation89_spill] sm:$0xff] %v10716_v51 }
 0x601   : > { %13532 = vst [vmem:[#allocation90_spill] sm:$0xff] %v10718_v1  ;;  %v10736_v1 = vld [vmem:[#allocation4 + $0x181] sm:$0xff] }
 0x604   : > { %4001 = vrot.lane.b32.xlu1 %v10720_v13, %s7970_s25 }
 0x605   : > { %3749 = vrot.lane.b32.xlu2 %v10722_v25, %s7967_s19  ;;  %4129 = vrot.lane.b32.xlu0 %v10722_v25, %s7971_s26 }
 0x606   : > { %v10730_v4 = vpop.permute.xlu1 %3729 }
 0x607   : > { %13533 = vst [vmem:[#allocation91_spill] sm:$0xff] %v10730_v4  ;;  %v10732_v33 = vpop.permute.xlu2 %3861  ;;  %v10734_v51 = vpop.permute.xlu0 %3857 }
 0x608   : > { %13534 = vst [vmem:[#allocation92_spill] sm:$0xff] %v10732_v33 }
 0x609   : > { %13535 = vst [vmem:[#allocation93_spill] sm:$0xff] %v10734_v51  ;;  %v10756_v51 = vld [vmem:[#allocation4 + $0x188] sm:$0xff] }
 0x60c   : > { %4131 = vrot.lane.b32.xlu1 %v10736_v1, %s7971_s26 }
 0x60d   : > { %4003 = vrot.lane.b32.xlu2 %v10738_v49, %s7970_s25  ;;  %4229 = vrot.lane.b32.xlu0 %v10392_v34, %s7972_s27 }
 0x60e   : > { %v10746_v30 = vpop.permute.xlu1 %3983 }
 0x60f   : > { %13536 = vst [vmem:[#allocation94_spill] sm:$0xff] %v10746_v30  ;;  %v10748_v4 = vpop.permute.xlu2 %3985  ;;  %v10750_v33 = vpop.permute.xlu0 %3981 }
 0x610   : > { %13537 = vst [vmem:[#allocation95_spill] sm:$0xff] %v10748_v4  ;;  %v10766_v4 = vld [vmem:[#allocation4 + $0x189] sm:$0xff] }
 0x611   : > { %13538 = vst [vmem:[#allocation96_spill] sm:$0xff] %v10750_v33  ;;  %v3367_v33 = vld [vmem:[#allocation4 + $0x8] sm:$0xff] }
 0x614   : > { %4231 = vrot.lane.b32.xlu1 %v10440_v26, %s7972_s27 }
 0x615   : > { %4233 = vrot.lane.b32.xlu2 %v10434_v59, %s7972_s27  ;;  %4005 = vrot.lane.b32.xlu0 %v10756_v51, %s7970_s25 }
 0x616   : > { %v10760_v41 = vpop.permute.xlu1 %3859 }
 0x617   : > { %13539 = vst [vmem:[#allocation97_spill] sm:$0xff] %v10760_v41  ;;  %v10762_v34 = vpop.permute.xlu2 %4115  ;;  %v10764_v30 = vpop.permute.xlu0 %4111 }
 0x618   : > { %13540 = vst [vmem:[#allocation98_spill] sm:$0xff] %v10762_v34 }
 0x619   : > { %13541 = vst [vmem:[#allocation99_spill] sm:$0xff] %v10764_v30  ;;  %v3653_v30 = vld [vmem:[#allocation4 + $0x19a] sm:$0xff] }
 0x61c   : > { %4237 = vrot.lane.b32.xlu1 %v10496_v22, %s7972_s27 }
 0x61d   : > { %4133 = vrot.lane.b32.xlu2 %v10766_v4, %s7971_s26  ;;  %4235 = vrot.lane.b32.xlu0 %v10489_v23, %s7972_s27 }
 0x61e   : > { %v10774_v59 = vpop.permute.xlu1 %4113 }
 0x61f   : > { %13542 = vst [vmem:[#allocation100_spill] sm:$0xff] %v10774_v59  ;;  %v10776_v26 = vpop.permute.xlu2 %3737  ;;  %v10778_v41 = vpop.permute.xlu0 %3733  ;;  %v3647_v59 = vld [vmem:[#allocation4 + $0x152] sm:$0xff] }
 0x620   : > { %13543 = vst [vmem:[#allocation101_spill] sm:$0xff] %v10776_v26 }
 0x621   : > { %13544 = vst [vmem:[#allocation102_spill] sm:$0xff] %v10778_v41 }
 0x624   : > { %4243 = vrot.lane.b32.xlu1 %v10578_v61, %s7972_s27 }
 0x625   : > { %4239 = vrot.lane.b32.xlu2 %v10522_v47, %s7972_s27  ;;  %4241 = vrot.lane.b32.xlu0 %v10540_v28, %s7972_s27 }
 0x626   : > { %v10786_v22 = vpop.permute.xlu1 %3735 }
 0x627   : > { %13545 = vst [vmem:[#allocation103_spill] sm:$0xff] %v10786_v22  ;;  %v10788_v34 = vpop.permute.xlu2 %3991  ;;  %v10790_v23 = vpop.permute.xlu0 %3987  ;;  %v3560_v22 = vld [vmem:[#allocation4 + $0x38] sm:$0xff] }
 0x628   : > { %13546 = vst [vmem:[#allocation104_spill] sm:$0xff] %v10788_v34  ;;  %v3561_v34 = vld [vmem:[#allocation4 + $0x48] sm:$0xff] }
 0x629   : > { %13547 = vst [vmem:[#allocation105_spill] sm:$0xff] %v10790_v23  ;;  %v3562_v23 = vld [vmem:[#allocation4 + $0x50] sm:$0xff] }
 0x62c   : > { %4249 = vrot.lane.b32.xlu1 %v10628_v32, %s7972_s27 }
 0x62d   : > { %4245 = vrot.lane.b32.xlu2 %v10572_v45, %s7972_s27  ;;  %4247 = vrot.lane.b32.xlu0 %v10622_v39, %s7972_s27 }
 0x62e   : > { %v10798_v61 = vpop.permute.xlu1 %3865 }
 0x62f   : > { %13548 = vst [vmem:[#allocation106_spill] sm:$0xff] %v10798_v61  ;;  %v10800_v47 = vpop.permute.xlu2 %3867  ;;  %v10802_v28 = vpop.permute.xlu0 %3863  ;;  %v10816_v61 = vld [vmem:[#allocation4 + $0x18a] sm:$0xff] }
 0x630   : > { %13549 = vst [vmem:[#allocation107_spill] sm:$0xff] %v10800_v47  ;;  %v10822_v47 = vld [vmem:[#allocation4 + $0x182] sm:$0xff] }
 0x631   : > { %13550 = vst [vmem:[#allocation108_spill] sm:$0xff] %v10802_v28  ;;  %v3559_v28 = vld [vmem:[#allocation4 + $0x30] sm:$0xff] }
 0x634   : > { %4255 = vrot.lane.b32.xlu1 %v10710_v42, %s7972_s27 }
 0x635   : > { %4251 = vrot.lane.b32.xlu2 %v10654_v62, %s7972_s27  ;;  %4253 = vrot.lane.b32.xlu0 %v10672_v5, %s7972_s27 }
 0x636   : > { %v10810_v32 = vpop.permute.xlu1 %3989 }
 0x637   : > { %13551 = vst [vmem:[#allocation109_spill] sm:$0xff] %v10810_v32  ;;  %v10812_v45 = vpop.permute.xlu2 %4121  ;;  %v10814_v39 = vpop.permute.xlu0 %4117 }
 0x638   : > { %13552 = vst [vmem:[#allocation110_spill] sm:$0xff] %v10812_v45 }
 0x639   : > { %13553 = vst [vmem:[#allocation111_spill] sm:$0xff] %v10814_v39 }
 0x63c   : > { %4261 = vrot.lane.b32.xlu1 %v10816_v61, %s7972_s27 }
 0x63d   : > { %4257 = vrot.lane.b32.xlu2 %v10704_v54, %s7972_s27  ;;  %4259 = vrot.lane.b32.xlu0 %v10822_v47, %s7972_s27 }
 0x63e   : > { %v10826_v62 = vpop.permute.xlu1 %4119 }
 0x63f   : > { %13554 = vst [vmem:[#allocation112_spill] sm:$0xff] %v10826_v62  ;;  %v10828_v26 = vpop.permute.xlu2 %3743  ;;  %v10830_v45 = vpop.permute.xlu0 %3739  ;;  %v3564_v62 = vld [vmem:[#allocation4 + $0x68] sm:$0xff] }
 0x640   : > { %13555 = vst [vmem:[#allocation113_spill] sm:$0xff] %v10828_v26  ;;  %v3563_v26 = vld [vmem:[#allocation4 + $0x60] sm:$0xff] }
 0x641   : > { %13556 = vst [vmem:[#allocation114_spill] sm:$0xff] %v10830_v45  ;;  %v3565_v45 = vld [vmem:[#allocation4 + $0x78] sm:$0xff] }
 0x644   : > { %4331 = vrot.lane.b32.xlu1 %v3561_v34, %s7973_s28 }
 0x645   : > { %4327 = vrot.lane.b32.xlu2 %v3559_v28, %s7973_s28  ;;  %4329 = vrot.lane.b32.xlu0 %v3560_v22, %s7973_s28 }
 0x646   : > { %v10835_v39 = vpop.permute.xlu1 %3741 }
 0x647   : > { %13557 = vst [vmem:[#allocation115_spill] sm:$0xff] %v10835_v39  ;;  %v10837_v32 = vpop.permute.xlu2 %3873  ;;  %v10839_v41 = vpop.permute.xlu0 %3869  ;;  %v3567_v39 = vld [vmem:[#allocation4 + $0x90] sm:$0xff] }
 0x648   : > { %13558 = vst [vmem:[#allocation116_spill] sm:$0xff] %v10837_v32  ;;  %v3566_v32 = vld [vmem:[#allocation4 + $0x80] sm:$0xff] }
 0x649   : > { %13559 = vst [vmem:[#allocation117_spill] sm:$0xff] %v10839_v41  ;;  %v3568_v41 = vld [vmem:[#allocation4 + $0x98] sm:$0xff] }
 0x64c   : > { %4337 = vrot.lane.b32.xlu1 %v3564_v62, %s7973_s28 }
 0x64d   : > { %4333 = vrot.lane.b32.xlu2 %v3562_v23, %s7973_s28  ;;  %4335 = vrot.lane.b32.xlu0 %v3563_v26, %s7973_s28 }
 0x64e   : > { %v10844_v34 = vpop.permute.xlu1 %3995 }
 0x64f   : > { %13560 = vst [vmem:[#allocation118_spill] sm:$0xff] %v10844_v34  ;;  %v10846_v28 = vpop.permute.xlu2 %3997  ;;  %v10848_v22 = vpop.permute.xlu0 %3993  ;;  %v3628_v34 = vld [vmem:[#allocation4 + $0x6a] sm:$0xff] }
 0x650   : > { %13561 = vst [vmem:[#allocation119_spill] sm:$0xff] %v10846_v28  ;;  %v3623_v28 = vld [vmem:[#allocation4 + $0x32] sm:$0xff] }
 0x651   : > { %13562 = vst [vmem:[#allocation120_spill] sm:$0xff] %v10848_v22  ;;  %v3631_v22 = vld [vmem:[#allocation4 + $0x92] sm:$0xff] }
 0x654   : > { %4343 = vrot.lane.b32.xlu1 %v3567_v39, %s7973_s28 }
 0x655   : > { %4339 = vrot.lane.b32.xlu2 %v3565_v45, %s7973_s28  ;;  %4341 = vrot.lane.b32.xlu0 %v3566_v32, %s7973_s28 }
 0x656   : > { %v10853_v62 = vpop.permute.xlu1 %3871 }
 0x657   : > { %13563 = vst [vmem:[#allocation121_spill] sm:$0xff] %v10853_v62  ;;  %v10855_v23 = vpop.permute.xlu2 %4127  ;;  %v10857_v26 = vpop.permute.xlu0 %4123  ;;  %v3621_v62 = vld [vmem:[#allocation4 + $0x199] sm:$0xff] }
 0x658   : > { %13564 = vst [vmem:[#allocation122_spill] sm:$0xff] %v10855_v23  ;;  %v3601_v23 = vld [vmem:[#allocation4 + $0xa9] sm:$0xff] }
 0x659   : > { %13565 = vst [vmem:[#allocation123_spill] sm:$0xff] %v10857_v26  ;;  %v3626_v26 = vld [vmem:[#allocation4 + $0x52] sm:$0xff] }
 0x65c   : > { %4349 = vrot.lane.b32.xlu1 %v10367_v0, %s7973_s28 }
 0x65d   : > { %4345 = vrot.lane.b32.xlu2 %v3568_v41, %s7973_s28  ;;  %4347 = vrot.lane.b32.xlu0 %v10334_v56, %s7973_s28 }
 0x65e   : > { %v10864_v39 = vpop.permute.xlu1 %4125 }
 0x65f   : > { %13566 = vst [vmem:[#allocation124_spill] sm:$0xff] %v10864_v39  ;;  %v10866_v45 = vpop.permute.xlu2 %3749  ;;  %v10868_v32 = vpop.permute.xlu0 %3745  ;;  %v3624_v39 = vld [vmem:[#allocation4 + $0x3a] sm:$0xff] }
 0x660   : > { %13567 = vst [vmem:[#allocation125_spill] sm:$0xff] %v10866_v45  ;;  %v3591_v45 = vld [vmem:[#allocation4 + $0x31] sm:$0xff] }
 0x661   : > { %13568 = vst [vmem:[#allocation126_spill] sm:$0xff] %v10868_v32  ;;  %v3599_v32 = vld [vmem:[#allocation4 + $0x91] sm:$0xff] }
 0x664   : > { %4355 = vrot.lane.b32.xlu1 %v10423_v2, %s7973_s28 }
 0x665   : > { %4351 = vrot.lane.b32.xlu2 %v10378_v38, %s7973_s28  ;;  %4353 = vrot.lane.b32.xlu0 %v10406_v52, %s7973_s28 }
 0x666   : > { %v10876_v0 = vpop.permute.xlu1 %3747 }
 0x667   : > { %13569 = vst [vmem:[#allocation127_spill] sm:$0xff] %v10876_v0  ;;  %v10878_v41 = vpop.permute.xlu2 %4003  ;;  %v10880_v56 = vpop.permute.xlu0 %3999  ;;  %v3595_v0 = vld [vmem:[#allocation4 + $0x61] sm:$0xff] }
 0x668   : > { %13570 = vst [vmem:[#allocation128_spill] sm:$0xff] %v10878_v41  ;;  %v3593_v41 = vld [vmem:[#allocation4 + $0x49] sm:$0xff] }
 0x669   : > { %13571 = vst [vmem:[#allocation129_spill] sm:$0xff] %v10880_v56  ;;  %v3602_v56 = vld [vmem:[#allocation4 + $0xb1] sm:$0xff] }
 0x66c   : > { %4361 = vrot.lane.b32.xlu1 %v10512_v57, %s7973_s28 }
 0x66d   : > { %4357 = vrot.lane.b32.xlu2 %v10451_v58, %s7973_s28  ;;  %4359 = vrot.lane.b32.xlu0 %v10471_v7, %s7973_s28 }
 0x66e   : > { %v10888_v2 = vpop.permute.xlu1 %3877 }
 0x66f   : > { %13572 = vst [vmem:[#allocation130_spill] sm:$0xff] %v10888_v2  ;;  %v10890_v38 = vpop.permute.xlu2 %4233  ;;  %v10892_v52 = vpop.permute.xlu0 %3875  ;;  %v3590_v2 = vld [vmem:[#allocation4 + $0x1a0] sm:$0xff] }
 0x670   : > { %13573 = vst [vmem:[#allocation131_spill] sm:$0xff] %v10892_v52  ;;  %v3597_v52 = vld [vmem:[#allocation4 + $0x79] sm:$0xff] }
 0x674   : > { %4367 = vrot.lane.b32.xlu1 %v10562_v46, %s7973_s28 }
 0x675   : > { %4363 = vrot.lane.b32.xlu2 %v10506_v31, %s7973_s28  ;;  %4365 = vrot.lane.b32.xlu0 %v10556_v53, %s7973_s28 }
 0x676   : > { %v10900_v57 = vpop.permute.xlu1 %4001 }
 0x677   : > { %13574 = vst [vmem:[#allocation132_spill] sm:$0xff] %v10900_v57  ;;  %v10902_v58 = vpop.permute.xlu2 %4133  ;;  %v10904_v7 = vpop.permute.xlu0 %4129  ;;  %v3598_v57 = vld [vmem:[#allocation4 + $0x81] sm:$0xff] }
 0x678   : > { %13575 = vst [vmem:[#allocation133_spill] sm:$0xff] %v10902_v58  ;;  %v3589_v58 = vld [vmem:[#allocation4 + $0x198] sm:$0xff] }
 0x679   : > { %13576 = vst [vmem:[#allocation134_spill] sm:$0xff] %v10904_v7  ;;  %v3600_v7 = vld [vmem:[#allocation4 + $0x99] sm:$0xff] }
 0x67c   : > { %4373 = vrot.lane.b32.xlu1 %v10644_v18, %s7973_s28 }
 0x67d   : > { %4369 = vrot.lane.b32.xlu2 %v10588_v60, %s7973_s28  ;;  %4371 = vrot.lane.b32.xlu0 %v10606_v24, %s7973_s28 }
 0x67e   : > { %v10912_v46 = vpop.permute.xlu1 %4131 }
 0x67f   : > { %13577 = vst [vmem:[#allocation135_spill] sm:$0xff] %v10912_v46  ;;  %v10914_v31 = vpop.permute.xlu2 %4239  ;;  %v10916_v53 = vpop.permute.xlu0 %4229  ;;  %v3592_v46 = vld [vmem:[#allocation4 + $0x39] sm:$0xff] }
 0x680   : > { %13578 = vst [vmem:[#allocation136_spill] sm:$0xff] %v10914_v31 }
 0x684   : > { %4379 = vrot.lane.b32.xlu1 %v10694_v27, %s7973_s28 }
 0x685   : > { %4375 = vrot.lane.b32.xlu2 %v10638_v50, %s7973_s28  ;;  %4377 = vrot.lane.b32.xlu0 %v10688_v15, %s7973_s28 }
 0x686   : > { %v10924_v18 = vpop.permute.xlu1 %4231 }
 0x687   : > { %v10926_v60 = vpop.permute.xlu2 %4245  ;;  %v10928_v24 = vpop.permute.xlu0 %4005 }
 0x688   : > { %13579 = vst [vmem:[#allocation137_spill] sm:$0xff] %v10926_v60  ;;  %v3641_v60 = vld [vmem:[#allocation4 + $0x10a] sm:$0xff] }
 0x689   : > { %13580 = vst [vmem:[#allocation138_spill] sm:$0xff] %v10928_v24  ;;  %v3594_v24 = vld [vmem:[#allocation4 + $0x51] sm:$0xff] }
 0x68c   : > { %4385 = vrot.lane.b32.xlu1 %v10756_v51, %s7973_s28 }
 0x68d   : > { %4381 = vrot.lane.b32.xlu2 %v10720_v13, %s7973_s28  ;;  %4383 = vrot.lane.b32.xlu0 %v10738_v49, %s7973_s28 }
 0x68e   : > { %v10936_v27 = vpop.permute.xlu1 %4237 }
 0x68f   : > { %13581 = vst [vmem:[#allocation139_spill] sm:$0xff] %v10936_v27  ;;  %v10938_v50 = vpop.permute.xlu2 %4251  ;;  %v10940_v15 = vpop.permute.xlu0 %4235 }
 0x690   : > { %13582 = vst [vmem:[#allocation140_spill] sm:$0xff] %v10938_v50  ;;  %v3625_v50 = vld [vmem:[#allocation4 + $0x4a] sm:$0xff] }
 0x694   : > { %4455 = vrot.lane.b32.xlu1 %v3591_v45, %s7974_s29 }
 0x695   : > { %4387 = vrot.lane.b32.xlu2 %v3589_v58, %s7973_s28  ;;  %4389 = vrot.lane.b32.xlu0 %v3590_v2, %s7973_s28 }
 0x696   : > { %v10945_v51 = vpop.permute.xlu1 %4243 }
 0x697   : > { %13583 = vst [vmem:[#allocation141_spill] sm:$0xff] %v10945_v51  ;;  %v10947_v13 = vpop.permute.xlu2 %4257  ;;  %v10949_v49 = vpop.permute.xlu0 %4241  ;;  %v3643_v51 = vld [vmem:[#allocation4 + $0x122] sm:$0xff] }
 0x698   : > { %13584 = vst [vmem:[#allocation142_spill] sm:$0xff] %v10947_v13  ;;  %v3596_v13 = vld [vmem:[#allocation4 + $0x69] sm:$0xff] }
 0x699   : > { %13585 = vst [vmem:[#allocation143_spill] sm:$0xff] %v10949_v49 }
 0x69c   : > { %4461 = vrot.lane.b32.xlu1 %v3594_v24, %s7974_s29 }
 0x69d   : > { %4457 = vrot.lane.b32.xlu2 %v3592_v46, %s7974_s29  ;;  %4459 = vrot.lane.b32.xlu0 %v3593_v41, %s7974_s29 }
 0x69e   : > { %v10954_v45 = vpop.permute.xlu1 %4249 }
 0x69f   : > { %13586 = vst [vmem:[#allocation144_spill] sm:$0xff] %v10954_v45  ;;  %v10956_v58 = vpop.permute.xlu2 %4327  ;;  %v10958_v2 = vpop.permute.xlu0 %4247  ;;  %v3629_v45 = vld [vmem:[#allocation4 + $0x7a] sm:$0xff] }
 0x6a0   : > { %13587 = vst [vmem:[#allocation145_spill] sm:$0xff] %v10958_v2  ;;  %v3637_v2 = vld [vmem:[#allocation4 + $0xda] sm:$0xff] }
 0x6a4   : > { %4467 = vrot.lane.b32.xlu1 %v3597_v52, %s7974_s29 }
 0x6a5   : > { %4463 = vrot.lane.b32.xlu2 %v3595_v0, %s7974_s29  ;;  %4465 = vrot.lane.b32.xlu0 %v3596_v13, %s7974_s29 }
 0x6a6   : > { %v10963_v24 = vpop.permute.xlu1 %4255 }
 0x6a7   : > { %13588 = vst [vmem:[#allocation146_spill] sm:$0xff] %v10963_v24  ;;  %v10965_v46 = vpop.permute.xlu2 %4333  ;;  %v10967_v41 = vpop.permute.xlu0 %4253  ;;  %v3603_v24 = vld [vmem:[#allocation4 + $0xc1] sm:$0xff] }
 0x6a8   : > { %13589 = vst [vmem:[#allocation147_spill] sm:$0xff] %v10967_v41 }
 0x6ac   : > { %4473 = vrot.lane.b32.xlu1 %v3600_v7, %s7974_s29 }
 0x6ad   : > { %4469 = vrot.lane.b32.xlu2 %v3598_v57, %s7974_s29  ;;  %4471 = vrot.lane.b32.xlu0 %v3599_v32, %s7974_s29 }
 0x6ae   : > { %v10972_v52 = vpop.permute.xlu1 %4261 }
 0x6af   : > { %13590 = vst [vmem:[#allocation148_spill] sm:$0xff] %v10972_v52  ;;  %v10974_v0 = vpop.permute.xlu2 %4339  ;;  %v10976_v13 = vpop.permute.xlu0 %4259  ;;  %v3604_v52 = vld [vmem:[#allocation4 + $0xc9] sm:$0xff] }
 0x6b0   : > { %13591 = vst [vmem:[#allocation149_spill] sm:$0xff] %v10976_v13  ;;  %v3605_v13 = vld [vmem:[#allocation4 + $0xd9] sm:$0xff] }
 0x6b4   : > { %4479 = vrot.lane.b32.xlu1 %v3603_v24, %s7974_s29 }
 0x6b5   : > { %4475 = vrot.lane.b32.xlu2 %v3601_v23, %s7974_s29  ;;  %4477 = vrot.lane.b32.xlu0 %v3602_v56, %s7974_s29 }
 0x6b6   : > { %v10981_v7 = vpop.permute.xlu1 %4331 }
 0x6b7   : > { %v10983_v57 = vpop.permute.xlu2 %4345  ;;  %v10985_v32 = vpop.permute.xlu0 %4329 }
 0x6bc   : > { %4485 = vrot.lane.b32.xlu1 %v10453_v17, %s7974_s29 }
 0x6bd   : > { %4481 = vrot.lane.b32.xlu2 %v3604_v52, %s7974_s29  ;;  %4483 = vrot.lane.b32.xlu0 %v3605_v13, %s7974_s29 }
 0x6be   : > { %v10991_v24 = vpop.permute.xlu1 %4337 }
 0x6bf   : > { %v10993_v23 = vpop.permute.xlu2 %4351  ;;  %v10995_v56 = vpop.permute.xlu0 %4335 }
 0x6c4   : > { %4491 = vrot.lane.b32.xlu1 %v10524_v16, %s7974_s29 }
 0x6c5   : > { %4487 = vrot.lane.b32.xlu2 %v10469_v35, %s7974_s29  ;;  %4489 = vrot.lane.b32.xlu0 %v10487_v14, %s7974_s29 }
 0x6c6   : > { %v11003_v17 = vpop.permute.xlu1 %4343 }
 0x6c7   : > { %v11005_v52 = vpop.permute.xlu2 %4357  ;;  %v11007_v13 = vpop.permute.xlu0 %4341 }
 0x6cc   : > { %4497 = vrot.lane.b32.xlu1 %v10590_v20, %s7974_s29 }
 0x6cd   : > { %4493 = vrot.lane.b32.xlu2 %v10538_v44, %s7974_s29  ;;  %4495 = vrot.lane.b32.xlu0 %v10554_v3, %s7974_s29 }
 0x6ce   : > { %v11015_v16 = vpop.permute.xlu1 %4349 }
 0x6cf   : > { %v11017_v35 = vpop.permute.xlu2 %4363  ;;  %v11019_v14 = vpop.permute.xlu0 %4347 }
 0x6d4   : > { %4503 = vrot.lane.b32.xlu1 %v10656_v48, %s7974_s29 }
 0x6d5   : > { %4499 = vrot.lane.b32.xlu2 %v10604_v6, %s7974_s29  ;;  %4501 = vrot.lane.b32.xlu0 %v10620_v12, %s7974_s29 }
 0x6d6   : > { %v11027_v20 = vpop.permute.xlu1 %4355 }
 0x6d7   : > { %v11029_v44 = vpop.permute.xlu2 %4369  ;;  %v11031_v3 = vpop.permute.xlu0 %4353 }
 0x6d8   : > { %13592 = vst [vmem:[#allocation150_spill] sm:$0xff] %v11029_v44  ;;  %v3644_v44 = vld [vmem:[#allocation4 + $0x12a] sm:$0xff] }
 0x6dc   : > { %4509 = vrot.lane.b32.xlu1 %v10722_v25, %s7974_s29 }
 0x6dd   : > { %4505 = vrot.lane.b32.xlu2 %v10670_v19, %s7974_s29  ;;  %4507 = vrot.lane.b32.xlu0 %v10686_v40, %s7974_s29  ;;  %v3622_v40 = vld [vmem:[#allocation4 + $0x1a1] sm:$0xff] }
 0x6de   : > { %v11039_v48 = vpop.permute.xlu1 %4361 }
 0x6df   : > { %v11041_v6 = vpop.permute.xlu0 %4359  ;;  %v11043_v12 = vpop.permute.xlu2 %4375 }
 0x6e0   : > { %13593 = vst [vmem:[#allocation151_spill] sm:$0xff] %v11043_v12  ;;  %v3639_v12 = vld [vmem:[#allocation4 + $0xf2] sm:$0xff] }
 0x6e4   : > { %4515 = vrot.lane.b32.xlu1 %v3621_v62, %s7974_s29 }
 0x6e5   : > { %4511 = vrot.lane.b32.xlu2 %v10736_v1, %s7974_s29  ;;  %4513 = vrot.lane.b32.xlu0 %v10766_v4, %s7974_s29  ;;  %v3627_v4 = vld [vmem:[#allocation4 + $0x62] sm:$0xff] }
 0x6e6   : > { %v11050_v25 = vpop.permute.xlu1 %4367 }
 0x6e7   : > { %13594 = vst [vmem:[#allocation152_spill] sm:$0xff] %v11050_v25  ;;  %v11052_v19 = vpop.permute.xlu0 %4365  ;;  %v11054_v41 = vpop.permute.xlu2 %4381  ;;  %v4942_v25 = vld [vmem:[%s13246_s6 + $0x38] sm:$0xff] }
 0x6e8   : > { %13595 = vst [vmem:[#allocation153_spill] sm:$0xff] %v11052_v19 }
 0x6e9   : > { %13596 = vst [vmem:[#allocation154_spill] sm:$0xff] %v11054_v41 }
 0x6ec   : > { %4585 = vrot.lane.b32.xlu1 %v3624_v39, %s7975_s30 }
 0x6ed   : > { %4517 = vrot.lane.b32.xlu2 %v3622_v40, %s7974_s29  ;;  %4583 = vrot.lane.b32.xlu0 %v3623_v28, %s7975_s30  ;;  %v3630_v28 = vld [vmem:[#allocation4 + $0x82] sm:$0xff] }
 0x6ee   : > { %v11059_v62 = vpop.permute.xlu1 %4373 }
 0x6ef   : > { %13597 = vst [vmem:[#allocation155_spill] sm:$0xff] %v11059_v62  ;;  %v11061_v1 = vpop.permute.xlu0 %4371  ;;  %v11065_v41 = vpop.permute.xlu2 %4387  ;;  %v3640_v62 = vld [vmem:[#allocation4 + $0xfa] sm:$0xff] }
 0x6f0   : > { %13598 = vst [vmem:[#allocation156_spill] sm:$0xff] %v11061_v1 }
 0x6f1   : > { %13599 = vst [vmem:[#allocation157_spill] sm:$0xff] %v11065_v41 }
 0x6f4   : > { %4591 = vrot.lane.b32.xlu1 %v3627_v4, %s7975_s30 }
 0x6f5   : > { %4587 = vrot.lane.b32.xlu2 %v3625_v50, %s7975_s30  ;;  %4589 = vrot.lane.b32.xlu0 %v3626_v26, %s7975_s30  ;;  %v3633_v26 = vld [vmem:[#allocation4 + $0xaa] sm:$0xff] }
 0x6f6   : > { %v11068_v39 = vpop.permute.xlu1 %4379 }
 0x6f7   : > { %13600 = vst [vmem:[#allocation158_spill] sm:$0xff] %v11068_v39  ;;  %v11070_v40 = vpop.permute.xlu0 %4377  ;;  %v11077_v50 = vpop.permute.xlu2 %4457  ;;  %v3632_v39 = vld [vmem:[#allocation4 + $0x9a] sm:$0xff] }
 0x6f8   : > { %13601 = vst [vmem:[#allocation159_spill] sm:$0xff] %v11070_v40  ;;  %v3634_v40 = vld [vmem:[#allocation4 + $0xb2] sm:$0xff] }
 0x6fc   : > { %4597 = vrot.lane.b32.xlu1 %v3630_v28, %s7975_s30 }
 0x6fd   : > { %4593 = vrot.lane.b32.xlu2 %v3628_v34, %s7975_s30  ;;  %4595 = vrot.lane.b32.xlu0 %v3629_v45, %s7975_s30 }
 0x6fe   : > { %v11075_v4 = vpop.permute.xlu1 %4385 }
 0x6ff   : > { %13602 = vst [vmem:[#allocation160_spill] sm:$0xff] %v11075_v4  ;;  %v11079_v41 = vpop.permute.xlu0 %4383  ;;  %v11088_v45 = vpop.permute.xlu2 %4463  ;;  %v3636_v4 = vld [vmem:[#allocation4 + $0xca] sm:$0xff] }
 0x700   : > { %13603 = vst [vmem:[#allocation161_spill] sm:$0xff] %v11079_v41  ;;  %v3635_v41 = vld [vmem:[#allocation4 + $0xc2] sm:$0xff] }
 0x704   : > { %4603 = vrot.lane.b32.xlu1 %v3633_v26, %s7975_s30 }
 0x705   : > { %4599 = vrot.lane.b32.xlu2 %v3631_v22, %s7975_s30  ;;  %4601 = vrot.lane.b32.xlu0 %v3632_v39, %s7975_s30 }
 0x706   : > { %v11084_v28 = vpop.permute.xlu1 %4455 }
 0x707   : > { %v11086_v34 = vpop.permute.xlu0 %4389  ;;  %v11097_v39 = vpop.permute.xlu2 %4469 }
 0x708   : > { %13604 = vst [vmem:[#allocation162_spill] sm:$0xff] %v11086_v34  ;;  %v3638_v34 = vld [vmem:[#allocation4 + $0xe2] sm:$0xff] }
 0x70c   : > { %4609 = vrot.lane.b32.xlu1 %v3636_v4, %s7975_s30 }
 0x70d   : > { %4605 = vrot.lane.b32.xlu2 %v3634_v40, %s7975_s30  ;;  %4607 = vrot.lane.b32.xlu0 %v3635_v41, %s7975_s30  ;;  %v3642_v41 = vld [vmem:[#allocation4 + $0x112] sm:$0xff] }
 0x70e   : > { %v11093_v26 = vpop.permute.xlu1 %4461 }
 0x70f   : > { %v11095_v22 = vpop.permute.xlu0 %4459  ;;  %v11108_v1 = vpop.permute.xlu2 %4475 }
 0x714   : > { %4615 = vrot.lane.b32.xlu1 %v3639_v12, %s7975_s30 }
 0x715   : > { %4611 = vrot.lane.b32.xlu2 %v3637_v2, %s7975_s30  ;;  %4613 = vrot.lane.b32.xlu0 %v3638_v34, %s7975_s30  ;;  %v3645_v34 = vld [vmem:[#allocation4 + $0x13a] sm:$0xff] }
 0x716   : > { %v11102_v4 = vpop.permute.xlu1 %4467 }
 0x717   : > { %v11104_v40 = vpop.permute.xlu0 %4465 }
 0x71c   : > { %4621 = vrot.lane.b32.xlu1 %v3642_v41, %s7975_s30 }
 0x71d   : > { %4617 = vrot.lane.b32.xlu2 %v3640_v62, %s7975_s30  ;;  %4619 = vrot.lane.b32.xlu0 %v3641_v60, %s7975_s30  ;;  %v11120_v62 = vpop.permute.xlu2 %4481  ;;  %v3646_v60 = vld [vmem:[#allocation4 + $0x142] sm:$0xff] }
 0x71e   : > { %v11111_v12 = vpop.permute.xlu1 %4473 }
 0x71f   : > { %v11113_v2 = vpop.permute.xlu0 %4471 }
 0x724   : > { %4627 = vrot.lane.b32.xlu1 %v3645_v34, %s7975_s30 }
 0x725   : > { %4623 = vrot.lane.b32.xlu2 %v3643_v51, %s7975_s30  ;;  %4625 = vrot.lane.b32.xlu0 %v3644_v44, %s7975_s30  ;;  %v4943_v44 = vld [vmem:[%s13246_s6 + $0x40] sm:$0xff]  ;;  %v11138_v31 = vpop.permute.xlu2 %4487 }
 0x726   : > { %v11118_v41 = vpop.permute.xlu1 %4479  ;;  %5051 = vmatpush.msrb.mxu3 %v4943_v44 }
 0x727   : > { %v11122_v49 = vpop.permute.xlu0 %4477 }
 0x728   : > { %5052 = vmatpush.msrb.mxu3 %v4942_v25  ;;  %v3654_v25 = vld [vmem:[#allocation4 + $0x1a2] sm:$0xff] }
 0x72c   : > { %4633 = vrot.lane.b32.xlu1 %v10672_v5, %s7975_s30  ;;  %v4941_v5 = vld [vmem:[%s13246_s6 + $0x30] sm:$0xff] }
 0x72d   : > { %4629 = vrot.lane.b32.xlu2 %v3646_v60, %s7975_s30  ;;  %4631 = vrot.lane.b32.xlu0 %v3647_v59, %s7975_s30  ;;  %v4940_v59 = vld [vmem:[%s13246_s6 + $0x28] sm:$0xff] }
 0x72e   : > { %v11128_v34 = vpop.permute.xlu1 %4485  ;;  %5053 = vmatpush.msrb.mxu3 %v4941_v5  ;;  %v11165_v5 = vpop.permute.xlu2 %4493 }
 0x72f   : > { %v11130_v51 = vpop.permute.xlu0 %4483  ;;  %13605 = vst [vmem:[#allocation163_spill] sm:$0xff] %v11165_v5 }
 0x730   : > { %5054 = vmatpush.msrb.mxu3 %v4940_v59  ;;  %v4936_v59 = vld [vmem:[%s13246_s6 + $0x8] sm:$0xff] }
 0x734   : > { %4639 = vrot.lane.b32.xlu1 %v10822_v47, %s7975_s30  ;;  %v4939_v47 = vld [vmem:[%s13246_s6 + $0x20] sm:$0xff] }
 0x735   : > { %4635 = vrot.lane.b32.xlu2 %v10710_v42, %s7975_s30  ;;  %4637 = vrot.lane.b32.xlu0 %v10704_v54, %s7975_s30  ;;  %v4938_v42 = vld [vmem:[%s13246_s6 + $0x18] sm:$0xff]  ;;  %v4937_v54 = vld [vmem:[%s13246_s6 + $0x10] sm:$0xff] }
 0x736   : > { %v11152_v60 = vpop.permute.xlu1 %4491  ;;  %5055 = vmatpush.msrb.mxu3 %v4939_v47 }
 0x737   : > { %v11154_v44 = vpop.permute.xlu0 %4489 }
 0x738   : > { %5056 = vmatpush.msrb.mxu3 %v4938_v42  ;;  %v4935_v42 = vld [vmem:[%s13246_s6] sm:$0xff] }
 0x73a   : > { %5057 = vmatpush.msrb.mxu3 %v4937_v54 }
 0x73c   : > { %4645 = vrot.lane.b32.xlu1 %v3654_v25, %s7975_s30  ;;  %5058 = vmatpush.msrb.mxu3 %v4936_v59  ;;  %v11181_v25 = vpop.permute.xlu2 %4499 }
 0x73d   : > { %4641 = vrot.lane.b32.xlu2 %v10816_v61, %s7975_s30  ;;  %4643 = vrot.lane.b32.xlu0 %v3653_v30, %s7975_s30  ;;  %13608 = vst [vmem:[#allocation166_spill] sm:$0xff] %v11181_v25 }
 0x73e   : > { %v11174_v47 = vpop.permute.xlu1 %4497  ;;  %5059 = vmatpush.msrb.mxu3 %v4935_v42 }
 0x73f   : > { %13606 = vst [vmem:[#allocation164_spill] sm:$0xff] %v11174_v47  ;;  %v11176_v19 = vpop.permute.xlu0 %4495  ;;  %v3366_v47 = vld [vmem:[#allocation4] sm:$0xff] }
 0x740   : > { %13607 = vst [vmem:[#allocation165_spill] sm:$0xff] %v11176_v19  ;;  %v4679_v59 = vsel %vm380_vm0, %v3366_v47, %v10235_v63 }
 0x741   : > { %v4711_v42 = vsel %vm402_vm2, %v4679_v59, %v10263_v43 }
 0x744   : > { %v11187_v27 = vpop.permute.xlu2 %4505 }
 0x745   : > { %13610 = vst [vmem:[#allocation168_spill] sm:$0xff] %v11187_v27 }
 0x746   : > { %v11183_v61 = vpop.permute.xlu1 %4503 }
 0x747   : > { %13609 = vst [vmem:[#allocation167_spill] sm:$0xff] %v11183_v61  ;;  %v11185_v5 = vpop.permute.xlu0 %4501  ;;  %v4680_v61 = vsel %vm380_vm0, %v3367_v33, %v10191_v8 }
 0x748   : > { %v4712_v47 = vsel %vm402_vm2, %v4680_v61, %v10256_v37  ;;  %v7916_v37 = vld [vmem:[#allocation4 + $0x18] sm:$0xff] }
 0x749   : > { %v4744_v8 = vsel %vm1068_vm5, %v4712_v47, %v10299_v36 }
 0x74c   : > { %v11199_v25 = vpop.permute.xlu2 %4511 }
 0x74e   : > { %v11191_v54 = vpop.permute.xlu1 %4509 }
 0x74f   : > { %v11189_v30 = vpop.permute.xlu0 %4507  ;;  %13612 = vst [vmem:[#allocation170_spill] sm:$0xff] %v11191_v54 }
 0x750   : > { %13611 = vst [vmem:[#allocation169_spill] sm:$0xff] %v11189_v30  ;;  %v4743_v30 = vsel %vm1068_vm5, %v4711_v42, %v10220_v9 }
 0x751   : > { %v4775_v54 = vsel %vm1077_vm6, %v4743_v30, %v10272_v11  ;;  %v4776_v11 = vsel %vm1077_vm6, %v4744_v8, %v10260_v21 }
 0x752   : > { %v4807_v63 = vsel %vm1086_vm7, %v4775_v54, %v10310_v10  ;;  %v4808_v36 = vsel %vm1086_vm7, %v4776_v11, %v10295_v29  ;;  %v13614_v54 = vld [vmem:[#allocation39_spill] sm:$0xff] }
 0x753   : > { %v4839_v43 = vsel %vm1095_vm8, %v4807_v63, %v10956_v58  ;;  %v4681_v58 = vsel %vm380_vm0, %v7916_v37, %v10276_v55  ;;  %v13615_v63 = vld [vmem:[#allocation35_spill] sm:$0xff] }
 0x754   : > { %v4871_v9 = vsel %vm1104_vm9, %v4839_v43, %v11084_v28  ;;  %v11223_v10 = vpop.permute.xlu2 %4517  ;;  %v4840_v28 = vsel %vm1095_vm8, %v4808_v36, %v10985_v32  ;;  %v4713_v42 = vsel %vm402_vm2, %v4681_v58, %v13614_v54  ;;  %v13617_v55 = vld [vmem:[#allocation43_spill] sm:$0xff]  ;;  %v13618_v43 = vld [vmem:[#allocation14_spill] sm:$0xff]  ;;  %v13621_v58 = vld [vmem:[#allocation16_spill] sm:$0xff] }
 0x755   : > { %v4872_v30 = vsel %vm1104_vm9, %v4840_v28, %v11077_v50  ;;  %v4745_v47 = vsel %vm1068_vm5, %v4713_v42, %v13615_v63  ;;  %v13624_v54 = vld [vmem:[#allocation42_spill] sm:$0xff]  ;;  %v7918_v63 = vld [vmem:[#allocation4 + $0x30] sm:$0xff] }
 0x756   : > { %v11205_v27 = vpop.permute.xlu1 %4515  ;;  %v4777_v29 = vsel %vm1077_vm6, %v4745_v47, %v13617_v55  ;;  %v13625_v47 = vld [vmem:[#allocation5_spill] sm:$0xff] }
 0x757   : > { %v11195_v19 = vpop.permute.xlu0 %4513  ;;  %v4809_v8 = vsel %vm1086_vm7, %v4777_v29, %v13618_v43  ;;  %v4683_v55 = vsel %vm380_vm0, %v7918_v63, %v13625_v47  ;;  %v13626_v43 = vld [vmem:[#allocation12_spill] sm:$0xff]  ;;  %v13636_v47 = vld [vmem:[#allocation9_spill] sm:$0xff] }
 0x758   : > { %v4841_v50 = vsel %vm1095_vm8, %v4809_v8, %v10981_v7  ;;  %v4715_v8 = vsel %vm402_vm2, %v4683_v55, %v13626_v43  ;;  %v13637_v43 = vld [vmem:[#allocation48_spill] sm:$0xff] }
 0x759   : > { %v4873_v11 = vsel %vm1104_vm9, %v4841_v50, %v11095_v22  ;;  %v13627_v50 = vld [vmem:[#allocation11_spill] sm:$0xff] }
 0x75c   : > { %v4588_v32 = vpop.permute.xlu2 %4587 }
 0x75d   : > { %v4905_v37 = vsel %vm1113_vm11, %v4873_v11, %v4588_v32  ;;  %v13630_v11 = vld [vmem:[#allocation29_spill] sm:$0xff] }
 0x75e   : > { %v4586_v61 = vpop.permute.xlu1 %4585 }
 0x75f   : > { %v4584_v33 = vpop.permute.xlu0 %4583  ;;  %v4904_v21 = vsel %vm1113_vm11, %v4872_v30, %v4586_v61  ;;  %v13622_v61 = vld [vmem:[#allocation34_spill] sm:$0xff]  ;;  %v13623_v30 = vld [vmem:[#allocation13_spill] sm:$0xff] }
 0x760   : > { %v4903_v59 = vsel %vm1113_vm11, %v4871_v9, %v4584_v33  ;;  %v7917_v9 = vld [vmem:[#allocation4 + $0x20] sm:$0xff]  ;;  %v13619_v33 = vld [vmem:[#allocation32_spill] sm:$0xff] }
 0x761   : > { %7227 = vmatmul.msk.f32.vlgmr.msrb.gmra.mxu3 %vm13613_vm14, %v4903_v59  ;;  %v4682_v59 = vsel %vm380_vm0, %v7917_v9, %v13619_v33  ;;  %v4747_v9 = vsel %vm1068_vm5, %v4715_v8, %v13627_v50  ;;  %v13629_v33 = vld [vmem:[#allocation6_spill] sm:$0xff]  ;;  %v13638_v50 = vld [vmem:[#allocation31_spill] sm:$0xff]  ;;  %vm13656_vm14 = vmmov %vm13620_vm1 }
 0x762   : > { %v4714_v36 = vsel %vm402_vm2, %v4682_v59, %v13621_v58  ;;  %v7919_v59 = vld [vmem:[#allocation4 + $0x38] sm:$0xff]  ;;  %v13631_v58 = vld [vmem:[#allocation23_spill] sm:$0xff] }
 0x763   : > { %v4746_v28 = vsel %vm1068_vm5, %v4714_v36, %v13622_v61 }
 0x764   : > { %v4778_v7 = vsel %vm1077_vm6, %v4746_v28, %v13623_v30  ;;  %v13632_v30 = vld [vmem:[#allocation38_spill] sm:$0xff] }
 0x765   : > { %v4810_v42 = vsel %vm1086_vm7, %v4778_v7, %v13624_v54 }
 0x766   : > { %v4842_v22 = vsel %vm1095_vm8, %v4810_v42, %v10965_v46  ;;  %v4779_v46 = vsel %vm1077_vm6, %v4747_v9, %v13629_v33  ;;  %v4592_v36 = vpop.permute.xlu1 %4591  ;;  %v13633_v42 = vld [vmem:[#allocation36_spill] sm:$0xff] }
 0x767   : > { %v4874_v29 = vsel %vm1104_vm9, %v4842_v22, %v11093_v26  ;;  %v4811_v26 = vsel %vm1086_vm7, %v4779_v46, %v13631_v58  ;;  %v13635_v22 = vld [vmem:[#allocation33_spill] sm:$0xff]  ;;  %v13640_v46 = vld [vmem:[#allocation40_spill] sm:$0xff]  ;;  %v13642_v58 = vld [vmem:[#allocation10_spill] sm:$0xff] }
 0x768   : > { %v4843_v61 = vsel %vm1095_vm8, %v4811_v26, %v10995_v56  ;;  %v4594_v56 = vpop.permute.xlu2 %4593 }
 0x769   : > { %7228 = vmatmul.msk.f32.gmra.mxu3 %vm13616_vm15, %v4904_v21  ;;  %v4590_v21 = vpop.permute.xlu0 %4589  ;;  %v4875_v28 = vsel %vm1104_vm9, %v4843_v61, %v11088_v45  ;;  %vm13664_vm15 = vmmov %vm13620_vm1 }
 0x76a   : > { %v4906_v32 = vsel %vm1113_vm11, %v4874_v29, %v4590_v21  ;;  %v4907_v54 = vsel %vm1113_vm11, %v4875_v28, %v4592_v36  ;;  %v7920_v29 = vld [vmem:[#allocation4 + $0x48] sm:$0xff]  ;;  %v13643_v36 = vld [vmem:[#allocation46_spill] sm:$0xff] }
 0x76b   : > { %v4685_v8 = vsel %vm380_vm0, %v7920_v29, %v13637_v43  ;;  %v13644_v28 = vld [vmem:[#allocation30_spill] sm:$0xff]  ;;  %v13649_v29 = vld [vmem:[#allocation41_spill] sm:$0xff] }
 0x76c   : > { %v4717_v9 = vsel %vm402_vm2, %v4685_v8, %v13638_v50 }
 0x76e   : > { %v4598_v43 = vpop.permute.xlu1 %4597 }
 0x771   : > { %7229 = vmatmul.msk.f32.gmra.mxu3 %vm13620_vm1, %v4905_v37  ;;  %v4684_v37 = vsel %vm380_vm0, %v7919_v59, %v13630_v11  ;;  %v4749_v59 = vsel %vm1068_vm5, %v4717_v9, %v13640_v46  ;;  %v13641_v11 = vld [vmem:[#allocation57_spill] sm:$0xff]  ;;  %v4596_v61 = vpop.permute.xlu0 %4595 }
 0x772   : > { %v4716_v7 = vsel %vm402_vm2, %v4684_v37, %v13632_v30  ;;  %v7921_v37 = vld [vmem:[#allocation4 + $0x50] sm:$0xff] }
 0x773   : > { %v4748_v21 = vsel %vm1068_vm5, %v4716_v7, %v13633_v42  ;;  %v4686_v26 = vsel %vm380_vm0, %v7921_v37, %v13642_v58  ;;  %v7923_v58 = vld [vmem:[#allocation4 + $0x68] sm:$0xff] }
 0x774   : > { %v4780_v63 = vsel %vm1077_vm6, %v4748_v21, %v13635_v22  ;;  %v4718_v30 = vsel %vm402_vm2, %v4686_v26, %v13644_v28  ;;  %v13655_v26 = vld [vmem:[#allocation7_spill] sm:$0xff]  ;;  %v13657_v28 = vld [vmem:[#allocation50_spill] sm:$0xff] }
 0x775   : > { %v4812_v55 = vsel %vm1086_vm7, %v4780_v63, %v13636_v47  ;;  %v13647_v63 = vld [vmem:[#allocation15_spill] sm:$0xff] }
 0x776   : > { %v4844_v45 = vsel %vm1095_vm8, %v4812_v55, %v10991_v24  ;;  %v4781_v24 = vsel %vm1077_vm6, %v4749_v59, %v13641_v11  ;;  %v7922_v55 = vld [vmem:[#allocation4 + $0x60] sm:$0xff] }
 0x777   : > { %v13653_v59 = vld [vmem:[#allocation19_spill] sm:$0xff] }
 0x779   : > { %7230 = vmatmul.msk.f32.gmra.mxu3 %vm13628_vm3, %v4906_v32  ;;  %v4876_v32 = vsel %vm1104_vm9, %v4844_v45, %v11104_v40  ;;  %v4813_v40 = vsel %vm1086_vm7, %v4781_v24, %v13643_v36  ;;  %v13654_v24 = vld [vmem:[#allocation44_spill] sm:$0xff]  ;;  %v4688_v36 = vsel %vm380_vm0, %v7923_v58, %v13655_v26  ;;  %vm13674_vm3 = vmmov %vm13620_vm1 }
 0x77a   : > { %v4908_v33 = vsel %vm1113_vm11, %v4876_v32, %v4594_v56  ;;  %v4845_v7 = vsel %vm1095_vm8, %v4813_v40, %v10974_v0  ;;  %v13648_v56 = vld [vmem:[#allocation37_spill] sm:$0xff]  ;;  %v13669_v58 = vld [vmem:[#allocation24_spill] sm:$0xff] }
 0x77b   : > { %v4877_v21 = vsel %vm1104_vm9, %v4845_v7, %v11102_v4  ;;  %v4687_v45 = vsel %vm380_vm0, %v7922_v55, %v13648_v56  ;;  %v13650_v32 = vld [vmem:[#allocation45_spill] sm:$0xff]  ;;  %v13658_v7 = vld [vmem:[#allocation47_spill] sm:$0xff]  ;;  %v13661_v55 = vld [vmem:[#allocation8_spill] sm:$0xff] }
 0x77c   : > { %v4909_v22 = vsel %vm1113_vm11, %v4877_v21, %v4596_v61  ;;  %v4719_v50 = vsel %vm402_vm2, %v4687_v45, %v13650_v32  ;;  %v13660_v21 = vld [vmem:[#allocation58_spill] sm:$0xff] }
 0x77d   : > { %v13665_v32 = vld [vmem:[#allocation26_spill] sm:$0xff] }
 0x781   : > { %7231 = vmatmul.msk.f32.gmra.mxu3 %vm13634_vm4, %v4907_v54  ;;  %v13645_v54 = vld [vmem:[#allocation51_spill] sm:$0xff]  ;;  %vm13681_vm4 = vmmov %vm13620_vm1 }
 0x782   : > { %v4750_v42 = vsel %vm1068_vm5, %v4718_v30, %v13645_v54  ;;  %v4720_v30 = vsel %vm402_vm2, %v4688_v36, %v13657_v28  ;;  %v13670_v36 = vld [vmem:[#allocation22_spill] sm:$0xff] }
 0x783   : > { %v4782_v47 = vsel %vm1077_vm6, %v4750_v42, %v13647_v63  ;;  %v4752_v54 = vsel %vm1068_vm5, %v4720_v30, %v13658_v7  ;;  %v13659_v42 = vld [vmem:[#allocation17_spill] sm:$0xff]  ;;  %v4602_v63 = vpop.permute.xlu0 %4601 }
 0x784   : > { %v4814_v0 = vsel %vm1086_vm7, %v4782_v47, %v13649_v29  ;;  %v7924_v47 = vld [vmem:[#allocation4 + $0x78] sm:$0xff]  ;;  %v13662_v29 = vld [vmem:[#allocation21_spill] sm:$0xff] }
 0x785   : > { %v4846_v8 = vsel %vm1095_vm8, %v4814_v0, %v11007_v13  ;;  %v4600_v13 = vpop.permute.xlu2 %4599  ;;  %v4689_v56 = vsel %vm380_vm0, %v7924_v47, %v13661_v55  ;;  %v7926_v30 = vld [vmem:[#allocation4 + $0x90] sm:$0xff]  ;;  %v13676_v47 = vld [vmem:[#allocation54_spill] sm:$0xff] }
 0x786   : > { %v4878_v4 = vsel %vm1104_vm9, %v4846_v8, %v11097_v39  ;;  %v4721_v0 = vsel %vm402_vm2, %v4689_v56, %v13662_v29  ;;  %v13663_v8 = vld [vmem:[#allocation25_spill] sm:$0xff]  ;;  %v7927_v55 = vld [vmem:[#allocation4 + $0x98] sm:$0xff]  ;;  %v13677_v56 = vld [vmem:[#allocation52_spill] sm:$0xff] }
 0x787   : > { %v4910_v9 = vsel %vm1113_vm11, %v4878_v4, %v4598_v43  ;;  %v4753_v4 = vsel %vm1068_vm5, %v4721_v0, %v13663_v8  ;;  %v13672_v7 = vld [vmem:[#allocation53_spill] sm:$0xff]  ;;  %v13678_v29 = vld [vmem:[#allocation72_spill] sm:$0xff] }
 0x789   : > { %7232 = vmatmul.msk.f32.gmra.mxu3 %vm13639_vm10, %v4908_v33  ;;  %v13651_v33 = vld [vmem:[#allocation59_spill] sm:$0xff]  ;;  %vm13687_vm10 = vmmov %vm13620_vm1 }
 0x78a   : > { %v4751_v46 = vsel %vm1068_vm5, %v4719_v50, %v13651_v33  ;;  %v7925_v50 = vld [vmem:[#allocation4 + $0x80] sm:$0xff] }
 0x78b   : > { %v4783_v11 = vsel %vm1077_vm6, %v4751_v46, %v13653_v59  ;;  %v13667_v46 = vld [vmem:[#allocation27_spill] sm:$0xff]  ;;  %v4604_v59 = vpop.permute.xlu1 %4603  ;;  %v4608_v0 = vpop.permute.xlu0 %4607 }
 0x78c   : > { %v4815_v37 = vsel %vm1086_vm7, %v4783_v11, %v13654_v24 }
 0x78d   : > { %v4847_v39 = vsel %vm1095_vm8, %v4815_v37, %v11003_v17  ;;  %v4784_v17 = vsel %vm1077_vm6, %v4752_v54, %v13659_v42  ;;  %v13668_v37 = vld [vmem:[#allocation20_spill] sm:$0xff]  ;;  %v4691_v54 = vsel %vm380_vm0, %v7926_v30, %v13672_v7  ;;  %v7929_v30 = vld [vmem:[#allocation4 + $0xb0] sm:$0xff] }
 0x78e   : > { %v4879_v40 = vsel %vm1104_vm9, %v4847_v39, %v11113_v2  ;;  %v13690_v7 = vld [vmem:[#allocation64_spill] sm:$0xff] }
 0x78f   : > { %v4911_v61 = vsel %vm1113_vm11, %v4879_v40, %v4600_v13 }
 0x791   : > { %7233 = vmatmul.msk.f32.gmra.mxu3 %vm13646_vm12, %v4909_v22  ;;  %v4816_v22 = vsel %vm1086_vm7, %v4784_v17, %v13660_v21  ;;  %v13673_v17 = vld [vmem:[#allocation28_spill] sm:$0xff]  ;;  %vm13691_vm12 = vmmov %vm13620_vm1 }
 0x792   : > { %v4848_v2 = vsel %vm1095_vm8, %v4816_v22, %v10983_v57  ;;  %v4785_v57 = vsel %vm1077_vm6, %v4753_v4, %v13665_v32  ;;  %v4723_v21 = vsel %vm402_vm2, %v4691_v54, %v13673_v17  ;;  %v13680_v32 = vld [vmem:[#allocation69_spill] sm:$0xff]  ;;  %v4694_v54 = vsel %vm380_vm0, %v7929_v30, %v13690_v7 }
 0x793   : > { %v4880_v45 = vsel %vm1104_vm9, %v4848_v2, %v11111_v12  ;;  %v4817_v12 = vsel %vm1086_vm7, %v4785_v57, %v13667_v46 }
 0x794   : > { %v4912_v43 = vsel %vm1113_vm11, %v4880_v45, %v4602_v63  ;;  %v4849_v11 = vsel %vm1095_vm8, %v4817_v12, %v11019_v14  ;;  %v4606_v14 = vpop.permute.xlu2 %4605  ;;  %v13675_v63 = vld [vmem:[#allocation49_spill] sm:$0xff]  ;;  %v4692_v45 = vsel %vm380_vm0, %v7927_v55, %v13677_v56  ;;  %v7928_v12 = vld [vmem:[#allocation4 + $0xa8] sm:$0xff] }
 0x795   : > { %v4881_v24 = vsel %vm1104_vm9, %v4849_v11, %v11108_v1  ;;  %v4755_v2 = vsel %vm1068_vm5, %v4723_v21, %v13675_v63  ;;  %v5253_v21 = vld [vmem:[#allocation4 + $0x1] sm:$0xff] }
 0x796   : > { %v4913_v39 = vsel %vm1113_vm11, %v4881_v24, %v4604_v59  ;;  %v13683_v59 = vld [vmem:[#allocation63_spill] sm:$0xff]  ;;  %5541 = vrot.lane.b32.xlu2 %v5253_v21, %s7967_s19 }
 0x797   : > { %v4693_v11 = vsel %vm380_vm0, %v7928_v12, %v13683_v59  ;;  %v13684_v24 = vld [vmem:[#allocation67_spill] sm:$0xff] }
 0x799   : > { %7234 = vmatmul.msk.f32.gmra.mxu3 %vm13652_vm13, %v4910_v9  ;;  %v13666_v9 = vld [vmem:[#allocation18_spill] sm:$0xff]  ;;  %vm13698_vm13 = vmmov %vm13620_vm1 }
 0x79a   : > { %v4690_v33 = vsel %vm380_vm0, %v7925_v50, %v13666_v9 }
 0x79b   : > { %v4722_v13 = vsel %vm402_vm2, %v4690_v33, %v13668_v37  ;;  %v13682_v33 = vld [vmem:[#allocation61_spill] sm:$0xff]  ;;  %v4610_v37 = vpop.permute.xlu1 %4609 }
 0x79c   : > { %v4754_v26 = vsel %vm1068_vm5, %v4722_v13, %v13669_v58 }
 0x79d   : > { %v4786_v40 = vsel %vm1077_vm6, %v4754_v26, %v13670_v36  ;;  %v13686_v36 = vld [vmem:[#allocation70_spill] sm:$0xff] }
 0x7a1   : > { %7235 = vmatmul.msk.f32.gmra.mxu3 %vm13656_vm14, %v4911_v61  ;;  %v13671_v61 = vld [vmem:[#allocation60_spill] sm:$0xff]  ;;  %vm13703_vm14 = vmmov %vm13620_vm1 }
 0x7a2   : > { %v4818_v28 = vsel %vm1086_vm7, %v4786_v40, %v13671_v61  ;;  %v13688_v61 = vld [vmem:[#allocation75_spill] sm:$0xff] }
 0x7a3   : > { %v4850_v1 = vsel %vm1095_vm8, %v4818_v28, %v11015_v16  ;;  %v4787_v16 = vsel %vm1077_vm6, %v4755_v2, %v13676_v47  ;;  %v13693_v2 = vld [vmem:[#allocation68_spill] sm:$0xff]  ;;  %v4616_v12 = vpop.permute.xlu1 %4615 }
 0x7a4   : > { %v4882_v42 = vsel %vm1104_vm9, %v4850_v1, %v11122_v49  ;;  %v4819_v49 = vsel %vm1086_vm7, %v4787_v16, %v13678_v29  ;;  %v13694_v47 = vld [vmem:[#allocation76_spill] sm:$0xff] }
 0x7a5   : > { %v4914_v22 = vsel %vm1113_vm11, %v4882_v42, %v4606_v14  ;;  %v4851_v4 = vsel %vm1095_vm8, %v4819_v49, %v10993_v23  ;;  %v13689_v14 = vld [vmem:[#allocation71_spill] sm:$0xff]  ;;  %v13695_v29 = vld [vmem:[#allocation56_spill] sm:$0xff] }
 0x7a6   : > { %v4883_v50 = vsel %vm1104_vm9, %v4851_v4, %v11118_v41 }
 0x7a7   : > { %v4915_v9 = vsel %vm1113_vm11, %v4883_v50, %v4608_v0 }
 0x7a9   : > { %7236 = vmatmul.msk.f32.gmra.mxu3 %vm13664_vm15, %v4912_v43  ;;  %v13679_v43 = vld [vmem:[#allocation55_spill] sm:$0xff]  ;;  %vm13707_vm15 = vmmov %vm13620_vm1 }
 0x7aa   : > { %v4724_v8 = vsel %vm402_vm2, %v4692_v45, %v13679_v43  ;;  %v7930_v45 = vld [vmem:[#allocation4 + $0xc0] sm:$0xff]  ;;  %v13696_v43 = vld [vmem:[#allocation73_spill] sm:$0xff] }
 0x7ab   : > { %v4756_v57 = vsel %vm1068_vm5, %v4724_v8, %v13680_v32  ;;  %v4695_v49 = vsel %vm380_vm0, %v7930_v45, %v13695_v29  ;;  %v13697_v32 = vld [vmem:[#allocation81_spill] sm:$0xff]  ;;  %v13712_v29 = vld [vmem:[#allocation96_spill] sm:$0xff] }
 0x7ac   : > { %v4788_v46 = vsel %vm1077_vm6, %v4756_v57, %v13682_v33  ;;  %v4727_v8 = vsel %vm402_vm2, %v4695_v49, %v13696_v43  ;;  %v13700_v33 = vld [vmem:[#allocation78_spill] sm:$0xff]  ;;  %v13714_v43 = vld [vmem:[#allocation139_spill] sm:$0xff] }
 0x7ad   : > { %v4820_v23 = vsel %vm1086_vm7, %v4788_v46, %v13684_v24  ;;  %v4759_v57 = vsel %vm1068_vm5, %v4727_v8, %v13697_v32  ;;  %v13701_v24 = vld [vmem:[#allocation65_spill] sm:$0xff] }
 0x7ae   : > { %v4852_v13 = vsel %vm1095_vm8, %v4820_v23, %v11031_v3  ;;  %v4612_v3 = vpop.permute.xlu2 %4611 }
 0x7af   : > { %v4884_v41 = vsel %vm1104_vm9, %v4852_v13, %v11120_v62  ;;  %v13702_v13 = vld [vmem:[#allocation85_spill] sm:$0xff] }
 0x7b0   : > { %v4916_v26 = vsel %vm1113_vm11, %v4884_v41, %v4610_v37 }
 0x7b1   : > { %7237 = vmatmul.msk.f32.gmra.mxu3 %vm13620_vm1, %v4913_v39  ;;  %v13685_v39 = vld [vmem:[#allocation62_spill] sm:$0xff] }
 0x7b2   : > { %v4725_v58 = vsel %vm402_vm2, %v4693_v11, %v13685_v39  ;;  %v13704_v39 = vld [vmem:[#allocation87_spill] sm:$0xff] }
 0x7b3   : > { %v4757_v40 = vsel %vm1068_vm5, %v4725_v58, %v13686_v36 }
 0x7b4   : > { %v4789_v28 = vsel %vm1077_vm6, %v4757_v40, %v13688_v61  ;;  %v7932_v61 = vld [vmem:[#allocation4 + $0xd8] sm:$0xff] }
 0x7b5   : > { %v4821_v1 = vsel %vm1086_vm7, %v4789_v28, %v13689_v14  ;;  %v13705_v28 = vld [vmem:[#allocation79_spill] sm:$0xff] }
 0x7b6   : > { %v4853_v62 = vsel %vm1095_vm8, %v4821_v1, %v11027_v20  ;;  %v4697_v14 = vsel %vm380_vm0, %v7932_v61, %v13705_v28  ;;  %v7935_v61 = vld [vmem:[#allocation4 + $0xf8] sm:$0xff]  ;;  %v13724_v28 = vld [vmem:[#allocation91_spill] sm:$0xff] }
 0x7b7   : > { %v4885_v42 = vsel %vm1104_vm9, %v4853_v62, %v11130_v51  ;;  %v4614_v51 = vpop.permute.xlu0 %4613  ;;  %v13706_v62 = vld [vmem:[#allocation84_spill] sm:$0xff] }
 0x7b8   : > { %v4917_v17 = vsel %vm1113_vm11, %v4885_v42, %v4612_v3  ;;  %v4729_v30 = vsel %vm402_vm2, %v4697_v14, %v13706_v62  ;;  %v4700_v14 = vsel %vm380_vm0, %v7935_v61, %v13724_v28  ;;  %v13746_v28 = vld [vmem:[#allocation137_spill] sm:$0xff] }
 0x7b9   : > { %7238 = vmatmul.msk.f32.gmra.mxu3 %vm13674_vm3, %v4914_v22  ;;  %v13692_v22 = vld [vmem:[#allocation66_spill] sm:$0xff]  ;;  %vm13718_vm3 = vmmov %vm13620_vm1 }
 0x7ba   : > { %v4726_v63 = vsel %vm402_vm2, %v4694_v54, %v13692_v22  ;;  %v13709_v54 = vld [vmem:[#allocation88_spill] sm:$0xff] }
 0x7bb   : > { %v4758_v20 = vsel %vm1068_vm5, %v4726_v63, %v13693_v2  ;;  %v7933_v2 = vld [vmem:[#allocation4 + $0xe0] sm:$0xff] }
 0x7bc   : > { %v4790_v16 = vsel %vm1077_vm6, %v4758_v20, %v13694_v47  ;;  %v13710_v20 = vld [vmem:[#allocation77_spill] sm:$0xff] }
 0x7bd   : > { %v4822_v55 = vsel %vm1086_vm7, %v4790_v16, %v10916_v53  ;;  %v5254_v53 = vld [vmem:[#allocation4 + $0x9] sm:$0xff]  ;;  %v4698_v47 = vsel %vm380_vm0, %v7933_v2, %v13710_v20 }
 0x7be   : > { %v4854_v56 = vsel %vm1095_vm8, %v4822_v55, %v11005_v52  ;;  %5543 = vrot.lane.b32.xlu0 %v5254_v53, %s7967_s19  ;;  %v13699_v52 = vld [vmem:[#allocation74_spill] sm:$0xff] }
 0x7bf   : > { %v4886_v0 = vsel %vm1104_vm9, %v4854_v56, %v11128_v34  ;;  %v4791_v50 = vsel %vm1077_vm6, %v4759_v57, %v13699_v52  ;;  %v4620_v21 = vpop.permute.xlu0 %4619  ;;  %v13715_v57 = vld [vmem:[#allocation153_spill] sm:$0xff] }
 0x7c0   : > { %v4918_v4 = vsel %vm1113_vm11, %v4886_v0, %v4614_v51  ;;  %v4823_v46 = vsel %vm1086_vm7, %v4791_v50, %v10924_v18  ;;  %v11484_v18 = vld [vmem:[%s13247_s7] ss:$0 sm:$0xff]  ;;  %v13711_v51 = vld [vmem:[#allocation82_spill] sm:$0xff] }
 0x7c1   : > { %7239 = vmatmul.msk.f32.gmra.mxu3 %vm13681_vm4, %v4915_v9  ;;  %v7931_v9 = vld [vmem:[#allocation4 + $0xc8] sm:$0xff]  ;;  %v4855_v59 = vsel %vm1095_vm8, %v4823_v46, %v11041_v6  ;;  %v4730_v56 = vsel %vm402_vm2, %v4698_v47, %v13711_v51  ;;  %v7934_v52 = vld [vmem:[#allocation4 + $0xf0] sm:$0xff]  ;;  %v13716_v50 = vld [vmem:[#allocation90_spill] sm:$0xff] }
 0x7c2   : > { %v4696_v34 = vsel %vm380_vm0, %v7931_v9, %v13700_v33  ;;  %v4887_v11 = vsel %vm1104_vm9, %v4855_v59, %v11138_v31  ;;  %v4762_v49 = vsel %vm1068_vm5, %v4730_v56, %v13712_v29  ;;  %v4699_v9 = vsel %vm380_vm0, %v7934_v52, %v13716_v50  ;;  %v13717_v33 = vld [vmem:[#allocation163_spill] sm:$0xff]  ;;  %vm13726_vm4 = vmmov %vm13620_vm1  ;;  %v13731_v47 = vld [vmem:[#allocation150_spill] sm:$0xff] }
 0x7c3   : > { %v4728_v23 = vsel %vm402_vm2, %v4696_v34, %v13701_v24  ;;  %v4919_v37 = vsel %vm1113_vm11, %v4887_v11, %v4616_v12  ;;  %v13719_v11 = vld [vmem:[#allocation83_spill] sm:$0xff]  ;;  %v13732_v51 = vld [vmem:[#allocation89_spill] sm:$0xff]  ;;  %v13738_v50 = vld [vmem:[#allocation102_spill] sm:$0xff] }
 0x7c4   : > { %v4760_v41 = vsel %vm1068_vm5, %v4728_v23, %v13702_v13  ;;  %v4731_v24 = vsel %vm402_vm2, %v4699_v9, %v13719_v11  ;;  %v13720_v23 = vld [vmem:[#allocation94_spill] sm:$0xff]  ;;  %v13721_v13 = vld [vmem:[#allocation99_spill] sm:$0xff]  ;;  %v7937_v52 = vld [vmem:[#allocation4 + $0x110] sm:$0xff] }
 0x7c5   : > { %v4792_v6 = vsel %vm1077_vm6, %v4760_v41, %v13704_v39  ;;  %v4702_v9 = vsel %vm380_vm0, %v7937_v52, %v13738_v50  ;;  %v13740_v11 = vld [vmem:[#allocation156_spill] sm:$0xff] }
 0x7c6   : > { %v4824_v31 = vsel %vm1086_vm7, %v4792_v6, %v10890_v38  ;;  %v13708_v38 = vld [vmem:[#allocation80_spill] sm:$0xff] }
 0x7c7   : > { %v4856_v40 = vsel %vm1095_vm8, %v4824_v31, %v11039_v48  ;;  %v4761_v48 = vsel %vm1068_vm5, %v4729_v30, %v13708_v38  ;;  %v13722_v6 = vld [vmem:[#allocation136_spill] sm:$0xff]  ;;  %v13727_v38 = vld [vmem:[#allocation93_spill] sm:$0xff]  ;;  %v4626_v2 = vpop.permute.xlu0 %4625 }
 0x7c8   : > { %v4888_v1 = vsel %vm1104_vm9, %v4856_v40, %v11154_v44  ;;  %v4793_v42 = vsel %vm1077_vm6, %v4761_v48, %v13709_v54  ;;  %v4732_v48 = vsel %vm402_vm2, %v4700_v14, %v13727_v38  ;;  %v13728_v54 = vld [vmem:[#allocation95_spill] sm:$0xff] }
 0x7c9   : > { %7240 = vmatmul.msk.f32.gmra.mxu3 %vm13687_vm10, %v4916_v26  ;;  %v4618_v26 = vpop.permute.xlu2 %4617  ;;  %v4825_v44 = vsel %vm1086_vm7, %v4793_v42, %v10940_v15  ;;  %v4764_v42 = vsel %vm1068_vm5, %v4732_v48, %v13728_v54  ;;  %vm13736_vm10 = vmmov %vm13620_vm1  ;;  %v7938_v38 = vld [vmem:[#allocation4 + $0x120] sm:$0xff] }
 0x7ca   : > { %v4920_v7 = vsel %vm1113_vm11, %v4888_v1, %v4618_v26  ;;  %v4857_v63 = vsel %vm1095_vm8, %v4825_v44, %v11017_v35  ;;  %v13713_v35 = vld [vmem:[#allocation86_spill] sm:$0xff]  ;;  %v13725_v1 = vld [vmem:[#allocation165_spill] sm:$0xff]  ;;  %v13748_v48 = vld [vmem:[#allocation103_spill] sm:$0xff] }
 0x7cb   : > { %v4889_v16 = vsel %vm1104_vm9, %v4857_v63, %v11152_v60  ;;  %v4794_v60 = vsel %vm1077_vm6, %v4762_v49, %v13713_v35  ;;  %v13734_v35 = vld [vmem:[#allocation97_spill] sm:$0xff]  ;;  %v4703_v54 = vsel %vm380_vm0, %v7938_v38, %v13748_v48 }
 0x7cc   : > { %v4921_v15 = vsel %vm1113_vm11, %v4889_v16, %v4620_v21  ;;  %v4826_v8 = vsel %vm1086_vm7, %v4794_v60, %v13714_v43 }
 0x7cd   : > { %v4858_v53 = vsel %vm1095_vm8, %v4826_v8, %v13715_v57  ;;  %v13735_v8 = vld [vmem:[#allocation105_spill] sm:$0xff] }
 0x7ce   : > { %v4890_v34 = vsel %vm1104_vm9, %v4858_v53, %v13717_v33  ;;  %v13739_v33 = vld [vmem:[#allocation141_spill] sm:$0xff] }
 0x7d1   : > { %7241 = vmatmul.msk.f32.gmra.mxu3 %vm13691_vm12, %v4917_v17  ;;  %v4624_v31 = vpop.permute.xlu2 %4623  ;;  %vm13744_vm12 = vmmov %vm13620_vm1 }
 0x7d9   : > { %7242 = vmatmul.msk.f32.gmra.mxu3 %vm13698_vm13, %v4918_v4  ;;  %v4622_v4 = vpop.permute.xlu1 %4621  ;;  %vm13750_vm13 = vmmov %vm13620_vm1 }
 0x7da   : > { %v4922_v59 = vsel %vm1113_vm11, %v4890_v34, %v4622_v4 }
 0x7e1   : > { %7243 = vmatmul.msk.f32.gmra.mxu3 %vm13703_vm14, %v4919_v37  ;;  %v4763_v37 = vsel %vm1068_vm5, %v4731_v24, %v13720_v23  ;;  %v13741_v23 = vld [vmem:[#allocation166_spill] sm:$0xff]  ;;  %vm13759_vm14 = vmmov %vm13620_vm1 }
 0x7e2   : > { %v4795_v41 = vsel %vm1077_vm6, %v4763_v37, %v13721_v13 }
 0x7e4   : > { %v5061_v58 = vpop.f32.mrf.mxu3 }
 0x7e5   : > { %v5062_v36 = vadd.f32 %v11484_v18, %v5061_v58  ;;  %v4827_v58 = vsel %vm1086_vm7, %v4795_v41, %v13722_v6  ;;  %v13742_v41 = vld [vmem:[#allocation92_spill] sm:$0xff] }
 0x7e7   : > { %v5157_v3 = vmax.f32 %v5062_v36, 0.0  ;;  %v13723_v36 = vld [vmem:[#allocation152_spill] sm:$0xff] }
 0x7e8   : > { %v4859_v40 = vsel %vm1095_vm8, %v4827_v58, %v13723_v36  ;;  %v13745_v36 = vld [vmem:[#allocation111_spill] sm:$0xff] }
 0x7e9   : > { %5189 = vst.msk [vmem:[#allocation4 + $0x19] sm:$0xff] %vm380_vm0, %v5157_v3  ;;  %7244 = vmatmul.msk.f32.gmra.mxu3 %vm13707_vm15, %v4920_v7  ;;  %v4891_v3 = vsel %vm1104_vm9, %v4859_v40, %v13725_v1  ;;  %v4630_v1 = vpop.permute.xlu2 %4629  ;;  %vm13765_vm15 = vmmov %vm13620_vm1 }
 0x7ea   : > { %v4923_v7 = vsel %vm1113_vm11, %v4891_v3, %v4624_v31  ;;  %v13743_v31 = vld [vmem:[#allocation109_spill] sm:$0xff] }
 0x7ec   : > { %v5064_v17 = vpop.f32.mrf.mxu3 }
 0x7ed   : > { %v5065_v22 = vadd.f32 %v11484_v18, %v5064_v17  ;;  %v13729_v17 = vld [vmem:[#allocation100_spill] sm:$0xff] }
 0x7ee   : > { %v4796_v44 = vsel %vm1077_vm6, %v4764_v42, %v13729_v17 }
 0x7ef   : > { %v5158_v55 = vmax.f32 %v5065_v22, 0.0  ;;  %v13730_v22 = vld [vmem:[#allocation143_spill] sm:$0xff] }
 0x7f0   : > { %v11517_v45 = vld [vmem:[#allocation4 + $0x19] sm:$0xff]  ;;  %v4828_v63 = vsel %vm1086_vm7, %v4796_v44, %v13730_v22  ;;  %v13749_v44 = vld [vmem:[#allocation108_spill] sm:$0xff] }
 0x7f1   : > { %5190 = vst.msk [vmem:[#allocation4 + $0x21] sm:$0xff] %vm380_vm0, %v5158_v55  ;;  %5545 = vrot.lane.b32.xlu1 %v11517_v45, %s7967_s19  ;;  %7245 = vmatmul.msk.f32.gmra.mxu3 %vm13620_vm1, %v4921_v15  ;;  %v4860_v16 = vsel %vm1095_vm8, %v4828_v63, %v13731_v47  ;;  %v7936_v55 = vld [vmem:[#allocation4 + $0x108] sm:$0xff] }
 0x7f2   : > { %v4701_v56 = vsel %vm380_vm0, %v7936_v55, %v13732_v51  ;;  %v13733_v15 = vld [vmem:[#allocation164_spill] sm:$0xff]  ;;  %v13753_v55 = vld [vmem:[#allocation145_spill] sm:$0xff] }
 0x7f3   : > { %v4892_v29 = vsel %vm1104_vm9, %v4860_v16, %v13733_v15  ;;  %v4733_v60 = vsel %vm402_vm2, %v4701_v56, %v13734_v35  ;;  %v13752_v47 = vld [vmem:[#allocation112_spill] sm:$0xff]  ;;  %v4632_v56 = vpop.permute.xlu0 %4631 }
 0x7f4   : > { %v5067_v0 = vpop.f32.mrf.mxu3  ;;  %v4924_v43 = vsel %vm1113_vm11, %v4892_v29, %v4626_v2  ;;  %v4765_v4 = vsel %vm1068_vm5, %v4733_v60, %v13735_v8  ;;  %v13751_v2 = vld [vmem:[#allocation104_spill] sm:$0xff]  ;;  %v13754_v29 = vld [vmem:[#allocation151_spill] sm:$0xff]  ;;  %v13755_v60 = vld [vmem:[#allocation101_spill] sm:$0xff] }
 0x7f5   : > { %v5068_v32 = vadd.f32 %v11484_v18, %v5067_v0  ;;  %v7939_v35 = vld [vmem:[#allocation4 + $0x128] sm:$0xff]  ;;  %v13756_v8 = vld [vmem:[#allocation167_spill] sm:$0xff] }
 0x7f7   : > { %v5159_v46 = vmax.f32 %v5068_v32, 0.0  ;;  %v13737_v32 = vld [vmem:[#allocation98_spill] sm:$0xff] }
 0x7f8   : > { %v11537_v12 = vld [vmem:[#allocation4 + $0x21] sm:$0xff]  ;;  %v4797_v57 = vsel %vm1077_vm6, %v4765_v4, %v13737_v32 }
 0x7f9   : > { %5191 = vst.msk [vmem:[#allocation4 + $0x31] sm:$0xff] %vm380_vm0, %v5159_v46  ;;  %5547 = vrot.lane.b32.xlu2 %v11537_v12, %s7967_s19  ;;  %7246 = vmatmul.msk.f32.gmra.mxu3 %vm13718_vm3, %v4922_v59  ;;  %v4829_v34 = vsel %vm1086_vm7, %v4797_v57, %v13739_v33  ;;  %v4628_v46 = vpop.permute.xlu1 %4627  ;;  %v13757_v57 = vld [vmem:[#allocation106_spill] sm:$0xff]  ;;  %vm13782_vm3 = vmmov %vm13620_vm1 }
 0x7fa   : > { %v4861_v24 = vsel %vm1095_vm8, %v4829_v34, %v13740_v11  ;;  %v13760_v34 = vld [vmem:[#allocation110_spill] sm:$0xff]  ;;  %v13761_v11 = vld [vmem:[#allocation144_spill] sm:$0xff] }
 0x7fb   : > { %v4893_v37 = vsel %vm1104_vm9, %v4861_v24, %v13741_v23 }
 0x7fc   : > { %v5070_v39 = vpop.f32.mrf.mxu3  ;;  %v4925_v6 = vsel %vm1113_vm11, %v4893_v37, %v4628_v46 }
 0x7fd   : > { %v5071_v26 = vadd.f32 %v11484_v18, %v5070_v39  ;;  %v4734_v39 = vsel %vm402_vm2, %v4702_v9, %v13742_v41  ;;  %v13758_v9 = vld [vmem:[#allocation120_spill] sm:$0xff] }
 0x7ff   : > { %v5160_v62 = vmax.f32 %v5071_v26, 0.0  ;;  %v4766_v26 = vsel %vm1068_vm5, %v4734_v39, %v13743_v31  ;;  %v7940_v39 = vld [vmem:[#allocation4 + $0x138] sm:$0xff] }
 0x800   : > { %v11559_v30 = vld [vmem:[#allocation4 + $0x31] sm:$0xff]  ;;  %v4798_v40 = vsel %vm1077_vm6, %v4766_v26, %v13745_v36  ;;  %v13764_v26 = vld [vmem:[#allocation168_spill] sm:$0xff] }
 0x801   : > { %5192 = vst.msk [vmem:[#allocation4 + $0x39] sm:$0xff] %vm380_vm0, %v5160_v62  ;;  %5549 = vrot.lane.b32.xlu0 %v11559_v30, %s7967_s19  ;;  %7247 = vmatmul.msk.f32.gmra.mxu3 %vm13726_vm4, %v4923_v7  ;;  %v4830_v14 = vsel %vm1086_vm7, %v4798_v40, %v13746_v28  ;;  %v13747_v62 = vld [vmem:[#allocation155_spill] sm:$0xff]  ;;  %v4634_v23 = vpop.permute.xlu1 %4633  ;;  %vm13789_vm4 = vmmov %vm13620_vm1 }
 0x802   : > { %v4862_v7 = vsel %vm1095_vm8, %v4830_v14, %v13747_v62  ;;  %v13766_v14 = vld [vmem:[#allocation107_spill] sm:$0xff] }
 0x803   : > { %v4894_v42 = vsel %vm1104_vm9, %v4862_v7, %v11185_v5  ;;  %v13768_v7 = vld [vmem:[#allocation123_spill] sm:$0xff] }
 0x804   : > { %v5073_v21 = vpop.f32.mrf.mxu3  ;;  %v4926_v22 = vsel %vm1113_vm11, %v4894_v42, %v4630_v1 }
 0x805   : > { %v5074_v20 = vadd.f32 %v11484_v18, %v5073_v21  ;;  %v4735_v21 = vsel %vm402_vm2, %v4703_v54, %v13749_v44  ;;  %v13769_v54 = vld [vmem:[#allocation140_spill] sm:$0xff] }
 0x807   : > { %v5161_v49 = vmax.f32 %v5074_v20, 0.0  ;;  %v4767_v20 = vsel %vm1068_vm5, %v4735_v21, %v13751_v2  ;;  %v13770_v21 = vld [vmem:[#allocation158_spill] sm:$0xff]  ;;  %v7941_v2 = vld [vmem:[#allocation4 + $0x140] sm:$0xff] }
 0x808   : > { %v11583_v0 = vld [vmem:[#allocation4 + $0x39] sm:$0xff]  ;;  %v4799_v5 = vsel %vm1077_vm6, %v4767_v20, %v13752_v47 }
 0x809   : > { %5193 = vst.msk [vmem:[#allocation4 + $0x49] sm:$0xff] %vm380_vm0, %v5161_v49  ;;  %5551 = vrot.lane.b32.xlu1 %v11583_v0, %s7967_s19  ;;  %7248 = vmatmul.msk.f32.gmra.mxu3 %vm13736_vm10, %v4924_v43  ;;  %v4831_v51 = vsel %vm1086_vm7, %v4799_v5, %v13753_v55  ;;  %v4704_v43 = vsel %vm380_vm0, %v7939_v35, %v13755_v60  ;;  %v13771_v20 = vld [vmem:[#allocation115_spill] sm:$0xff]  ;;  %v13772_v5 = vld [vmem:[#allocation169_spill] sm:$0xff]  ;;  %v13775_v60 = vld [vmem:[#allocation124_spill] sm:$0xff] }
 0x80a   : > { %v4863_v49 = vsel %vm1095_vm8, %v4831_v51, %v13754_v29  ;;  %v4706_v47 = vsel %vm380_vm0, %v7941_v2, %v13771_v20  ;;  %v13788_v2 = vld [vmem:[#allocation132_spill] sm:$0xff]  ;;  %vm13795_vm10 = vmmov %vm13620_vm1 }
 0x80b   : > { %v4895_v4 = vsel %vm1104_vm9, %v4863_v49, %v13756_v8  ;;  %v13774_v49 = vld [vmem:[#allocation119_spill] sm:$0xff] }
 0x80c   : > { %v5076_v53 = vpop.f32.mrf.mxu3  ;;  %v4927_v52 = vsel %vm1113_vm11, %v4895_v4, %v4632_v56  ;;  %v13776_v4 = vld [vmem:[#allocation147_spill] sm:$0xff] }
 0x80d   : > { %v5077_v59 = vadd.f32 %v11484_v18, %v5076_v53  ;;  %v4736_v53 = vsel %vm402_vm2, %v4704_v43, %v13757_v57  ;;  %v4638_v57 = vpop.permute.xlu0 %4637 }
 0x80e   : > { %v4768_v33 = vsel %vm1068_vm5, %v4736_v53, %v13758_v9 }
 0x80f   : > { %v5162_v13 = vmax.f32 %v5077_v59, 0.0  ;;  %v4800_v46 = vsel %vm1077_vm6, %v4768_v33, %v13760_v34  ;;  %v7942_v33 = vld [vmem:[#allocation4 + $0x150] sm:$0xff] }
 0x810   : > { %v11606_v58 = vld [vmem:[#allocation4 + $0x49] sm:$0xff]  ;;  %v4832_v24 = vsel %vm1086_vm7, %v4800_v46, %v13761_v11 }
 0x811   : > { %5194 = vst.msk [vmem:[#allocation4 + $0x51] sm:$0xff] %vm380_vm0, %v5162_v13  ;;  %5553 = vrot.lane.b32.xlu2 %v11606_v58, %s7967_s19  ;;  %7249 = vmatmul.msk.f32.gmra.mxu3 %vm13744_vm12, %v4925_v6  ;;  %v13762_v13 = vld [vmem:[#allocation159_spill] sm:$0xff]  ;;  %v13763_v6 = vld [vmem:[#allocation114_spill] sm:$0xff]  ;;  %v13778_v34 = vld [vmem:[#allocation113_spill] sm:$0xff] }
 0x812   : > { %v4864_v41 = vsel %vm1095_vm8, %v4832_v24, %v13762_v13  ;;  %v4705_v31 = vsel %vm380_vm0, %v7940_v39, %v13763_v6  ;;  %v4707_v46 = vsel %vm380_vm0, %v7942_v33, %v13778_v34  ;;  %v13781_v39 = vld [vmem:[#allocation129_spill] sm:$0xff]  ;;  %v13797_v34 = vld [vmem:[#allocation135_spill] sm:$0xff]  ;;  %vm13803_vm12 = vmmov %vm13620_vm1 }
 0x813   : > { %v4896_v36 = vsel %vm1104_vm9, %v4864_v41, %v13764_v26  ;;  %v4737_v1 = vsel %vm402_vm2, %v4705_v31, %v13766_v14  ;;  %v13783_v31 = vld [vmem:[#allocation122_spill] sm:$0xff] }
 0x814   : > { %v5079_v61 = vpop.f32.mrf.mxu3 }
 0x815   : > { %v5080_v3 = vadd.f32 %v11484_v18, %v5079_v61  ;;  %v4928_v61 = vsel %vm1113_vm11, %v4896_v36, %v4634_v23  ;;  %v13780_v23 = vld [vmem:[#allocation121_spill] sm:$0xff] }
 0x817   : > { %v5163_v17 = vmax.f32 %v5080_v3, 0.0  ;;  %v13767_v3 = vld [vmem:[#allocation118_spill] sm:$0xff] }
 0x818   : > { %v11628_v63 = vld [vmem:[#allocation4 + $0x51] sm:$0xff]  ;;  %v4769_v62 = vsel %vm1068_vm5, %v4737_v1, %v13767_v3 }
 0x819   : > { %5195 = vst.msk [vmem:[#allocation4 + $0x61] sm:$0xff] %vm380_vm0, %v5163_v17  ;;  %5555 = vrot.lane.b32.xlu0 %v11628_v63, %s7967_s19  ;;  %7250 = vmatmul.msk.f32.gmra.mxu3 %vm13750_vm13, %v4926_v22  ;;  %v4801_v38 = vsel %vm1077_vm6, %v4769_v62, %v13768_v7  ;;  %v4636_v17 = vpop.permute.xlu2 %4635  ;;  %v13785_v1 = vld [vmem:[#allocation146_spill] sm:$0xff]  ;;  %v4640_v62 = vpop.permute.xlu1 %4639  ;;  %vm13807_vm13 = vmmov %vm13620_vm1 }
 0x81a   : > { %v4833_v42 = vsel %vm1086_vm7, %v4801_v38, %v13769_v54  ;;  %v13786_v38 = vld [vmem:[#allocation161_spill] sm:$0xff] }
 0x81b   : > { %v4865_v22 = vsel %vm1095_vm8, %v4833_v42, %v13770_v21 }
 0x81c   : > { %v5082_v16 = vpop.f32.mrf.mxu3 }
 0x81d   : > { %v5083_v15 = vadd.f32 %v11484_v18, %v5082_v16  ;;  %v4897_v16 = vsel %vm1104_vm9, %v4865_v22, %v13772_v5 }
 0x81e   : > { %v4929_v51 = vsel %vm1113_vm11, %v4897_v16, %v4636_v17  ;;  %v13787_v17 = vld [vmem:[#allocation116_spill] sm:$0xff]  ;;  %v13791_v16 = vld [vmem:[#allocation142_spill] sm:$0xff] }
 0x81f   : > { %v5164_v32 = vmax.f32 %v5083_v15, 0.0  ;;  %v13773_v15 = vld [vmem:[#allocation117_spill] sm:$0xff] }
 0x820   : > { %v11650_v50 = vld [vmem:[#allocation4 + $0x61] sm:$0xff]  ;;  %v4738_v29 = vsel %vm402_vm2, %v4706_v47, %v13773_v15  ;;  %v13790_v47 = vld [vmem:[#allocation134_spill] sm:$0xff] }
 0x821   : > { %5196 = vst.msk [vmem:[#allocation4 + $0x69] sm:$0xff] %vm380_vm0, %v5164_v32  ;;  %5557 = vrot.lane.b32.xlu1 %v11650_v50, %s7967_s19  ;;  %7251 = vmatmul.msk.f32.gmra.mxu3 %vm13759_vm14, %v4927_v52  ;;  %v4770_v35 = vsel %vm1068_vm5, %v4738_v29, %v13774_v49  ;;  %v13777_v52 = vld [vmem:[#allocation154_spill] sm:$0xff]  ;;  %v13792_v29 = vld [vmem:[#allocation160_spill] sm:$0xff]  ;;  %vm13952_vm14 = vmmov %vm13620_vm1 }
 0x822   : > { %v4802_v43 = vsel %vm1077_vm6, %v4770_v35, %v13775_v60  ;;  %v7944_v35 = vld [vmem:[#allocation4 + $0x168] sm:$0xff]  ;;  %v13793_v60 = vld [vmem:[#allocation127_spill] sm:$0xff] }
 0x823   : > { %v4834_v32 = vsel %vm1086_vm7, %v4802_v43, %v13776_v4  ;;  %v4709_v43 = vsel %vm380_vm0, %v7944_v35, %v13793_v60 }
 0x824   : > { %v5085_v59 = vpop.f32.mrf.mxu3  ;;  %v4866_v9 = vsel %vm1095_vm8, %v4834_v32, %v13777_v52  ;;  %v13794_v32 = vld [vmem:[#allocation131_spill] sm:$0xff] }
 0x825   : > { %v5086_v37 = vadd.f32 %v11484_v18, %v5085_v59  ;;  %v13779_v59 = vld [vmem:[#allocation170_spill] sm:$0xff] }
 0x826   : > { %v4898_v11 = vsel %vm1104_vm9, %v4866_v9, %v13779_v59  ;;  %v13796_v9 = vld [vmem:[#allocation128_spill] sm:$0xff]  ;;  %v13798_v59 = vld [vmem:[#allocation149_spill] sm:$0xff] }
 0x827   : > { %v5165_v40 = vmax.f32 %v5086_v37, 0.0  ;;  %v4739_v37 = vsel %vm402_vm2, %v4707_v46, %v13780_v23  ;;  %v4930_v13 = vsel %vm1113_vm11, %v4898_v11, %v4638_v57  ;;  %v4741_v57 = vsel %vm402_vm2, %v4709_v43, %v13794_v32 }
 0x828   : > { %v11670_v28 = vld [vmem:[#allocation4 + $0x69] sm:$0xff]  ;;  %v4771_v6 = vsel %vm1068_vm5, %v4739_v37, %v13781_v39  ;;  %v4773_v33 = vsel %vm1068_vm5, %v4741_v57, %v13796_v9 }
 0x829   : > { %5197 = vst.msk [vmem:[#allocation4 + $0x79] sm:$0xff] %vm380_vm0, %v5165_v40  ;;  %5559 = vrot.lane.b32.xlu2 %v11670_v28, %s7967_s19  ;;  %7252 = vmatmul.msk.f32.gmra.mxu3 %vm13765_vm15, %v4928_v61  ;;  %v4803_v26 = vsel %vm1077_vm6, %v4771_v6, %v13783_v31  ;;  %v7943_v40 = vld [vmem:[#allocation4 + $0x158] sm:$0xff]  ;;  %v13799_v37 = vld [vmem:[#allocation157_spill] sm:$0xff]  ;;  %vm13956_vm15 = vmmov %vm13620_vm1 }
 0x82a   : > { %v13784_v61 = vld [vmem:[#allocation126_spill] sm:$0xff]  ;;  %v4835_v3 = vsel %vm1086_vm7, %v4803_v26, %v13785_v1  ;;  %v7945_v39 = vld [vmem:[#allocation4 + $0x170] sm:$0xff] }
 0x82b   : > { %v4708_v14 = vsel %vm380_vm0, %v7943_v40, %v13784_v61  ;;  %v13800_v6 = vld [vmem:[#allocation125_spill] sm:$0xff]  ;;  %v13801_v40 = vld [vmem:[#allocation130_spill] sm:$0xff] }
 0x82c   : > { %v5088_v48 = vpop.f32.mrf.mxu3  ;;  %v4710_v31 = vsel %vm380_vm0, %v7945_v39, %v13800_v6 }
 0x82d   : > { %v5089_v44 = vadd.f32 %v11484_v18, %v5088_v48  ;;  %v4867_v48 = vsel %vm1095_vm8, %v4835_v3, %v13786_v38  ;;  %v4742_v61 = vsel %vm402_vm2, %v4710_v31, %v13801_v40  ;;  %v13802_v3 = vld [vmem:[#allocation138_spill] sm:$0xff] }
 0x82e   : > { %v4899_v54 = vsel %vm1104_vm9, %v4867_v48, %v11199_v25  ;;  %v13805_v48 = vld [vmem:[#allocation148_spill] sm:$0xff] }
 0x82f   : > { %v5166_v55 = vmax.f32 %v5089_v44, 0.0  ;;  %v4740_v44 = vsel %vm402_vm2, %v4708_v14, %v13787_v17  ;;  %v4931_v21 = vsel %vm1113_vm11, %v4899_v54, %v4640_v62  ;;  %v4774_v62 = vsel %vm1068_vm5, %v4742_v61, %v13802_v3 }
 0x830   : > { %v11692_v56 = vld [vmem:[#allocation4 + $0x79] sm:$0xff]  ;;  %v4772_v20 = vsel %vm1068_vm5, %v4740_v44, %v13788_v2 }
 0x831   : > { %5198 = vst.msk [vmem:[#allocation4 + $0x81] sm:$0xff] %vm380_vm0, %v5166_v55  ;;  %7253 = vmatmul.msk.f32.gmra.mxu3 %vm13620_vm1, %v4929_v51  ;;  %5561 = vrot.lane.b32.xlu0 %v11692_v56, %s7967_s19  ;;  %v4804_v25 = vsel %vm1077_vm6, %v4772_v20, %v13790_v47  ;;  %v4642_v51 = vpop.permute.xlu2 %4641  ;;  %v13806_v44 = vld [vmem:[#allocation162_spill] sm:$0xff] }
 0x832   : > { %v4836_v55 = vsel %vm1086_vm7, %v4804_v25, %v13791_v16 }
 0x833   : > { %v4868_v49 = vsel %vm1095_vm8, %v4836_v55, %v13792_v29 }
 0x834   : > { %v5091_v8 = vpop.f32.mrf.mxu3 }
 0x835   : > { %v5092_v53 = vadd.f32 %v11484_v18, %v5091_v8  ;;  %v4900_v8 = vsel %vm1104_vm9, %v4868_v49, %v11195_v19  ;;  %v4805_v19 = vsel %vm1077_vm6, %v4773_v33, %v13797_v34 }
 0x836   : > { %v4837_v11 = vsel %vm1086_vm7, %v4805_v19, %v13798_v59 }
 0x837   : > { %v5167_v24 = vmax.f32 %v5092_v53, 0.0  ;;  %v4932_v53 = vsel %vm1113_vm11, %v4900_v8, %v4642_v51 }
 0x838   : > { %v11716_v41 = vld [vmem:[#allocation4 + $0x81] sm:$0xff] }
 0x839   : > { %5199 = vst.msk [vmem:[#allocation4 + $0x91] sm:$0xff] %vm380_vm0, %v5167_v24  ;;  %7254 = vmatmul.msk.f32.gmra.mxu3 %vm13782_vm3, %v4930_v13  ;;  %5563 = vrot.lane.b32.xlu1 %v11716_v41, %s7967_s19  ;;  %v4644_v24 = vpop.permute.xlu0 %4643  ;;  %v4869_v13 = vsel %vm1095_vm8, %v4837_v11, %v13799_v37  ;;  %vm13962_vm3 = vmmov %vm13620_vm1 }
 0x83a   : > { %v4901_v26 = vsel %vm1104_vm9, %v4869_v13, %v11205_v27 }
 0x83b   : > { %v4933_v14 = vsel %vm1113_vm11, %v4901_v26, %v4644_v24 }
 0x83c   : > { %v5094_v36 = vpop.f32.mrf.mxu3 }
 0x83d   : > { %v5095_v7 = vadd.f32 %v11484_v18, %v5094_v36 }
 0x83f   : > { %v5168_v42 = vmax.f32 %v5095_v7, 0.0  ;;  %v13804_v7 = vld [vmem:[#allocation133_spill] sm:$0xff] }
 0x840   : > { %v11738_v22 = vld [vmem:[#allocation4 + $0x91] sm:$0xff]  ;;  %v4806_v27 = vsel %vm1077_vm6, %v4774_v62, %v13804_v7 }
 0x841   : > { %5200 = vst.msk [vmem:[#allocation4 + $0x99] sm:$0xff] %vm380_vm0, %v5168_v42  ;;  %7255 = vmatmul.msk.f32.gmra.mxu3 %vm13789_vm4, %v4931_v21  ;;  %5565 = vrot.lane.b32.xlu2 %v11738_v22, %s7967_s19  ;;  %v4838_v54 = vsel %vm1086_vm7, %v4806_v27, %v13805_v48  ;;  %v4646_v42 = vpop.permute.xlu1 %4645  ;;  %vm13967_vm4 = vmmov %vm13620_vm1 }
 0x842   : > { %v4870_v21 = vsel %vm1095_vm8, %v4838_v54, %v13806_v44 }
 0x843   : > { %v4902_v2 = vsel %vm1104_vm9, %v4870_v21, %v11223_v10 }
 0x844   : > { %v5097_v5 = vpop.f32.mrf.mxu3  ;;  %v4934_v47 = vsel %vm1113_vm11, %v4902_v2, %v4646_v42 }
 0x845   : > { %v5098_v15 = vadd.f32 %v11484_v18, %v5097_v5 }
 0x847   : > { %v5169_v4 = vmax.f32 %v5098_v15, 0.0 }
 0x848   : > { %v11760_v52 = vld [vmem:[#allocation4 + $0x99] sm:$0xff] }
 0x849   : > { %5201 = vst.msk [vmem:[#allocation4 + $0xa9] sm:$0xff] %vm380_vm0, %v5169_v4  ;;  %7256 = vmatmul.msk.f32.gmra.mxu3 %vm13795_vm10, %v4932_v53  ;;  %5567 = vrot.lane.b32.xlu0 %v11760_v52, %s7967_s19  ;;  %vm13972_vm10 = vmmov %vm13620_vm1 }
 0x84c   : > { %v5100_v46 = vpop.f32.mrf.mxu3 }
 0x84d   : > { %v5101_v23 = vadd.f32 %v11484_v18, %v5100_v46 }
 0x84f   : > { %v5170_v36 = vmax.f32 %v5101_v23, 0.0 }
 0x850   : > { %v11782_v1 = vld [vmem:[#allocation4 + $0xa9] sm:$0xff] }
 0x851   : > { %5202 = vst.msk [vmem:[#allocation4 + $0xb1] sm:$0xff] %vm380_vm0, %v5170_v36  ;;  %7257 = vmatmul.msk.f32.gmra.mxu3 %vm13803_vm12, %v4933_v14  ;;  %5569 = vrot.lane.b32.xlu1 %v11782_v1, %s7967_s19  ;;  %vm13977_vm12 = vmmov %vm13620_vm1 }
 0x854   : > { %v5103_v38 = vpop.f32.mrf.mxu3 }
 0x855   : > { %v5104_v17 = vadd.f32 %v11484_v18, %v5103_v38 }
 0x857   : > { %v5171_v20 = vmax.f32 %v5104_v17, 0.0 }
 0x858   : > { %v11800_v25 = vld [vmem:[#allocation4 + $0xb1] sm:$0xff] }
 0x859   : > { %5203 = vst.msk [vmem:[#allocation4 + $0xc1] sm:$0xff] %vm380_vm0, %v5171_v20  ;;  %7258 = vmatmul.msk.f32.gmra.mxu3 %vm13807_vm13, %v4934_v47  ;;  %5571 = vrot.lane.b32.xlu2 %v11800_v25, %s7967_s19  ;;  %vm13982_vm13 = vmmov %vm13620_vm1 }
 0x85c   : > { %v5106_v5 = vpop.f32.mrf.mxu3 }
 0x85d   : > { %v5107_v16 = vadd.f32 %v11484_v18, %v5106_v5 }
 0x85f   : > { %v5172_v55 = vmax.f32 %v5107_v16, 0.0 }
 0x860   : > { %v11807_v51 = vld [vmem:[#allocation4 + $0xc1] sm:$0xff] }
 0x861   : > { %5204 = vst.msk [vmem:[#allocation4 + $0xc9] sm:$0xff] %vm380_vm0, %v5172_v55  ;;  %5573 = vrot.lane.b32.xlu0 %v11807_v51, %s7967_s19 }
 0x864   : > { %v5109_v10 = vpop.f32.mrf.mxu3 }
 0x865   : > { %v5110_v15 = vadd.f32 %v11484_v18, %v5109_v10 }
 0x867   : > { %v5173_v29 = vmax.f32 %v5110_v15, 0.0 }
 0x868   : > { %v11813_v49 = vld [vmem:[#allocation4 + $0xc9] sm:$0xff] }
 0x869   : > { %5205 = vst.msk [vmem:[#allocation4 + $0xd9] sm:$0xff] %vm380_vm0, %v5173_v29  ;;  %5575 = vrot.lane.b32.xlu1 %v11813_v49, %s7967_s19 }
 0x86c   : > { %v5112_v35 = vpop.f32.mrf.mxu3 }
 0x86d   : > { %v5113_v60 = vadd.f32 %v11484_v18, %v5112_v35 }
 0x86f   : > { %v5174_v43 = vmax.f32 %v5113_v60, 0.0 }
 0x870   : > { %v11819_v8 = vld [vmem:[#allocation4 + $0xd9] sm:$0xff] }
 0x871   : > { %5206 = vst.msk [vmem:[#allocation4 + $0xe1] sm:$0xff] %vm380_vm0, %v5174_v43  ;;  %5577 = vrot.lane.b32.xlu2 %v11819_v8, %s7967_s19 }
 0x874   : > { %v5115_v4 = vpop.f32.mrf.mxu3 }
 0x875   : > { %v5116_v32 = vadd.f32 %v11484_v18, %v5115_v4  ;;  %v5285_v4 = vld [vmem:[#allocation4 + $0x2] sm:$0xff] }
 0x877   : > { %v5175_v57 = vmax.f32 %v5116_v32, 0.0 }
 0x878   : > { %v11825_v53 = vld [vmem:[#allocation4 + $0xe1] sm:$0xff] }
 0x879   : > { %5207 = vst.msk [vmem:[#allocation4 + $0xf1] sm:$0xff] %vm380_vm0, %v5175_v57  ;;  %5579 = vrot.lane.b32.xlu0 %v11825_v53, %s7967_s19 }
 0x87c   : > { %v5118_v9 = vpop.f32.mrf.mxu3 }
 0x87d   : > { %v5119_v33 = vadd.f32 %v11484_v18, %v5118_v9 }
 0x87f   : > { %v5176_v34 = vmax.f32 %v5119_v33, 0.0 }
 0x880   : > { %v11831_v19 = vld [vmem:[#allocation4 + $0xf1] sm:$0xff] }
 0x881   : > { %5208 = vst.msk [vmem:[#allocation4 + $0xf9] sm:$0xff] %vm380_vm0, %v5176_v34  ;;  %5581 = vrot.lane.b32.xlu1 %v11831_v19, %s7967_s19  ;;  %v5286_v34 = vld [vmem:[#allocation4 + $0xa] sm:$0xff] }
 0x884   : > { %v5121_v46 = vpop.f32.mrf.mxu3 }
 0x885   : > { %v5122_v59 = vadd.f32 %v11484_v18, %v5121_v46 }
 0x887   : > { %v5177_v11 = vmax.f32 %v5122_v59, 0.0  ;;  %v11898_v59 = vld [vmem:[#allocation4 + $0x22] sm:$0xff] }
 0x888   : > { %v11837_v24 = vld [vmem:[#allocation4 + $0xf9] sm:$0xff] }
 0x889   : > { %5209 = vst.msk [vmem:[#allocation4 + $0x109] sm:$0xff] %vm380_vm0, %v5177_v11  ;;  %5583 = vrot.lane.b32.xlu2 %v11837_v24, %s7967_s19 }
 0x88c   : > { %v5124_v23 = vpop.f32.mrf.mxu3 }
 0x88d   : > { %v5125_v37 = vadd.f32 %v11484_v18, %v5124_v23  ;;  %v11902_v23 = vpop.permute.xlu2 %5541 }
 0x88e   : > { %13808 = vst [vmem:[#allocation39_spill] sm:$0xff] %v11902_v23 }
 0x88f   : > { %v5178_v13 = vmax.f32 %v5125_v37, 0.0 }
 0x890   : > { %v11843_v39 = vld [vmem:[#allocation4 + $0x109] sm:$0xff] }
 0x891   : > { %5210 = vst.msk [vmem:[#allocation4 + $0x111] sm:$0xff] %vm380_vm0, %v5178_v13  ;;  %5585 = vrot.lane.b32.xlu0 %v11843_v39, %s7967_s19 }
 0x894   : > { %v5127_v6 = vpop.f32.mrf.mxu3 }
 0x895   : > { %v5128_v31 = vadd.f32 %v11484_v18, %v5127_v6 }
 0x897   : > { %v5179_v26 = vmax.f32 %v5128_v31, 0.0  ;;  %v11911_v31 = vld [vmem:[#allocation4 + $0x32] sm:$0xff] }
 0x898   : > { %v11849_v36 = vld [vmem:[#allocation4 + $0x111] sm:$0xff] }
 0x899   : > { %5211 = vst.msk [vmem:[#allocation4 + $0x121] sm:$0xff] %vm380_vm0, %v5179_v26  ;;  %5587 = vrot.lane.b32.xlu1 %v11849_v36, %s7967_s19  ;;  %v11913_v26 = vld [vmem:[#allocation4 + $0x4a] sm:$0xff] }
 0x89c   : > { %v5130_v40 = vpop.f32.mrf.mxu3 }
 0x89d   : > { %v5131_v61 = vadd.f32 %v11484_v18, %v5130_v40  ;;  %v11920_v40 = vld [vmem:[#allocation4 + $0x1a] sm:$0xff] }
 0x89f   : > { %v5180_v14 = vmax.f32 %v5131_v61, 0.0  ;;  %v11924_v61 = vpop.permute.xlu2 %5547 }
 0x8a0   : > { %v11855_v3 = vld [vmem:[#allocation4 + $0x121] sm:$0xff]  ;;  %13809 = vst [vmem:[#allocation35_spill] sm:$0xff] %v11924_v61 }
 0x8a1   : > { %5212 = vst.msk [vmem:[#allocation4 + $0x129] sm:$0xff] %vm380_vm0, %v5180_v14  ;;  %5589 = vrot.lane.b32.xlu2 %v11855_v3, %s7967_s19  ;;  %v11928_v14 = vld [vmem:[#allocation4 + $0x6a] sm:$0xff] }
 0x8a4   : > { %v5133_v62 = vpop.f32.mrf.mxu3 }
 0x8a5   : > { %v5134_v7 = vadd.f32 %v11484_v18, %v5133_v62  ;;  %v11934_v62 = vld [vmem:[#allocation4 + $0x3a] sm:$0xff] }
 0x8a7   : > { %v5181_v27 = vmax.f32 %v5134_v7, 0.0  ;;  %v11938_v7 = vpop.permute.xlu2 %5553 }
 0x8a8   : > { %v11861_v38 = vld [vmem:[#allocation4 + $0x129] sm:$0xff]  ;;  %13810 = vst [vmem:[#allocation43_spill] sm:$0xff] %v11938_v7 }
 0x8a9   : > { %5213 = vst.msk [vmem:[#allocation4 + $0x139] sm:$0xff] %vm380_vm0, %v5181_v27  ;;  %5591 = vrot.lane.b32.xlu0 %v11861_v38, %s7967_s19  ;;  %v11940_v27 = vld [vmem:[#allocation4 + $0x92] sm:$0xff] }
 0x8ac   : > { %v5136_v48 = vpop.f32.mrf.mxu3 }
 0x8ad   : > { %v5137_v54 = vadd.f32 %v11484_v18, %v5136_v48  ;;  %v11942_v48 = vld [vmem:[#allocation4 + $0x7a] sm:$0xff] }
 0x8af   : > { %v5182_v42 = vmax.f32 %v5137_v54, 0.0  ;;  %v11948_v54 = vld [vmem:[#allocation4 + $0x62] sm:$0xff] }
 0x8b0   : > { %v11867_v17 = vld [vmem:[#allocation4 + $0x139] sm:$0xff] }
 0x8b1   : > { %5214 = vst.msk [vmem:[#allocation4 + $0x141] sm:$0xff] %vm380_vm0, %v5182_v42  ;;  %5593 = vrot.lane.b32.xlu1 %v11867_v17, %s7967_s19  ;;  %v11952_v42 = vpop.permute.xlu1 %5545 }
 0x8b2   : > { %13811 = vst [vmem:[#allocation14_spill] sm:$0xff] %v11952_v42 }
 0x8b4   : > { %v5139_v44 = vpop.f32.mrf.mxu3 }
 0x8b5   : > { %v5140_v21 = vadd.f32 %v11484_v18, %v5139_v44  ;;  %v11954_v44 = vpop.permute.xlu2 %5559 }
 0x8b6   : > { %13812 = vst [vmem:[#allocation32_spill] sm:$0xff] %v11954_v44  ;;  %v12018_v44 = vld [vmem:[#allocation4 + $0xf2] sm:$0xff] }
 0x8b7   : > { %v5183_v2 = vmax.f32 %v5140_v21, 0.0  ;;  %v11956_v21 = vld [vmem:[#allocation4 + $0xb2] sm:$0xff] }
 0x8b8   : > { %v11873_v20 = vld [vmem:[#allocation4 + $0x141] sm:$0xff] }
 0x8b9   : > { %5215 = vst.msk [vmem:[#allocation4 + $0x151] sm:$0xff] %vm380_vm0, %v5183_v2  ;;  %5595 = vrot.lane.b32.xlu2 %v11873_v20, %s7967_s19  ;;  %v11958_v2 = vld [vmem:[#allocation4 + $0x9a] sm:$0xff]  ;;  %v12028_v7 = vld [vmem:[#allocation4 + $0x142] sm:$0xff] }
 0x8ba   : > { %13825 = vst [vmem:[#allocation33_spill] sm:$0xff] %v12028_v7  ;;  %v12051_v23 = vld [vmem:[#allocation4 + $0x13a] sm:$0xff] }
 0x8bc   : > { %v5142_v47 = vpop.f32.mrf.mxu3 }
 0x8bd   : > { %v5143_v5 = vadd.f32 %v11484_v18, %v5142_v47  ;;  %v11964_v47 = vld [vmem:[#allocation4 + $0x82] sm:$0xff] }
 0x8bf   : > { %v5184_v16 = vmax.f32 %v5143_v5, 0.0  ;;  %v11966_v5 = vpop.permute.xlu0 %5543 }
 0x8c0   : > { %v11879_v55 = vld [vmem:[#allocation4 + $0x151] sm:$0xff]  ;;  %13813 = vst [vmem:[#allocation16_spill] sm:$0xff] %v11966_v5 }
 0x8c1   : > { %5216 = vst.msk [vmem:[#allocation4 + $0x159] sm:$0xff] %vm380_vm0, %v5184_v16  ;;  %5597 = vrot.lane.b32.xlu0 %v11879_v55, %s7967_s19  ;;  %v11970_v16 = vpop.permute.xlu1 %5551 }
 0x8c2   : > { %13814 = vst [vmem:[#allocation34_spill] sm:$0xff] %v11970_v16  ;;  %v12030_v16 = vld [vmem:[#allocation4 + $0x12a] sm:$0xff] }
 0x8c3   : > { %13826 = vst [vmem:[#allocation9_spill] sm:$0xff] %v12030_v16 }
 0x8c4   : > { %v5145_v10 = vpop.f32.mrf.mxu3 }
 0x8c5   : > { %v5146_v15 = vadd.f32 %v11484_v18, %v5145_v10  ;;  %v11972_v10 = vpop.permute.xlu2 %5565 }
 0x8c6   : > { %13815 = vst [vmem:[#allocation13_spill] sm:$0xff] %v11972_v10  ;;  %v12012_v10 = vld [vmem:[#allocation4 + $0x10a] sm:$0xff] }
 0x8c7   : > { %v5185_v29 = vmax.f32 %v5146_v15, 0.0  ;;  %v11974_v15 = vld [vmem:[#allocation4 + $0xda] sm:$0xff] }
 0x8c8   : > { %v11885_v35 = vld [vmem:[#allocation4 + $0x159] sm:$0xff] }
 0x8c9   : > { %5217 = vst.msk [vmem:[#allocation4 + $0x169] sm:$0xff] %vm380_vm0, %v5185_v29  ;;  %5599 = vrot.lane.b32.xlu1 %v11885_v35, %s7967_s19  ;;  %v11976_v29 = vld [vmem:[#allocation4 + $0xc2] sm:$0xff]  ;;  %v12046_v5 = vld [vmem:[#allocation4 + $0x152] sm:$0xff] }
 0x8ca   : > { %13830 = vst [vmem:[#allocation57_spill] sm:$0xff] %v12046_v5 }
 0x8cc   : > { %v5148_v60 = vpop.f32.mrf.mxu3 }
 0x8cd   : > { %v5149_v43 = vadd.f32 %v11484_v18, %v5148_v60  ;;  %v11982_v60 = vld [vmem:[#allocation4 + $0xaa] sm:$0xff] }
 0x8cf   : > { %v5186_v32 = vmax.f32 %v5149_v43, 0.0  ;;  %v11986_v43 = vpop.permute.xlu1 %5557 }
 0x8d0   : > { %v11891_v57 = vld [vmem:[#allocation4 + $0x169] sm:$0xff]  ;;  %13816 = vst [vmem:[#allocation42_spill] sm:$0xff] %v11986_v43 }
 0x8d1   : > { %5218 = vst.msk [vmem:[#allocation4 + $0x171] sm:$0xff] %vm380_vm0, %v5186_v32  ;;  %5601 = vrot.lane.b32.xlu2 %v11891_v57, %s7967_s19  ;;  %5669 = vrot.lane.b32.xlu1 %v5285_v4, %s7969_s24  ;;  %v11988_v4 = vpop.permute.xlu2 %5571  ;;  %v11990_v32 = vpop.permute.xlu0 %5549 }
 0x8d2   : > { %13817 = vst [vmem:[#allocation5_spill] sm:$0xff] %v11988_v4 }
 0x8d3   : > { %13818 = vst [vmem:[#allocation12_spill] sm:$0xff] %v11990_v32  ;;  %v12036_v32 = vld [vmem:[#allocation4 + $0x112] sm:$0xff] }
 0x8d4   : > { %v5151_v9 = vpop.f32.mrf.mxu3 }
 0x8d5   : > { %v5152_v33 = vadd.f32 %v11484_v18, %v5151_v9  ;;  %v11992_v9 = vld [vmem:[#allocation4 + $0xfa] sm:$0xff] }
 0x8d7   : > { %v5187_v46 = vmax.f32 %v5152_v33, 0.0  ;;  %v11994_v33 = vld [vmem:[#allocation4 + $0xe2] sm:$0xff] }
 0x8d8   : > { %v11900_v11 = vld [vmem:[#allocation4 + $0x171] sm:$0xff] }
 0x8d9   : > { %5219 = vst.msk [vmem:[#allocation4 + $0x181] sm:$0xff] %vm380_vm0, %v5187_v46  ;;  %5671 = vrot.lane.b32.xlu2 %v5286_v34, %s7969_s24  ;;  %5675 = vrot.lane.b32.xlu1 %v11898_v59, %s7969_s24  ;;  %v12000_v34 = vld [vmem:[#allocation4 + $0xca] sm:$0xff]  ;;  %v12004_v46 = vpop.permute.xlu1 %5563 }
 0x8da   : > { %5603 = vrot.lane.b32.xlu0 %v11900_v11, %s7967_s19  ;;  %13819 = vst [vmem:[#allocation11_spill] sm:$0xff] %v12004_v46  ;;  %v5315_v42 = vld [vmem:[#allocation4 + $0x16a] sm:$0xff] }
 0x8dc   : > { %v5154_v37 = vpop.f32.mrf.mxu3 }
 0x8dd   : > { %v5155_v13 = vadd.f32 %v11484_v18, %v5154_v37  ;;  %v11926_v18 = vld [vmem:[#allocation4 + $0x52] sm:$0xff]  ;;  %v12006_v37 = vpop.permute.xlu2 %5577 }
 0x8de   : > { %13820 = vst [vmem:[#allocation6_spill] sm:$0xff] %v12006_v37  ;;  %v5316_v37 = vld [vmem:[#allocation4 + $0x172] sm:$0xff] }
 0x8df   : > { %v5188_v6 = vmax.f32 %v5155_v13, 0.0  ;;  %v12008_v13 = vpop.permute.xlu0 %5555 }
 0x8e0   : > { %13821 = vst [vmem:[#allocation29_spill] sm:$0xff] %v12008_v13 }
 0x8e1   : > { %5220 = vst.msk [vmem:[#allocation4 + $0x189] sm:$0xff] %vm380_vm0, %v5188_v6  ;;  %5677 = vrot.lane.b32.xlu2 %v11911_v31, %s7969_s24  ;;  %5681 = vrot.lane.b32.xlu1 %v11913_v26, %s7969_s24  ;;  %v12010_v6 = vld [vmem:[#allocation4 + $0x122] sm:$0xff]  ;;  %v12022_v46 = vpop.permute.xlu1 %5569 }
 0x8e2   : > { %5673 = vrot.lane.b32.xlu0 %v11920_v40, %s7969_s24  ;;  %13822 = vst [vmem:[#allocation23_spill] sm:$0xff] %v12022_v46 }
 0x8e5   : > { %v12024_v43 = vpop.permute.xlu2 %5583 }
 0x8e6   : > { %13823 = vst [vmem:[#allocation38_spill] sm:$0xff] %v12024_v43 }
 0x8e7   : > { %v12026_v13 = vpop.permute.xlu0 %5561 }
 0x8e8   : > { %13824 = vst [vmem:[#allocation36_spill] sm:$0xff] %v12026_v13 }
 0x8e9   : > { %5683 = vrot.lane.b32.xlu2 %v11926_v18, %s7969_s24  ;;  %5687 = vrot.lane.b32.xlu1 %v11928_v14, %s7969_s24  ;;  %v12040_v46 = vpop.permute.xlu1 %5575 }
 0x8ea   : > { %5679 = vrot.lane.b32.xlu0 %v11934_v62, %s7969_s24  ;;  %13827 = vst [vmem:[#allocation48_spill] sm:$0xff] %v12040_v46 }
 0x8ef   : > { %v12044_v13 = vpop.permute.xlu0 %5567 }
 0x8f0   : > { %13829 = vst [vmem:[#allocation40_spill] sm:$0xff] %v12044_v13  ;;  %v12061_v13 = vld [vmem:[#allocation4 + $0x20] sm:$0xff] }
 0x8f1   : > { %5693 = vrot.lane.b32.xlu1 %v11940_v27, %s7969_s24  ;;  %5689 = vrot.lane.b32.xlu2 %v11942_v48, %s7969_s24  ;;  %13834 = vst [vmem:[#allocation51_spill] sm:$0xff] %v12061_v13 }
 0x8f2   : > { %5685 = vrot.lane.b32.xlu0 %v11948_v54, %s7969_s24 }
 0x8f3   : > { %v12055_v43 = vpop.permute.xlu1 %5581 }
 0x8f4   : > { %13831 = vst [vmem:[#allocation10_spill] sm:$0xff] %v12055_v43 }
 0x8f9   : > { %5699 = vrot.lane.b32.xlu1 %v11956_v21, %s7969_s24  ;;  %5695 = vrot.lane.b32.xlu2 %v11958_v2, %s7969_s24 }
 0x8fa   : > { %5691 = vrot.lane.b32.xlu0 %v11964_v47, %s7969_s24 }
 0x8fb   : > { %v12042_v61 = vpop.permute.xlu2 %5589 }
 0x8fc   : > { %13828 = vst [vmem:[#allocation31_spill] sm:$0xff] %v12042_v61  ;;  %v12059_v61 = vpop.permute.xlu0 %5573 }
 0x8fd   : > { %13833 = vst [vmem:[#allocation30_spill] sm:$0xff] %v12059_v61  ;;  %v5227_v61 = vld [vmem:[#allocation4 + $0x48] sm:$0xff] }
 0x901   : > { %5705 = vrot.lane.b32.xlu1 %v11974_v15, %s7969_s24  ;;  %5701 = vrot.lane.b32.xlu2 %v11976_v29, %s7969_s24 }
 0x902   : > { %5697 = vrot.lane.b32.xlu0 %v11982_v60, %s7969_s24 }
 0x909   : > { %5711 = vrot.lane.b32.xlu1 %v11992_v9, %s7969_s24  ;;  %5707 = vrot.lane.b32.xlu2 %v11994_v33, %s7969_s24 }
 0x90a   : > { %5703 = vrot.lane.b32.xlu0 %v12000_v34, %s7969_s24 }
 0x90b   : > { %v12070_v4 = vpop.permute.xlu1 %5587 }
 0x90c   : > { %13836 = vst [vmem:[#allocation37_spill] sm:$0xff] %v12070_v4 }
 0x911   : > { %5717 = vrot.lane.b32.xlu1 %v12010_v6, %s7969_s24  ;;  %5713 = vrot.lane.b32.xlu2 %v12012_v10, %s7969_s24 }
 0x912   : > { %5709 = vrot.lane.b32.xlu0 %v12018_v44, %s7969_s24 }
 0x913   : > { %v12057_v46 = vpop.permute.xlu2 %5595 }
 0x914   : > { %13832 = vst [vmem:[#allocation46_spill] sm:$0xff] %v12057_v46  ;;  %v12074_v46 = vpop.permute.xlu0 %5579 }
 0x915   : > { %13838 = vst [vmem:[#allocation45_spill] sm:$0xff] %v12074_v46  ;;  %v5226_v46 = vld [vmem:[#allocation4 + $0x38] sm:$0xff] }
 0x919   : > { %5723 = vrot.lane.b32.xlu1 %v12028_v7, %s7969_s24  ;;  %5719 = vrot.lane.b32.xlu2 %v12030_v16, %s7969_s24  ;;  %v12076_v16 = vld [vmem:[#allocation4 + $0x18] sm:$0xff]  ;;  %v5228_v7 = vld [vmem:[#allocation4 + $0x50] sm:$0xff] }
 0x91a   : > { %5715 = vrot.lane.b32.xlu0 %v12036_v32, %s7969_s24  ;;  %13839 = vst [vmem:[#allocation59_spill] sm:$0xff] %v12076_v16 }
 0x91c   : > { %v12086_v4 = vpop.permute.xlu0 %5585 }
 0x91d   : > { %13842 = vst [vmem:[#allocation7_spill] sm:$0xff] %v12086_v4  ;;  %v5234_v4 = vld [vmem:[#allocation4 + $0x98] sm:$0xff] }
 0x921   : > { %5729 = vrot.lane.b32.xlu1 %v5315_v42, %s7969_s24  ;;  %5725 = vrot.lane.b32.xlu2 %v12046_v5, %s7969_s24  ;;  %v12066_v42 = vld [vmem:[#allocation4 + $0x15a] sm:$0xff]  ;;  %v5225_v5 = vld [vmem:[#allocation4 + $0x30] sm:$0xff] }
 0x922   : > { %5721 = vrot.lane.b32.xlu0 %v12051_v23, %s7969_s24  ;;  %13835 = vst [vmem:[#allocation15_spill] sm:$0xff] %v12066_v42 }
 0x929   : > { %5799 = vrot.lane.b32.xlu1 %v12061_v13, %s7970_s25  ;;  %5731 = vrot.lane.b32.xlu2 %v5316_v37, %s7969_s24  ;;  %v12082_v37 = vpop.permute.xlu1 %5593 }
 0x92a   : > { %5727 = vrot.lane.b32.xlu0 %v12066_v42, %s7969_s24  ;;  %13840 = vst [vmem:[#allocation19_spill] sm:$0xff] %v12082_v37  ;;  %v5233_v37 = vld [vmem:[#allocation4 + $0x90] sm:$0xff]  ;;  %v5231_v42 = vld [vmem:[#allocation4 + $0x78] sm:$0xff] }
 0x92b   : > { %v12072_v43 = vpop.permute.xlu2 %5601 }
 0x92c   : > { %13837 = vst [vmem:[#allocation41_spill] sm:$0xff] %v12072_v43  ;;  %v5230_v43 = vld [vmem:[#allocation4 + $0x68] sm:$0xff] }
 0x931   : > { %5805 = vrot.lane.b32.xlu1 %v5227_v61, %s7970_s25  ;;  %5801 = vrot.lane.b32.xlu2 %v5225_v5, %s7970_s25 }
 0x932   : > { %5797 = vrot.lane.b32.xlu0 %v12076_v16, %s7970_s25  ;;  %v12095_v16 = vpop.permute.xlu0 %5591 }
 0x933   : > { %v12084_v13 = vpop.permute.xlu2 %5671  ;;  %13845 = vst [vmem:[#allocation17_spill] sm:$0xff] %v12095_v16  ;;  %v5235_v16 = vld [vmem:[#allocation4 + $0xa8] sm:$0xff] }
 0x934   : > { %13841 = vst [vmem:[#allocation44_spill] sm:$0xff] %v12084_v13  ;;  %v5229_v13 = vld [vmem:[#allocation4 + $0x60] sm:$0xff] }
 0x939   : > { %5811 = vrot.lane.b32.xlu1 %v5230_v43, %s7970_s25  ;;  %5807 = vrot.lane.b32.xlu2 %v5228_v7, %s7970_s25 }
 0x93a   : > { %5803 = vrot.lane.b32.xlu0 %v5226_v46, %s7970_s25  ;;  %v12104_v46 = vpop.permute.xlu0 %5597 }
 0x93b   : > { %v12091_v61 = vpop.permute.xlu2 %5677  ;;  %v12093_v5 = vpop.permute.xlu1 %5599 }
 0x93c   : > { %13843 = vst [vmem:[#allocation50_spill] sm:$0xff] %v12091_v61  ;;  %v12106_v61 = vld [vmem:[#allocation4 + $0xb0] sm:$0xff] }
 0x93d   : > { %13844 = vst [vmem:[#allocation47_spill] sm:$0xff] %v12093_v5  ;;  %v5232_v5 = vld [vmem:[#allocation4 + $0x80] sm:$0xff] }
 0x93e   : > { %13848 = vst [vmem:[#allocation21_spill] sm:$0xff] %v12106_v61 }
 0x941   : > { %5817 = vrot.lane.b32.xlu1 %v5233_v37, %s7970_s25  ;;  %5813 = vrot.lane.b32.xlu2 %v5231_v42, %s7970_s25 }
 0x942   : > { %5809 = vrot.lane.b32.xlu0 %v5229_v13, %s7970_s25 }
 0x943   : > { %v12100_v43 = vpop.permute.xlu2 %5683  ;;  %v12102_v7 = vpop.permute.xlu1 %5669 }
 0x944   : > { %13846 = vst [vmem:[#allocation58_spill] sm:$0xff] %v12100_v43  ;;  %v12118_v43 = vld [vmem:[#allocation4 + $0xd8] sm:$0xff] }
 0x945   : > { %13847 = vst [vmem:[#allocation8_spill] sm:$0xff] %v12102_v7  ;;  %v12120_v7 = vld [vmem:[#allocation4 + $0xc0] sm:$0xff] }
 0x946   : > { %13852 = vst [vmem:[#allocation27_spill] sm:$0xff] %v12118_v43 }
 0x947   : > { %13853 = vst [vmem:[#allocation20_spill] sm:$0xff] %v12120_v7 }
 0x949   : > { %5823 = vrot.lane.b32.xlu1 %v12106_v61, %s7970_s25  ;;  %5819 = vrot.lane.b32.xlu2 %v5234_v4, %s7970_s25  ;;  %v12135_v61 = vld [vmem:[#allocation4 + $0xe0] sm:$0xff] }
 0x94a   : > { %5815 = vrot.lane.b32.xlu0 %v5232_v5, %s7970_s25  ;;  %13858 = vst [vmem:[#allocation28_spill] sm:$0xff] %v12135_v61 }
 0x94b   : > { %v12112_v42 = vpop.permute.xlu1 %5675  ;;  %v12114_v13 = vpop.permute.xlu2 %5689 }
 0x94c   : > { %13849 = vst [vmem:[#allocation25_spill] sm:$0xff] %v12112_v42  ;;  %v12116_v37 = vpop.permute.xlu0 %5603  ;;  %v12133_v42 = vld [vmem:[#allocation4 + $0xf8] sm:$0xff] }
 0x94d   : > { %13850 = vst [vmem:[#allocation26_spill] sm:$0xff] %v12114_v13 }
 0x94e   : > { %13851 = vst [vmem:[#allocation18_spill] sm:$0xff] %v12116_v37  ;;  %v12137_v37 = vld [vmem:[#allocation4 + $0xc8] sm:$0xff] }
 0x94f   : > { %13857 = vst [vmem:[#allocation53_spill] sm:$0xff] %v12133_v42 }
 0x950   : > { %13859 = vst [vmem:[#allocation49_spill] sm:$0xff] %v12137_v37 }
 0x951   : > { %5829 = vrot.lane.b32.xlu1 %v12118_v43, %s7970_s25  ;;  %5825 = vrot.lane.b32.xlu2 %v12120_v7, %s7970_s25  ;;  %v12153_v43 = vld [vmem:[#allocation4 + $0x108] sm:$0xff]  ;;  %v12155_v7 = vld [vmem:[#allocation4 + $0xf0] sm:$0xff] }
 0x952   : > { %5821 = vrot.lane.b32.xlu0 %v5235_v16, %s7970_s25  ;;  %13864 = vst [vmem:[#allocation69_spill] sm:$0xff] %v12153_v43 }
 0x953   : > { %v12127_v4 = vpop.permute.xlu1 %5681  ;;  %v12129_v5 = vpop.permute.xlu2 %5695  ;;  %13865 = vst [vmem:[#allocation61_spill] sm:$0xff] %v12155_v7 }
 0x954   : > { %13854 = vst [vmem:[#allocation24_spill] sm:$0xff] %v12127_v4  ;;  %v12131_v13 = vpop.permute.xlu0 %5673 }
 0x955   : > { %13855 = vst [vmem:[#allocation22_spill] sm:$0xff] %v12129_v5 }
 0x956   : > { %13856 = vst [vmem:[#allocation60_spill] sm:$0xff] %v12131_v13  ;;  %v12151_v13 = vld [vmem:[#allocation4 + $0x120] sm:$0xff] }
 0x957   : > { %13863 = vst [vmem:[#allocation55_spill] sm:$0xff] %v12151_v13 }
 0x959   : > { %5835 = vrot.lane.b32.xlu1 %v12133_v42, %s7970_s25  ;;  %5831 = vrot.lane.b32.xlu2 %v12135_v61, %s7970_s25  ;;  %v12169_v42 = vld [vmem:[#allocation4 + $0x140] sm:$0xff]  ;;  %v12171_v61 = vld [vmem:[#allocation4 + $0x128] sm:$0xff] }
 0x95a   : > { %5827 = vrot.lane.b32.xlu0 %v12137_v37, %s7970_s25  ;;  %13869 = vst [vmem:[#allocation70_spill] sm:$0xff] %v12169_v42 }
 0x95b   : > { %v12145_v16 = vpop.permute.xlu1 %5687  ;;  %v12147_v5 = vpop.permute.xlu2 %5701  ;;  %13870 = vst [vmem:[#allocation75_spill] sm:$0xff] %v12171_v61 }
 0x95c   : > { %13860 = vst [vmem:[#allocation54_spill] sm:$0xff] %v12145_v16  ;;  %v12149_v4 = vpop.permute.xlu0 %5679 }
 0x95d   : > { %13861 = vst [vmem:[#allocation52_spill] sm:$0xff] %v12147_v5  ;;  %v12173_v5 = vld [vmem:[#allocation4 + $0x110] sm:$0xff] }
 0x95e   : > { %13862 = vst [vmem:[#allocation72_spill] sm:$0xff] %v12149_v4 }
 0x95f   : > { %13871 = vst [vmem:[#allocation71_spill] sm:$0xff] %v12173_v5 }
 0x961   : > { %5841 = vrot.lane.b32.xlu1 %v12151_v13, %s7970_s25  ;;  %5837 = vrot.lane.b32.xlu2 %v12153_v43, %s7970_s25  ;;  %v5251_v13 = vld [vmem:[#allocation4 + $0x168] sm:$0xff]  ;;  %v12187_v43 = vld [vmem:[#allocation4 + $0x150] sm:$0xff] }
 0x962   : > { %5833 = vrot.lane.b32.xlu0 %v12155_v7, %s7970_s25 }
 0x963   : > { %v12163_v16 = vpop.permute.xlu1 %5693  ;;  %v12165_v37 = vpop.permute.xlu2 %5707 }
 0x964   : > { %13866 = vst [vmem:[#allocation63_spill] sm:$0xff] %v12163_v16  ;;  %v12167_v4 = vpop.permute.xlu0 %5685 }
 0x965   : > { %13867 = vst [vmem:[#allocation67_spill] sm:$0xff] %v12165_v37  ;;  %v12189_v37 = vld [vmem:[#allocation4 + $0x138] sm:$0xff] }
 0x966   : > { %13868 = vst [vmem:[#allocation62_spill] sm:$0xff] %v12167_v4 }
 0x967   : > { %13875 = vst [vmem:[#allocation76_spill] sm:$0xff] %v12189_v37 }
 0x969   : > { %5847 = vrot.lane.b32.xlu1 %v12169_v42, %s7970_s25  ;;  %5843 = vrot.lane.b32.xlu2 %v12171_v61, %s7970_s25 }
 0x96a   : > { %5839 = vrot.lane.b32.xlu0 %v12173_v5, %s7970_s25 }
 0x96b   : > { %v12181_v16 = vpop.permute.xlu1 %5699  ;;  %v12183_v7 = vpop.permute.xlu2 %5713 }
 0x96c   : > { %13872 = vst [vmem:[#allocation64_spill] sm:$0xff] %v12181_v16  ;;  %v12185_v4 = vpop.permute.xlu0 %5691  ;;  %v12204_v16 = vld [vmem:[#allocation4 + $0x158] sm:$0xff] }
 0x96d   : > { %13873 = vst [vmem:[#allocation66_spill] sm:$0xff] %v12183_v7  ;;  %v5348_v7 = vld [vmem:[#allocation4 + $0x188] sm:$0xff] }
 0x96e   : > { %13874 = vst [vmem:[#allocation68_spill] sm:$0xff] %v12185_v4  ;;  %v12202_v4 = vld [vmem:[#allocation4 + $0x170] sm:$0xff] }
 0x96f   : > { %13879 = vst [vmem:[#allocation74_spill] sm:$0xff] %v12202_v4 }
 0x971   : > { %5853 = vrot.lane.b32.xlu1 %v5251_v13, %s7970_s25  ;;  %5849 = vrot.lane.b32.xlu2 %v12187_v43, %s7970_s25 }
 0x972   : > { %5845 = vrot.lane.b32.xlu0 %v12189_v37, %s7970_s25 }
 0x973   : > { %v12196_v5 = vpop.permute.xlu1 %5705  ;;  %v12198_v42 = vpop.permute.xlu2 %5719 }
 0x974   : > { %13876 = vst [vmem:[#allocation56_spill] sm:$0xff] %v12196_v5  ;;  %v12200_v61 = vpop.permute.xlu0 %5697 }
 0x975   : > { %13877 = vst [vmem:[#allocation73_spill] sm:$0xff] %v12198_v42 }
 0x976   : > { %13878 = vst [vmem:[#allocation81_spill] sm:$0xff] %v12200_v61  ;;  %v5347_v61 = vld [vmem:[#allocation4 + $0x180] sm:$0xff] }
 0x979   : > { %5859 = vrot.lane.b32.xlu1 %v5348_v7, %s7970_s25  ;;  %5855 = vrot.lane.b32.xlu2 %v12202_v4, %s7970_s25 }
 0x97a   : > { %5851 = vrot.lane.b32.xlu0 %v12204_v16, %s7970_s25 }
 0x97b   : > { %v12211_v13 = vpop.permute.xlu1 %5711  ;;  %v12213_v37 = vpop.permute.xlu2 %5725 }
 0x97c   : > { %v12215_v42 = vpop.permute.xlu0 %5703 }
 0x981   : > { %5929 = vrot.lane.b32.xlu1 %v11559_v30, %s7971_s26  ;;  %5925 = vrot.lane.b32.xlu2 %v11517_v45, %s7971_s26 }
 0x982   : > { %5857 = vrot.lane.b32.xlu0 %v5347_v61, %s7970_s25 }
 0x983   : > { %v12222_v7 = vpop.permute.xlu1 %5717  ;;  %v12224_v5 = vpop.permute.xlu2 %5731 }
 0x984   : > { %v12226_v4 = vpop.permute.xlu0 %5709 }
 0x989   : > { %5935 = vrot.lane.b32.xlu1 %v11628_v63, %s7971_s26  ;;  %5931 = vrot.lane.b32.xlu2 %v11583_v0, %s7971_s26 }
 0x98a   : > { %5927 = vrot.lane.b32.xlu0 %v11537_v12, %s7971_s26 }
 0x98b   : > { %v12234_v30 = vpop.permute.xlu1 %5723  ;;  %v12236_v45 = vpop.permute.xlu2 %5801 }
 0x98c   : > { %v12238_v61 = vpop.permute.xlu0 %5715 }
 0x991   : > { %5941 = vrot.lane.b32.xlu1 %v11692_v56, %s7971_s26  ;;  %5937 = vrot.lane.b32.xlu2 %v11650_v50, %s7971_s26 }
 0x992   : > { %5933 = vrot.lane.b32.xlu0 %v11606_v58, %s7971_s26 }
 0x993   : > { %v12246_v63 = vpop.permute.xlu1 %5729  ;;  %v12248_v0 = vpop.permute.xlu2 %5807 }
 0x994   : > { %13880 = vst [vmem:[#allocation78_spill] sm:$0xff] %v12246_v63  ;;  %v12250_v12 = vpop.permute.xlu0 %5721  ;;  %v12336_v63 = vld [vmem:[#allocation4 + $0x181] sm:$0xff] }
 0x995   : > { %13881 = vst [vmem:[#allocation65_spill] sm:$0xff] %v12248_v0 }
 0x996   : > { %13892 = vst [vmem:[#allocation139_spill] sm:$0xff] %v12336_v63 }
 0x999   : > { %5947 = vrot.lane.b32.xlu1 %v11760_v52, %s7971_s26  ;;  %5943 = vrot.lane.b32.xlu2 %v11716_v41, %s7971_s26 }
 0x99a   : > { %5939 = vrot.lane.b32.xlu0 %v11670_v28, %s7971_s26 }
 0x99b   : > { %v12258_v56 = vpop.permute.xlu1 %5799  ;;  %v12260_v50 = vpop.permute.xlu2 %5813 }
 0x99c   : > { %13882 = vst [vmem:[#allocation85_spill] sm:$0xff] %v12260_v50  ;;  %v12262_v58 = vpop.permute.xlu0 %5727 }
 0x9a1   : > { %5953 = vrot.lane.b32.xlu1 %v11807_v51, %s7971_s26  ;;  %5949 = vrot.lane.b32.xlu2 %v11782_v1, %s7971_s26 }
 0x9a2   : > { %5945 = vrot.lane.b32.xlu0 %v11738_v22, %s7971_s26 }
 0x9a3   : > { %v12270_v52 = vpop.permute.xlu1 %5805  ;;  %v12272_v41 = vpop.permute.xlu2 %5819 }
 0x9a4   : > { %13883 = vst [vmem:[#allocation87_spill] sm:$0xff] %v12270_v52  ;;  %v12274_v28 = vpop.permute.xlu0 %5797 }
 0x9a5   : > { %13884 = vst [vmem:[#allocation79_spill] sm:$0xff] %v12272_v41 }
 0x9a9   : > { %5959 = vrot.lane.b32.xlu1 %v11825_v53, %s7971_s26  ;;  %5955 = vrot.lane.b32.xlu2 %v11813_v49, %s7971_s26 }
 0x9aa   : > { %5951 = vrot.lane.b32.xlu0 %v11800_v25, %s7971_s26 }
 0x9ab   : > { %v12282_v51 = vpop.permute.xlu1 %5811  ;;  %v12284_v1 = vpop.permute.xlu2 %5825 }
 0x9ac   : > { %13885 = vst [vmem:[#allocation84_spill] sm:$0xff] %v12282_v51  ;;  %v12286_v22 = vpop.permute.xlu0 %5803 }
 0x9ad   : > { %13886 = vst [vmem:[#allocation80_spill] sm:$0xff] %v12284_v1  ;;  %v5380_v1 = vld [vmem:[#allocation4 + $0x189] sm:$0xff] }
 0x9b1   : > { %5965 = vrot.lane.b32.xlu1 %v11843_v39, %s7971_s26  ;;  %5961 = vrot.lane.b32.xlu2 %v11831_v19, %s7971_s26 }
 0x9b2   : > { %5957 = vrot.lane.b32.xlu0 %v11819_v8, %s7971_s26 }
 0x9b3   : > { %v12294_v53 = vpop.permute.xlu1 %5817  ;;  %v12296_v49 = vpop.permute.xlu2 %5831 }
 0x9b4   : > { %13887 = vst [vmem:[#allocation88_spill] sm:$0xff] %v12294_v53  ;;  %v12298_v25 = vpop.permute.xlu0 %5809 }
 0x9b5   : > { %13888 = vst [vmem:[#allocation77_spill] sm:$0xff] %v12298_v25  ;;  %v5416_v25 = vld [vmem:[#allocation4 + $0x50] sm:$0xff] }
 0x9b9   : > { %5971 = vrot.lane.b32.xlu1 %v11861_v38, %s7971_s26  ;;  %5967 = vrot.lane.b32.xlu2 %v11849_v36, %s7971_s26 }
 0x9ba   : > { %5963 = vrot.lane.b32.xlu0 %v11837_v24, %s7971_s26 }
 0x9bb   : > { %v12306_v39 = vpop.permute.xlu1 %5823  ;;  %v12308_v19 = vpop.permute.xlu2 %5837 }
 0x9bc   : > { %13889 = vst [vmem:[#allocation82_spill] sm:$0xff] %v12306_v39  ;;  %v12310_v8 = vpop.permute.xlu0 %5815 }
 0x9bd   : > { %13890 = vst [vmem:[#allocation96_spill] sm:$0xff] %v12310_v8 }
 0x9c1   : > { %5977 = vrot.lane.b32.xlu1 %v11879_v55, %s7971_s26  ;;  %5973 = vrot.lane.b32.xlu2 %v11867_v17, %s7971_s26 }
 0x9c2   : > { %5969 = vrot.lane.b32.xlu0 %v11855_v3, %s7971_s26 }
 0x9c3   : > { %v12318_v38 = vpop.permute.xlu1 %5829  ;;  %v12320_v36 = vpop.permute.xlu2 %5843 }
 0x9c4   : > { %v12322_v24 = vpop.permute.xlu0 %5821 }
 0x9c5   : > { %13891 = vst [vmem:[#allocation86_spill] sm:$0xff] %v12322_v24 }
 0x9c9   : > { %5983 = vrot.lane.b32.xlu1 %v11900_v11, %s7971_s26  ;;  %5979 = vrot.lane.b32.xlu2 %v11885_v35, %s7971_s26 }
 0x9ca   : > { %5975 = vrot.lane.b32.xlu0 %v11873_v20, %s7971_s26 }
 0x9cb   : > { %v12330_v55 = vpop.permute.xlu1 %5835  ;;  %v12332_v17 = vpop.permute.xlu2 %5849 }
 0x9cc   : > { %v12334_v3 = vpop.permute.xlu0 %5827 }
 0x9d1   : > { %6053 = vrot.lane.b32.xlu1 %v11920_v40, %s7972_s27  ;;  %5985 = vrot.lane.b32.xlu2 %v12336_v63, %s7971_s26 }
 0x9d2   : > { %5981 = vrot.lane.b32.xlu0 %v11891_v57, %s7971_s26 }
 0x9d3   : > { %v12344_v35 = vpop.permute.xlu1 %5841  ;;  %v12346_v20 = vpop.permute.xlu2 %5855 }
 0x9d4   : > { %v12348_v11 = vpop.permute.xlu0 %5833 }
 0x9d9   : > { %6059 = vrot.lane.b32.xlu1 %v11934_v62, %s7972_s27  ;;  %6055 = vrot.lane.b32.xlu2 %v11898_v59, %s7972_s27 }
 0x9da   : > { %5987 = vrot.lane.b32.xlu0 %v5380_v1, %s7971_s26 }
 0x9db   : > { %v12355_v40 = vpop.permute.xlu1 %5847  ;;  %v12357_v39 = vpop.permute.xlu2 %5925 }
 0x9dc   : > { %v12359_v57 = vpop.permute.xlu0 %5839 }
 0x9e1   : > { %6065 = vrot.lane.b32.xlu1 %v11948_v54, %s7972_s27  ;;  %6061 = vrot.lane.b32.xlu2 %v11913_v26, %s7972_s27 }
 0x9e2   : > { %6057 = vrot.lane.b32.xlu0 %v11911_v31, %s7972_s27 }
 0x9e3   : > { %v12367_v24 = vpop.permute.xlu1 %5853  ;;  %v12369_v59 = vpop.permute.xlu2 %5931 }
 0x9e4   : > { %v12371_v1 = vpop.permute.xlu0 %5845 }
 0x9e9   : > { %6071 = vrot.lane.b32.xlu1 %v11964_v47, %s7972_s27  ;;  %6067 = vrot.lane.b32.xlu2 %v11928_v14, %s7972_s27 }
 0x9ea   : > { %6063 = vrot.lane.b32.xlu0 %v11926_v18, %s7972_s27 }
 0x9eb   : > { %v12379_v63 = vpop.permute.xlu1 %5859  ;;  %v12381_v41 = vpop.permute.xlu2 %5937 }
 0x9ec   : > { %13893 = vst [vmem:[#allocation153_spill] sm:$0xff] %v12381_v41  ;;  %v12383_v53 = vpop.permute.xlu0 %5851 }
 0x9f1   : > { %6077 = vrot.lane.b32.xlu1 %v11982_v60, %s7972_s27  ;;  %6073 = vrot.lane.b32.xlu2 %v11940_v27, %s7972_s27 }
 0x9f2   : > { %6069 = vrot.lane.b32.xlu0 %v11942_v48, %s7972_s27 }
 0x9f3   : > { %v12391_v8 = vpop.permute.xlu1 %5929  ;;  %v12393_v50 = vpop.permute.xlu2 %5943 }
 0x9f4   : > { %13894 = vst [vmem:[#allocation90_spill] sm:$0xff] %v12393_v50  ;;  %v12395_v51 = vpop.permute.xlu0 %5857  ;;  %v5414_v50 = vld [vmem:[#allocation4 + $0x38] sm:$0xff] }
 0x9f5   : > { %13895 = vst [vmem:[#allocation163_spill] sm:$0xff] %v12395_v51  ;;  %v13904_v51 = vld [vmem:[#allocation15_spill] sm:$0xff] }
 0x9f9   : > { %6083 = vrot.lane.b32.xlu1 %v12000_v34, %s7972_s27  ;;  %6079 = vrot.lane.b32.xlu2 %v11956_v21, %s7972_s27 }
 0x9fa   : > { %6075 = vrot.lane.b32.xlu0 %v11958_v2, %s7972_s27 }
 0x9fb   : > { %v12403_v60 = vpop.permute.xlu1 %5935  ;;  %v12405_v27 = vpop.permute.xlu2 %5949 }
 0x9fc   : > { %13896 = vst [vmem:[#allocation83_spill] sm:$0xff] %v12403_v60  ;;  %v12407_v41 = vpop.permute.xlu0 %5927  ;;  %v13910_v60 = vld [vmem:[#allocation47_spill] sm:$0xff] }
 0x9fd   : > { %13897 = vst [vmem:[#allocation94_spill] sm:$0xff] %v12405_v27  ;;  %v13905_v27 = vld [vmem:[#allocation33_spill] sm:$0xff] }
 0xa01   : > { %6089 = vrot.lane.b32.xlu1 %v12018_v44, %s7972_s27  ;;  %6085 = vrot.lane.b32.xlu2 %v11974_v15, %s7972_s27 }
 0xa02   : > { %6081 = vrot.lane.b32.xlu0 %v11976_v29, %s7972_s27 }
 0xa03   : > { %v12415_v34 = vpop.permute.xlu1 %5941  ;;  %v12417_v21 = vpop.permute.xlu2 %5955 }
 0xa04   : > { %13898 = vst [vmem:[#allocation99_spill] sm:$0xff] %v12415_v34  ;;  %v12419_v2 = vpop.permute.xlu0 %5933  ;;  %v5415_v34 = vld [vmem:[#allocation4 + $0x48] sm:$0xff] }
 0xa05   : > { %13899 = vst [vmem:[#allocation136_spill] sm:$0xff] %v12419_v2 }
 0xa09   : > { %6095 = vrot.lane.b32.xlu1 %v12036_v32, %s7972_s27  ;;  %6091 = vrot.lane.b32.xlu2 %v11992_v9, %s7972_s27 }
 0xa0a   : > { %6087 = vrot.lane.b32.xlu0 %v11994_v33, %s7972_s27 }
 0xa0b   : > { %v12427_v44 = vpop.permute.xlu1 %5947  ;;  %v12429_v15 = vpop.permute.xlu2 %5961 }
 0xa0c   : > { %13900 = vst [vmem:[#allocation152_spill] sm:$0xff] %v12427_v44  ;;  %v12431_v29 = vpop.permute.xlu0 %5939 }
 0xa0d   : > { %13901 = vst [vmem:[#allocation91_spill] sm:$0xff] %v12431_v29  ;;  %v5446_v29 = vld [vmem:[#allocation4 + $0x39] sm:$0xff] }
 0xa11   : > { %6101 = vrot.lane.b32.xlu1 %v12051_v23, %s7972_s27  ;;  %6097 = vrot.lane.b32.xlu2 %v12010_v6, %s7972_s27  ;;  %v13906_v23 = vld [vmem:[#allocation9_spill] sm:$0xff] }
 0xa12   : > { %6093 = vrot.lane.b32.xlu0 %v12012_v10, %s7972_s27 }
 0xa13   : > { %v12439_v32 = vpop.permute.xlu1 %5953  ;;  %v12441_v9 = vpop.permute.xlu2 %5967 }
 0xa14   : > { %13902 = vst [vmem:[#allocation165_spill] sm:$0xff] %v12439_v32  ;;  %v12443_v33 = vpop.permute.xlu0 %5945  ;;  %v5413_v32 = vld [vmem:[#allocation4 + $0x30] sm:$0xff] }
 0xa15   : > { %13903 = vst [vmem:[#allocation93_spill] sm:$0xff] %v12443_v33 }
 0xa19   : > { %6107 = vrot.lane.b32.xlu1 %v13904_v51, %s7972_s27  ;;  %6103 = vrot.lane.b32.xlu2 %v13905_v27, %s7972_s27  ;;  %v13908_v51 = vld [vmem:[#allocation57_spill] sm:$0xff] }
 0xa1a   : > { %6099 = vrot.lane.b32.xlu0 %v13906_v23, %s7972_s27 }
 0xa1b   : > { %v12451_v44 = vpop.permute.xlu1 %5959  ;;  %v12453_v6 = vpop.permute.xlu2 %5973 }
 0xa1c   : > { %v12455_v10 = vpop.permute.xlu0 %5951 }
 0xa1d   : > { %13907 = vst [vmem:[#allocation95_spill] sm:$0xff] %v12455_v10  ;;  %v5445_v10 = vld [vmem:[#allocation4 + $0x31] sm:$0xff] }
 0xa21   : > { %6437 = vrot.lane.b32.xlu1 %v11911_v31, %s7975_s30  ;;  %6181 = vrot.lane.b32.xlu2 %v5413_v32, %s7973_s28 }
 0xa22   : > { %6105 = vrot.lane.b32.xlu0 %v13908_v51, %s7972_s27 }
 0xa23   : > { %v12462_v33 = vpop.permute.xlu1 %5965  ;;  %v12464_v27 = vpop.permute.xlu2 %5979 }
 0xa24   : > { %v12466_v23 = vpop.permute.xlu0 %5957 }
 0xa29   : > { %6439 = vrot.lane.b32.xlu1 %v11934_v62, %s7975_s30  ;;  %6183 = vrot.lane.b32.xlu2 %v5414_v50, %s7973_s28 }
 0xa2a   : > { %6309 = vrot.lane.b32.xlu0 %v5445_v10, %s7974_s29 }
 0xa2b   : > { %v12472_v31 = vpop.permute.xlu1 %5971  ;;  %v12474_v32 = vpop.permute.xlu2 %5985 }
 0xa2c   : > { %13909 = vst [vmem:[#allocation100_spill] sm:$0xff] %v12474_v32  ;;  %v12476_v51 = vpop.permute.xlu0 %5963  ;;  %v6562_v32 = vsel %vm380_vm0, %v12204_v16, %v13910_v60 }
 0xa31   : > { %6441 = vrot.lane.b32.xlu1 %v11913_v26, %s7975_s30  ;;  %6185 = vrot.lane.b32.xlu2 %v5415_v34, %s7973_s28  ;;  %v5447_v26 = vld [vmem:[#allocation4 + $0x49] sm:$0xff]  ;;  %v6594_v34 = vsel %vm402_vm2, %v6562_v32, %v12262_v58  ;;  %v5448_v58 = vld [vmem:[#allocation4 + $0x51] sm:$0xff] }
 0xa32   : > { %6311 = vrot.lane.b32.xlu0 %v5446_v29, %s7974_s29  ;;  %v6626_v29 = vsel %vm1068_vm5, %v6594_v34, %v12346_v20  ;;  %v5418_v34 = vld [vmem:[#allocation4 + $0x68] sm:$0xff] }
 0xa33   : > { %v12482_v62 = vpop.permute.xlu1 %5977  ;;  %v12484_v50 = vpop.permute.xlu2 %6055 }
 0xa34   : > { %v12486_v10 = vpop.permute.xlu0 %5969 }
 0xa39   : > { %6443 = vrot.lane.b32.xlu1 %v11926_v18, %s7975_s30  ;;  %6187 = vrot.lane.b32.xlu2 %v5416_v25, %s7973_s28  ;;  %v5417_v18 = vld [vmem:[#allocation4 + $0x60] sm:$0xff]  ;;  %v6561_v25 = vsel %vm380_vm0, %v12187_v43, %v12104_v46  ;;  %v13913_v46 = vld [vmem:[#allocation18_spill] sm:$0xff] }
 0xa3a   : > { %6313 = vrot.lane.b32.xlu0 %v5447_v26, %s7974_s29  ;;  %v6593_v20 = vsel %vm402_vm2, %v6561_v25, %v12213_v37  ;;  %v5449_v43 = vld [vmem:[#allocation4 + $0x61] sm:$0xff]  ;;  %v13914_v37 = vld [vmem:[#allocation74_spill] sm:$0xff] }
 0xa3b   : > { %v5984_v0 = vpop.permute.xlu1 %5983  ;;  %v12499_v2 = vpop.permute.xlu2 %6061  ;;  %v6625_v32 = vsel %vm1068_vm5, %v6593_v20, %v12367_v24 }
 0xa3c   : > { %v12502_v52 = vsel %vm1077_vm6, %v6626_v29, %v5984_v0  ;;  %v12504_v16 = vpop.permute.xlu0 %5975  ;;  %v6564_v29 = vsel %vm380_vm0, %v13914_v37, %v13913_v46  ;;  %v13917_v46 = vld [vmem:[#allocation20_spill] sm:$0xff] }
 0xa3d   : > { %13911 = vst [vmem:[#allocation143_spill] sm:$0xff] %v12502_v52  ;;  %v6596_v24 = vsel %vm402_vm2, %v6564_v29, %v12224_v5  ;;  %v5420_v29 = vld [vmem:[#allocation4 + $0x80] sm:$0xff]  ;;  %v5421_v52 = vld [vmem:[#allocation4 + $0x90] sm:$0xff] }
 0xa3e   : > { %v6628_v25 = vsel %vm1068_vm5, %v6596_v24, %v12379_v63  ;;  %v13916_v63 = vld [vmem:[#allocation30_spill] sm:$0xff]  ;;  %v13918_v24 = vld [vmem:[#allocation52_spill] sm:$0xff] }
 0xa3f   : > { %v6549_v37 = vsel %vm380_vm0, %v13917_v46, %v13916_v63 }
 0xa41   : > { %6445 = vrot.lane.b32.xlu1 %v11948_v54, %s7975_s30  ;;  %6189 = vrot.lane.b32.xlu2 %v5417_v18, %s7973_s28 }
 0xa42   : > { %6315 = vrot.lane.b32.xlu0 %v5448_v58, %s7974_s29 }
 0xa43   : > { %v12515_v0 = vpop.permute.xlu1 %6053  ;;  %v12517_v60 = vpop.permute.xlu2 %6067 }
 0xa44   : > { %v5982_v54 = vpop.permute.xlu0 %5981 }
 0xa45   : > { %v12522_v26 = vsel %vm1077_vm6, %v6625_v32, %v5982_v54  ;;  %v5419_v32 = vld [vmem:[#allocation4 + $0x78] sm:$0xff]  ;;  %v5450_v54 = vld [vmem:[#allocation4 + $0x69] sm:$0xff] }
 0xa46   : > { %13912 = vst [vmem:[#allocation150_spill] sm:$0xff] %v12522_v26  ;;  %v13928_v26 = vld [vmem:[#allocation66_spill] sm:$0xff] }
 0xa49   : > { %6447 = vrot.lane.b32.xlu1 %v11928_v14, %s7975_s30  ;;  %6191 = vrot.lane.b32.xlu2 %v5418_v34, %s7973_s28 }
 0xa4a   : > { %6317 = vrot.lane.b32.xlu0 %v5449_v43, %s7974_s29 }
 0xa4b   : > { %v12533_v18 = vpop.permute.xlu1 %6059  ;;  %v12535_v58 = vpop.permute.xlu2 %6073 }
 0xa4c   : > { %v5988_v14 = vpop.permute.xlu0 %5987 }
 0xa4d   : > { %v12540_v20 = vsel %vm1077_vm6, %v6628_v25, %v5988_v14  ;;  %v6581_v25 = vsel %vm402_vm2, %v6549_v37, %v13918_v24  ;;  %v13920_v24 = vld [vmem:[#allocation28_spill] sm:$0xff] }
 0xa4e   : > { %13915 = vst [vmem:[#allocation89_spill] sm:$0xff] %v12540_v20  ;;  %v6613_v14 = vsel %vm1068_vm5, %v6581_v25, %v12318_v38  ;;  %v5485_v20 = vld [vmem:[#allocation4 + $0x92] sm:$0xff]  ;;  %v13921_v38 = vld [vmem:[#allocation67_spill] sm:$0xff] }
 0xa51   : > { %6449 = vrot.lane.b32.xlu1 %v11942_v48, %s7975_s30  ;;  %6193 = vrot.lane.b32.xlu2 %v5419_v32, %s7973_s28  ;;  %v5451_v48 = vld [vmem:[#allocation4 + $0x79] sm:$0xff]  ;;  %v6645_v32 = vsel %vm1077_vm6, %v6613_v14, %v12466_v23  ;;  %v5452_v23 = vld [vmem:[#allocation4 + $0x81] sm:$0xff] }
 0xa52   : > { %6319 = vrot.lane.b32.xlu0 %v5450_v54, %s7974_s29 }
 0xa53   : > { %v12546_v5 = vpop.permute.xlu1 %6065  ;;  %v12548_v34 = vpop.permute.xlu2 %6079 }
 0xa54   : > { %v12550_v43 = vpop.permute.xlu0 %6057 }
 0xa59   : > { %6451 = vrot.lane.b32.xlu1 %v11964_v47, %s7975_s30  ;;  %6195 = vrot.lane.b32.xlu2 %v5420_v29, %s7973_s28  ;;  %v13919_v47 = vld [vmem:[#allocation45_spill] sm:$0xff] }
 0xa5a   : > { %6321 = vrot.lane.b32.xlu0 %v5451_v48, %s7974_s29  ;;  %v6552_v29 = vsel %vm380_vm0, %v13920_v24, %v13919_v47 }
 0xa5b   : > { %v12565_v54 = vpop.permute.xlu1 %6071  ;;  %v6086_v63 = vpop.permute.xlu2 %6085  ;;  %v6584_v25 = vsel %vm402_vm2, %v6552_v29, %v13921_v38  ;;  %v13925_v38 = vld [vmem:[#allocation7_spill] sm:$0xff] }
 0xa5c   : > { %v12568_v46 = vsel %vm1086_vm7, %v6645_v32, %v6086_v63  ;;  %v12570_v37 = vpop.permute.xlu0 %6063  ;;  %v6616_v48 = vsel %vm1068_vm5, %v6584_v25, %v12330_v55  ;;  %v13923_v55 = vld [vmem:[#allocation5_spill] sm:$0xff] }
 0xa5d   : > { %v6648_v14 = vsel %vm1077_vm6, %v6616_v48, %v12476_v51  ;;  %v13926_v51 = vld [vmem:[#allocation69_spill] sm:$0xff]  ;;  %v5422_v48 = vld [vmem:[#allocation4 + $0x98] sm:$0xff] }
 0xa5e   : > { %v6555_v25 = vsel %vm380_vm0, %v13926_v51, %v13925_v38 }
 0xa61   : > { %6453 = vrot.lane.b32.xlu1 %v5485_v20, %s7975_s30  ;;  %6197 = vrot.lane.b32.xlu2 %v5421_v52, %s7973_s28  ;;  %v6797_v52 = vld [vmem:[%s13248_s8 + $0x40] sm:$0xff] }
 0xa62   : > { %6323 = vrot.lane.b32.xlu0 %v5452_v23, %s7974_s29  ;;  %6905 = vmatpush.msrb.mxu0 %v6797_v52  ;;  %v13924_v20 = vld [vmem:[#allocation21_spill] sm:$0xff]  ;;  %v5486_v23 = vld [vmem:[#allocation4 + $0x9a] sm:$0xff] }
 0xa63   : > { %v12584_v32 = vpop.permute.xlu1 %6077  ;;  %v6092_v63 = vpop.permute.xlu2 %6091  ;;  %7298 = vmatpush.msrb.mxu2 %v6797_v52  ;;  %v6548_v29 = vsel %vm380_vm0, %v13924_v20, %v13923_v55  ;;  %v5453_v52 = vld [vmem:[#allocation4 + $0x91] sm:$0xff] }
 0xa64   : > { %v12587_v47 = vsel %vm1086_vm7, %v6648_v14, %v6092_v63  ;;  %v12589_v24 = vpop.permute.xlu0 %6069  ;;  %v13927_v14 = vld [vmem:[#allocation64_spill] sm:$0xff] }
 0xa65   : > { %13922 = vst [vmem:[#allocation164_spill] sm:$0xff] %v12587_v47  ;;  %v6580_v63 = vsel %vm402_vm2, %v6548_v29, %v13927_v14  ;;  %v6587_v47 = vsel %vm402_vm2, %v6555_v25, %v13928_v26  ;;  %v13931_v14 = vld [vmem:[#allocation17_spill] sm:$0xff] }
 0xa66   : > { %v6612_v55 = vsel %vm1068_vm5, %v6580_v63, %v12334_v3  ;;  %v6619_v20 = vsel %vm1068_vm5, %v6587_v47, %v12344_v35  ;;  %v6796_v35 = vld [vmem:[%s13248_s8 + $0x38] sm:$0xff]  ;;  %v13930_v47 = vld [vmem:[#allocation27_spill] sm:$0xff] }
 0xa67   : > { %v6644_v38 = vsel %vm1077_vm6, %v6612_v55, %v12417_v21  ;;  %v6651_v29 = vsel %vm1077_vm6, %v6619_v20, %v12486_v10  ;;  %v6795_v21 = vld [vmem:[%s13248_s8 + $0x30] sm:$0xff]  ;;  %6906 = vmatpush.msrb.mxu0 %v6796_v35  ;;  %7299 = vmatpush.msrb.mxu2 %v6796_v35  ;;  %v13929_v10 = vld [vmem:[#allocation6_spill] sm:$0xff]  ;;  %v5487_v55 = vld [vmem:[#allocation4 + $0xaa] sm:$0xff] }
 0xa68   : > { %v13932_v63 = vld [vmem:[#allocation75_spill] sm:$0xff]  ;;  %v5423_v20 = vld [vmem:[#allocation4 + $0xa8] sm:$0xff] }
 0xa69   : > { %6455 = vrot.lane.b32.xlu1 %v5486_v23, %s7975_s30  ;;  %6199 = vrot.lane.b32.xlu2 %v5422_v48, %s7973_s28  ;;  %v6551_v48 = vsel %vm380_vm0, %v13930_v47, %v13929_v10  ;;  %v5454_v35 = vld [vmem:[#allocation4 + $0x99] sm:$0xff] }
 0xa6a   : > { %6325 = vrot.lane.b32.xlu0 %v5453_v52, %s7974_s29  ;;  %v6558_v52 = vsel %vm380_vm0, %v13932_v63, %v13931_v14  ;;  %6907 = vmatpush.msrb.mxu0 %v6795_v21 }
 0xa6b   : > { %v6084_v26 = vpop.permute.xlu1 %6083  ;;  %v6098_v51 = vpop.permute.xlu2 %6097  ;;  %7300 = vmatpush.msrb.mxu2 %v6795_v21  ;;  %v6794_v21 = vld [vmem:[%s13248_s8 + $0x28] sm:$0xff] }
 0xa6c   : > { %v12616_v25 = vsel %vm1086_vm7, %v6644_v38, %v6084_v26  ;;  %v12619_v23 = vsel %vm1086_vm7, %v6651_v29, %v6098_v51  ;;  %v12621_v3 = vpop.permute.xlu0 %6075  ;;  %v13933_v38 = vld [vmem:[#allocation56_spill] sm:$0xff]  ;;  %v13934_v26 = vld [vmem:[#allocation73_spill] sm:$0xff]  ;;  %6908 = vmatpush.msrb.mxu0 %v6794_v21 }
 0xa6d   : > { %v6583_v29 = vsel %vm402_vm2, %v6551_v48, %v13933_v38  ;;  %v6590_v51 = vsel %vm402_vm2, %v6558_v52, %v13934_v26  ;;  %7301 = vmatpush.msrb.mxu2 %v6794_v21  ;;  %v13935_v38 = vld [vmem:[#allocation38_spill] sm:$0xff] }
 0xa6e   : > { %v6615_v10 = vsel %vm1068_vm5, %v6583_v29, %v12348_v11  ;;  %v6622_v47 = vsel %vm1068_vm5, %v6590_v51, %v12355_v40  ;;  %v13936_v29 = vld [vmem:[#allocation53_spill] sm:$0xff] }
 0xa6f   : > { %v6647_v48 = vsel %vm1077_vm6, %v6615_v10, %v12429_v15  ;;  %v6654_v14 = vsel %vm1077_vm6, %v6622_v47, %v12504_v16  ;;  %v6792_v15 = vld [vmem:[%s13248_s8 + $0x18] sm:$0xff]  ;;  %v6791_v16 = vld [vmem:[%s13248_s8 + $0x10] sm:$0xff]  ;;  %v6554_v26 = vsel %vm380_vm0, %v13936_v29, %v13935_v38  ;;  %v5488_v51 = vld [vmem:[#allocation4 + $0xb2] sm:$0xff] }
 0xa70   : > { %v13937_v10 = vld [vmem:[#allocation48_spill] sm:$0xff]  ;;  %v13938_v47 = vld [vmem:[#allocation49_spill] sm:$0xff] }
 0xa71   : > { %6457 = vrot.lane.b32.xlu1 %v5487_v55, %s7975_s30  ;;  %6201 = vrot.lane.b32.xlu2 %v5423_v20, %s7973_s28  ;;  %v6793_v20 = vld [vmem:[%s13248_s8 + $0x20] sm:$0xff]  ;;  %v6550_v21 = vsel %vm380_vm0, %v13938_v47, %v13937_v10  ;;  %v5425_v10 = vld [vmem:[#allocation4 + $0xc0] sm:$0xff]  ;;  %v13941_v47 = vld [vmem:[#allocation10_spill] sm:$0xff] }
 0xa72   : > { %6327 = vrot.lane.b32.xlu0 %v5454_v35, %s7974_s29  ;;  %6909 = vmatpush.msrb.mxu0 %v6793_v20  ;;  %v5424_v35 = vld [vmem:[#allocation4 + $0xb0] sm:$0xff] }
 0xa73   : > { %v6090_v63 = vpop.permute.xlu1 %6089  ;;  %v6104_v52 = vpop.permute.xlu2 %6103  ;;  %7302 = vmatpush.msrb.mxu2 %v6793_v20  ;;  %v6790_v20 = vld [vmem:[%s13248_s8 + $0x8] sm:$0xff] }
 0xa74   : > { %v12654_v11 = vsel %vm1086_vm7, %v6647_v48, %v6090_v63  ;;  %v12657_v40 = vsel %vm1086_vm7, %v6654_v14, %v6104_v52  ;;  %v12659_v55 = vpop.permute.xlu0 %6081  ;;  %6910 = vmatpush.msrb.mxu0 %v6792_v15  ;;  %v6586_v48 = vsel %vm402_vm2, %v6554_v26, %v12211_v13  ;;  %v5455_v14 = vld [vmem:[#allocation4 + $0xa9] sm:$0xff]  ;;  %v6582_v63 = vsel %vm402_vm2, %v6550_v21, %v12215_v42 }
 0xa75   : > { %7303 = vmatpush.msrb.mxu2 %v6792_v15  ;;  %v6618_v52 = vsel %vm1068_vm5, %v6586_v48, %v12359_v57  ;;  %v6614_v13 = vsel %vm1068_vm5, %v6582_v63, %v12296_v49  ;;  %v6789_v49 = vld [vmem:[%s13248_s8] sm:$0xff] }
 0xa76   : > { %6911 = vmatpush.msrb.mxu0 %v6791_v16  ;;  %v6650_v15 = vsel %vm1077_vm6, %v6618_v52, %v12441_v9  ;;  %v6646_v42 = vsel %vm1077_vm6, %v6614_v13, %v12451_v44  ;;  %v13939_v9 = vld [vmem:[#allocation31_spill] sm:$0xff]  ;;  %v13942_v21 = vld [vmem:[#allocation61_spill] sm:$0xff] }
 0xa77   : > { %7304 = vmatpush.msrb.mxu2 %v6791_v16  ;;  %v13940_v16 = vld [vmem:[#allocation55_spill] sm:$0xff]  ;;  %v6553_v48 = vsel %vm380_vm0, %v13942_v21, %v13941_v47  ;;  %v5456_v63 = vld [vmem:[#allocation4 + $0xb1] sm:$0xff] }
 0xa78   : > { %6912 = vmatpush.msrb.mxu0 %v6790_v20  ;;  %v5489_v44 = vld [vmem:[#allocation4 + $0xc2] sm:$0xff]  ;;  %v6585_v52 = vsel %vm402_vm2, %v6553_v48, %v12226_v4 }
 0xa79   : > { %6459 = vrot.lane.b32.xlu1 %v5488_v51, %s7975_s30  ;;  %6203 = vrot.lane.b32.xlu2 %v5424_v35, %s7973_s28  ;;  %v6557_v35 = vsel %vm380_vm0, %v13940_v16, %v13939_v9  ;;  %v6617_v13 = vsel %vm1068_vm5, %v6585_v52, %v12308_v19  ;;  %v13944_v9 = vld [vmem:[#allocation70_spill] sm:$0xff]  ;;  %v5490_v16 = vld [vmem:[#allocation4 + $0xca] sm:$0xff]  ;;  %v5457_v47 = vld [vmem:[#allocation4 + $0xc1] sm:$0xff] }
 0xa7a   : > { %6329 = vrot.lane.b32.xlu0 %v5455_v14, %s7974_s29  ;;  %7305 = vmatpush.msrb.mxu2 %v6790_v20  ;;  %v6589_v14 = vsel %vm402_vm2, %v6557_v35, %v12222_v7  ;;  %v5426_v35 = vld [vmem:[#allocation4 + $0xc8] sm:$0xff] }
 0xa7b   : > { %v6096_v38 = vpop.permute.xlu1 %6095  ;;  %v12692_v29 = vpop.permute.xlu2 %6181  ;;  %6913 = vmatpush.msrb.mxu0 %v6789_v49  ;;  %v6621_v20 = vsel %vm1068_vm5, %v6589_v14, %v12371_v1 }
 0xa7c   : > { %v12697_v57 = vsel %vm1086_vm7, %v6650_v15, %v6096_v38  ;;  %v6088_v26 = vpop.permute.xlu0 %6087  ;;  %7306 = vmatpush.msrb.mxu2 %v6789_v49  ;;  %v6653_v15 = vsel %vm1077_vm6, %v6621_v20, %v12453_v6  ;;  %v13943_v49 = vld [vmem:[#allocation46_spill] sm:$0xff]  ;;  %v13945_v6 = vld [vmem:[#allocation37_spill] sm:$0xff] }
 0xa7d   : > { %v12700_v51 = vsel %vm1086_vm7, %v6646_v42, %v6088_v26  ;;  %v6649_v42 = vsel %vm1077_vm6, %v6617_v13, %v12462_v33  ;;  %v6560_v19 = vsel %vm380_vm0, %v13944_v9, %v13943_v49 }
 0xa7e   : > { %v6592_v33 = vsel %vm402_vm2, %v6560_v19, %v12234_v30 }
 0xa7f   : > { %v6624_v48 = vsel %vm1068_vm5, %v6592_v33, %v12383_v53 }
 0xa81   : > { %6461 = vrot.lane.b32.xlu1 %v5489_v44, %s7975_s30  ;;  %6205 = vrot.lane.b32.xlu2 %v5425_v10, %s7973_s28  ;;  %v13946_v44 = vld [vmem:[#allocation71_spill] sm:$0xff] }
 0xa82   : > { %6331 = vrot.lane.b32.xlu0 %v5456_v63, %s7974_s29  ;;  %v6556_v10 = vsel %vm380_vm0, %v13946_v44, %v13945_v6  ;;  %v6656_v63 = vsel %vm1077_vm6, %v6624_v48, %v12464_v27  ;;  %v5458_v27 = vld [vmem:[#allocation4 + $0xc9] sm:$0xff]  ;;  %v5428_v48 = vld [vmem:[#allocation4 + $0xe0] sm:$0xff] }
 0xa83   : > { %v6102_v7 = vpop.permute.xlu1 %6101  ;;  %v12724_v38 = vpop.permute.xlu2 %6183  ;;  %v6588_v21 = vsel %vm402_vm2, %v6556_v10, %v12238_v61  ;;  %v13949_v10 = vld [vmem:[#allocation39_spill] sm:$0xff] }
 0xa84   : > { %v12729_v26 = vsel %vm1086_vm7, %v6653_v15, %v6102_v7  ;;  %v6094_v4 = vpop.permute.xlu0 %6093  ;;  %v6620_v14 = vsel %vm1068_vm5, %v6588_v21, %v12320_v36  ;;  %v5491_v15 = vld [vmem:[#allocation4 + $0xda] sm:$0xff]  ;;  %v13948_v36 = vld [vmem:[#allocation76_spill] sm:$0xff] }
 0xa85   : > { %v12732_v1 = vsel %vm1086_vm7, %v6649_v42, %v6094_v4  ;;  %v6652_v20 = vsel %vm1077_vm6, %v6620_v14, %v12472_v31  ;;  %v5427_v7 = vld [vmem:[#allocation4 + $0xd8] sm:$0xff]  ;;  %v13947_v42 = vld [vmem:[#allocation19_spill] sm:$0xff] }
 0xa86   : > { %v6559_v4 = vsel %vm380_vm0, %v13948_v36, %v13947_v42  ;;  %v5492_v21 = vld [vmem:[#allocation4 + $0xe2] sm:$0xff] }
 0xa87   : > { %v6591_v31 = vsel %vm402_vm2, %v6559_v4, %v12250_v12  ;;  %v13950_v12 = vld [vmem:[#allocation8_spill] sm:$0xff] }
 0xa88   : > { %v6623_v49 = vsel %vm1068_vm5, %v6591_v31, %v12332_v17  ;;  %v13951_v36 = vld [vmem:[#allocation16_spill] sm:$0xff]  ;;  %v5429_v31 = vld [vmem:[#allocation4 + $0xf0] sm:$0xff] }
 0xa89   : > { %6463 = vrot.lane.b32.xlu1 %v5490_v16, %s7975_s30  ;;  %6207 = vrot.lane.b32.xlu2 %v5426_v35, %s7973_s28  ;;  %v5221_v16 = vld [vmem:[#allocation4] sm:$0xff]  ;;  %v6655_v35 = vsel %vm1077_vm6, %v6623_v49, %v12482_v62  ;;  %v13953_v4 = vld [vmem:[#allocation44_spill] sm:$0xff] }
 0xa8a   : > { %6333 = vrot.lane.b32.xlu0 %v5457_v47, %s7974_s29  ;;  %v6533_v33 = vsel %vm380_vm0, %v5221_v16, %v13949_v10  ;;  %v5459_v62 = vld [vmem:[#allocation4 + $0xd9] sm:$0xff] }
 0xa8b   : > { %v6108_v30 = vpop.permute.xlu1 %6107  ;;  %v12753_v52 = vpop.permute.xlu2 %6185  ;;  %v6565_v47 = vsel %vm402_vm2, %v6533_v33, %v13950_v12 }
 0xa8c   : > { %v12758_v13 = vsel %vm1086_vm7, %v6656_v63, %v6108_v30  ;;  %v6100_v61 = vpop.permute.xlu0 %6099  ;;  %v6597_v17 = vsel %vm1068_vm5, %v6565_v47, %v12274_v28  ;;  %v13954_v47 = vld [vmem:[#allocation14_spill] sm:$0xff] }
 0xa8d   : > { %v12761_v53 = vsel %vm1086_vm7, %v6652_v20, %v6100_v61  ;;  %v6629_v14 = vsel %vm1077_vm6, %v6597_v17, %v12357_v39  ;;  %v5222_v61 = vld [vmem:[#allocation4 + $0x8] sm:$0xff]  ;;  %v5494_v17 = vld [vmem:[#allocation4 + $0xfa] sm:$0xff] }
 0xa8e   : > { %v6661_v63 = vsel %vm1086_vm7, %v6629_v14, %v12515_v0  ;;  %v6534_v39 = vsel %vm380_vm0, %v5222_v61, %v13951_v36  ;;  %v13958_v36 = vld [vmem:[#allocation35_spill] sm:$0xff] }
 0xa8f   : > { %v6693_v28 = vsel %vm1095_vm8, %v6661_v63, %v12692_v29  ;;  %v6566_v0 = vsel %vm402_vm2, %v6534_v39, %v13953_v4  ;;  %v5460_v29 = vld [vmem:[#allocation4 + $0xe1] sm:$0xff]  ;;  %v13960_v4 = vld [vmem:[#allocation25_spill] sm:$0xff] }
 0xa90   : > { %v6598_v49 = vsel %vm1068_vm5, %v6566_v0, %v12258_v56  ;;  %v13959_v39 = vld [vmem:[#allocation51_spill] sm:$0xff]  ;;  %v5495_v0 = vld [vmem:[#allocation4 + $0x10a] sm:$0xff] }
 0xa91   : > { %6465 = vrot.lane.b32.xlu1 %v5491_v15, %s7975_s30  ;;  %6209 = vrot.lane.b32.xlu2 %v5427_v7, %s7973_s28 }
 0xa92   : > { %6335 = vrot.lane.b32.xlu0 %v5458_v27, %s7974_s29  ;;  %v5493_v27 = vld [vmem:[#allocation4 + $0xf2] sm:$0xff] }
 0xa93   : > { %v6438_v9 = vpop.permute.xlu1 %6437  ;;  %v12773_v19 = vpop.permute.xlu2 %6187 }
 0xa94   : > { %v6106_v6 = vpop.permute.xlu0 %6105 }
 0xa95   : > { %v12778_v44 = vsel %vm1086_vm7, %v6655_v35, %v6106_v6 }
 0xa99   : > { %6467 = vrot.lane.b32.xlu1 %v5492_v21, %s7975_s30  ;;  %6211 = vrot.lane.b32.xlu2 %v5428_v48, %s7973_s28  ;;  %v13955_v21 = vld [vmem:[#allocation59_spill] sm:$0xff]  ;;  %v13957_v48 = vld [vmem:[#allocation60_spill] sm:$0xff] }
 0xa9a   : > { %6337 = vrot.lane.b32.xlu0 %v5459_v62, %s7974_s29  ;;  %v5430_v62 = vld [vmem:[#allocation4 + $0xf8] sm:$0xff] }
 0xa9b   : > { %v6440_v30 = vpop.permute.xlu1 %6439  ;;  %v12793_v20 = vpop.permute.xlu2 %6189 }
 0xa9c   : > { %v6310_v15 = vpop.permute.xlu0 %6309 }
 0xa9d   : > { %v6725_v7 = vsel %vm1104_vm9, %v6693_v28, %v6310_v15 }
 0xa9e   : > { %v6757_v42 = vsel %vm1113_vm11, %v6725_v7, %v6438_v9  ;;  %v6630_v9 = vsel %vm1077_vm6, %v6598_v49, %v12407_v41  ;;  %v6535_v41 = vsel %vm380_vm0, %v13955_v21, %v13954_v47  ;;  %v13963_v47 = vld [vmem:[#allocation50_spill] sm:$0xff] }
 0xa9f   : > { %7259 = vmatmul.msk.f32.vlgmr.msrb.gmra.mxu0 %vm13952_vm14, %v6757_v42  ;;  %v6662_v16 = vsel %vm1086_vm7, %v6630_v9, %v12484_v50  ;;  %v6567_v50 = vsel %vm402_vm2, %v6535_v41, %v13957_v48  ;;  %v5496_v21 = vld [vmem:[#allocation4 + $0x112] sm:$0xff]  ;;  %v13964_v48 = vld [vmem:[#allocation87_spill] sm:$0xff]  ;;  %vm13987_vm14 = vmmov %vm13620_vm1 }
 0xaa0   : > { %v6694_v10 = vsel %vm1095_vm8, %v6662_v16, %v12724_v38  ;;  %v6599_v14 = vsel %vm1068_vm5, %v6567_v50, %v12236_v45  ;;  %v5461_v38 = vld [vmem:[#allocation4 + $0xf1] sm:$0xff] }
 0xaa1   : > { %6469 = vrot.lane.b32.xlu1 %v5493_v27, %s7975_s30  ;;  %6213 = vrot.lane.b32.xlu2 %v5429_v31, %s7973_s28  ;;  %v6631_v63 = vsel %vm1077_vm6, %v6599_v14, %v12391_v8  ;;  %v6536_v8 = vsel %vm380_vm0, %v13959_v39, %v13958_v36  ;;  %v5431_v27 = vld [vmem:[#allocation4 + $0x108] sm:$0xff]  ;;  %v5432_v41 = vld [vmem:[#allocation4 + $0x110] sm:$0xff] }
 0xaa2   : > { %6339 = vrot.lane.b32.xlu0 %v5460_v29, %s7974_s29  ;;  %v13968_v39 = vld [vmem:[#allocation72_spill] sm:$0xff] }
 0xaa3   : > { %v6442_v35 = vpop.permute.xlu1 %6441  ;;  %v12813_v6 = vpop.permute.xlu2 %6191 }
 0xaa4   : > { %v6312_v56 = vpop.permute.xlu0 %6311 }
 0xaa5   : > { %v6726_v33 = vsel %vm1104_vm9, %v6694_v10, %v6312_v56 }
 0xaa6   : > { %v6758_v12 = vsel %vm1113_vm11, %v6726_v33, %v6440_v30  ;;  %v6663_v30 = vsel %vm1086_vm7, %v6631_v63, %v12550_v43  ;;  %v6568_v43 = vsel %vm402_vm2, %v6536_v8, %v13960_v4  ;;  %v7946_v33 = vld [vmem:[#allocation4 + $0x30] sm:$0xff]  ;;  %v5497_v8 = vld [vmem:[#allocation4 + $0x122] sm:$0xff] }
 0xaa7   : > { %7260 = vmatmul.msk.f32.gmra.mxu0 %vm13956_vm15, %v6758_v12  ;;  %v6695_v15 = vsel %vm1095_vm8, %v6663_v30, %v12753_v52  ;;  %v6600_v31 = vsel %vm1068_vm5, %v6568_v43, %v12286_v22  ;;  %v5462_v52 = vld [vmem:[#allocation4 + $0xf9] sm:$0xff]  ;;  %v13961_v12 = vld [vmem:[#allocation12_spill] sm:$0xff]  ;;  %v13969_v43 = vld [vmem:[#allocation65_spill] sm:$0xff] }
 0xaa8   : > { %v6632_v49 = vsel %vm1077_vm6, %v6600_v31, %v12369_v59  ;;  %v6537_v59 = vsel %vm380_vm0, %v7946_v33, %v13961_v12  ;;  %v5433_v4 = vld [vmem:[#allocation4 + $0x120] sm:$0xff]  ;;  %vm13992_vm15 = vmmov %vm13620_vm1 }
 0xaa9   : > { %6471 = vrot.lane.b32.xlu1 %v5494_v17, %s7975_s30  ;;  %6215 = vrot.lane.b32.xlu2 %v5430_v62, %s7973_s28  ;;  %v6664_v29 = vsel %vm1086_vm7, %v6632_v49, %v12533_v18  ;;  %v6569_v18 = vsel %vm402_vm2, %v6537_v59, %v13963_v47  ;;  %v13965_v17 = vld [vmem:[#allocation136_spill] sm:$0xff]  ;;  %v13971_v33 = vld [vmem:[#allocation43_spill] sm:$0xff] }
 0xaaa   : > { %6341 = vrot.lane.b32.xlu0 %v5461_v38, %s7974_s29  ;;  %v6601_v50 = vsel %vm1068_vm5, %v6569_v18, %v13964_v48  ;;  %v13973_v59 = vld [vmem:[#allocation24_spill] sm:$0xff]  ;;  %v13975_v48 = vld [vmem:[#allocation153_spill] sm:$0xff] }
 0xaab   : > { %v6444_v61 = vpop.permute.xlu1 %6443  ;;  %v12834_v28 = vpop.permute.xlu2 %6193  ;;  %v6633_v62 = vsel %vm1077_vm6, %v6601_v50, %v13965_v17  ;;  %v5498_v47 = vld [vmem:[#allocation4 + $0x12a] sm:$0xff] }
 0xaac   : > { %v6314_v45 = vpop.permute.xlu0 %6313  ;;  %v6665_v14 = vsel %vm1086_vm7, %v6633_v62, %v12499_v2  ;;  %v5434_v18 = vld [vmem:[#allocation4 + $0x128] sm:$0xff] }
 0xaad   : > { %v6727_v7 = vsel %vm1104_vm9, %v6695_v15, %v6314_v45  ;;  %v6697_v30 = vsel %vm1095_vm8, %v6665_v14, %v12793_v20  ;;  %v5464_v20 = vld [vmem:[#allocation4 + $0x111] sm:$0xff] }
 0xaae   : > { %v6759_v42 = vsel %vm1113_vm11, %v6727_v7, %v6442_v35  ;;  %v6696_v35 = vsel %vm1095_vm8, %v6664_v29, %v12773_v19  ;;  %v5463_v19 = vld [vmem:[#allocation4 + $0x109] sm:$0xff]  ;;  %v7947_v7 = vld [vmem:[#allocation4 + $0x38] sm:$0xff] }
 0xaaf   : > { %7261 = vmatmul.msk.f32.gmra.mxu0 %vm13620_vm1, %v6759_v42  ;;  %v13966_v42 = vld [vmem:[#allocation34_spill] sm:$0xff] }
 0xab0   : > { %v6538_v36 = vsel %vm380_vm0, %v7947_v7, %v13966_v42  ;;  %v13978_v42 = vld [vmem:[#allocation58_spill] sm:$0xff] }
 0xab1   : > { %6473 = vrot.lane.b32.xlu1 %v5495_v0, %s7975_s30  ;;  %6217 = vrot.lane.b32.xlu2 %v5431_v27, %s7973_s28  ;;  %v6570_v2 = vsel %vm402_vm2, %v6538_v36, %v13968_v39  ;;  %v13970_v27 = vld [vmem:[#allocation83_spill] sm:$0xff]  ;;  %v12926_v36 = vld [vmem:[#allocation4 + $0x16a] sm:$0xff] }
 0xab2   : > { %6343 = vrot.lane.b32.xlu0 %v5462_v52, %s7974_s29  ;;  %v6602_v0 = vsel %vm1068_vm5, %v6570_v2, %v13969_v43  ;;  %v5439_v39 = vld [vmem:[#allocation4 + $0x168] sm:$0xff] }
 0xab3   : > { %v6446_v9 = vpop.permute.xlu1 %6445  ;;  %v12855_v16 = vpop.permute.xlu2 %6195  ;;  %v6634_v31 = vsel %vm1077_vm6, %v6602_v0, %v13970_v27  ;;  %v13979_v2 = vld [vmem:[#allocation84_spill] sm:$0xff] }
 0xab4   : > { %v6316_v22 = vpop.permute.xlu0 %6315  ;;  %v6666_v52 = vsel %vm1086_vm7, %v6634_v31, %v12570_v37 }
 0xab5   : > { %v6728_v10 = vsel %vm1104_vm9, %v6696_v35, %v6316_v22 }
 0xab6   : > { %v6760_v56 = vsel %vm1113_vm11, %v6728_v10, %v6444_v61 }
 0xab7   : > { %7262 = vmatmul.msk.f32.gmra.mxu0 %vm13962_vm3, %v6760_v56  ;;  %v7948_v56 = vld [vmem:[#allocation4 + $0x48] sm:$0xff]  ;;  %vm14002_vm3 = vmmov %vm13620_vm1 }
 0xab8   : > { %v6539_v12 = vsel %vm380_vm0, %v7948_v56, %v13971_v33  ;;  %v13983_v56 = vld [vmem:[#allocation62_spill] sm:$0xff] }
 0xab9   : > { %6475 = vrot.lane.b32.xlu1 %v5496_v21, %s7975_s30  ;;  %6219 = vrot.lane.b32.xlu2 %v5432_v41, %s7973_s28  ;;  %v6571_v37 = vsel %vm402_vm2, %v6539_v12, %v13973_v59  ;;  %v13974_v21 = vld [vmem:[#allocation77_spill] sm:$0xff]  ;;  %v5499_v33 = vld [vmem:[#allocation4 + $0x13a] sm:$0xff] }
 0xaba   : > { %6345 = vrot.lane.b32.xlu0 %v5463_v19, %s7974_s29  ;;  %v6603_v41 = vsel %vm1068_vm5, %v6571_v37, %v13974_v21  ;;  %v5435_v12 = vld [vmem:[#allocation4 + $0x138] sm:$0xff]  ;;  %v13984_v59 = vld [vmem:[#allocation85_spill] sm:$0xff] }
 0xabb   : > { %v6448_v38 = vpop.permute.xlu1 %6447  ;;  %v12875_v63 = vpop.permute.xlu2 %6197  ;;  %v6635_v50 = vsel %vm1077_vm6, %v6603_v41, %v13975_v48 }
 0xabc   : > { %v6318_v61 = vpop.permute.xlu0 %6317  ;;  %v6667_v19 = vsel %vm1086_vm7, %v6635_v50, %v12546_v5 }
 0xabd   : > { %v6729_v15 = vsel %vm1104_vm9, %v6697_v30, %v6318_v61  ;;  %v6699_v14 = vsel %vm1095_vm8, %v6667_v19, %v12834_v28 }
 0xabe   : > { %v6761_v45 = vsel %vm1113_vm11, %v6729_v15, %v6446_v9  ;;  %v6698_v9 = vsel %vm1095_vm8, %v6666_v52, %v12813_v6  ;;  %v5465_v6 = vld [vmem:[#allocation4 + $0x121] sm:$0xff]  ;;  %v7949_v15 = vld [vmem:[#allocation4 + $0x50] sm:$0xff] }
 0xabf   : > { %7263 = vmatmul.msk.f32.gmra.mxu0 %vm13967_vm4, %v6761_v45  ;;  %v13976_v45 = vld [vmem:[#allocation29_spill] sm:$0xff]  ;;  %vm14007_vm4 = vmmov %vm13620_vm1 }
 0xac0   : > { %v6540_v7 = vsel %vm380_vm0, %v7949_v15, %v13976_v45  ;;  %v12969_v15 = vld [vmem:[#allocation4 + $0x172] sm:$0xff] }
 0xac1   : > { %6477 = vrot.lane.b32.xlu1 %v5497_v8, %s7975_s30  ;;  %6221 = vrot.lane.b32.xlu2 %v5433_v4, %s7973_s28  ;;  %v6572_v5 = vsel %vm402_vm2, %v6540_v7, %v13978_v42  ;;  %v5466_v8 = vld [vmem:[#allocation4 + $0x129] sm:$0xff]  ;;  %v13980_v4 = vld [vmem:[#allocation91_spill] sm:$0xff] }
 0xac2   : > { %6347 = vrot.lane.b32.xlu0 %v5464_v20, %s7974_s29  ;;  %v6604_v28 = vsel %vm1068_vm5, %v6572_v5, %v13979_v2  ;;  %v5440_v45 = vld [vmem:[#allocation4 + $0x170] sm:$0xff]  ;;  %v13989_v7 = vld [vmem:[#allocation96_spill] sm:$0xff]  ;;  %v5467_v42 = vld [vmem:[#allocation4 + $0x139] sm:$0xff] }
 0xac3   : > { %v6450_v49 = vpop.permute.xlu1 %6449  ;;  %v12895_v29 = vpop.permute.xlu2 %6199  ;;  %v6636_v43 = vsel %vm1077_vm6, %v6604_v28, %v13980_v4  ;;  %v13990_v5 = vld [vmem:[#allocation90_spill] sm:$0xff] }
 0xac4   : > { %v6320_v35 = vpop.permute.xlu0 %6319  ;;  %v6668_v0 = vsel %vm1086_vm7, %v6636_v43, %v12517_v60 }
 0xac5   : > { %v6730_v22 = vsel %vm1104_vm9, %v6698_v9, %v6320_v35  ;;  %v6700_v31 = vsel %vm1095_vm8, %v6668_v0, %v12855_v16  ;;  %v7950_v35 = vld [vmem:[#allocation4 + $0x60] sm:$0xff]  ;;  %v5471_v16 = vld [vmem:[#allocation4 + $0x169] sm:$0xff] }
 0xac6   : > { %v6762_v10 = vsel %vm1113_vm11, %v6730_v22, %v6448_v38  ;;  %v13981_v22 = vld [vmem:[#allocation42_spill] sm:$0xff] }
 0xac7   : > { %7264 = vmatmul.msk.f32.gmra.mxu0 %vm13972_vm10, %v6762_v10  ;;  %v6541_v10 = vsel %vm380_vm0, %v7950_v35, %v13981_v22  ;;  %v5500_v35 = vld [vmem:[#allocation4 + $0x142] sm:$0xff]  ;;  %vm14012_vm10 = vmmov %vm13620_vm1 }
 0xac8   : > { %v6573_v60 = vsel %vm402_vm2, %v6541_v10, %v13983_v56  ;;  %v5436_v22 = vld [vmem:[#allocation4 + $0x140] sm:$0xff]  ;;  %v13994_v10 = vld [vmem:[#allocation88_spill] sm:$0xff] }
 0xac9   : > { %6479 = vrot.lane.b32.xlu1 %v5498_v47, %s7975_s30  ;;  %6223 = vrot.lane.b32.xlu2 %v5434_v18, %s7973_s28  ;;  %v6605_v37 = vsel %vm1068_vm5, %v6573_v60, %v13984_v59  ;;  %v13985_v47 = vld [vmem:[#allocation99_spill] sm:$0xff]  ;;  %v13995_v60 = vld [vmem:[#allocation93_spill] sm:$0xff] }
 0xaca   : > { %6349 = vrot.lane.b32.xlu0 %v5465_v6, %s7974_s29  ;;  %v6637_v18 = vsel %vm1077_vm6, %v6605_v37, %v13985_v47 }
 0xacb   : > { %v6452_v17 = vpop.permute.xlu1 %6451  ;;  %v12915_v62 = vpop.permute.xlu2 %6201  ;;  %v6669_v21 = vsel %vm1086_vm7, %v6637_v18, %v12589_v24 }
 0xacc   : > { %v6322_v38 = vpop.permute.xlu0 %6321  ;;  %v6701_v48 = vsel %vm1095_vm8, %v6669_v21, %v12875_v63 }
 0xacd   : > { %v6731_v30 = vsel %vm1104_vm9, %v6699_v14, %v6322_v38  ;;  %v7951_v14 = vld [vmem:[#allocation4 + $0x68] sm:$0xff] }
 0xace   : > { %v6763_v61 = vsel %vm1113_vm11, %v6731_v30, %v6450_v49  ;;  %v13986_v38 = vld [vmem:[#allocation32_spill] sm:$0xff] }
 0xacf   : > { %7265 = vmatmul.msk.f32.gmra.mxu0 %vm13977_vm12, %v6763_v61  ;;  %v6542_v30 = vsel %vm380_vm0, %v7951_v14, %v13986_v38  ;;  %v13988_v61 = vld [vmem:[#allocation54_spill] sm:$0xff]  ;;  %v13999_v38 = vld [vmem:[#allocation139_spill] sm:$0xff]  ;;  %vm14016_vm12 = vmmov %vm13620_vm1 }
 0xad0   : > { %v6574_v24 = vsel %vm402_vm2, %v6542_v30, %v13988_v61  ;;  %v14000_v30 = vld [vmem:[#allocation152_spill] sm:$0xff] }
 0xad1   : > { %6489 = vrot.lane.b32.xlu1 %v12926_v36, %s7975_s30  ;;  %6233 = vrot.lane.b32.xlu2 %v5439_v39, %s7973_s28  ;;  %v6606_v63 = vsel %vm1068_vm5, %v6574_v24, %v13989_v7 }
 0xad2   : > { %6351 = vrot.lane.b32.xlu0 %v5466_v8, %s7974_s29  ;;  %v6638_v39 = vsel %vm1077_vm6, %v6606_v63, %v13990_v5 }
 0xad3   : > { %v6454_v20 = vpop.permute.xlu1 %6453  ;;  %v12938_v27 = vpop.permute.xlu2 %6203  ;;  %v6670_v2 = vsel %vm1086_vm7, %v6638_v39, %v12565_v54  ;;  %v7954_v39 = vld [vmem:[#allocation4 + $0x90] sm:$0xff] }
 0xad4   : > { %v6324_v52 = vpop.permute.xlu0 %6323  ;;  %v6702_v4 = vsel %vm1095_vm8, %v6670_v2, %v12895_v29  ;;  %v5472_v29 = vld [vmem:[#allocation4 + $0x171] sm:$0xff] }
 0xad5   : > { %v6732_v49 = vsel %vm1104_vm9, %v6700_v31, %v6324_v52  ;;  %v7952_v31 = vld [vmem:[#allocation4 + $0x78] sm:$0xff]  ;;  %v13991_v52 = vld [vmem:[#allocation36_spill] sm:$0xff]  ;;  %v14001_v2 = vld [vmem:[#allocation13_spill] sm:$0xff] }
 0xad6   : > { %v6764_v9 = vsel %vm1113_vm11, %v6732_v49, %v6452_v17  ;;  %v6543_v49 = vsel %vm380_vm0, %v7952_v31, %v13991_v52  ;;  %v14005_v52 = vld [vmem:[#allocation94_spill] sm:$0xff] }
 0xad7   : > { %7266 = vmatmul.msk.f32.gmra.mxu0 %vm13982_vm13, %v6764_v9  ;;  %v13993_v9 = vld [vmem:[#allocation26_spill] sm:$0xff]  ;;  %vm14017_vm13 = vmmov %vm13620_vm1 }
 0xad8   : > { %v6575_v54 = vsel %vm402_vm2, %v6543_v49, %v13993_v9 }
 0xad9   : > { %6481 = vrot.lane.b32.xlu1 %v5499_v33, %s7975_s30  ;;  %6225 = vrot.lane.b32.xlu2 %v5435_v12, %s7973_s28  ;;  %v6607_v56 = vsel %vm1068_vm5, %v6575_v54, %v13994_v10 }
 0xada   : > { %6361 = vrot.lane.b32.xlu0 %v5471_v16, %s7974_s29  ;;  %v6639_v33 = vsel %vm1077_vm6, %v6607_v56, %v13995_v60  ;;  %v7955_v60 = vld [vmem:[#allocation4 + $0x98] sm:$0xff] }
 0xadb   : > { %v6456_v41 = vpop.permute.xlu1 %6455  ;;  %v12958_v6 = vpop.permute.xlu2 %6205  ;;  %v6671_v12 = vsel %vm1086_vm7, %v6639_v33, %v12535_v58  ;;  %v14006_v33 = vld [vmem:[#allocation40_spill] sm:$0xff] }
 0xadc   : > { %v6326_v50 = vpop.permute.xlu0 %6325  ;;  %v6703_v16 = vsel %vm1095_vm8, %v6671_v12, %v12915_v62  ;;  %v5468_v62 = vld [vmem:[#allocation4 + $0x141] sm:$0xff]  ;;  %v6546_v12 = vsel %vm380_vm0, %v7955_v60, %v14006_v33 }
 0xadd   : > { %v6733_v19 = vsel %vm1104_vm9, %v6701_v48, %v6326_v50  ;;  %v13996_v48 = vld [vmem:[#allocation11_spill] sm:$0xff] }
 0xade   : > { %v6765_v17 = vsel %vm1113_vm11, %v6733_v19, %v6454_v20  ;;  %v13997_v19 = vld [vmem:[#allocation68_spill] sm:$0xff] }
 0xadf   : > { %7267 = vmatmul.msk.f32.gmra.mxu0 %vm13987_vm14, %v6765_v17  ;;  %v13998_v17 = vld [vmem:[#allocation79_spill] sm:$0xff]  ;;  %vm14018_vm14 = vmmov %vm13620_vm1 }
 0xae1   : > { %6491 = vrot.lane.b32.xlu1 %v12969_v15, %s7975_s30  ;;  %6235 = vrot.lane.b32.xlu2 %v5440_v45, %s7973_s28 }
 0xae2   : > { %6353 = vrot.lane.b32.xlu0 %v5467_v42, %s7974_s29 }
 0xae3   : > { %v6458_v28 = vpop.permute.xlu1 %6457  ;;  %v12981_v8 = vpop.permute.xlu2 %6207 }
 0xae4   : > { %v6328_v43 = vpop.permute.xlu0 %6327 }
 0xae5   : > { %v6734_v0 = vsel %vm1104_vm9, %v6702_v4, %v6328_v43  ;;  %v14003_v4 = vld [vmem:[#allocation63_spill] sm:$0xff]  ;;  %v5469_v43 = vld [vmem:[#allocation4 + $0x151] sm:$0xff] }
 0xae6   : > { %v6766_v20 = vsel %vm1113_vm11, %v6734_v0, %v6456_v41  ;;  %v7953_v41 = vld [vmem:[#allocation4 + $0x80] sm:$0xff] }
 0xae7   : > { %7268 = vmatmul.msk.f32.gmra.mxu0 %vm13992_vm15, %v6766_v20  ;;  %v6544_v50 = vsel %vm380_vm0, %v7953_v41, %v13996_v48  ;;  %v5505_v0 = vld [vmem:[#allocation4 + $0x182] sm:$0xff]  ;;  %v14004_v20 = vld [vmem:[#allocation86_spill] sm:$0xff]  ;;  %vm14019_vm15 = vmmov %vm13620_vm1 }
 0xae8   : > { %v6576_v58 = vsel %vm402_vm2, %v6544_v50, %v13997_v19  ;;  %v14010_v41 = vld [vmem:[#allocation95_spill] sm:$0xff] }
 0xae9   : > { %6483 = vrot.lane.b32.xlu1 %v5500_v35, %s7975_s30  ;;  %6227 = vrot.lane.b32.xlu2 %v5436_v22, %s7973_s28  ;;  %v6608_v14 = vsel %vm1068_vm5, %v6576_v58, %v13998_v17 }
 0xaea   : > { %6363 = vrot.lane.b32.xlu0 %v5472_v29, %s7974_s29  ;;  %v6640_v61 = vsel %vm1077_vm6, %v6608_v14, %v14000_v30  ;;  %v7956_v30 = vld [vmem:[#allocation4 + $0xa8] sm:$0xff] }
 0xaeb   : > { %v6460_v59 = vpop.permute.xlu1 %6459  ;;  %v13001_v37 = vpop.permute.xlu2 %6209  ;;  %v6672_v24 = vsel %vm1086_vm7, %v6640_v61, %v12621_v3  ;;  %v14011_v61 = vld [vmem:[#allocation23_spill] sm:$0xff] }
 0xaec   : > { %v6330_v47 = vpop.permute.xlu0 %6329  ;;  %v6704_v63 = vsel %vm1095_vm8, %v6672_v24, %v12938_v27  ;;  %v5441_v27 = vld [vmem:[#allocation4 + $0x180] sm:$0xff]  ;;  %v6547_v24 = vsel %vm380_vm0, %v7956_v30, %v14011_v61  ;;  %v14020_v30 = vld [vmem:[#allocation164_spill] sm:$0xff] }
 0xaed   : > { %v6735_v18 = vsel %vm1104_vm9, %v6703_v16, %v6330_v47  ;;  %v5442_v16 = vld [vmem:[#allocation4 + $0x188] sm:$0xff]  ;;  %v5501_v47 = vld [vmem:[#allocation4 + $0x152] sm:$0xff] }
 0xaee   : > { %v6767_v21 = vsel %vm1113_vm11, %v6735_v18, %v6458_v28  ;;  %v6545_v28 = vsel %vm380_vm0, %v7954_v39, %v14001_v2  ;;  %v14009_v18 = vld [vmem:[#allocation82_spill] sm:$0xff] }
 0xaef   : > { %7269 = vmatmul.msk.f32.gmra.mxu0 %vm13620_vm1, %v6767_v21  ;;  %v6577_v3 = vsel %vm402_vm2, %v6545_v28, %v14003_v4 }
 0xaf0   : > { %v6609_v31 = vsel %vm1068_vm5, %v6577_v3, %v14004_v20 }
 0xaf1   : > { %6365 = vrot.lane.b32.xlu1 %v13999_v38, %s7974_s29  ;;  %6109 = vrot.lane.b32.xlu2 %v12926_v36, %s7972_s27  ;;  %v6641_v49 = vsel %vm1077_vm6, %v6609_v31, %v14005_v52 }
 0xaf2   : > { %6355 = vrot.lane.b32.xlu0 %v5468_v62, %s7974_s29  ;;  %v6673_v9 = vsel %vm1086_vm7, %v6641_v49, %v12584_v32 }
 0xaf3   : > { %v6462_v45 = vpop.permute.xlu1 %6461  ;;  %v13023_v7 = vpop.permute.xlu2 %6211  ;;  %v6705_v22 = vsel %vm1095_vm8, %v6673_v9, %v12958_v6  ;;  %v5437_v6 = vld [vmem:[#allocation4 + $0x150] sm:$0xff] }
 0xaf4   : > { %v6332_v42 = vpop.permute.xlu0 %6331 }
 0xaf5   : > { %v6736_v5 = vsel %vm1104_vm9, %v6704_v63, %v6332_v42  ;;  %v14014_v42 = vld [vmem:[#allocation80_spill] sm:$0xff] }
 0xaf6   : > { %v6768_v36 = vsel %vm1113_vm11, %v6736_v5, %v6460_v59  ;;  %v14008_v59 = vld [vmem:[#allocation22_spill] sm:$0xff] }
 0xaf7   : > { %7270 = vmatmul.msk.f32.gmra.mxu0 %vm14002_vm3, %v6768_v36  ;;  %v6578_v32 = vsel %vm402_vm2, %v6546_v12, %v14008_v59  ;;  %v14015_v36 = vld [vmem:[#allocation165_spill] sm:$0xff]  ;;  %v5476_v59 = vld [vmem:[#allocation4 + $0x1a1] sm:$0xff]  ;;  %vm14021_vm3 = vmmov %vm13620_vm1 }
 0xaf8   : > { %v6610_v21 = vsel %vm1068_vm5, %v6578_v32, %v14009_v18  ;;  %v5475_v32 = vld [vmem:[#allocation4 + $0x199] sm:$0xff] }
 0xaf9   : > { %6357 = vrot.lane.b32.xlu1 %v5469_v43, %s7974_s29  ;;  %6493 = vrot.lane.b32.xlu2 %v5505_v0, %s7975_s30  ;;  %v6642_v48 = vsel %vm1077_vm6, %v6610_v21, %v14010_v41  ;;  %v5508_v41 = vld [vmem:[#allocation4 + $0x1a2] sm:$0xff] }
 0xafa   : > { %6237 = vrot.lane.b32.xlu0 %v5441_v27, %s7973_s28  ;;  %v6674_v50 = vsel %vm1086_vm7, %v6642_v48, %v12548_v34  ;;  %v5438_v34 = vld [vmem:[#allocation4 + $0x158] sm:$0xff]  ;;  %v5444_v48 = vld [vmem:[#allocation4 + $0x1a0] sm:$0xff] }
 0xafb   : > { %v6464_v54 = vpop.permute.xlu1 %6463  ;;  %v13043_v35 = vpop.permute.xlu2 %6213  ;;  %v6706_v17 = vsel %vm1095_vm8, %v6674_v50, %v12981_v8  ;;  %v7957_v8 = vld [vmem:[#allocation4 + $0x189] sm:$0xff]  ;;  %v5470_v27 = vld [vmem:[#allocation4 + $0x159] sm:$0xff] }
 0xafc   : > { %v6334_v10 = vpop.permute.xlu0 %6333 }
 0xafd   : > { %v6737_v56 = vsel %vm1104_vm9, %v6705_v22, %v6334_v10  ;;  %v5443_v22 = vld [vmem:[#allocation4 + $0x198] sm:$0xff] }
 0xafe   : > { %v6769_v29 = vsel %vm1113_vm11, %v6737_v56, %v6462_v45  ;;  %v14013_v45 = vld [vmem:[#allocation81_spill] sm:$0xff]  ;;  %v5507_v10 = vld [vmem:[#allocation4 + $0x19a] sm:$0xff] }
 0xaff   : > { %7271 = vmatmul.msk.f32.gmra.mxu0 %vm14007_vm4, %v6769_v29  ;;  %v6579_v63 = vsel %vm402_vm2, %v6547_v24, %v14013_v45  ;;  %vm14022_vm4 = vmmov %vm13620_vm1 }
 0xb00   : > { %v6611_v5 = vsel %vm1068_vm5, %v6579_v63, %v14014_v42 }
 0xb01   : > { %6239 = vrot.lane.b32.xlu1 %v5442_v16, %s7973_s28  ;;  %6485 = vrot.lane.b32.xlu2 %v5501_v47, %s7975_s30  ;;  %v6643_v39 = vsel %vm1077_vm6, %v6611_v5, %v14015_v36 }
 0xb02   : > { %6229 = vrot.lane.b32.xlu0 %v5437_v6, %s7973_s28  ;;  %v6675_v2 = vsel %vm1086_vm7, %v6643_v39, %v12659_v55 }
 0xb03   : > { %v6466_v19 = vpop.permute.xlu1 %6465  ;;  %v6216_v58 = vpop.permute.xlu2 %6215  ;;  %v6707_v3 = vsel %vm1095_vm8, %v6675_v2, %v13001_v37  ;;  %v6708_v37 = vsel %vm1095_vm8, %v12616_v25, %v13023_v7  ;;  %v6709_v25 = vsel %vm1095_vm8, %v12568_v46, %v13043_v35 }
 0xb04   : > { %v6336_v14 = vpop.permute.xlu0 %6335  ;;  %v6710_v46 = vsel %vm1095_vm8, %v12700_v51, %v6216_v58 }
 0xb05   : > { %v6738_v38 = vsel %vm1104_vm9, %v6706_v17, %v6336_v14 }
 0xb06   : > { %v6770_v62 = vsel %vm1113_vm11, %v6738_v38, %v6464_v54 }
 0xb07   : > { %7272 = vmatmul.msk.f32.gmra.mxu0 %vm14012_vm10, %v6770_v62  ;;  %vm14023_vm10 = vmmov %vm13620_vm1 }
 0xb09   : > { %6231 = vrot.lane.b32.xlu1 %v5438_v34, %s7973_s28  ;;  %6367 = vrot.lane.b32.xlu2 %v7957_v8, %s7974_s29 }
 0xb0a   : > { %6111 = vrot.lane.b32.xlu0 %v12969_v15, %s7972_s27  ;;  %v5506_v15 = vld [vmem:[#allocation4 + $0x18a] sm:$0xff] }
 0xb0b   : > { %v6468_v28 = vpop.permute.xlu1 %6467  ;;  %v6218_v4 = vpop.permute.xlu2 %6217 }
 0xb0c   : > { %v6338_v43 = vpop.permute.xlu0 %6337 }
 0xb0d   : > { %v6739_v20 = vsel %vm1104_vm9, %v6707_v3, %v6338_v43 }
 0xb0e   : > { %v6771_v31 = vsel %vm1113_vm11, %v6739_v20, %v6466_v19  ;;  %v6711_v19 = vsel %vm1095_vm8, %v12654_v11, %v6218_v4 }
 0xb0f   : > { %7273 = vmatmul.msk.f32.gmra.mxu0 %vm14016_vm12, %v6771_v31  ;;  %vm14024_vm12 = vmmov %vm13620_vm1 }
 0xb11   : > { %6113 = vrot.lane.b32.xlu1 %v5505_v0, %s7972_s27  ;;  %6359 = vrot.lane.b32.xlu2 %v5470_v27, %s7974_s29  ;;  %v5502_v0 = vld [vmem:[#allocation4 + $0x15a] sm:$0xff] }
 0xb12   : > { %6495 = vrot.lane.b32.xlu0 %v5506_v15, %s7975_s30 }
 0xb13   : > { %v6470_v55 = vpop.permute.xlu1 %6469  ;;  %v6220_v52 = vpop.permute.xlu2 %6219 }
 0xb14   : > { %v6340_v49 = vpop.permute.xlu0 %6339  ;;  %v6712_v61 = vsel %vm1095_vm8, %v14020_v30, %v6220_v52 }
 0xb15   : > { %v6740_v9 = vsel %vm1104_vm9, %v6708_v37, %v6340_v49 }
 0xb16   : > { %v6772_v54 = vsel %vm1113_vm11, %v6740_v9, %v6468_v28  ;;  %v13133_v28 = vld [vmem:[%s13249_s9] ss:$0 sm:$0xff] }
 0xb17   : > { %7274 = vmatmul.msk.f32.gmra.mxu0 %vm14017_vm13, %v6772_v54  ;;  %vm14025_vm13 = vmmov %vm13620_vm1 }
 0xb19   : > { %6241 = vrot.lane.b32.xlu2 %v5443_v22, %s7973_s28  ;;  %6497 = vrot.lane.b32.xlu1 %v5507_v10, %s7975_s30 }
 0xb1a   : > { %6487 = vrot.lane.b32.xlu0 %v5502_v0, %s7975_s30 }
 0xb1b   : > { %v6472_v56 = vpop.permute.xlu1 %6471  ;;  %v6222_v29 = vpop.permute.xlu2 %6221 }
 0xb1c   : > { %v6915_v7 = vpop.f32.mrf.mxu0  ;;  %v6342_v60 = vpop.permute.xlu0 %6341  ;;  %v6713_v5 = vsel %vm1095_vm8, %v12732_v1, %v6222_v29 }
 0xb1d   : > { %v6741_v33 = vsel %vm1104_vm9, %v6709_v25, %v6342_v60  ;;  %v6916_v27 = vadd.f32 %v13133_v28, %v6915_v7 }
 0xb1e   : > { %v6773_v12 = vsel %vm1113_vm11, %v6741_v33, %v6470_v55 }
 0xb1f   : > { %7275 = vmatmul.msk.f32.gmra.mxu0 %vm14018_vm14, %v6773_v12  ;;  %v7011_v55 = vmax.f32 %v6916_v27, 0.0  ;;  %vm14026_vm14 = vmmov %vm13620_vm1  ;;  %v14030_v27 = vld [vmem:[#allocation143_spill] sm:$0xff] }
 0xb21   : > { %6115 = vrot.lane.b32.xlu2 %v5506_v15, %s7972_s27  ;;  %6371 = vrot.lane.b32.xlu1 %v5476_v59, %s7974_s29 }
 0xb22   : > { %6369 = vrot.lane.b32.xlu0 %v5475_v32, %s7974_s29  ;;  %s7295_s29 = sshll.u32 %s14041_s14, 4 }
 0xb23   : > { %v6474_v16 = vpop.permute.xlu1 %6473  ;;  %v6224_v18 = vpop.permute.xlu2 %6223  ;;  %s379_s18 = scalar_lea.vmem %s13250_s10, %s7295_s29 }
 0xb24   : > { %v6918_v35 = vpop.f32.mrf.mxu0  ;;  %v6344_v47 = vpop.permute.xlu0 %6343  ;;  %v6714_v43 = vsel %vm1095_vm8, %v12697_v57, %v6224_v18 }
 0xb25   : > { %v6742_v21 = vsel %vm1104_vm9, %v6710_v46, %v6344_v47  ;;  %v6919_v22 = vadd.f32 %v13133_v28, %v6918_v35 }
 0xb26   : > { %v6774_v6 = vsel %vm1113_vm11, %v6742_v21, %v6472_v56 }
 0xb27   : > { %7276 = vmatmul.msk.f32.gmra.mxu0 %vm14019_vm15, %v6774_v6  ;;  %v7012_v0 = vmax.f32 %v6919_v22, 0.0  ;;  %vm14027_vm15 = vmmov %vm13620_vm1 }
 0xb29   : > { %6499 = vrot.lane.b32.xlu2 %v5508_v41, %s7975_s30 }
 0xb2a   : > { %6243 = vrot.lane.b32.xlu0 %v5444_v48, %s7973_s28 }
 0xb2b   : > { %v6476_v50 = vpop.permute.xlu1 %6475  ;;  %v6234_v38 = vpop.permute.xlu2 %6233 }
 0xb2c   : > { %v6921_v51 = vpop.f32.mrf.mxu0  ;;  %v6346_v58 = vpop.permute.xlu0 %6345  ;;  %v6719_v37 = vsel %vm1095_vm8, %v12778_v44, %v6234_v38 }
 0xb2d   : > { %v6743_v17 = vsel %vm1104_vm9, %v6711_v19, %v6346_v58  ;;  %v6922_v60 = vadd.f32 %v13133_v28, %v6921_v51 }
 0xb2e   : > { %v6775_v14 = vsel %vm1113_vm11, %v6743_v17, %v6474_v16 }
 0xb2f   : > { %7277 = vmatmul.msk.f32.gmra.mxu0 %vm13620_vm1, %v6775_v14  ;;  %v7013_v59 = vmax.f32 %v6922_v60, 0.0  ;;  %v7958_v60 = vld [vmem:[#allocation4 + $0x168] sm:$0xff] }
 0xb33   : > { %v6478_v62 = vpop.permute.xlu1 %6477  ;;  %v6226_v11 = vpop.permute.xlu2 %6225 }
 0xb34   : > { %v6924_v24 = vpop.f32.mrf.mxu0  ;;  %v6348_v45 = vpop.permute.xlu0 %6347  ;;  %v6715_v29 = vsel %vm1095_vm8, %v12619_v23, %v6226_v11 }
 0xb35   : > { %v6744_v63 = vsel %vm1104_vm9, %v6712_v61, %v6348_v45  ;;  %v6925_v47 = vadd.f32 %v13133_v28, %v6924_v24 }
 0xb36   : > { %v6776_v34 = vsel %vm1113_vm11, %v6744_v63, %v6476_v50 }
 0xb37   : > { %7278 = vmatmul.msk.f32.gmra.mxu0 %vm14021_vm3, %v6776_v34  ;;  %v7014_v6 = vmax.f32 %v6925_v47, 0.0  ;;  %vm14029_vm3 = vmmov %vm13620_vm1 }
 0xb3b   : > { %v6480_v42 = vpop.permute.xlu1 %6479  ;;  %v6236_v4 = vpop.permute.xlu2 %6235 }
 0xb3c   : > { %v6927_v8 = vpop.f32.mrf.mxu0  ;;  %v6350_v36 = vpop.permute.xlu0 %6349  ;;  %v6720_v16 = vsel %vm1095_vm8, %v12758_v13, %v6236_v4 }
 0xb3d   : > { %v6745_v39 = vsel %vm1104_vm9, %v6713_v5, %v6350_v36  ;;  %v6928_v51 = vadd.f32 %v13133_v28, %v6927_v8 }
 0xb3e   : > { %v6777_v2 = vsel %vm1113_vm11, %v6745_v39, %v6478_v62  ;;  %v14028_v62 = vld [vmem:[#allocation150_spill] sm:$0xff] }
 0xb3f   : > { %7279 = vmatmul.msk.f32.gmra.mxu0 %vm14022_vm4, %v6777_v2  ;;  %v7015_v17 = vmax.f32 %v6928_v51, 0.0  ;;  %vm14031_vm4 = vmmov %vm13620_vm1 }
 0xb43   : > { %v6490_v3 = vpop.permute.xlu1 %6489  ;;  %v6228_v54 = vpop.permute.xlu2 %6227 }
 0xb44   : > { %v6930_v20 = vpop.f32.mrf.mxu0  ;;  %v6352_v1 = vpop.permute.xlu0 %6351  ;;  %v6716_v48 = vsel %vm1095_vm8, %v12761_v53, %v6228_v54 }
 0xb45   : > { %v6746_v31 = vsel %vm1104_vm9, %v6714_v43, %v6352_v1  ;;  %v6931_v45 = vadd.f32 %v13133_v28, %v6930_v20 }
 0xb46   : > { %v6778_v15 = vsel %vm1113_vm11, %v6746_v31, %v6480_v42 }
 0xb47   : > { %7280 = vmatmul.msk.f32.gmra.mxu0 %vm14023_vm10, %v6778_v15  ;;  %v7016_v11 = vmax.f32 %v6931_v45, 0.0  ;;  %vm14034_vm10 = vmmov %vm13620_vm1 }
 0xb4b   : > { %v6482_v52 = vpop.permute.xlu1 %6481  ;;  %v6110_v12 = vpop.permute.xlu2 %6109 }
 0xb4c   : > { %7043 = vxpose.xlu0.b32.start [1/16] (narrow) %v7011_v55, 8  ;;  %v6933_v49 = vpop.f32.mrf.mxu0  ;;  %v6362_v9 = vpop.permute.xlu0 %6361  ;;  %v6689_v30 = vsel %vm1086_vm7, %v14028_v62, %v6110_v12  ;;  %v14038_v62 = vld [vmem:[#allocation89_spill] sm:$0xff] }
 0xb4d   : > { %v6751_v57 = vsel %vm1104_vm9, %v6719_v37, %v6362_v9  ;;  %v6934_v2 = vadd.f32 %v13133_v28, %v6933_v49 }
 0xb4e   : > { %v6783_v10 = vsel %vm1113_vm11, %v6751_v57, %v6490_v3 }
 0xb4f   : > { %7285 = vmatmul.msk.f32.vlgmr.msrb.gmra.mxu2 %vm14024_vm12, %v6783_v10  ;;  %v7017_v43 = vmax.f32 %v6934_v2, 0.0 }
 0xb53   : > { %v6492_v56 = vpop.permute.xlu1 %6491  ;;  %v6494_v21 = vpop.permute.xlu2 %6493 }
 0xb54   : > { %7044 = vxpose.xlu0.b32.cont [2/16] (narrow) %v7012_v0, 8  ;;  %v6936_v25 = vpop.f32.mrf.mxu0  ;;  %v6354_v44 = vpop.permute.xlu0 %6353 }
 0xb55   : > { %v6747_v7 = vsel %vm1104_vm9, %v6715_v29, %v6354_v44  ;;  %v6937_v31 = vadd.f32 %v13133_v28, %v6936_v25 }
 0xb56   : > { %v6779_v33 = vsel %vm1113_vm11, %v6747_v7, %v6482_v52 }
 0xb57   : > { %7281 = vmatmul.msk.f32.gmra.mxu0 %vm14025_vm13, %v6779_v33  ;;  %v7018_v37 = vmax.f32 %v6937_v31, 0.0  ;;  %v14032_v33 = vld [vmem:[#allocation41_spill] sm:$0xff] }
 0xb58   : > { %v6563_v12 = vsel %vm380_vm0, %v7958_v60, %v14032_v33  ;;  %vm14037_vm0 = vmmov %vm13620_vm1 }
 0xb5b   : > { %v6484_v32 = vpop.permute.xlu1 %6483  ;;  %v6486_v14 = vpop.permute.xlu2 %6485 }
 0xb5c   : > { %7045 = vxpose.xlu0.b32.cont [3/16] (narrow) %v7013_v59, 8  ;;  %v6939_v46 = vpop.f32.mrf.mxu0  ;;  %v6364_v23 = vpop.permute.xlu0 %6363 }
 0xb5d   : > { %v6752_v35 = vsel %vm1104_vm9, %v6720_v16, %v6364_v23  ;;  %v6940_v22 = vadd.f32 %v13133_v28, %v6939_v46 }
 0xb5e   : > { %v6784_v18 = vsel %vm1113_vm11, %v6752_v35, %v6492_v56  ;;  %v14036_v35 = vld [vmem:[#allocation100_spill] sm:$0xff] }
 0xb5f   : > { %7286 = vmatmul.msk.f32.gmra.mxu2 %vm14026_vm14, %v6784_v18  ;;  %v7019_v29 = vmax.f32 %v6940_v22, 0.0 }
 0xb63   : > { %v6366_v41 = vpop.permute.xlu1 %6365  ;;  %v6368_v8 = vpop.permute.xlu2 %6367 }
 0xb64   : > { %7046 = vxpose.xlu0.b32.cont [4/16] (narrow) %v7014_v6, 8  ;;  %v6942_v50 = vpop.f32.mrf.mxu0  ;;  %v6356_v13 = vpop.permute.xlu0 %6355 }
 0xb65   : > { %v6748_v19 = vsel %vm1104_vm9, %v6716_v48, %v6356_v13  ;;  %v6943_v46 = vadd.f32 %v13133_v28, %v6942_v50 }
 0xb66   : > { %v6780_v58 = vsel %vm1113_vm11, %v6748_v19, %v6484_v32  ;;  %v14033_v32 = vld [vmem:[#allocation78_spill] sm:$0xff] }
 0xb67   : > { %7282 = vmatmul.msk.f32.gmra.mxu0 %vm14027_vm15, %v6780_v58  ;;  %v6595_v16 = vsel %vm402_vm2, %v6563_v12, %v14033_v32  ;;  %v7020_v6 = vmax.f32 %v6943_v46, 0.0  ;;  %vm14039_vm2 = vmmov %vm14037_vm0 }
 0xb6b   : > { %v6358_v38 = vpop.permute.xlu1 %6357  ;;  %v6360_v55 = vpop.permute.xlu2 %6359 }
 0xb6c   : > { %7047 = vxpose.xlu0.b32.cont [5/16] (narrow) %v7015_v17, 8  ;;  %v6238_v61 = vpop.permute.xlu0 %6237  ;;  %v6945_v53 = vpop.f32.mrf.mxu0 }
 0xb6d   : > { %v6721_v24 = vsel %vm1095_vm8, %v6689_v30, %v6238_v61  ;;  %v6946_v51 = vadd.f32 %v13133_v28, %v6945_v53 }
 0xb6e   : > { %v6753_v63 = vsel %vm1104_vm9, %v6721_v24, %v6366_v41 }
 0xb6f   : > { %v6785_v34 = vsel %vm1113_vm11, %v6753_v63, %v6494_v21  ;;  %v7021_v17 = vmax.f32 %v6946_v51, 0.0 }
 0xb70   : > { %7287 = vmatmul.msk.f32.gmra.mxu2 %vm13620_vm1, %v6785_v34 }
 0xb73   : > { %v6240_v36 = vpop.permute.xlu1 %6239  ;;  %v6242_v10 = vpop.permute.xlu2 %6241 }
 0xb74   : > { %7048 = vxpose.xlu0.b32.cont [6/16] (narrow) %v7016_v11, 8  ;;  %v6230_v42 = vpop.permute.xlu0 %6229  ;;  %v6948_v5 = vpop.f32.mrf.mxu0 }
 0xb75   : > { %v6717_v39 = vsel %vm1095_vm8, %v12729_v26, %v6230_v42  ;;  %v6949_v34 = vadd.f32 %v13133_v28, %v6948_v5 }
 0xb76   : > { %v6749_v4 = vsel %vm1104_vm9, %v6717_v39, %v6358_v38 }
 0xb77   : > { %v6781_v3 = vsel %vm1113_vm11, %v6749_v4, %v6486_v14 }
 0xb78   : > { %7283 = vmatmul.msk.f32.gmra.mxu0 %vm14029_vm3, %v6781_v3 }
 0xb7b   : > { %v6232_v52 = vpop.permute.xlu1 %6231  ;;  %v6116_v41 = vpop.permute.xlu2 %6115 }
 0xb7c   : > { %7049 = vxpose.xlu0.b32.cont [7/16] (narrow) %v7017_v43, 8  ;;  %v6112_v20 = vpop.permute.xlu0 %6111  ;;  %v6951_v1 = vpop.f32.mrf.mxu0  ;;  %v6718_v0 = vsel %vm1095_vm8, %v12657_v40, %v6232_v52  ;;  %v14035_v40 = vld [vmem:[#allocation163_spill] sm:$0xff]  ;;  %v6692_v30 = vsel %vm1086_vm7, %v14038_v62, %v6116_v41 }
 0xb7d   : > { %v6690_v15 = vsel %vm1086_vm7, %v14030_v27, %v6112_v20  ;;  %v6750_v25 = vsel %vm1104_vm9, %v6718_v0, %v6360_v55  ;;  %v6627_v23 = vsel %vm1068_vm5, %v6595_v16, %v14035_v40  ;;  %v6952_v2 = vadd.f32 %v13133_v28, %v6951_v1 }
 0xb7e   : > { %v6722_v26 = vsel %vm1095_vm8, %v6690_v15, %v6240_v36  ;;  %v6659_v47 = vsel %vm1077_vm6, %v6627_v23, %v14036_v35 }
 0xb7f   : > { %v6754_v49 = vsel %vm1104_vm9, %v6722_v26, %v6368_v8  ;;  %v7022_v8 = vmax.f32 %v6949_v34, 0.0  ;;  %v7023_v3 = vmax.f32 %v6952_v2, 0.0 }
 0xb83   : > { %v6114_v56 = vpop.permute.xlu1 %6113  ;;  %v6500_v38 = vpop.permute.xlu2 %6499 }
 0xb84   : > { %7050 = vxpose.xlu0.b32.cont [8/16] (narrow) %v7018_v37, 8  ;;  %v6496_v9 = vpop.permute.xlu0 %6495  ;;  %v6954_v54 = vpop.f32.mrf.mxu0  ;;  %v6691_v18 = vsel %vm1086_vm7, %v6659_v47, %v6114_v56 }
 0xb85   : > { %v6786_v57 = vsel %vm1113_vm11, %v6754_v49, %v6496_v9  ;;  %v6723_v48 = vsel %vm1095_vm8, %v6691_v18, %v6242_v10  ;;  %v6955_v20 = vadd.f32 %v13133_v28, %v6954_v54 }
 0xb86   : > { %7288 = vmatmul.msk.f32.gmra.mxu2 %vm14031_vm4, %v6786_v57 }
 0xb87   : > { %v7024_v27 = vmax.f32 %v6955_v20, 0.0 }
 0xb8b   : > { %v6498_v21 = vpop.permute.xlu1 %6497 }
 0xb8c   : > { %7051 = vxpose.xlu0.b32.cont [9/16] (narrow) %v7019_v29, 8  ;;  %v6488_v44 = vpop.permute.xlu0 %6487  ;;  %v6957_v7 = vpop.f32.mrf.mxu0 }
 0xb8d   : > { %v6782_v59 = vsel %vm1113_vm11, %v6750_v25, %v6488_v44  ;;  %v6958_v52 = vadd.f32 %v13133_v28, %v6957_v7 }
 0xb8e   : > { %7284 = vmatmul.msk.f32.gmra.mxu0 %vm14034_vm10, %v6782_v59 }
 0xb8f   : > { %v7025_v1 = vmax.f32 %v6958_v52, 0.0 }
 0xb93   : > { %v6372_v14 = vpop.permute.xlu1 %6371 }
 0xb94   : > { %7052 = vxpose.xlu0.b32.cont [10/16] (narrow) %v7020_v6, 8  ;;  %v6370_v13 = vpop.permute.xlu0 %6369  ;;  %v6960_v19 = vpop.f32.mrf.mxu0 }
 0xb95   : > { %v6755_v50 = vsel %vm1104_vm9, %v6723_v48, %v6370_v13  ;;  %v6961_v9 = vadd.f32 %v13133_v28, %v6960_v19 }
 0xb96   : > { %v6787_v58 = vsel %vm1113_vm11, %v6755_v50, %v6498_v21 }
 0xb97   : > { %7289 = vmatmul.msk.f32.gmra.mxu2 %vm14037_vm0, %v6787_v58  ;;  %v7026_v54 = vmax.f32 %v6961_v9, 0.0 }
 0xb9c   : > { %v6244_v61 = vpop.permute.xlu0 %6243  ;;  %v6963_v24 = vpop.f32.mrf.mxu0  ;;  %7053 = vxpose.xlu0.b32.cont [11/16] (narrow) %v7021_v17, 8 }
 0xb9d   : > { %v6724_v45 = vsel %vm1095_vm8, %v6692_v30, %v6244_v61  ;;  %v6964_v63 = vadd.f32 %v13133_v28, %v6963_v24 }
 0xb9e   : > { %v6756_v53 = vsel %vm1104_vm9, %v6724_v45, %v6372_v14 }
 0xb9f   : > { %v7027_v11 = vmax.f32 %v6964_v63, 0.0  ;;  %v6788_v42 = vsel %vm1113_vm11, %v6756_v53, %v6500_v38 }
 0xba0   : > { %7290 = vmatmul.msk.f32.gmra.mxu2 %vm14039_vm2, %v6788_v42 }
 0xba1   : > { %7075 = vxpose.xlu1.b32.start [1/16] (narrow) %v7027_v11, 8 }
 0xba4   : > { %v6966_v36 = vpop.f32.mrf.mxu0  ;;  %7054 = vxpose.xlu0.b32.cont [12/16] (narrow) %v7022_v8, 8 }
 0xba5   : > { %v6967_v39 = vadd.f32 %v13133_v28, %v6966_v36 }
 0xba7   : > { %v7028_v4 = vmax.f32 %v6967_v39, 0.0 }
 0xba9   : > { %7076 = vxpose.xlu1.b32.cont [2/16] (narrow) %v7028_v4, 8 }
 0xbac   : > { %v6969_v43 = vpop.f32.mrf.mxu0  ;;  %7055 = vxpose.xlu0.b32.cont [13/16] (narrow) %v7023_v3, 8 }
 0xbad   : > { %v6970_v5 = vadd.f32 %v13133_v28, %v6969_v43 }
 0xbaf   : > { %v7029_v31 = vmax.f32 %v6970_v5, 0.0 }
 0xbb1   : > { %7077 = vxpose.xlu1.b32.cont [3/16] (narrow) %v7029_v31, 8 }
 0xbb4   : > { %v6972_v15 = vpop.f32.mrf.mxu0  ;;  %7056 = vxpose.xlu0.b32.cont [14/16] (narrow) %v7024_v27, 8 }
 0xbb5   : > { %v6973_v55 = vadd.f32 %v13133_v28, %v6972_v15 }
 0xbb7   : > { %v7030_v26 = vmax.f32 %v6973_v55, 0.0 }
 0xbb9   : > { %7078 = vxpose.xlu1.b32.cont [4/16] (narrow) %v7030_v26, 8 }
 0xbbc   : > { %v6975_v37 = vpop.f32.mrf.mxu0  ;;  %7057 = vxpose.xlu0.b32.cont [15/16] (narrow) %v7025_v1, 8 }
 0xbbd   : > { %v6976_v49 = vadd.f32 %v13133_v28, %v6975_v37 }
 0xbbf   : > { %v7031_v57 = vmax.f32 %v6976_v49, 0.0 }
 0xbc1   : > { %7079 = vxpose.xlu1.b32.cont [5/16] (narrow) %v7031_v57, 8 }
 0xbc4   : > { %v6978_v22 = vpop.f32.mrf.mxu0  ;;  %7058 = vxpose.xlu0.b32.end [16/16] (narrow) %v7026_v54, 8 }
 0xbc5   : > { %v6979_v10 = vadd.f32 %v13133_v28, %v6978_v22 }
 0xbc7   : > { %v7032_v0 = vmax.f32 %v6979_v10, 0.0 }
 0xbc9   : > { %7080 = vxpose.xlu1.b32.cont [6/16] (narrow) %v7032_v0, 8 }
 0xbd2   : > { %v6993_v46 = vpop.f32.mrf.mxu2 }
 0xbd3   : > { %v6994_v23 = vadd.f32 %v13133_v28, %v6993_v46 }
 0xbd4   : > { %v6981_v56 = vpop.f32.mrf.mxu0 }
 0xbd5   : > { %v6982_v29 = vadd.f32 %v13133_v28, %v6981_v56  ;;  %v7037_v47 = vmax.f32 %v6994_v23, 0.0 }
 0xbd7   : > { %v7033_v25 = vmax.f32 %v6982_v29, 0.0 }
 0xbd9   : > { %7081 = vxpose.xlu1.b32.cont [7/16] (narrow) %v7033_v25, 8 }
 0xbe2   : > { %v6996_v35 = vpop.f32.mrf.mxu2 }
 0xbe3   : > { %v6997_v18 = vadd.f32 %v13133_v28, %v6996_v35 }
 0xbe4   : > { %v6984_v44 = vpop.f32.mrf.mxu0 }
 0xbe5   : > { %v6985_v7 = vadd.f32 %v13133_v28, %v6984_v44  ;;  %v7038_v6 = vmax.f32 %v6997_v18, 0.0 }
 0xbe7   : > { %v7034_v60 = vmax.f32 %v6985_v7, 0.0 }
 0xbe9   : > { %7082 = vxpose.xlu1.b32.cont [8/16] (narrow) %v7034_v60, 8 }
 0xbf0   : > { %v7059_v30 = vpop.trf.xlu0 }
 0xbf1   : > { %7107 = vst [vmem:[%s379_s18] sm:$0xff] %v7059_v30 }
 0xbf3   : > { %v6999_v21 = vpop.f32.mrf.mxu2 }
 0xbf4   : > { %v7000_v41 = vadd.f32 %v13133_v28, %v6999_v21 }
 0xbf5   : > { %v6987_v33 = vpop.f32.mrf.mxu0 }
 0xbf6   : > { %v6988_v12 = vadd.f32 %v13133_v28, %v6987_v33  ;;  %v7039_v13 = vmax.f32 %v7000_v41, 0.0 }
 0xbf8   : > { %v7035_v59 = vmax.f32 %v6988_v12, 0.0 }
 0xbfa   : > { %7083 = vxpose.xlu1.b32.cont [9/16] (narrow) %v7035_v59, 8 }
 0xc09   : > { %v7002_v48 = vpop.f32.mrf.mxu2 }
 0xc0a   : > { %v7003_v19 = vadd.f32 %v13133_v28, %v7002_v48 }
 0xc0b   : > { %v6990_v32 = vpop.f32.mrf.mxu0 }
 0xc0c   : > { %v6991_v16 = vadd.f32 %v13133_v28, %v6990_v32  ;;  %v7040_v51 = vmax.f32 %v7003_v19, 0.0 }
 0xc0e   : > { %v7036_v40 = vmax.f32 %v6991_v16, 0.0 }
 0xc10   : > { %7084 = vxpose.xlu1.b32.cont [10/16] (narrow) %v7036_v40, 8 }
 0xc18   : > { %7085 = vxpose.xlu1.b32.cont [11/16] (narrow) %v7037_v47, 8 }
 0xc1a   : > { %v7005_v50 = vpop.f32.mrf.mxu2 }
 0xc1b   : > { %v7006_v58 = vadd.f32 %v13133_v28, %v7005_v50 }
 0xc1d   : > { %v7041_v17 = vmax.f32 %v7006_v58, 0.0 }
 0xc20   : > { %7086 = vxpose.xlu1.b32.cont [12/16] (narrow) %v7038_v6, 8 }
 0xc23   : > { %v7008_v14 = vpop.f32.mrf.mxu2 }
 0xc24   : > { %v7009_v38 = vadd.f32 %v13133_v28, %v7008_v14 }
 0xc26   : > { %v7042_v62 = vmax.f32 %v7009_v38, 0.0 }
 0xc28   : > { %7087 = vxpose.xlu1.b32.cont [13/16] (narrow) %v7039_v13, 8 }
 0xc30   : > { %7088 = vxpose.xlu1.b32.cont [14/16] (narrow) %v7040_v51, 8 }
 0xc38   : > { %7089 = vxpose.xlu1.b32.cont [15/16] (narrow) %v7041_v17, 8 }
 0xc40   : > { %7090 = vxpose.xlu1.b32.end [16/16] (narrow) %v7042_v62, 8 }
 0xc6c   : > { %v7091_v61 = vpop.trf.xlu1 }
 0xc6d   : > { %7108 = vst [vmem:[%s379_s18 + $0x8] sm:$0xff] %v7091_v61 }
 0xc6e PF: > { %s20_s13 = sadd.s32 1, %s7965_s13  }
 0xc6f   : > { %p17_p4 = scmp.ge.s32.totalorder %s20_s13, 4  }
 0xc71   :  { %19 = sbr.rel (!%p17_p4) target bundleno = 1 (0x1), region = 99 }

</bundles_post_ra>
